<compile_context>
chip_gen: v7x
topology: tpu7x:2x2x1
jax: 0.10.0
libtpu: 0.0.40
codegen_flags: <defaults>
</compile_context>

<pallas_src>
import jax
import jax.numpy as jnp
from jax.experimental import pallas as pl
from jax.experimental.pallas import tpu as pltpu

EPS = 1e-5
PADL = 8  # left margin (pixels) of the padded conv scratches; keeps interior writes
          # sublane-aligned.  Scratch width is W + 2*PADL.


# --------------------------- in-kernel compute helpers -------------------------


def _gn_relu(x, gn_ref, gmap_ref, gmapt_ref, n_pixels, cpg):
    """GroupNorm + ReLU on x: [N, C] (one sample).  gn_ref: [2, C] = [gamma; beta].

    Per-channel sums are VPU/XLU reductions.  When channels-per-group == 1 the group
    mapping is the identity and is skipped entirely (perf review #4); otherwise two
    tiny f32 one-hot matmuls do the group aggregation / broadcast-back."""
    gamma = gn_ref[0:1, :]
    beta = gn_ref[1:2, :]
    s1 = jnp.sum(x, axis=0, keepdims=True)          # [1, C]
    s2 = jnp.sum(x * x, axis=0, keepdims=True)      # [1, C]
    if cpg == 1:
        n = float(n_pixels)
        mean_c = s1 / n
        inv_c = jax.lax.rsqrt(s2 / n - mean_c * mean_c + EPS)
    else:
        n = float(n_pixels * cpg)
        stats = jnp.concatenate([s1, s2], axis=0)                                 # [2, C]
        g = jnp.dot(stats, gmap_ref[...], preferred_element_type=jnp.float32)     # [2, G]
        mean_g = g[0:1, :] / n
        inv_g = jax.lax.rsqrt(g[1:2, :] / n - mean_g * mean_g + EPS)
        mi = jnp.concatenate([mean_g, inv_g], axis=0)                             # [2, G]
        mc = jnp.dot(mi, gmapt_ref[...], preferred_element_type=jnp.float32)      # [2, C]
        mean_c = mc[0:1, :]
        inv_c = mc[1:2, :]
    scale = inv_c * gamma
    shift = beta - mean_c * scale
    return jnp.maximum(x * scale + shift, 0.0)


def _zero_conv_halo(pad_ref, H, W):
    """Zero only the halo cells the 3x3 taps read (perf review #8): top/bottom pad rows
    plus one column either side of the interior.  Done every step (megacore-safe)."""
    Hp, Wp, C = pad_ref.shape
    zr = jnp.zeros((1, Wp, C), jnp.float32)
    pad_ref[0:1] = zr
    pad_ref[H + 1:H + 2] = zr
    zc = jnp.zeros((Hp, 1, C), jnp.float32)
    pad_ref[:, PADL - 1:PADL] = zc
    pad_ref[:, PADL + W:PADL + W + 1] = zc


def _zero_bank_halo(bank_e_ref, bank_o_ref, W):
    """Halo zeroing for the even/odd-row banks used by stride-2 convs."""
    Wp, C = bank_o_ref.shape[1], bank_o_ref.shape[2]
    bank_o_ref[0:1] = jnp.zeros((1, Wp, C), jnp.float32)   # top pad row (input row -1)
    for b in (bank_e_ref, bank_o_ref):
        zc = jnp.zeros((b.shape[0], 1, C), jnp.float32)
        b[:, PADL - 1:PADL] = zc
        b[:, PADL + W:PADL + W + 1] = zc


def _conv3x3_s1(pad_ref, w_ref, H, W):
    """3x3 stride-1 conv.  pad_ref interior [1:H+1, PADL:PADL+W, :] holds the input,
    halo is zero.  Per-tap ref slices (perf review #9), bf16 MXU operands, f32 acc.
    Returns [H*W, Cout] (no bias)."""
    acc = None
    for kh in range(3):
        for kw in range(3):
            c0 = PADL - 1 + kw
            slab = pad_ref[kh:kh + H, c0:c0 + W, :]
            slab = slab.reshape(H * W, slab.shape[-1]).astype(jnp.bfloat16)
            t = jnp.dot(slab, w_ref[kh * 3 + kw], preferred_element_type=jnp.float32)
            acc = t if acc is None else acc + t
    return acc


def _conv3x3_s2_acc(bank_e_ref, bank_o_ref, w_ref, Ho, W):
    """3x3 stride-2 conv, H-subsampling already done via the even/odd row banks
    (perf review #3).  Returns acc[Ho*W, Cout]: full W resolution at strided H; the
    caller selects columns w = 2*wo with one small bf16 one-hot matmul."""
    acc = None
    for kh in range(3):
        for kw in range(3):
            c0 = PADL - 1 + kw
            if kh == 0:            # input row 2*ho - 1  -> odd bank, shifted by the pad row
                slab = bank_o_ref[0:Ho, c0:c0 + W, :]
            elif kh == 1:          # input row 2*ho      -> even bank
                slab = bank_e_ref[0:Ho, c0:c0 + W, :]
            else:                  # input row 2*ho + 1  -> odd bank
                slab = bank_o_ref[1:Ho + 1, c0:c0 + W, :]
            slab = slab.reshape(Ho * W, slab.shape[-1]).astype(jnp.bfloat16)
            t = jnp.dot(slab, w_ref[kh * 3 + kw], preferred_element_type=jnp.float32)
            acc = t if acc is None else acc + t
    return acc


# ------------------------------- fused forward ---------------------------------


def wideresnet_forward(params, x_nchw):
    x = jnp.transpose(x_nchw, (0, 2, 3, 1)).astype(jnp.float32)     # NCHW -> NHWC
    B, H0, W0, Cin = x.shape
    num_classes = params["dense"]["w"].shape[-1]

    # Stem im2col done in the wrapper (pure input-layout prep; Cin=4 is too narrow for
    # the MXU) -> the stem becomes a single K=9*Cin matmul inside the kernel.
    xp = jnp.pad(x, ((0, 0), (1, 1), (1, 1), (0, 0)))
    cols = jnp.concatenate(
        [xp[:, kh:kh + H0, kw:kw + W0, :] for kh in range(3) for kw in range(3)],
        axis=-1).reshape(B, H0 * W0, 9 * Cin)

    operands, in_specs = [], []

    def add_rep(arr):
        arr = jnp.asarray(arr)
        nd = arr.ndim
        operands.append(arr)
        in_specs.append(pl.BlockSpec(arr.shape, lambda b, _nd=nd: (0,) * _nd))
        return len(operands) - 1

    # batched activation input (index 0)
    operands.append(cols)
    in_specs.append(pl.BlockSpec((1, H0 * W0, 9 * Cin), lambda b: (b, 0, 0)))

    scratch_shapes = []

    def add_scratch(shape):
        scratch_shapes.append(pltpu.VMEM(shape, jnp.float32))
        return len(scratch_shapes) - 1

    def gn_operands(gn, C):
        G = min(16, C)
        cpg = C // G
        idx_gn = add_rep(jnp.stack([gn["gamma"], gn["beta"]], axis=0))   # [2, C]
        if cpg > 1:
            m = (jnp.arange(C)[:, None] // cpg == jnp.arange(G)[None, :]).astype(jnp.float32)
            idx_m, idx_mt = add_rep(m), add_rep(m.T)
        else:
            idx_m = idx_mt = None
        return dict(gn=idx_gn, m=idx_m, mt=idx_mt, cpg=cpg)

    def conv_w(w):                          # [3,3,ci,co] -> [9, ci, co] bf16
        _, _, ci, co = w.shape
        return w.reshape(9, ci, co).astype(jnp.bfloat16)

    stem_w = add_rep(params["conv_in"]["w"].reshape(9 * Cin, -1).astype(jnp.bfloat16))
    stem_b = add_rep(params["conv_in"]["b"].reshape(1, -1))

    H, W = H0, W0
    block_cfgs = []
    for blocks in params["groups"]:
        for p in blocks:
            cin, cout, stride, has_skip = p["cin"], p["cout"], p["stride"], p["has_skip"]
            Ho, Wo = H // stride, W // stride
            cfg = dict(H=H, W=W, Ho=Ho, Wo=Wo, cin=cin, cout=cout,
                       stride=stride, has_skip=has_skip)
            cfg["gn_in"] = gn_operands(p["norm_in"], cin)
            cfg["w_in"] = add_rep(conv_w(p["conv_in"]["w"]))
            cfg["b_in"] = add_rep(p["conv_in"]["b"].reshape(1, -1))
            cfg["gn_out"] = gn_operands(p["norm_out"], cout)
            cfg["w_out"] = add_rep(conv_w(p["conv_out"]["w"]))
            bias_out = p["conv_out"]["b"]
            if has_skip:
                cfg["skip_w"] = add_rep(p["skip_w"].astype(jnp.bfloat16))
                bias_out = bias_out + p["skip_b"]           # fold both output biases (#10)
            cfg["b_out"] = add_rep(bias_out.reshape(1, -1))
            cfg["pad_in"] = add_scratch((H + 2, W + 2 * PADL, cin))
            if stride == 1:
                cfg["pad_out"] = add_scratch((H + 2, W + 2 * PADL, cout))
            else:
                cfg["bank_e"] = add_scratch((Ho, W + 2 * PADL, cout))
                cfg["bank_o"] = add_scratch((Ho + 1, W + 2 * PADL, cout))
                r = jnp.arange(Ho * Wo)
                src = (r // Wo) * W + 2 * (r % Wo)           # pick columns w = 2*wo
                sel = (src[:, None] == jnp.arange(Ho * W)[None, :]).astype(jnp.bfloat16)
                cfg["sel"] = add_rep(sel)
            block_cfgs.append(cfg)
            H, W = Ho, Wo

    Hf, Wf = H, W
    Cf = params["dense"]["w"].shape[0]
    head_gn = gn_operands(params["norm_out"], Cf)
    dense_w = add_rep(params["dense"]["w"].astype(jnp.bfloat16))
    dense_b = add_rep(params["dense"]["b"].reshape(1, -1))

    n_inputs = len(operands)

    def kernel(*refs):
        in_refs = refs[:n_inputs]
        o_ref = refs[n_inputs]
        sc = refs[n_inputs + 1:]

        def gn(xv, g, n_pixels):
            m = in_refs[g["m"]] if g["m"] is not None else None
            mt = in_refs[g["mt"]] if g["mt"] is not None else None
            return _gn_relu(xv, in_refs[g["gn"]], m, mt, n_pixels, g["cpg"])

        # ---- stem: one K=9*Cin bf16 matmul on the MXU ----
        a = jnp.dot(in_refs[0][0].astype(jnp.bfloat16), in_refs[stem_w][...],
                    preferred_element_type=jnp.float32) + in_refs[stem_b][...]

        # ---- residual blocks, fully fused ----
        for cfg in block_cfgs:
            Hb, Wb, Ho, Wo = cfg["H"], cfg["W"], cfg["Ho"], cfg["Wo"]
            cin, cout, stride = cfg["cin"], cfg["cout"], cfg["stride"]

            # GroupNorm(norm_in) + ReLU -> conv_in (3x3, stride 1)
            y = gn(a, cfg["gn_in"], Hb * Wb)
            pad_in = sc[cfg["pad_in"]]
            _zero_conv_halo(pad_in, Hb, Wb)
            pad_in[1:Hb + 1, PADL:PADL + Wb, :] = y.reshape(Hb, Wb, cin)
            h = (_conv3x3_s1(pad_in, in_refs[cfg["w_in"]], Hb, Wb)
                 + in_refs[cfg["b_in"]][...])

            # GroupNorm(norm_out) + ReLU -> conv_out (3x3, stride 1 or 2) + identity
            y2 = gn(h, cfg["gn_out"], Hb * Wb)

            if stride == 1:
                pad_out = sc[cfg["pad_out"]]
                _zero_conv_halo(pad_out, Hb, Wb)
                pad_out[1:Hb + 1, PADL:PADL + Wb, :] = y2.reshape(Hb, Wb, cout)
                out = _conv3x3_s1(pad_out, in_refs[cfg["w_out"]], Hb, Wb)
                if cfg["has_skip"]:
                    out = out + jnp.dot(a.astype(jnp.bfloat16),
                                        in_refs[cfg["skip_w"]][...],
                                        preferred_element_type=jnp.float32)
                else:
                    out = out + a
                a = out + in_refs[cfg["b_out"]][...]
            else:
                # Even/odd-row banks: free H-subsample via leading-dim reshapes (#3).
                bank_e, bank_o = sc[cfg["bank_e"]], sc[cfg["bank_o"]]
                _zero_bank_halo(bank_e, bank_o, Wb)
                y2_4d = y2.reshape(Ho, 2, Wb, cout)
                bank_e[0:Ho, PADL:PADL + Wb, :] = y2_4d[:, 0]
                bank_o[1:Ho + 1, PADL:PADL + Wb, :] = y2_4d[:, 1]
                acc = _conv3x3_s2_acc(bank_e, bank_o, in_refs[cfg["w_out"]], Ho, Wb)
                # 1x1 stride-2 skip: even-H rows for free; W-subsample shared below.
                x_even = a.reshape(Ho, 2, Wb, cin)[:, 0].reshape(Ho * Wb, cin)
                acc = acc + jnp.dot(x_even.astype(jnp.bfloat16),
                                    in_refs[cfg["skip_w"]][...],
                                    preferred_element_type=jnp.float32)
                # Single bf16 one-hot column selection (w = 2*wo) on the MXU (#3/#10).
                out = jnp.dot(in_refs[cfg["sel"]][...], acc.astype(jnp.bfloat16),
                              preferred_element_type=jnp.float32)
                a = out + in_refs[cfg["b_out"]][...]

        # ---- head: GN + ReLU + global average pool + dense ----
        y = gn(a, head_gn, Hf * Wf)
        pooled = jnp.mean(y, axis=0, keepdims=True)                  # [1, Cf]
        logits = (jnp.dot(pooled.astype(jnp.bfloat16), in_refs[dense_w][...],
                          preferred_element_type=jnp.float32)
                  + in_refs[dense_b][...])
        o_ref[...] = logits.reshape(1, 1, num_classes)

    out = pl.pallas_call(
        kernel,
        out_shape=jax.ShapeDtypeStruct((B, 1, num_classes), jnp.float32),
        grid_spec=pltpu.PrefetchScalarGridSpec(
            num_scalar_prefetch=0,
            grid=(B,),
            in_specs=in_specs,
            out_specs=pl.BlockSpec((1, 1, num_classes), lambda b: (b, 0, 0)),
            scratch_shapes=scratch_shapes),
        compiler_params=pltpu.CompilerParams(dimension_semantics=("parallel",)),
    )(*operands)
    return out[:, 0, :]


# --------------------------- parameter construction -------------------------


def _uniform(key, shape, bound):
    return jax.random.uniform(key, shape, jnp.float32, -bound, bound)


def init_conv(key, kh, kw, cin, cout):
    fan_in = cin * kh * kw
    bound = 1.0 / (fan_in ** 0.5)
    k1, k2 = jax.random.split(key)
    return {"w": _uniform(k1, (kh, kw, cin, cout), bound),
            "b": _uniform(k2, (cout,), bound)}


def init_gn(c):
    return {"gamma": jnp.ones((c,), jnp.float32),
            "beta": jnp.zeros((c,), jnp.float32)}


def init_linear(key, fin, fout):
    bound = 1.0 / (fin ** 0.5)
    k1, k2 = jax.random.split(key)
    return {"w": _uniform(k1, (fin, fout), bound),
            "b": _uniform(k2, (fout,), bound)}


def init_block(key, cin, cout, stride):
    keys = jax.random.split(key, 3)
    p = {
        "cin": cin, "cout": cout, "stride": stride,
        "has_skip": (stride != 1) or (cin != cout),
        "norm_in": init_gn(cin),
        "conv_in": init_conv(keys[0], 3, 3, cin, cout),
        "norm_out": init_gn(cout),
        "conv_out": init_conv(keys[1], 3, 3, cout, cout),
    }
    if p["has_skip"]:
        bound = 1.0 / (cin ** 0.5)
        k1, k2 = jax.random.split(keys[2])
        p["skip_w"] = _uniform(k1, (cin, cout), bound)
        p["skip_b"] = _uniform(k2, (cout,), bound)
    return p


def init_wideresnet(key, in_channels, depth, widen_factor, num_classes):
    assert (depth - 4) % 6 == 0 and depth > 4
    assert widen_factor > 0
    num_blocks = (depth - 4) // 6
    feats = (16, 16 * widen_factor, 32 * widen_factor, 64 * widen_factor)
    keys = jax.random.split(key, 5)
    params = {"conv_in": init_conv(keys[0], 3, 3, in_channels, feats[0])}
    fin = feats[0]
    groups = []
    for gi, (f, stride) in enumerate(zip(feats[1:], (1, 2, 2))):
        blocks = []
        for bi in range(num_blocks):
            bk = jax.random.fold_in(keys[1 + gi], bi)
            blocks.append(init_block(bk, fin, f, stride if bi == 0 else 1))
            fin = f
        groups.append(blocks)
    params["groups"] = groups
    params["norm_out"] = init_gn(fin)
    params["dense"] = init_linear(keys[4], fin, num_classes)
    return params


# --------------------------- pure-JAX reference ------------------------------


def _ref_conv3x3(x, w, b, stride):
    y = jax.lax.conv_general_dilated(
        x, w, (stride, stride), ((1, 1), (1, 1)),
        dimension_numbers=("NHWC", "HWIO", "NHWC"))
    return y + b


def _ref_conv1x1(x, w, b, stride):
    y = jax.lax.conv_general_dilated(
        x, w.reshape(1, 1, *w.shape), (stride, stride), "VALID",
        dimension_numbers=("NHWC", "HWIO", "NHWC"))
    return y + b


def _ref_gn(x, gamma, beta, G, relu_after):
    B, H, W, C = x.shape
    xg = x.reshape(B, H, W, G, C // G)
    mean = xg.mean(axis=(1, 2, 4), keepdims=True)
    var = ((xg - mean) ** 2).mean(axis=(1, 2, 4), keepdims=True)
    y = ((xg - mean) / jnp.sqrt(var + EPS)).reshape(B, H, W, C) * gamma + beta
    return jnp.maximum(y, 0.0) if relu_after else y


def _ref_block(p, x):
    h = _ref_gn(x, p["norm_in"]["gamma"], p["norm_in"]["beta"], min(16, p["cin"]), True)
    h = _ref_conv3x3(h, p["conv_in"]["w"], p["conv_in"]["b"], 1)
    h = _ref_gn(h, p["norm_out"]["gamma"], p["norm_out"]["beta"], min(16, p["cout"]), True)
    h = _ref_conv3x3(h, p["conv_out"]["w"], p["conv_out"]["b"], p["stride"])
    idn = _ref_conv1x1(x, p["skip_w"], p["skip_b"], p["stride"]) if p["has_skip"] else x
    return h + idn


def ref_forward(params, x_nchw):
    x = jnp.transpose(x_nchw, (0, 2, 3, 1)).astype(jnp.float32)
    x = _ref_conv3x3(x, params["conv_in"]["w"], params["conv_in"]["b"], 1)
    for blocks in params["groups"]:
        for p in blocks:
            x = _ref_block(p, x)
    x = _ref_gn(x, params["norm_out"]["gamma"], params["norm_out"]["beta"],
                min(16, x.shape[-1]), True)
    pooled = x.mean(axis=(1, 2))
    return pooled @ params["dense"]["w"] + params["dense"]["b"]


# ----------------------------------- main ------------------------------------

if __name__ == "__main__":
    key = jax.random.PRNGKey(0)
    k_param, k_input = jax.random.split(key)

    in_channels, depth, widen_factor, num_classes = 4, 10, 1, 8
    params = init_wideresnet(k_param, in_channels, depth, widen_factor, num_classes)

    # PyTorch-style NCHW input.
    x = jax.random.normal(k_input, (2, in_channels, 16, 16), jnp.float32)

    forward = jax.jit(lambda inp: wideresnet_forward(params, inp))
    out = jax.block_until_ready(forward(x))
    assert out.shape == (2, num_classes), out.shape

    ref = jax.block_until_ready(ref_forward(params, x))
    err = float(jnp.max(jnp.abs(out - ref)))
    # bf16 MXU operands (f32 accumulation) on convs / skips / selectors / dense
    # => slightly looser tolerance than pure f32.
    assert err < 5e-2, f"max abs err {err}"

    print("KERNEL_OK")
</pallas_src>

<mosaic_0001>
module attributes {stable_mosaic.version = 11 : i64} {
  func.func @kernel(%arg0: i32, %arg1: memref<1x256x36xf32, #tpu.memory_space<vmem>>, %arg2: memref<36x16xbf16, #tpu.memory_space<vmem>>, %arg3: memref<1x16xf32, #tpu.memory_space<vmem>>, %arg4: memref<2x16xf32, #tpu.memory_space<vmem>>, %arg5: memref<9x16x16xbf16, #tpu.memory_space<vmem>>, %arg6: memref<1x16xf32, #tpu.memory_space<vmem>>, %arg7: memref<2x16xf32, #tpu.memory_space<vmem>>, %arg8: memref<9x16x16xbf16, #tpu.memory_space<vmem>>, %arg9: memref<1x16xf32, #tpu.memory_space<vmem>>, %arg10: memref<2x16xf32, #tpu.memory_space<vmem>>, %arg11: memref<9x16x32xbf16, #tpu.memory_space<vmem>>, %arg12: memref<1x32xf32, #tpu.memory_space<vmem>>, %arg13: memref<2x32xf32, #tpu.memory_space<vmem>>, %arg14: memref<32x16xf32, #tpu.memory_space<vmem>>, %arg15: memref<16x32xf32, #tpu.memory_space<vmem>>, %arg16: memref<9x32x32xbf16, #tpu.memory_space<vmem>>, %arg17: memref<16x32xbf16, #tpu.memory_space<vmem>>, %arg18: memref<1x32xf32, #tpu.memory_space<vmem>>, %arg19: memref<64x128xbf16, #tpu.memory_space<vmem>>, %arg20: memref<2x32xf32, #tpu.memory_space<vmem>>, %arg21: memref<32x16xf32, #tpu.memory_space<vmem>>, %arg22: memref<16x32xf32, #tpu.memory_space<vmem>>, %arg23: memref<9x32x64xbf16, #tpu.memory_space<vmem>>, %arg24: memref<1x64xf32, #tpu.memory_space<vmem>>, %arg25: memref<2x64xf32, #tpu.memory_space<vmem>>, %arg26: memref<64x16xf32, #tpu.memory_space<vmem>>, %arg27: memref<16x64xf32, #tpu.memory_space<vmem>>, %arg28: memref<9x64x64xbf16, #tpu.memory_space<vmem>>, %arg29: memref<32x64xbf16, #tpu.memory_space<vmem>>, %arg30: memref<1x64xf32, #tpu.memory_space<vmem>>, %arg31: memref<16x32xbf16, #tpu.memory_space<vmem>>, %arg32: memref<2x64xf32, #tpu.memory_space<vmem>>, %arg33: memref<64x16xf32, #tpu.memory_space<vmem>>, %arg34: memref<16x64xf32, #tpu.memory_space<vmem>>, %arg35: memref<64x8xbf16, #tpu.memory_space<vmem>>, %arg36: memref<1x8xf32, #tpu.memory_space<vmem>>, %arg37: memref<1x1x8xf32, #tpu.memory_space<vmem>>, %arg38: memref<18x32x16xf32, #tpu.memory_space<vmem>>, %arg39: memref<18x32x16xf32, #tpu.memory_space<vmem>>, %arg40: memref<18x32x16xf32, #tpu.memory_space<vmem>>, %arg41: memref<8x32x32xf32, #tpu.memory_space<vmem>>, %arg42: memref<9x32x32xf32, #tpu.memory_space<vmem>>, %arg43: memref<10x24x32xf32, #tpu.memory_space<vmem>>, %arg44: memref<4x24x64xf32, #tpu.memory_space<vmem>>, %arg45: memref<5x24x64xf32, #tpu.memory_space<vmem>>) attributes {dimension_semantics = [#tpu.dimension_semantics<parallel>], iteration_bounds = array<i64: 2>, scalar_prefetch = 0 : i64, scratch_operands = 8 : i64, tpu.core_type = #tpu.core_type<tc>, window_params = [{transform_indices = @transform_0, window_bounds = array<i64: 1, 256, 36>}, {pipeline_mode = #tpu.pipeline_mode<synchronous>, transform_indices = @transform_1, window_bounds = array<i64: 36, 16>}, {pipeline_mode = #tpu.pipeline_mode<synchronous>, transform_indices = @transform_2, window_bounds = array<i64: 1, 16>}, {pipeline_mode = #tpu.pipeline_mode<synchronous>, transform_indices = @transform_3, window_bounds = array<i64: 2, 16>}, {pipeline_mode = #tpu.pipeline_mode<synchronous>, transform_indices = @transform_4, window_bounds = array<i64: 9, 16, 16>}, {pipeline_mode = #tpu.pipeline_mode<synchronous>, transform_indices = @transform_5, window_bounds = array<i64: 1, 16>}, {pipeline_mode = #tpu.pipeline_mode<synchronous>, transform_indices = @transform_6, window_bounds = array<i64: 2, 16>}, {pipeline_mode = #tpu.pipeline_mode<synchronous>, transform_indices = @transform_7, window_bounds = array<i64: 9, 16, 16>}, {pipeline_mode = #tpu.pipeline_mode<synchronous>, transform_indices = @transform_8, window_bounds = array<i64: 1, 16>}, {pipeline_mode = #tpu.pipeline_mode<synchronous>, transform_indices = @transform_9, window_bounds = array<i64: 2, 16>}, {pipeline_mode = #tpu.pipeline_mode<synchronous>, transform_indices = @transform_10, window_bounds = array<i64: 9, 16, 32>}, {pipeline_mode = #tpu.pipeline_mode<synchronous>, transform_indices = @transform_11, window_bounds = array<i64: 1, 32>}, {pipeline_mode = #tpu.pipeline_mode<synchronous>, transform_indices = @transform_12, window_bounds = array<i64: 2, 32>}, {pipeline_mode = #tpu.pipeline_mode<synchronous>, transform_indices = @transform_13, window_bounds = array<i64: 32, 16>}, {pipeline_mode = #tpu.pipeline_mode<synchronous>, transform_indices = @transform_14, window_bounds = array<i64: 16, 32>}, {pipeline_mode = #tpu.pipeline_mode<synchronous>, transform_indices = @transform_15, window_bounds = array<i64: 9, 32, 32>}, {pipeline_mode = #tpu.pipeline_mode<synchronous>, transform_indices = @transform_16, window_bounds = array<i64: 16, 32>}, {pipeline_mode = #tpu.pipeline_mode<synchronous>, transform_indices = @transform_17, window_bounds = array<i64: 1, 32>}, {pipeline_mode = #tpu.pipeline_mode<synchronous>, transform_indices = @transform_18, window_bounds = array<i64: 64, 128>}, {pipeline_mode = #tpu.pipeline_mode<synchronous>, transform_indices = @transform_19, window_bounds = array<i64: 2, 32>}, {pipeline_mode = #tpu.pipeline_mode<synchronous>, transform_indices = @transform_20, window_bounds = array<i64: 32, 16>}, {pipeline_mode = #tpu.pipeline_mode<synchronous>, transform_indices = @transform_21, window_bounds = array<i64: 16, 32>}, {pipeline_mode = #tpu.pipeline_mode<synchronous>, transform_indices = @transform_22, window_bounds = array<i64: 9, 32, 64>}, {pipeline_mode = #tpu.pipeline_mode<synchronous>, transform_indices = @transform_23, window_bounds = array<i64: 1, 64>}, {pipeline_mode = #tpu.pipeline_mode<synchronous>, transform_indices = @transform_24, window_bounds = array<i64: 2, 64>}, {pipeline_mode = #tpu.pipeline_mode<synchronous>, transform_indices = @transform_25, window_bounds = array<i64: 64, 16>}, {pipeline_mode = #tpu.pipeline_mode<synchronous>, transform_indices = @transform_26, window_bounds = array<i64: 16, 64>}, {pipeline_mode = #tpu.pipeline_mode<synchronous>, transform_indices = @transform_27, window_bounds = array<i64: 9, 64, 64>}, {pipeline_mode = #tpu.pipeline_mode<synchronous>, transform_indices = @transform_28, window_bounds = array<i64: 32, 64>}, {pipeline_mode = #tpu.pipeline_mode<synchronous>, transform_indices = @transform_29, window_bounds = array<i64: 1, 64>}, {pipeline_mode = #tpu.pipeline_mode<synchronous>, transform_indices = @transform_30, window_bounds = array<i64: 16, 32>}, {pipeline_mode = #tpu.pipeline_mode<synchronous>, transform_indices = @transform_31, window_bounds = array<i64: 2, 64>}, {pipeline_mode = #tpu.pipeline_mode<synchronous>, transform_indices = @transform_32, window_bounds = array<i64: 64, 16>}, {pipeline_mode = #tpu.pipeline_mode<synchronous>, transform_indices = @transform_33, window_bounds = array<i64: 16, 64>}, {pipeline_mode = #tpu.pipeline_mode<synchronous>, transform_indices = @transform_34, window_bounds = array<i64: 64, 8>}, {pipeline_mode = #tpu.pipeline_mode<synchronous>, transform_indices = @transform_35, window_bounds = array<i64: 1, 8>}, {transform_indices = @transform_36, window_bounds = array<i64: 1, 1, 8>}]} {
    %c0 = arith.constant 0 : index
    %c0_0 = arith.constant 0 : index
    %c0_1 = arith.constant 0 : index
    %0 = vector.load %arg1[%c0, %c0_0, %c0_1] : memref<1x256x36xf32, #tpu.memory_space<vmem>>, vector<1x256x36xf32>
    %1 = vector.shape_cast %0 : vector<1x256x36xf32> to vector<256x36xf32>
    %2 = arith.truncf %1 : vector<256x36xf32> to vector<256x36xbf16>
    %c0_2 = arith.constant 0 : index
    %c0_3 = arith.constant 0 : index
    %3 = vector.load %arg2[%c0_2, %c0_3] : memref<36x16xbf16, #tpu.memory_space<vmem>>, vector<36x16xbf16>
    %cst = arith.constant dense<0.000000e+00> : vector<256x16xf32>
    %4 = tpu.matmul %2, %3, %cst {dimension_numbers = #tpu.dot_dimension_numbers<[1], [0], [0], [1], [0, 0, 1, 1], [], []>} : vector<256x36xbf16>, vector<36x16xbf16>, vector<256x16xf32> -> vector<256x16xf32>
    %c0_4 = arith.constant 0 : index
    %c0_5 = arith.constant 0 : index
    %5 = vector.load %arg3[%c0_4, %c0_5] : memref<1x16xf32, #tpu.memory_space<vmem>>, vector<1x16xf32>
    %6 = vector.broadcast %5 : vector<1x16xf32> to vector<256x16xf32>
    %7 = arith.addf %4, %6 : vector<256x16xf32>
    %c0_6 = arith.constant 0 : index
    %c0_7 = arith.constant 0 : index
    %8 = vector.load %arg4[%c0_6, %c0_7] : memref<2x16xf32, #tpu.memory_space<vmem>>, vector<1x16xf32>
    %c1 = arith.constant 1 : index
    %c0_8 = arith.constant 0 : index
    %9 = vector.load %arg4[%c1, %c0_8] : memref<2x16xf32, #tpu.memory_space<vmem>>, vector<1x16xf32>
    %cst_9 = arith.constant dense<0.000000e+00> : vector<16xf32>
    %10 = vector.multi_reduction <add>, %7, %cst_9 [0] : vector<256x16xf32> to vector<16xf32>
    %11 = vector.shape_cast %10 : vector<16xf32> to vector<1x16xf32>
    %12 = arith.mulf %7, %7 : vector<256x16xf32>
    %cst_10 = arith.constant dense<0.000000e+00> : vector<16xf32>
    %13 = vector.multi_reduction <add>, %12, %cst_10 [0] : vector<256x16xf32> to vector<16xf32>
    %14 = vector.shape_cast %13 : vector<16xf32> to vector<1x16xf32>
    %cst_11 = arith.constant 2.560000e+02 : f32
    %15 = vector.broadcast %cst_11 : f32 to vector<1x16xf32>
    %16 = arith.divf %11, %15 : vector<1x16xf32>
    %cst_12 = arith.constant 2.560000e+02 : f32
    %17 = vector.broadcast %cst_12 : f32 to vector<1x16xf32>
    %18 = arith.divf %14, %17 : vector<1x16xf32>
    %19 = arith.mulf %16, %16 : vector<1x16xf32>
    %20 = arith.subf %18, %19 : vector<1x16xf32>
    %cst_13 = arith.constant 9.99999974E-6 : f32
    %21 = vector.broadcast %cst_13 : f32 to vector<1x16xf32>
    %22 = arith.addf %20, %21 : vector<1x16xf32>
    %23 = math.rsqrt %22 : vector<1x16xf32>
    %24 = arith.mulf %23, %8 : vector<1x16xf32>
    %25 = arith.mulf %16, %24 : vector<1x16xf32>
    %26 = arith.subf %9, %25 : vector<1x16xf32>
    %27 = vector.broadcast %24 : vector<1x16xf32> to vector<256x16xf32>
    %28 = arith.mulf %7, %27 : vector<256x16xf32>
    %29 = vector.broadcast %26 : vector<1x16xf32> to vector<256x16xf32>
    %30 = arith.addf %28, %29 : vector<256x16xf32>
    %cst_14 = arith.constant 0.000000e+00 : f32
    %31 = vector.broadcast %cst_14 : f32 to vector<256x16xf32>
    %32 = arith.maximumf %30, %31 : vector<256x16xf32>
    %cst_15 = arith.constant 0.000000e+00 : f32
    %33 = vector.broadcast %cst_15 : f32 to vector<1x32x16xf32>
    %c0_16 = arith.constant 0 : index
    %c0_17 = arith.constant 0 : index
    %c0_18 = arith.constant 0 : index
    %34 = vector.load %arg38[%c0_16, %c0_17, %c0_18] : memref<18x32x16xf32, #tpu.memory_space<vmem>>, vector<1x32x16xf32>
    tpu.vector_store %arg38[%c0_16, %c0_17, %c0_18], %33 {strides = array<i32>} : memref<18x32x16xf32, #tpu.memory_space<vmem>>, vector<1x32x16xf32>,
    %c17 = arith.constant 17 : index
    %c0_19 = arith.constant 0 : index
    %c0_20 = arith.constant 0 : index
    %35 = vector.load %arg38[%c17, %c0_19, %c0_20] : memref<18x32x16xf32, #tpu.memory_space<vmem>>, vector<1x32x16xf32>
    tpu.vector_store %arg38[%c17, %c0_19, %c0_20], %33 {strides = array<i32>} : memref<18x32x16xf32, #tpu.memory_space<vmem>>, vector<1x32x16xf32>,
    %cst_21 = arith.constant 0.000000e+00 : f32
    %36 = vector.broadcast %cst_21 : f32 to vector<18x1x16xf32>
    %c0_22 = arith.constant 0 : index
    %c7 = arith.constant 7 : index
    %c0_23 = arith.constant 0 : index
    %37 = vector.load %arg38[%c0_22, %c7, %c0_23] : memref<18x32x16xf32, #tpu.memory_space<vmem>>, vector<18x1x16xf32>
    tpu.vector_store %arg38[%c0_22, %c7, %c0_23], %36 {strides = array<i32>} : memref<18x32x16xf32, #tpu.memory_space<vmem>>, vector<18x1x16xf32>,
    %c0_24 = arith.constant 0 : index
    %c24 = arith.constant 24 : index
    %c0_25 = arith.constant 0 : index
    %38 = vector.load %arg38[%c0_24, %c24, %c0_25] : memref<18x32x16xf32, #tpu.memory_space<vmem>>, vector<18x1x16xf32>
    tpu.vector_store %arg38[%c0_24, %c24, %c0_25], %36 {strides = array<i32>} : memref<18x32x16xf32, #tpu.memory_space<vmem>>, vector<18x1x16xf32>,
    %39 = vector.shape_cast %32 : vector<256x16xf32> to vector<16x16x16xf32>
    %c1_26 = arith.constant 1 : index
    %c8 = arith.constant 8 : index
    %c0_27 = arith.constant 0 : index
    %40 = vector.load %arg38[%c1_26, %c8, %c0_27] : memref<18x32x16xf32, #tpu.memory_space<vmem>>, vector<16x16x16xf32>
    tpu.vector_store %arg38[%c1_26, %c8, %c0_27], %39 {strides = array<i32>} : memref<18x32x16xf32, #tpu.memory_space<vmem>>, vector<16x16x16xf32>,
    %c0_28 = arith.constant 0 : index
    %c7_29 = arith.constant 7 : index
    %c0_30 = arith.constant 0 : index
    %41 = vector.load %arg38[%c0_28, %c7_29, %c0_30] : memref<18x32x16xf32, #tpu.memory_space<vmem>>, vector<16x16x16xf32>
    %42 = vector.shape_cast %41 : vector<16x16x16xf32> to vector<256x16xf32>
    %43 = arith.truncf %42 : vector<256x16xf32> to vector<256x16xbf16>
    %c0_31 = arith.constant 0 : index
    %c0_32 = arith.constant 0 : index
    %c0_33 = arith.constant 0 : index
    %44 = vector.load %arg5[%c0_31, %c0_32, %c0_33] : memref<9x16x16xbf16, #tpu.memory_space<vmem>>, vector<1x16x16xbf16>
    %45 = vector.shape_cast %44 : vector<1x16x16xbf16> to vector<16x16xbf16>
    %cst_34 = arith.constant dense<0.000000e+00> : vector<256x16xf32>
    %46 = tpu.matmul %43, %45, %cst_34 {dimension_numbers = #tpu.dot_dimension_numbers<[1], [0], [0], [1], [0, 0, 1, 1], [], []>} : vector<256x16xbf16>, vector<16x16xbf16>, vector<256x16xf32> -> vector<256x16xf32>
    %c0_35 = arith.constant 0 : index
    %c8_36 = arith.constant 8 : index
    %c0_37 = arith.constant 0 : index
    %47 = vector.load %arg38[%c0_35, %c8_36, %c0_37] : memref<18x32x16xf32, #tpu.memory_space<vmem>>, vector<16x16x16xf32>
    %48 = vector.shape_cast %47 : vector<16x16x16xf32> to vector<256x16xf32>
    %49 = arith.truncf %48 : vector<256x16xf32> to vector<256x16xbf16>
    %c1_38 = arith.constant 1 : index
    %c0_39 = arith.constant 0 : index
    %c0_40 = arith.constant 0 : index
    %50 = vector.load %arg5[%c1_38, %c0_39, %c0_40] : memref<9x16x16xbf16, #tpu.memory_space<vmem>>, vector<1x16x16xbf16>
    %51 = vector.shape_cast %50 : vector<1x16x16xbf16> to vector<16x16xbf16>
    %cst_41 = arith.constant dense<0.000000e+00> : vector<256x16xf32>
    %52 = tpu.matmul %49, %51, %cst_41 {dimension_numbers = #tpu.dot_dimension_numbers<[1], [0], [0], [1], [0, 0, 1, 1], [], []>} : vector<256x16xbf16>, vector<16x16xbf16>, vector<256x16xf32> -> vector<256x16xf32>
    %53 = arith.addf %46, %52 : vector<256x16xf32>
    %c0_42 = arith.constant 0 : index
    %c9 = arith.constant 9 : index
    %c0_43 = arith.constant 0 : index
    %54 = vector.load %arg38[%c0_42, %c9, %c0_43] : memref<18x32x16xf32, #tpu.memory_space<vmem>>, vector<16x16x16xf32>
    %55 = vector.shape_cast %54 : vector<16x16x16xf32> to vector<256x16xf32>
    %56 = arith.truncf %55 : vector<256x16xf32> to vector<256x16xbf16>
    %c2 = arith.constant 2 : index
    %c0_44 = arith.constant 0 : index
    %c0_45 = arith.constant 0 : index
    %57 = vector.load %arg5[%c2, %c0_44, %c0_45] : memref<9x16x16xbf16, #tpu.memory_space<vmem>>, vector<1x16x16xbf16>
    %58 = vector.shape_cast %57 : vector<1x16x16xbf16> to vector<16x16xbf16>
    %cst_46 = arith.constant dense<0.000000e+00> : vector<256x16xf32>
    %59 = tpu.matmul %56, %58, %cst_46 {dimension_numbers = #tpu.dot_dimension_numbers<[1], [0], [0], [1], [0, 0, 1, 1], [], []>} : vector<256x16xbf16>, vector<16x16xbf16>, vector<256x16xf32> -> vector<256x16xf32>
    %60 = arith.addf %53, %59 : vector<256x16xf32>
    %c1_47 = arith.constant 1 : index
    %c7_48 = arith.constant 7 : index
    %c0_49 = arith.constant 0 : index
    %61 = vector.load %arg38[%c1_47, %c7_48, %c0_49] : memref<18x32x16xf32, #tpu.memory_space<vmem>>, vector<16x16x16xf32>
    %62 = vector.shape_cast %61 : vector<16x16x16xf32> to vector<256x16xf32>
    %63 = arith.truncf %62 : vector<256x16xf32> to vector<256x16xbf16>
    %c3 = arith.constant 3 : index
    %c0_50 = arith.constant 0 : index
    %c0_51 = arith.constant 0 : index
    %64 = vector.load %arg5[%c3, %c0_50, %c0_51] : memref<9x16x16xbf16, #tpu.memory_space<vmem>>, vector<1x16x16xbf16>
    %65 = vector.shape_cast %64 : vector<1x16x16xbf16> to vector<16x16xbf16>
    %cst_52 = arith.constant dense<0.000000e+00> : vector<256x16xf32>
    %66 = tpu.matmul %63, %65, %cst_52 {dimension_numbers = #tpu.dot_dimension_numbers<[1], [0], [0], [1], [0, 0, 1, 1], [], []>} : vector<256x16xbf16>, vector<16x16xbf16>, vector<256x16xf32> -> vector<256x16xf32>
    %67 = arith.addf %60, %66 : vector<256x16xf32>
    %c1_53 = arith.constant 1 : index
    %c8_54 = arith.constant 8 : index
    %c0_55 = arith.constant 0 : index
    %68 = vector.load %arg38[%c1_53, %c8_54, %c0_55] : memref<18x32x16xf32, #tpu.memory_space<vmem>>, vector<16x16x16xf32>
    %69 = vector.shape_cast %68 : vector<16x16x16xf32> to vector<256x16xf32>
    %70 = arith.truncf %69 : vector<256x16xf32> to vector<256x16xbf16>
    %c4 = arith.constant 4 : index
    %c0_56 = arith.constant 0 : index
    %c0_57 = arith.constant 0 : index
    %71 = vector.load %arg5[%c4, %c0_56, %c0_57] : memref<9x16x16xbf16, #tpu.memory_space<vmem>>, vector<1x16x16xbf16>
    %72 = vector.shape_cast %71 : vector<1x16x16xbf16> to vector<16x16xbf16>
    %cst_58 = arith.constant dense<0.000000e+00> : vector<256x16xf32>
    %73 = tpu.matmul %70, %72, %cst_58 {dimension_numbers = #tpu.dot_dimension_numbers<[1], [0], [0], [1], [0, 0, 1, 1], [], []>} : vector<256x16xbf16>, vector<16x16xbf16>, vector<256x16xf32> -> vector<256x16xf32>
    %74 = arith.addf %67, %73 : vector<256x16xf32>
    %c1_59 = arith.constant 1 : index
    %c9_60 = arith.constant 9 : index
    %c0_61 = arith.constant 0 : index
    %75 = vector.load %arg38[%c1_59, %c9_60, %c0_61] : memref<18x32x16xf32, #tpu.memory_space<vmem>>, vector<16x16x16xf32>
    %76 = vector.shape_cast %75 : vector<16x16x16xf32> to vector<256x16xf32>
    %77 = arith.truncf %76 : vector<256x16xf32> to vector<256x16xbf16>
    %c5 = arith.constant 5 : index
    %c0_62 = arith.constant 0 : index
    %c0_63 = arith.constant 0 : index
    %78 = vector.load %arg5[%c5, %c0_62, %c0_63] : memref<9x16x16xbf16, #tpu.memory_space<vmem>>, vector<1x16x16xbf16>
    %79 = vector.shape_cast %78 : vector<1x16x16xbf16> to vector<16x16xbf16>
    %cst_64 = arith.constant dense<0.000000e+00> : vector<256x16xf32>
    %80 = tpu.matmul %77, %79, %cst_64 {dimension_numbers = #tpu.dot_dimension_numbers<[1], [0], [0], [1], [0, 0, 1, 1], [], []>} : vector<256x16xbf16>, vector<16x16xbf16>, vector<256x16xf32> -> vector<256x16xf32>
    %81 = arith.addf %74, %80 : vector<256x16xf32>
    %c2_65 = arith.constant 2 : index
    %c7_66 = arith.constant 7 : index
    %c0_67 = arith.constant 0 : index
    %82 = vector.load %arg38[%c2_65, %c7_66, %c0_67] : memref<18x32x16xf32, #tpu.memory_space<vmem>>, vector<16x16x16xf32>
    %83 = vector.shape_cast %82 : vector<16x16x16xf32> to vector<256x16xf32>
    %84 = arith.truncf %83 : vector<256x16xf32> to vector<256x16xbf16>
    %c6 = arith.constant 6 : index
    %c0_68 = arith.constant 0 : index
    %c0_69 = arith.constant 0 : index
    %85 = vector.load %arg5[%c6, %c0_68, %c0_69] : memref<9x16x16xbf16, #tpu.memory_space<vmem>>, vector<1x16x16xbf16>
    %86 = vector.shape_cast %85 : vector<1x16x16xbf16> to vector<16x16xbf16>
    %cst_70 = arith.constant dense<0.000000e+00> : vector<256x16xf32>
    %87 = tpu.matmul %84, %86, %cst_70 {dimension_numbers = #tpu.dot_dimension_numbers<[1], [0], [0], [1], [0, 0, 1, 1], [], []>} : vector<256x16xbf16>, vector<16x16xbf16>, vector<256x16xf32> -> vector<256x16xf32>
    %88 = arith.addf %81, %87 : vector<256x16xf32>
    %c2_71 = arith.constant 2 : index
    %c8_72 = arith.constant 8 : index
    %c0_73 = arith.constant 0 : index
    %89 = vector.load %arg38[%c2_71, %c8_72, %c0_73] : memref<18x32x16xf32, #tpu.memory_space<vmem>>, vector<16x16x16xf32>
    %90 = vector.shape_cast %89 : vector<16x16x16xf32> to vector<256x16xf32>
    %91 = arith.truncf %90 : vector<256x16xf32> to vector<256x16xbf16>
    %c7_74 = arith.constant 7 : index
    %c0_75 = arith.constant 0 : index
    %c0_76 = arith.constant 0 : index
    %92 = vector.load %arg5[%c7_74, %c0_75, %c0_76] : memref<9x16x16xbf16, #tpu.memory_space<vmem>>, vector<1x16x16xbf16>
    %93 = vector.shape_cast %92 : vector<1x16x16xbf16> to vector<16x16xbf16>
    %cst_77 = arith.constant dense<0.000000e+00> : vector<256x16xf32>
    %94 = tpu.matmul %91, %93, %cst_77 {dimension_numbers = #tpu.dot_dimension_numbers<[1], [0], [0], [1], [0, 0, 1, 1], [], []>} : vector<256x16xbf16>, vector<16x16xbf16>, vector<256x16xf32> -> vector<256x16xf32>
    %95 = arith.addf %88, %94 : vector<256x16xf32>
    %c2_78 = arith.constant 2 : index
    %c9_79 = arith.constant 9 : index
    %c0_80 = arith.constant 0 : index
    %96 = vector.load %arg38[%c2_78, %c9_79, %c0_80] : memref<18x32x16xf32, #tpu.memory_space<vmem>>, vector<16x16x16xf32>
    %97 = vector.shape_cast %96 : vector<16x16x16xf32> to vector<256x16xf32>
    %98 = arith.truncf %97 : vector<256x16xf32> to vector<256x16xbf16>
    %c8_81 = arith.constant 8 : index
    %c0_82 = arith.constant 0 : index
    %c0_83 = arith.constant 0 : index
    %99 = vector.load %arg5[%c8_81, %c0_82, %c0_83] : memref<9x16x16xbf16, #tpu.memory_space<vmem>>, vector<1x16x16xbf16>
    %100 = vector.shape_cast %99 : vector<1x16x16xbf16> to vector<16x16xbf16>
    %cst_84 = arith.constant dense<0.000000e+00> : vector<256x16xf32>
    %101 = tpu.matmul %98, %100, %cst_84 {dimension_numbers = #tpu.dot_dimension_numbers<[1], [0], [0], [1], [0, 0, 1, 1], [], []>} : vector<256x16xbf16>, vector<16x16xbf16>, vector<256x16xf32> -> vector<256x16xf32>
    %102 = arith.addf %95, %101 : vector<256x16xf32>
    %c0_85 = arith.constant 0 : index
    %c0_86 = arith.constant 0 : index
    %103 = vector.load %arg6[%c0_85, %c0_86] : memref<1x16xf32, #tpu.memory_space<vmem>>, vector<1x16xf32>
    %104 = vector.broadcast %103 : vector<1x16xf32> to vector<256x16xf32>
    %105 = arith.addf %102, %104 : vector<256x16xf32>
    %c0_87 = arith.constant 0 : index
    %c0_88 = arith.constant 0 : index
    %106 = vector.load %arg7[%c0_87, %c0_88] : memref<2x16xf32, #tpu.memory_space<vmem>>, vector<1x16xf32>
    %c1_89 = arith.constant 1 : index
    %c0_90 = arith.constant 0 : index
    %107 = vector.load %arg7[%c1_89, %c0_90] : memref<2x16xf32, #tpu.memory_space<vmem>>, vector<1x16xf32>
    %cst_91 = arith.constant dense<0.000000e+00> : vector<16xf32>
    %108 = vector.multi_reduction <add>, %105, %cst_91 [0] : vector<256x16xf32> to vector<16xf32>
    %109 = vector.shape_cast %108 : vector<16xf32> to vector<1x16xf32>
    %110 = arith.mulf %105, %105 : vector<256x16xf32>
    %cst_92 = arith.constant dense<0.000000e+00> : vector<16xf32>
    %111 = vector.multi_reduction <add>, %110, %cst_92 [0] : vector<256x16xf32> to vector<16xf32>
    %112 = vector.shape_cast %111 : vector<16xf32> to vector<1x16xf32>
    %cst_93 = arith.constant 2.560000e+02 : f32
    %113 = vector.broadcast %cst_93 : f32 to vector<1x16xf32>
    %114 = arith.divf %109, %113 : vector<1x16xf32>
    %cst_94 = arith.constant 2.560000e+02 : f32
    %115 = vector.broadcast %cst_94 : f32 to vector<1x16xf32>
    %116 = arith.divf %112, %115 : vector<1x16xf32>
    %117 = arith.mulf %114, %114 : vector<1x16xf32>
    %118 = arith.subf %116, %117 : vector<1x16xf32>
    %cst_95 = arith.constant 9.99999974E-6 : f32
    %119 = vector.broadcast %cst_95 : f32 to vector<1x16xf32>
    %120 = arith.addf %118, %119 : vector<1x16xf32>
    %121 = math.rsqrt %120 : vector<1x16xf32>
    %122 = arith.mulf %121, %106 : vector<1x16xf32>
    %123 = arith.mulf %114, %122 : vector<1x16xf32>
    %124 = arith.subf %107, %123 : vector<1x16xf32>
    %125 = vector.broadcast %122 : vector<1x16xf32> to vector<256x16xf32>
    %126 = arith.mulf %105, %125 : vector<256x16xf32>
    %127 = vector.broadcast %124 : vector<1x16xf32> to vector<256x16xf32>
    %128 = arith.addf %126, %127 : vector<256x16xf32>
    %cst_96 = arith.constant 0.000000e+00 : f32
    %129 = vector.broadcast %cst_96 : f32 to vector<256x16xf32>
    %130 = arith.maximumf %128, %129 : vector<256x16xf32>
    %cst_97 = arith.constant 0.000000e+00 : f32
    %131 = vector.broadcast %cst_97 : f32 to vector<1x32x16xf32>
    %c0_98 = arith.constant 0 : index
    %c0_99 = arith.constant 0 : index
    %c0_100 = arith.constant 0 : index
    %132 = vector.load %arg39[%c0_98, %c0_99, %c0_100] : memref<18x32x16xf32, #tpu.memory_space<vmem>>, vector<1x32x16xf32>
    tpu.vector_store %arg39[%c0_98, %c0_99, %c0_100], %131 {strides = array<i32>} : memref<18x32x16xf32, #tpu.memory_space<vmem>>, vector<1x32x16xf32>,
    %c17_101 = arith.constant 17 : index
    %c0_102 = arith.constant 0 : index
    %c0_103 = arith.constant 0 : index
    %133 = vector.load %arg39[%c17_101, %c0_102, %c0_103] : memref<18x32x16xf32, #tpu.memory_space<vmem>>, vector<1x32x16xf32>
    tpu.vector_store %arg39[%c17_101, %c0_102, %c0_103], %131 {strides = array<i32>} : memref<18x32x16xf32, #tpu.memory_space<vmem>>, vector<1x32x16xf32>,
    %cst_104 = arith.constant 0.000000e+00 : f32
    %134 = vector.broadcast %cst_104 : f32 to vector<18x1x16xf32>
    %c0_105 = arith.constant 0 : index
    %c7_106 = arith.constant 7 : index
    %c0_107 = arith.constant 0 : index
    %135 = vector.load %arg39[%c0_105, %c7_106, %c0_107] : memref<18x32x16xf32, #tpu.memory_space<vmem>>, vector<18x1x16xf32>
    tpu.vector_store %arg39[%c0_105, %c7_106, %c0_107], %134 {strides = array<i32>} : memref<18x32x16xf32, #tpu.memory_space<vmem>>, vector<18x1x16xf32>,
    %c0_108 = arith.constant 0 : index
    %c24_109 = arith.constant 24 : index
    %c0_110 = arith.constant 0 : index
    %136 = vector.load %arg39[%c0_108, %c24_109, %c0_110] : memref<18x32x16xf32, #tpu.memory_space<vmem>>, vector<18x1x16xf32>
    tpu.vector_store %arg39[%c0_108, %c24_109, %c0_110], %134 {strides = array<i32>} : memref<18x32x16xf32, #tpu.memory_space<vmem>>, vector<18x1x16xf32>,
    %137 = vector.shape_cast %130 : vector<256x16xf32> to vector<16x16x16xf32>
    %c1_111 = arith.constant 1 : index
    %c8_112 = arith.constant 8 : index
    %c0_113 = arith.constant 0 : index
    %138 = vector.load %arg39[%c1_111, %c8_112, %c0_113] : memref<18x32x16xf32, #tpu.memory_space<vmem>>, vector<16x16x16xf32>
    tpu.vector_store %arg39[%c1_111, %c8_112, %c0_113], %137 {strides = array<i32>} : memref<18x32x16xf32, #tpu.memory_space<vmem>>, vector<16x16x16xf32>,
    %c0_114 = arith.constant 0 : index
    %c7_115 = arith.constant 7 : index
    %c0_116 = arith.constant 0 : index
    %139 = vector.load %arg39[%c0_114, %c7_115, %c0_116] : memref<18x32x16xf32, #tpu.memory_space<vmem>>, vector<16x16x16xf32>
    %140 = vector.shape_cast %139 : vector<16x16x16xf32> to vector<256x16xf32>
    %141 = arith.truncf %140 : vector<256x16xf32> to vector<256x16xbf16>
    %c0_117 = arith.constant 0 : index
    %c0_118 = arith.constant 0 : index
    %c0_119 = arith.constant 0 : index
    %142 = vector.load %arg8[%c0_117, %c0_118, %c0_119] : memref<9x16x16xbf16, #tpu.memory_space<vmem>>, vector<1x16x16xbf16>
    %143 = vector.shape_cast %142 : vector<1x16x16xbf16> to vector<16x16xbf16>
    %cst_120 = arith.constant dense<0.000000e+00> : vector<256x16xf32>
    %144 = tpu.matmul %141, %143, %cst_120 {dimension_numbers = #tpu.dot_dimension_numbers<[1], [0], [0], [1], [0, 0, 1, 1], [], []>} : vector<256x16xbf16>, vector<16x16xbf16>, vector<256x16xf32> -> vector<256x16xf32>
    %c0_121 = arith.constant 0 : index
    %c8_122 = arith.constant 8 : index
    %c0_123 = arith.constant 0 : index
    %145 = vector.load %arg39[%c0_121, %c8_122, %c0_123] : memref<18x32x16xf32, #tpu.memory_space<vmem>>, vector<16x16x16xf32>
    %146 = vector.shape_cast %145 : vector<16x16x16xf32> to vector<256x16xf32>
    %147 = arith.truncf %146 : vector<256x16xf32> to vector<256x16xbf16>
    %c1_124 = arith.constant 1 : index
    %c0_125 = arith.constant 0 : index
    %c0_126 = arith.constant 0 : index
    %148 = vector.load %arg8[%c1_124, %c0_125, %c0_126] : memref<9x16x16xbf16, #tpu.memory_space<vmem>>, vector<1x16x16xbf16>
    %149 = vector.shape_cast %148 : vector<1x16x16xbf16> to vector<16x16xbf16>
    %cst_127 = arith.constant dense<0.000000e+00> : vector<256x16xf32>
    %150 = tpu.matmul %147, %149, %cst_127 {dimension_numbers = #tpu.dot_dimension_numbers<[1], [0], [0], [1], [0, 0, 1, 1], [], []>} : vector<256x16xbf16>, vector<16x16xbf16>, vector<256x16xf32> -> vector<256x16xf32>
    %151 = arith.addf %144, %150 : vector<256x16xf32>
    %c0_128 = arith.constant 0 : index
    %c9_129 = arith.constant 9 : index
    %c0_130 = arith.constant 0 : index
    %152 = vector.load %arg39[%c0_128, %c9_129, %c0_130] : memref<18x32x16xf32, #tpu.memory_space<vmem>>, vector<16x16x16xf32>
    %153 = vector.shape_cast %152 : vector<16x16x16xf32> to vector<256x16xf32>
    %154 = arith.truncf %153 : vector<256x16xf32> to vector<256x16xbf16>
    %c2_131 = arith.constant 2 : index
    %c0_132 = arith.constant 0 : index
    %c0_133 = arith.constant 0 : index
    %155 = vector.load %arg8[%c2_131, %c0_132, %c0_133] : memref<9x16x16xbf16, #tpu.memory_space<vmem>>, vector<1x16x16xbf16>
    %156 = vector.shape_cast %155 : vector<1x16x16xbf16> to vector<16x16xbf16>
    %cst_134 = arith.constant dense<0.000000e+00> : vector<256x16xf32>
    %157 = tpu.matmul %154, %156, %cst_134 {dimension_numbers = #tpu.dot_dimension_numbers<[1], [0], [0], [1], [0, 0, 1, 1], [], []>} : vector<256x16xbf16>, vector<16x16xbf16>, vector<256x16xf32> -> vector<256x16xf32>
    %158 = arith.addf %151, %157 : vector<256x16xf32>
    %c1_135 = arith.constant 1 : index
    %c7_136 = arith.constant 7 : index
    %c0_137 = arith.constant 0 : index
    %159 = vector.load %arg39[%c1_135, %c7_136, %c0_137] : memref<18x32x16xf32, #tpu.memory_space<vmem>>, vector<16x16x16xf32>
    %160 = vector.shape_cast %159 : vector<16x16x16xf32> to vector<256x16xf32>
    %161 = arith.truncf %160 : vector<256x16xf32> to vector<256x16xbf16>
    %c3_138 = arith.constant 3 : index
    %c0_139 = arith.constant 0 : index
    %c0_140 = arith.constant 0 : index
    %162 = vector.load %arg8[%c3_138, %c0_139, %c0_140] : memref<9x16x16xbf16, #tpu.memory_space<vmem>>, vector<1x16x16xbf16>
    %163 = vector.shape_cast %162 : vector<1x16x16xbf16> to vector<16x16xbf16>
    %cst_141 = arith.constant dense<0.000000e+00> : vector<256x16xf32>
    %164 = tpu.matmul %161, %163, %cst_141 {dimension_numbers = #tpu.dot_dimension_numbers<[1], [0], [0], [1], [0, 0, 1, 1], [], []>} : vector<256x16xbf16>, vector<16x16xbf16>, vector<256x16xf32> -> vector<256x16xf32>
    %165 = arith.addf %158, %164 : vector<256x16xf32>
    %c1_142 = arith.constant 1 : index
    %c8_143 = arith.constant 8 : index
    %c0_144 = arith.constant 0 : index
    %166 = vector.load %arg39[%c1_142, %c8_143, %c0_144] : memref<18x32x16xf32, #tpu.memory_space<vmem>>, vector<16x16x16xf32>
    %167 = vector.shape_cast %166 : vector<16x16x16xf32> to vector<256x16xf32>
    %168 = arith.truncf %167 : vector<256x16xf32> to vector<256x16xbf16>
    %c4_145 = arith.constant 4 : index
    %c0_146 = arith.constant 0 : index
    %c0_147 = arith.constant 0 : index
    %169 = vector.load %arg8[%c4_145, %c0_146, %c0_147] : memref<9x16x16xbf16, #tpu.memory_space<vmem>>, vector<1x16x16xbf16>
    %170 = vector.shape_cast %169 : vector<1x16x16xbf16> to vector<16x16xbf16>
    %cst_148 = arith.constant dense<0.000000e+00> : vector<256x16xf32>
    %171 = tpu.matmul %168, %170, %cst_148 {dimension_numbers = #tpu.dot_dimension_numbers<[1], [0], [0], [1], [0, 0, 1, 1], [], []>} : vector<256x16xbf16>, vector<16x16xbf16>, vector<256x16xf32> -> vector<256x16xf32>
    %172 = arith.addf %165, %171 : vector<256x16xf32>
    %c1_149 = arith.constant 1 : index
    %c9_150 = arith.constant 9 : index
    %c0_151 = arith.constant 0 : index
    %173 = vector.load %arg39[%c1_149, %c9_150, %c0_151] : memref<18x32x16xf32, #tpu.memory_space<vmem>>, vector<16x16x16xf32>
    %174 = vector.shape_cast %173 : vector<16x16x16xf32> to vector<256x16xf32>
    %175 = arith.truncf %174 : vector<256x16xf32> to vector<256x16xbf16>
    %c5_152 = arith.constant 5 : index
    %c0_153 = arith.constant 0 : index
    %c0_154 = arith.constant 0 : index
    %176 = vector.load %arg8[%c5_152, %c0_153, %c0_154] : memref<9x16x16xbf16, #tpu.memory_space<vmem>>, vector<1x16x16xbf16>
    %177 = vector.shape_cast %176 : vector<1x16x16xbf16> to vector<16x16xbf16>
    %cst_155 = arith.constant dense<0.000000e+00> : vector<256x16xf32>
    %178 = tpu.matmul %175, %177, %cst_155 {dimension_numbers = #tpu.dot_dimension_numbers<[1], [0], [0], [1], [0, 0, 1, 1], [], []>} : vector<256x16xbf16>, vector<16x16xbf16>, vector<256x16xf32> -> vector<256x16xf32>
    %179 = arith.addf %172, %178 : vector<256x16xf32>
    %c2_156 = arith.constant 2 : index
    %c7_157 = arith.constant 7 : index
    %c0_158 = arith.constant 0 : index
    %180 = vector.load %arg39[%c2_156, %c7_157, %c0_158] : memref<18x32x16xf32, #tpu.memory_space<vmem>>, vector<16x16x16xf32>
    %181 = vector.shape_cast %180 : vector<16x16x16xf32> to vector<256x16xf32>
    %182 = arith.truncf %181 : vector<256x16xf32> to vector<256x16xbf16>
    %c6_159 = arith.constant 6 : index
    %c0_160 = arith.constant 0 : index
    %c0_161 = arith.constant 0 : index
    %183 = vector.load %arg8[%c6_159, %c0_160, %c0_161] : memref<9x16x16xbf16, #tpu.memory_space<vmem>>, vector<1x16x16xbf16>
    %184 = vector.shape_cast %183 : vector<1x16x16xbf16> to vector<16x16xbf16>
    %cst_162 = arith.constant dense<0.000000e+00> : vector<256x16xf32>
    %185 = tpu.matmul %182, %184, %cst_162 {dimension_numbers = #tpu.dot_dimension_numbers<[1], [0], [0], [1], [0, 0, 1, 1], [], []>} : vector<256x16xbf16>, vector<16x16xbf16>, vector<256x16xf32> -> vector<256x16xf32>
    %186 = arith.addf %179, %185 : vector<256x16xf32>
    %c2_163 = arith.constant 2 : index
    %c8_164 = arith.constant 8 : index
    %c0_165 = arith.constant 0 : index
    %187 = vector.load %arg39[%c2_163, %c8_164, %c0_165] : memref<18x32x16xf32, #tpu.memory_space<vmem>>, vector<16x16x16xf32>
    %188 = vector.shape_cast %187 : vector<16x16x16xf32> to vector<256x16xf32>
    %189 = arith.truncf %188 : vector<256x16xf32> to vector<256x16xbf16>
    %c7_166 = arith.constant 7 : index
    %c0_167 = arith.constant 0 : index
    %c0_168 = arith.constant 0 : index
    %190 = vector.load %arg8[%c7_166, %c0_167, %c0_168] : memref<9x16x16xbf16, #tpu.memory_space<vmem>>, vector<1x16x16xbf16>
    %191 = vector.shape_cast %190 : vector<1x16x16xbf16> to vector<16x16xbf16>
    %cst_169 = arith.constant dense<0.000000e+00> : vector<256x16xf32>
    %192 = tpu.matmul %189, %191, %cst_169 {dimension_numbers = #tpu.dot_dimension_numbers<[1], [0], [0], [1], [0, 0, 1, 1], [], []>} : vector<256x16xbf16>, vector<16x16xbf16>, vector<256x16xf32> -> vector<256x16xf32>
    %193 = arith.addf %186, %192 : vector<256x16xf32>
    %c2_170 = arith.constant 2 : index
    %c9_171 = arith.constant 9 : index
    %c0_172 = arith.constant 0 : index
    %194 = vector.load %arg39[%c2_170, %c9_171, %c0_172] : memref<18x32x16xf32, #tpu.memory_space<vmem>>, vector<16x16x16xf32>
    %195 = vector.shape_cast %194 : vector<16x16x16xf32> to vector<256x16xf32>
    %196 = arith.truncf %195 : vector<256x16xf32> to vector<256x16xbf16>
    %c8_173 = arith.constant 8 : index
    %c0_174 = arith.constant 0 : index
    %c0_175 = arith.constant 0 : index
    %197 = vector.load %arg8[%c8_173, %c0_174, %c0_175] : memref<9x16x16xbf16, #tpu.memory_space<vmem>>, vector<1x16x16xbf16>
    %198 = vector.shape_cast %197 : vector<1x16x16xbf16> to vector<16x16xbf16>
    %cst_176 = arith.constant dense<0.000000e+00> : vector<256x16xf32>
    %199 = tpu.matmul %196, %198, %cst_176 {dimension_numbers = #tpu.dot_dimension_numbers<[1], [0], [0], [1], [0, 0, 1, 1], [], []>} : vector<256x16xbf16>, vector<16x16xbf16>, vector<256x16xf32> -> vector<256x16xf32>
    %200 = arith.addf %193, %199 : vector<256x16xf32>
    %201 = arith.addf %200, %7 : vector<256x16xf32>
    %c0_177 = arith.constant 0 : index
    %c0_178 = arith.constant 0 : index
    %202 = vector.load %arg9[%c0_177, %c0_178] : memref<1x16xf32, #tpu.memory_space<vmem>>, vector<1x16xf32>
    %203 = vector.broadcast %202 : vector<1x16xf32> to vector<256x16xf32>
    %204 = arith.addf %201, %203 : vector<256x16xf32>
    %c0_179 = arith.constant 0 : index
    %c0_180 = arith.constant 0 : index
    %205 = vector.load %arg10[%c0_179, %c0_180] : memref<2x16xf32, #tpu.memory_space<vmem>>, vector<1x16xf32>
    %c1_181 = arith.constant 1 : index
    %c0_182 = arith.constant 0 : index
    %206 = vector.load %arg10[%c1_181, %c0_182] : memref<2x16xf32, #tpu.memory_space<vmem>>, vector<1x16xf32>
    %cst_183 = arith.constant dense<0.000000e+00> : vector<16xf32>
    %207 = vector.multi_reduction <add>, %204, %cst_183 [0] : vector<256x16xf32> to vector<16xf32>
    %208 = vector.shape_cast %207 : vector<16xf32> to vector<1x16xf32>
    %209 = arith.mulf %204, %204 : vector<256x16xf32>
    %cst_184 = arith.constant dense<0.000000e+00> : vector<16xf32>
    %210 = vector.multi_reduction <add>, %209, %cst_184 [0] : vector<256x16xf32> to vector<16xf32>
    %211 = vector.shape_cast %210 : vector<16xf32> to vector<1x16xf32>
    %cst_185 = arith.constant 2.560000e+02 : f32
    %212 = vector.broadcast %cst_185 : f32 to vector<1x16xf32>
    %213 = arith.divf %208, %212 : vector<1x16xf32>
    %cst_186 = arith.constant 2.560000e+02 : f32
    %214 = vector.broadcast %cst_186 : f32 to vector<1x16xf32>
    %215 = arith.divf %211, %214 : vector<1x16xf32>
    %216 = arith.mulf %213, %213 : vector<1x16xf32>
    %217 = arith.subf %215, %216 : vector<1x16xf32>
    %cst_187 = arith.constant 9.99999974E-6 : f32
    %218 = vector.broadcast %cst_187 : f32 to vector<1x16xf32>
    %219 = arith.addf %217, %218 : vector<1x16xf32>
    %220 = math.rsqrt %219 : vector<1x16xf32>
    %221 = arith.mulf %220, %205 : vector<1x16xf32>
    %222 = arith.mulf %213, %221 : vector<1x16xf32>
    %223 = arith.subf %206, %222 : vector<1x16xf32>
    %224 = vector.broadcast %221 : vector<1x16xf32> to vector<256x16xf32>
    %225 = arith.mulf %204, %224 : vector<256x16xf32>
    %226 = vector.broadcast %223 : vector<1x16xf32> to vector<256x16xf32>
    %227 = arith.addf %225, %226 : vector<256x16xf32>
    %cst_188 = arith.constant 0.000000e+00 : f32
    %228 = vector.broadcast %cst_188 : f32 to vector<256x16xf32>
    %229 = arith.maximumf %227, %228 : vector<256x16xf32>
    %cst_189 = arith.constant 0.000000e+00 : f32
    %230 = vector.broadcast %cst_189 : f32 to vector<1x32x16xf32>
    %c0_190 = arith.constant 0 : index
    %c0_191 = arith.constant 0 : index
    %c0_192 = arith.constant 0 : index
    %231 = vector.load %arg40[%c0_190, %c0_191, %c0_192] : memref<18x32x16xf32, #tpu.memory_space<vmem>>, vector<1x32x16xf32>
    tpu.vector_store %arg40[%c0_190, %c0_191, %c0_192], %230 {strides = array<i32>} : memref<18x32x16xf32, #tpu.memory_space<vmem>>, vector<1x32x16xf32>,
    %c17_193 = arith.constant 17 : index
    %c0_194 = arith.constant 0 : index
    %c0_195 = arith.constant 0 : index
    %232 = vector.load %arg40[%c17_193, %c0_194, %c0_195] : memref<18x32x16xf32, #tpu.memory_space<vmem>>, vector<1x32x16xf32>
    tpu.vector_store %arg40[%c17_193, %c0_194, %c0_195], %230 {strides = array<i32>} : memref<18x32x16xf32, #tpu.memory_space<vmem>>, vector<1x32x16xf32>,
    %cst_196 = arith.constant 0.000000e+00 : f32
    %233 = vector.broadcast %cst_196 : f32 to vector<18x1x16xf32>
    %c0_197 = arith.constant 0 : index
    %c7_198 = arith.constant 7 : index
    %c0_199 = arith.constant 0 : index
    %234 = vector.load %arg40[%c0_197, %c7_198, %c0_199] : memref<18x32x16xf32, #tpu.memory_space<vmem>>, vector<18x1x16xf32>
    tpu.vector_store %arg40[%c0_197, %c7_198, %c0_199], %233 {strides = array<i32>} : memref<18x32x16xf32, #tpu.memory_space<vmem>>, vector<18x1x16xf32>,
    %c0_200 = arith.constant 0 : index
    %c24_201 = arith.constant 24 : index
    %c0_202 = arith.constant 0 : index
    %235 = vector.load %arg40[%c0_200, %c24_201, %c0_202] : memref<18x32x16xf32, #tpu.memory_space<vmem>>, vector<18x1x16xf32>
    tpu.vector_store %arg40[%c0_200, %c24_201, %c0_202], %233 {strides = array<i32>} : memref<18x32x16xf32, #tpu.memory_space<vmem>>, vector<18x1x16xf32>,
    %236 = vector.shape_cast %229 : vector<256x16xf32> to vector<16x16x16xf32>
    %c1_203 = arith.constant 1 : index
    %c8_204 = arith.constant 8 : index
    %c0_205 = arith.constant 0 : index
    %237 = vector.load %arg40[%c1_203, %c8_204, %c0_205] : memref<18x32x16xf32, #tpu.memory_space<vmem>>, vector<16x16x16xf32>
    tpu.vector_store %arg40[%c1_203, %c8_204, %c0_205], %236 {strides = array<i32>} : memref<18x32x16xf32, #tpu.memory_space<vmem>>, vector<16x16x16xf32>,
    %c0_206 = arith.constant 0 : index
    %c7_207 = arith.constant 7 : index
    %c0_208 = arith.constant 0 : index
    %238 = vector.load %arg40[%c0_206, %c7_207, %c0_208] : memref<18x32x16xf32, #tpu.memory_space<vmem>>, vector<16x16x16xf32>
    %239 = vector.shape_cast %238 : vector<16x16x16xf32> to vector<256x16xf32>
    %240 = arith.truncf %239 : vector<256x16xf32> to vector<256x16xbf16>
    %c0_209 = arith.constant 0 : index
    %c0_210 = arith.constant 0 : index
    %c0_211 = arith.constant 0 : index
    %241 = vector.load %arg11[%c0_209, %c0_210, %c0_211] : memref<9x16x32xbf16, #tpu.memory_space<vmem>>, vector<1x16x32xbf16>
    %242 = vector.shape_cast %241 : vector<1x16x32xbf16> to vector<16x32xbf16>
    %cst_212 = arith.constant dense<0.000000e+00> : vector<256x32xf32>
    %243 = tpu.matmul %240, %242, %cst_212 {dimension_numbers = #tpu.dot_dimension_numbers<[1], [0], [0], [1], [0, 0, 1, 1], [], []>} : vector<256x16xbf16>, vector<16x32xbf16>, vector<256x32xf32> -> vector<256x32xf32>
    %c0_213 = arith.constant 0 : index
    %c8_214 = arith.constant 8 : index
    %c0_215 = arith.constant 0 : index
    %244 = vector.load %arg40[%c0_213, %c8_214, %c0_215] : memref<18x32x16xf32, #tpu.memory_space<vmem>>, vector<16x16x16xf32>
    %245 = vector.shape_cast %244 : vector<16x16x16xf32> to vector<256x16xf32>
    %246 = arith.truncf %245 : vector<256x16xf32> to vector<256x16xbf16>
    %c1_216 = arith.constant 1 : index
    %c0_217 = arith.constant 0 : index
    %c0_218 = arith.constant 0 : index
    %247 = vector.load %arg11[%c1_216, %c0_217, %c0_218] : memref<9x16x32xbf16, #tpu.memory_space<vmem>>, vector<1x16x32xbf16>
    %248 = vector.shape_cast %247 : vector<1x16x32xbf16> to vector<16x32xbf16>
    %cst_219 = arith.constant dense<0.000000e+00> : vector<256x32xf32>
    %249 = tpu.matmul %246, %248, %cst_219 {dimension_numbers = #tpu.dot_dimension_numbers<[1], [0], [0], [1], [0, 0, 1, 1], [], []>} : vector<256x16xbf16>, vector<16x32xbf16>, vector<256x32xf32> -> vector<256x32xf32>
    %250 = arith.addf %243, %249 : vector<256x32xf32>
    %c0_220 = arith.constant 0 : index
    %c9_221 = arith.constant 9 : index
    %c0_222 = arith.constant 0 : index
    %251 = vector.load %arg40[%c0_220, %c9_221, %c0_222] : memref<18x32x16xf32, #tpu.memory_space<vmem>>, vector<16x16x16xf32>
    %252 = vector.shape_cast %251 : vector<16x16x16xf32> to vector<256x16xf32>
    %253 = arith.truncf %252 : vector<256x16xf32> to vector<256x16xbf16>
    %c2_223 = arith.constant 2 : index
    %c0_224 = arith.constant 0 : index
    %c0_225 = arith.constant 0 : index
    %254 = vector.load %arg11[%c2_223, %c0_224, %c0_225] : memref<9x16x32xbf16, #tpu.memory_space<vmem>>, vector<1x16x32xbf16>
    %255 = vector.shape_cast %254 : vector<1x16x32xbf16> to vector<16x32xbf16>
    %cst_226 = arith.constant dense<0.000000e+00> : vector<256x32xf32>
    %256 = tpu.matmul %253, %255, %cst_226 {dimension_numbers = #tpu.dot_dimension_numbers<[1], [0], [0], [1], [0, 0, 1, 1], [], []>} : vector<256x16xbf16>, vector<16x32xbf16>, vector<256x32xf32> -> vector<256x32xf32>
    %257 = arith.addf %250, %256 : vector<256x32xf32>
    %c1_227 = arith.constant 1 : index
    %c7_228 = arith.constant 7 : index
    %c0_229 = arith.constant 0 : index
    %258 = vector.load %arg40[%c1_227, %c7_228, %c0_229] : memref<18x32x16xf32, #tpu.memory_space<vmem>>, vector<16x16x16xf32>
    %259 = vector.shape_cast %258 : vector<16x16x16xf32> to vector<256x16xf32>
    %260 = arith.truncf %259 : vector<256x16xf32> to vector<256x16xbf16>
    %c3_230 = arith.constant 3 : index
    %c0_231 = arith.constant 0 : index
    %c0_232 = arith.constant 0 : index
    %261 = vector.load %arg11[%c3_230, %c0_231, %c0_232] : memref<9x16x32xbf16, #tpu.memory_space<vmem>>, vector<1x16x32xbf16>
    %262 = vector.shape_cast %261 : vector<1x16x32xbf16> to vector<16x32xbf16>
    %cst_233 = arith.constant dense<0.000000e+00> : vector<256x32xf32>
    %263 = tpu.matmul %260, %262, %cst_233 {dimension_numbers = #tpu.dot_dimension_numbers<[1], [0], [0], [1], [0, 0, 1, 1], [], []>} : vector<256x16xbf16>, vector<16x32xbf16>, vector<256x32xf32> -> vector<256x32xf32>
    %264 = arith.addf %257, %263 : vector<256x32xf32>
    %c1_234 = arith.constant 1 : index
    %c8_235 = arith.constant 8 : index
    %c0_236 = arith.constant 0 : index
    %265 = vector.load %arg40[%c1_234, %c8_235, %c0_236] : memref<18x32x16xf32, #tpu.memory_space<vmem>>, vector<16x16x16xf32>
    %266 = vector.shape_cast %265 : vector<16x16x16xf32> to vector<256x16xf32>
    %267 = arith.truncf %266 : vector<256x16xf32> to vector<256x16xbf16>
    %c4_237 = arith.constant 4 : index
    %c0_238 = arith.constant 0 : index
    %c0_239 = arith.constant 0 : index
    %268 = vector.load %arg11[%c4_237, %c0_238, %c0_239] : memref<9x16x32xbf16, #tpu.memory_space<vmem>>, vector<1x16x32xbf16>
    %269 = vector.shape_cast %268 : vector<1x16x32xbf16> to vector<16x32xbf16>
    %cst_240 = arith.constant dense<0.000000e+00> : vector<256x32xf32>
    %270 = tpu.matmul %267, %269, %cst_240 {dimension_numbers = #tpu.dot_dimension_numbers<[1], [0], [0], [1], [0, 0, 1, 1], [], []>} : vector<256x16xbf16>, vector<16x32xbf16>, vector<256x32xf32> -> vector<256x32xf32>
    %271 = arith.addf %264, %270 : vector<256x32xf32>
    %c1_241 = arith.constant 1 : index
    %c9_242 = arith.constant 9 : index
    %c0_243 = arith.constant 0 : index
    %272 = vector.load %arg40[%c1_241, %c9_242, %c0_243] : memref<18x32x16xf32, #tpu.memory_space<vmem>>, vector<16x16x16xf32>
    %273 = vector.shape_cast %272 : vector<16x16x16xf32> to vector<256x16xf32>
    %274 = arith.truncf %273 : vector<256x16xf32> to vector<256x16xbf16>
    %c5_244 = arith.constant 5 : index
    %c0_245 = arith.constant 0 : index
    %c0_246 = arith.constant 0 : index
    %275 = vector.load %arg11[%c5_244, %c0_245, %c0_246] : memref<9x16x32xbf16, #tpu.memory_space<vmem>>, vector<1x16x32xbf16>
    %276 = vector.shape_cast %275 : vector<1x16x32xbf16> to vector<16x32xbf16>
    %cst_247 = arith.constant dense<0.000000e+00> : vector<256x32xf32>
    %277 = tpu.matmul %274, %276, %cst_247 {dimension_numbers = #tpu.dot_dimension_numbers<[1], [0], [0], [1], [0, 0, 1, 1], [], []>} : vector<256x16xbf16>, vector<16x32xbf16>, vector<256x32xf32> -> vector<256x32xf32>
    %278 = arith.addf %271, %277 : vector<256x32xf32>
    %c2_248 = arith.constant 2 : index
    %c7_249 = arith.constant 7 : index
    %c0_250 = arith.constant 0 : index
    %279 = vector.load %arg40[%c2_248, %c7_249, %c0_250] : memref<18x32x16xf32, #tpu.memory_space<vmem>>, vector<16x16x16xf32>
    %280 = vector.shape_cast %279 : vector<16x16x16xf32> to vector<256x16xf32>
    %281 = arith.truncf %280 : vector<256x16xf32> to vector<256x16xbf16>
    %c6_251 = arith.constant 6 : index
    %c0_252 = arith.constant 0 : index
    %c0_253 = arith.constant 0 : index
    %282 = vector.load %arg11[%c6_251, %c0_252, %c0_253] : memref<9x16x32xbf16, #tpu.memory_space<vmem>>, vector<1x16x32xbf16>
    %283 = vector.shape_cast %282 : vector<1x16x32xbf16> to vector<16x32xbf16>
    %cst_254 = arith.constant dense<0.000000e+00> : vector<256x32xf32>
    %284 = tpu.matmul %281, %283, %cst_254 {dimension_numbers = #tpu.dot_dimension_numbers<[1], [0], [0], [1], [0, 0, 1, 1], [], []>} : vector<256x16xbf16>, vector<16x32xbf16>, vector<256x32xf32> -> vector<256x32xf32>
    %285 = arith.addf %278, %284 : vector<256x32xf32>
    %c2_255 = arith.constant 2 : index
    %c8_256 = arith.constant 8 : index
    %c0_257 = arith.constant 0 : index
    %286 = vector.load %arg40[%c2_255, %c8_256, %c0_257] : memref<18x32x16xf32, #tpu.memory_space<vmem>>, vector<16x16x16xf32>
    %287 = vector.shape_cast %286 : vector<16x16x16xf32> to vector<256x16xf32>
    %288 = arith.truncf %287 : vector<256x16xf32> to vector<256x16xbf16>
    %c7_258 = arith.constant 7 : index
    %c0_259 = arith.constant 0 : index
    %c0_260 = arith.constant 0 : index
    %289 = vector.load %arg11[%c7_258, %c0_259, %c0_260] : memref<9x16x32xbf16, #tpu.memory_space<vmem>>, vector<1x16x32xbf16>
    %290 = vector.shape_cast %289 : vector<1x16x32xbf16> to vector<16x32xbf16>
    %cst_261 = arith.constant dense<0.000000e+00> : vector<256x32xf32>
    %291 = tpu.matmul %288, %290, %cst_261 {dimension_numbers = #tpu.dot_dimension_numbers<[1], [0], [0], [1], [0, 0, 1, 1], [], []>} : vector<256x16xbf16>, vector<16x32xbf16>, vector<256x32xf32> -> vector<256x32xf32>
    %292 = arith.addf %285, %291 : vector<256x32xf32>
    %c2_262 = arith.constant 2 : index
    %c9_263 = arith.constant 9 : index
    %c0_264 = arith.constant 0 : index
    %293 = vector.load %arg40[%c2_262, %c9_263, %c0_264] : memref<18x32x16xf32, #tpu.memory_space<vmem>>, vector<16x16x16xf32>
    %294 = vector.shape_cast %293 : vector<16x16x16xf32> to vector<256x16xf32>
    %295 = arith.truncf %294 : vector<256x16xf32> to vector<256x16xbf16>
    %c8_265 = arith.constant 8 : index
    %c0_266 = arith.constant 0 : index
    %c0_267 = arith.constant 0 : index
    %296 = vector.load %arg11[%c8_265, %c0_266, %c0_267] : memref<9x16x32xbf16, #tpu.memory_space<vmem>>, vector<1x16x32xbf16>
    %297 = vector.shape_cast %296 : vector<1x16x32xbf16> to vector<16x32xbf16>
    %cst_268 = arith.constant dense<0.000000e+00> : vector<256x32xf32>
    %298 = tpu.matmul %295, %297, %cst_268 {dimension_numbers = #tpu.dot_dimension_numbers<[1], [0], [0], [1], [0, 0, 1, 1], [], []>} : vector<256x16xbf16>, vector<16x32xbf16>, vector<256x32xf32> -> vector<256x32xf32>
    %299 = arith.addf %292, %298 : vector<256x32xf32>
    %c0_269 = arith.constant 0 : index
    %c0_270 = arith.constant 0 : index
    %300 = vector.load %arg12[%c0_269, %c0_270] : memref<1x32xf32, #tpu.memory_space<vmem>>, vector<1x32xf32>
    %301 = vector.broadcast %300 : vector<1x32xf32> to vector<256x32xf32>
    %302 = arith.addf %299, %301 : vector<256x32xf32>
    %c0_271 = arith.constant 0 : index
    %c0_272 = arith.constant 0 : index
    %303 = vector.load %arg13[%c0_271, %c0_272] : memref<2x32xf32, #tpu.memory_space<vmem>>, vector<1x32xf32>
    %c1_273 = arith.constant 1 : index
    %c0_274 = arith.constant 0 : index
    %304 = vector.load %arg13[%c1_273, %c0_274] : memref<2x32xf32, #tpu.memory_space<vmem>>, vector<1x32xf32>
    %cst_275 = arith.constant dense<0.000000e+00> : vector<32xf32>
    %305 = vector.multi_reduction <add>, %302, %cst_275 [0] : vector<256x32xf32> to vector<32xf32>
    %306 = vector.shape_cast %305 : vector<32xf32> to vector<1x32xf32>
    %307 = arith.mulf %302, %302 : vector<256x32xf32>
    %cst_276 = arith.constant dense<0.000000e+00> : vector<32xf32>
    %308 = vector.multi_reduction <add>, %307, %cst_276 [0] : vector<256x32xf32> to vector<32xf32>
    %309 = vector.shape_cast %308 : vector<32xf32> to vector<1x32xf32>
    %310 = tpu.concatenate %306, %309 in 0 : vector<1x32xf32>, vector<1x32xf32> -> vector<2x32xf32>
    %c0_277 = arith.constant 0 : index
    %c0_278 = arith.constant 0 : index
    %311 = vector.load %arg14[%c0_277, %c0_278] : memref<32x16xf32, #tpu.memory_space<vmem>>, vector<32x16xf32>
    %cst_279 = arith.constant dense<0.000000e+00> : vector<2x16xf32>
    %312 = tpu.matmul %310, %311, %cst_279 {dimension_numbers = #tpu.dot_dimension_numbers<[1], [0], [0], [1], [0, 0, 1, 1], [], []>} : vector<2x32xf32>, vector<32x16xf32>, vector<2x16xf32> -> vector<2x16xf32>
    %313 = vector.extract_strided_slice %312 {offsets = [0, 0], sizes = [1, 16], strides = [1, 1]} : vector<2x16xf32> to vector<1x16xf32>
    %cst_280 = arith.constant 5.120000e+02 : f32
    %314 = vector.broadcast %cst_280 : f32 to vector<1x16xf32>
    %315 = arith.divf %313, %314 : vector<1x16xf32>
    %316 = vector.extract_strided_slice %312 {offsets = [1, 0], sizes = [1, 16], strides = [1, 1]} : vector<2x16xf32> to vector<1x16xf32>
    %cst_281 = arith.constant 5.120000e+02 : f32
    %317 = vector.broadcast %cst_281 : f32 to vector<1x16xf32>
    %318 = arith.divf %316, %317 : vector<1x16xf32>
    %319 = arith.mulf %315, %315 : vector<1x16xf32>
    %320 = arith.subf %318, %319 : vector<1x16xf32>
    %cst_282 = arith.constant 9.99999974E-6 : f32
    %321 = vector.broadcast %cst_282 : f32 to vector<1x16xf32>
    %322 = arith.addf %320, %321 : vector<1x16xf32>
    %323 = math.rsqrt %322 : vector<1x16xf32>
    %324 = tpu.concatenate %315, %323 in 0 : vector<1x16xf32>, vector<1x16xf32> -> vector<2x16xf32>
    %c0_283 = arith.constant 0 : index
    %c0_284 = arith.constant 0 : index
    %325 = vector.load %arg15[%c0_283, %c0_284] : memref<16x32xf32, #tpu.memory_space<vmem>>, vector<16x32xf32>
    %cst_285 = arith.constant dense<0.000000e+00> : vector<2x32xf32>
    %326 = tpu.matmul %324, %325, %cst_285 {dimension_numbers = #tpu.dot_dimension_numbers<[1], [0], [0], [1], [0, 0, 1, 1], [], []>} : vector<2x16xf32>, vector<16x32xf32>, vector<2x32xf32> -> vector<2x32xf32>
    %327 = vector.extract_strided_slice %326 {offsets = [0, 0], sizes = [1, 32], strides = [1, 1]} : vector<2x32xf32> to vector<1x32xf32>
    %328 = vector.extract_strided_slice %326 {offsets = [1, 0], sizes = [1, 32], strides = [1, 1]} : vector<2x32xf32> to vector<1x32xf32>
    %329 = arith.mulf %328, %303 : vector<1x32xf32>
    %330 = arith.mulf %327, %329 : vector<1x32xf32>
    %331 = arith.subf %304, %330 : vector<1x32xf32>
    %332 = vector.broadcast %329 : vector<1x32xf32> to vector<256x32xf32>
    %333 = arith.mulf %302, %332 : vector<256x32xf32>
    %334 = vector.broadcast %331 : vector<1x32xf32> to vector<256x32xf32>
    %335 = arith.addf %333, %334 : vector<256x32xf32>
    %cst_286 = arith.constant 0.000000e+00 : f32
    %336 = vector.broadcast %cst_286 : f32 to vector<256x32xf32>
    %337 = arith.maximumf %335, %336 : vector<256x32xf32>
    %cst_287 = arith.constant 0.000000e+00 : f32
    %338 = vector.broadcast %cst_287 : f32 to vector<1x32x32xf32>
    %c0_288 = arith.constant 0 : index
    %c0_289 = arith.constant 0 : index
    %c0_290 = arith.constant 0 : index
    %339 = vector.load %arg42[%c0_288, %c0_289, %c0_290] : memref<9x32x32xf32, #tpu.memory_space<vmem>>, vector<1x32x32xf32>
    tpu.vector_store %arg42[%c0_288, %c0_289, %c0_290], %338 {strides = array<i32>} : memref<9x32x32xf32, #tpu.memory_space<vmem>>, vector<1x32x32xf32>,
    %cst_291 = arith.constant 0.000000e+00 : f32
    %340 = vector.broadcast %cst_291 : f32 to vector<8x1x32xf32>
    %c0_292 = arith.constant 0 : index
    %c7_293 = arith.constant 7 : index
    %c0_294 = arith.constant 0 : index
    %341 = vector.load %arg41[%c0_292, %c7_293, %c0_294] : memref<8x32x32xf32, #tpu.memory_space<vmem>>, vector<8x1x32xf32>
    tpu.vector_store %arg41[%c0_292, %c7_293, %c0_294], %340 {strides = array<i32>} : memref<8x32x32xf32, #tpu.memory_space<vmem>>, vector<8x1x32xf32>,
    %c0_295 = arith.constant 0 : index
    %c24_296 = arith.constant 24 : index
    %c0_297 = arith.constant 0 : index
    %342 = vector.load %arg41[%c0_295, %c24_296, %c0_297] : memref<8x32x32xf32, #tpu.memory_space<vmem>>, vector<8x1x32xf32>
    tpu.vector_store %arg41[%c0_295, %c24_296, %c0_297], %340 {strides = array<i32>} : memref<8x32x32xf32, #tpu.memory_space<vmem>>, vector<8x1x32xf32>,
    %cst_298 = arith.constant 0.000000e+00 : f32
    %343 = vector.broadcast %cst_298 : f32 to vector<9x1x32xf32>
    %c0_299 = arith.constant 0 : index
    %c7_300 = arith.constant 7 : index
    %c0_301 = arith.constant 0 : index
    %344 = vector.load %arg42[%c0_299, %c7_300, %c0_301] : memref<9x32x32xf32, #tpu.memory_space<vmem>>, vector<9x1x32xf32>
    tpu.vector_store %arg42[%c0_299, %c7_300, %c0_301], %343 {strides = array<i32>} : memref<9x32x32xf32, #tpu.memory_space<vmem>>, vector<9x1x32xf32>,
    %c0_302 = arith.constant 0 : index
    %c24_303 = arith.constant 24 : index
    %c0_304 = arith.constant 0 : index
    %345 = vector.load %arg42[%c0_302, %c24_303, %c0_304] : memref<9x32x32xf32, #tpu.memory_space<vmem>>, vector<9x1x32xf32>
    tpu.vector_store %arg42[%c0_302, %c24_303, %c0_304], %343 {strides = array<i32>} : memref<9x32x32xf32, #tpu.memory_space<vmem>>, vector<9x1x32xf32>,
    %346 = vector.shape_cast %337 : vector<256x32xf32> to vector<8x2x16x32xf32>
    %347 = vector.extract_strided_slice %346 {offsets = [0, 0, 0, 0], sizes = [8, 1, 16, 32], strides = [1, 1, 1, 1]} : vector<8x2x16x32xf32> to vector<8x1x16x32xf32>
    %348 = vector.shape_cast %347 : vector<8x1x16x32xf32> to vector<8x16x32xf32>
    %c0_305 = arith.constant 0 : index
    %c8_306 = arith.constant 8 : index
    %c0_307 = arith.constant 0 : index
    %349 = vector.load %arg41[%c0_305, %c8_306, %c0_307] : memref<8x32x32xf32, #tpu.memory_space<vmem>>, vector<8x16x32xf32>
    tpu.vector_store %arg41[%c0_305, %c8_306, %c0_307], %348 {strides = array<i32>} : memref<8x32x32xf32, #tpu.memory_space<vmem>>, vector<8x16x32xf32>,
    %350 = vector.extract_strided_slice %346 {offsets = [0, 1, 0, 0], sizes = [8, 1, 16, 32], strides = [1, 1, 1, 1]} : vector<8x2x16x32xf32> to vector<8x1x16x32xf32>
    %351 = vector.shape_cast %350 : vector<8x1x16x32xf32> to vector<8x16x32xf32>
    %c1_308 = arith.constant 1 : index
    %c8_309 = arith.constant 8 : index
    %c0_310 = arith.constant 0 : index
    %352 = vector.load %arg42[%c1_308, %c8_309, %c0_310] : memref<9x32x32xf32, #tpu.memory_space<vmem>>, vector<8x16x32xf32>
    tpu.vector_store %arg42[%c1_308, %c8_309, %c0_310], %351 {strides = array<i32>} : memref<9x32x32xf32, #tpu.memory_space<vmem>>, vector<8x16x32xf32>,
    %c0_311 = arith.constant 0 : index
    %c7_312 = arith.constant 7 : index
    %c0_313 = arith.constant 0 : index
    %353 = vector.load %arg42[%c0_311, %c7_312, %c0_313] : memref<9x32x32xf32, #tpu.memory_space<vmem>>, vector<8x16x32xf32>
    %354 = vector.shape_cast %353 : vector<8x16x32xf32> to vector<128x32xf32>
    %355 = arith.truncf %354 : vector<128x32xf32> to vector<128x32xbf16>
    %c0_314 = arith.constant 0 : index
    %c0_315 = arith.constant 0 : index
    %c0_316 = arith.constant 0 : index
    %356 = vector.load %arg16[%c0_314, %c0_315, %c0_316] : memref<9x32x32xbf16, #tpu.memory_space<vmem>>, vector<1x32x32xbf16>
    %357 = vector.shape_cast %356 : vector<1x32x32xbf16> to vector<32x32xbf16>
    %cst_317 = arith.constant dense<0.000000e+00> : vector<128x32xf32>
    %358 = tpu.matmul %355, %357, %cst_317 {dimension_numbers = #tpu.dot_dimension_numbers<[1], [0], [0], [1], [0, 0, 1, 1], [], []>} : vector<128x32xbf16>, vector<32x32xbf16>, vector<128x32xf32> -> vector<128x32xf32>
    %c0_318 = arith.constant 0 : index
    %c8_319 = arith.constant 8 : index
    %c0_320 = arith.constant 0 : index
    %359 = vector.load %arg42[%c0_318, %c8_319, %c0_320] : memref<9x32x32xf32, #tpu.memory_space<vmem>>, vector<8x16x32xf32>
    %360 = vector.shape_cast %359 : vector<8x16x32xf32> to vector<128x32xf32>
    %361 = arith.truncf %360 : vector<128x32xf32> to vector<128x32xbf16>
    %c1_321 = arith.constant 1 : index
    %c0_322 = arith.constant 0 : index
    %c0_323 = arith.constant 0 : index
    %362 = vector.load %arg16[%c1_321, %c0_322, %c0_323] : memref<9x32x32xbf16, #tpu.memory_space<vmem>>, vector<1x32x32xbf16>
    %363 = vector.shape_cast %362 : vector<1x32x32xbf16> to vector<32x32xbf16>
    %cst_324 = arith.constant dense<0.000000e+00> : vector<128x32xf32>
    %364 = tpu.matmul %361, %363, %cst_324 {dimension_numbers = #tpu.dot_dimension_numbers<[1], [0], [0], [1], [0, 0, 1, 1], [], []>} : vector<128x32xbf16>, vector<32x32xbf16>, vector<128x32xf32> -> vector<128x32xf32>
    %365 = arith.addf %358, %364 : vector<128x32xf32>
    %c0_325 = arith.constant 0 : index
    %c9_326 = arith.constant 9 : index
    %c0_327 = arith.constant 0 : index
    %366 = vector.load %arg42[%c0_325, %c9_326, %c0_327] : memref<9x32x32xf32, #tpu.memory_space<vmem>>, vector<8x16x32xf32>
    %367 = vector.shape_cast %366 : vector<8x16x32xf32> to vector<128x32xf32>
    %368 = arith.truncf %367 : vector<128x32xf32> to vector<128x32xbf16>
    %c2_328 = arith.constant 2 : index
    %c0_329 = arith.constant 0 : index
    %c0_330 = arith.constant 0 : index
    %369 = vector.load %arg16[%c2_328, %c0_329, %c0_330] : memref<9x32x32xbf16, #tpu.memory_space<vmem>>, vector<1x32x32xbf16>
    %370 = vector.shape_cast %369 : vector<1x32x32xbf16> to vector<32x32xbf16>
    %cst_331 = arith.constant dense<0.000000e+00> : vector<128x32xf32>
    %371 = tpu.matmul %368, %370, %cst_331 {dimension_numbers = #tpu.dot_dimension_numbers<[1], [0], [0], [1], [0, 0, 1, 1], [], []>} : vector<128x32xbf16>, vector<32x32xbf16>, vector<128x32xf32> -> vector<128x32xf32>
    %372 = arith.addf %365, %371 : vector<128x32xf32>
    %c0_332 = arith.constant 0 : index
    %c7_333 = arith.constant 7 : index
    %c0_334 = arith.constant 0 : index
    %373 = vector.load %arg41[%c0_332, %c7_333, %c0_334] : memref<8x32x32xf32, #tpu.memory_space<vmem>>, vector<8x16x32xf32>
    %374 = vector.shape_cast %373 : vector<8x16x32xf32> to vector<128x32xf32>
    %375 = arith.truncf %374 : vector<128x32xf32> to vector<128x32xbf16>
    %c3_335 = arith.constant 3 : index
    %c0_336 = arith.constant 0 : index
    %c0_337 = arith.constant 0 : index
    %376 = vector.load %arg16[%c3_335, %c0_336, %c0_337] : memref<9x32x32xbf16, #tpu.memory_space<vmem>>, vector<1x32x32xbf16>
    %377 = vector.shape_cast %376 : vector<1x32x32xbf16> to vector<32x32xbf16>
    %cst_338 = arith.constant dense<0.000000e+00> : vector<128x32xf32>
    %378 = tpu.matmul %375, %377, %cst_338 {dimension_numbers = #tpu.dot_dimension_numbers<[1], [0], [0], [1], [0, 0, 1, 1], [], []>} : vector<128x32xbf16>, vector<32x32xbf16>, vector<128x32xf32> -> vector<128x32xf32>
    %379 = arith.addf %372, %378 : vector<128x32xf32>
    %c0_339 = arith.constant 0 : index
    %c8_340 = arith.constant 8 : index
    %c0_341 = arith.constant 0 : index
    %380 = vector.load %arg41[%c0_339, %c8_340, %c0_341] : memref<8x32x32xf32, #tpu.memory_space<vmem>>, vector<8x16x32xf32>
    %381 = vector.shape_cast %380 : vector<8x16x32xf32> to vector<128x32xf32>
    %382 = arith.truncf %381 : vector<128x32xf32> to vector<128x32xbf16>
    %c4_342 = arith.constant 4 : index
    %c0_343 = arith.constant 0 : index
    %c0_344 = arith.constant 0 : index
    %383 = vector.load %arg16[%c4_342, %c0_343, %c0_344] : memref<9x32x32xbf16, #tpu.memory_space<vmem>>, vector<1x32x32xbf16>
    %384 = vector.shape_cast %383 : vector<1x32x32xbf16> to vector<32x32xbf16>
    %cst_345 = arith.constant dense<0.000000e+00> : vector<128x32xf32>
    %385 = tpu.matmul %382, %384, %cst_345 {dimension_numbers = #tpu.dot_dimension_numbers<[1], [0], [0], [1], [0, 0, 1, 1], [], []>} : vector<128x32xbf16>, vector<32x32xbf16>, vector<128x32xf32> -> vector<128x32xf32>
    %386 = arith.addf %379, %385 : vector<128x32xf32>
    %c0_346 = arith.constant 0 : index
    %c9_347 = arith.constant 9 : index
    %c0_348 = arith.constant 0 : index
    %387 = vector.load %arg41[%c0_346, %c9_347, %c0_348] : memref<8x32x32xf32, #tpu.memory_space<vmem>>, vector<8x16x32xf32>
    %388 = vector.shape_cast %387 : vector<8x16x32xf32> to vector<128x32xf32>
    %389 = arith.truncf %388 : vector<128x32xf32> to vector<128x32xbf16>
    %c5_349 = arith.constant 5 : index
    %c0_350 = arith.constant 0 : index
    %c0_351 = arith.constant 0 : index
    %390 = vector.load %arg16[%c5_349, %c0_350, %c0_351] : memref<9x32x32xbf16, #tpu.memory_space<vmem>>, vector<1x32x32xbf16>
    %391 = vector.shape_cast %390 : vector<1x32x32xbf16> to vector<32x32xbf16>
    %cst_352 = arith.constant dense<0.000000e+00> : vector<128x32xf32>
    %392 = tpu.matmul %389, %391, %cst_352 {dimension_numbers = #tpu.dot_dimension_numbers<[1], [0], [0], [1], [0, 0, 1, 1], [], []>} : vector<128x32xbf16>, vector<32x32xbf16>, vector<128x32xf32> -> vector<128x32xf32>
    %393 = arith.addf %386, %392 : vector<128x32xf32>
    %c1_353 = arith.constant 1 : index
    %c7_354 = arith.constant 7 : index
    %c0_355 = arith.constant 0 : index
    %394 = vector.load %arg42[%c1_353, %c7_354, %c0_355] : memref<9x32x32xf32, #tpu.memory_space<vmem>>, vector<8x16x32xf32>
    %395 = vector.shape_cast %394 : vector<8x16x32xf32> to vector<128x32xf32>
    %396 = arith.truncf %395 : vector<128x32xf32> to vector<128x32xbf16>
    %c6_356 = arith.constant 6 : index
    %c0_357 = arith.constant 0 : index
    %c0_358 = arith.constant 0 : index
    %397 = vector.load %arg16[%c6_356, %c0_357, %c0_358] : memref<9x32x32xbf16, #tpu.memory_space<vmem>>, vector<1x32x32xbf16>
    %398 = vector.shape_cast %397 : vector<1x32x32xbf16> to vector<32x32xbf16>
    %cst_359 = arith.constant dense<0.000000e+00> : vector<128x32xf32>
    %399 = tpu.matmul %396, %398, %cst_359 {dimension_numbers = #tpu.dot_dimension_numbers<[1], [0], [0], [1], [0, 0, 1, 1], [], []>} : vector<128x32xbf16>, vector<32x32xbf16>, vector<128x32xf32> -> vector<128x32xf32>
    %400 = arith.addf %393, %399 : vector<128x32xf32>
    %c1_360 = arith.constant 1 : index
    %c8_361 = arith.constant 8 : index
    %c0_362 = arith.constant 0 : index
    %401 = vector.load %arg42[%c1_360, %c8_361, %c0_362] : memref<9x32x32xf32, #tpu.memory_space<vmem>>, vector<8x16x32xf32>
    %402 = vector.shape_cast %401 : vector<8x16x32xf32> to vector<128x32xf32>
    %403 = arith.truncf %402 : vector<128x32xf32> to vector<128x32xbf16>
    %c7_363 = arith.constant 7 : index
    %c0_364 = arith.constant 0 : index
    %c0_365 = arith.constant 0 : index
    %404 = vector.load %arg16[%c7_363, %c0_364, %c0_365] : memref<9x32x32xbf16, #tpu.memory_space<vmem>>, vector<1x32x32xbf16>
    %405 = vector.shape_cast %404 : vector<1x32x32xbf16> to vector<32x32xbf16>
    %cst_366 = arith.constant dense<0.000000e+00> : vector<128x32xf32>
    %406 = tpu.matmul %403, %405, %cst_366 {dimension_numbers = #tpu.dot_dimension_numbers<[1], [0], [0], [1], [0, 0, 1, 1], [], []>} : vector<128x32xbf16>, vector<32x32xbf16>, vector<128x32xf32> -> vector<128x32xf32>
    %407 = arith.addf %400, %406 : vector<128x32xf32>
    %c1_367 = arith.constant 1 : index
    %c9_368 = arith.constant 9 : index
    %c0_369 = arith.constant 0 : index
    %408 = vector.load %arg42[%c1_367, %c9_368, %c0_369] : memref<9x32x32xf32, #tpu.memory_space<vmem>>, vector<8x16x32xf32>
    %409 = vector.shape_cast %408 : vector<8x16x32xf32> to vector<128x32xf32>
    %410 = arith.truncf %409 : vector<128x32xf32> to vector<128x32xbf16>
    %c8_370 = arith.constant 8 : index
    %c0_371 = arith.constant 0 : index
    %c0_372 = arith.constant 0 : index
    %411 = vector.load %arg16[%c8_370, %c0_371, %c0_372] : memref<9x32x32xbf16, #tpu.memory_space<vmem>>, vector<1x32x32xbf16>
    %412 = vector.shape_cast %411 : vector<1x32x32xbf16> to vector<32x32xbf16>
    %cst_373 = arith.constant dense<0.000000e+00> : vector<128x32xf32>
    %413 = tpu.matmul %410, %412, %cst_373 {dimension_numbers = #tpu.dot_dimension_numbers<[1], [0], [0], [1], [0, 0, 1, 1], [], []>} : vector<128x32xbf16>, vector<32x32xbf16>, vector<128x32xf32> -> vector<128x32xf32>
    %414 = arith.addf %407, %413 : vector<128x32xf32>
    %415 = vector.shape_cast %204 : vector<256x16xf32> to vector<8x2x16x16xf32>
    %416 = vector.extract_strided_slice %415 {offsets = [0, 0, 0, 0], sizes = [8, 1, 16, 16], strides = [1, 1, 1, 1]} : vector<8x2x16x16xf32> to vector<8x1x16x16xf32>
    %417 = vector.shape_cast %416 : vector<8x1x16x16xf32> to vector<8x16x16xf32>
    %418 = vector.shape_cast %417 : vector<8x16x16xf32> to vector<128x16xf32>
    %419 = arith.truncf %418 : vector<128x16xf32> to vector<128x16xbf16>
    %c0_374 = arith.constant 0 : index
    %c0_375 = arith.constant 0 : index
    %420 = vector.load %arg17[%c0_374, %c0_375] : memref<16x32xbf16, #tpu.memory_space<vmem>>, vector<16x32xbf16>
    %cst_376 = arith.constant dense<0.000000e+00> : vector<128x32xf32>
    %421 = tpu.matmul %419, %420, %cst_376 {dimension_numbers = #tpu.dot_dimension_numbers<[1], [0], [0], [1], [0, 0, 1, 1], [], []>} : vector<128x16xbf16>, vector<16x32xbf16>, vector<128x32xf32> -> vector<128x32xf32>
    %422 = arith.addf %414, %421 : vector<128x32xf32>
    %c0_377 = arith.constant 0 : index
    %c0_378 = arith.constant 0 : index
    %423 = vector.load %arg19[%c0_377, %c0_378] : memref<64x128xbf16, #tpu.memory_space<vmem>>, vector<64x128xbf16>
    %424 = arith.truncf %422 : vector<128x32xf32> to vector<128x32xbf16>
    %cst_379 = arith.constant dense<0.000000e+00> : vector<64x32xf32>
    %425 = tpu.matmul %423, %424, %cst_379 {dimension_numbers = #tpu.dot_dimension_numbers<[1], [0], [0], [1], [0, 0, 1, 1], [], []>} : vector<64x128xbf16>, vector<128x32xbf16>, vector<64x32xf32> -> vector<64x32xf32>
    %c0_380 = arith.constant 0 : index
    %c0_381 = arith.constant 0 : index
    %426 = vector.load %arg18[%c0_380, %c0_381] : memref<1x32xf32, #tpu.memory_space<vmem>>, vector<1x32xf32>
    %427 = vector.broadcast %426 : vector<1x32xf32> to vector<64x32xf32>
    %428 = arith.addf %425, %427 : vector<64x32xf32>
    %c0_382 = arith.constant 0 : index
    %c0_383 = arith.constant 0 : index
    %429 = vector.load %arg20[%c0_382, %c0_383] : memref<2x32xf32, #tpu.memory_space<vmem>>, vector<1x32xf32>
    %c1_384 = arith.constant 1 : index
    %c0_385 = arith.constant 0 : index
    %430 = vector.load %arg20[%c1_384, %c0_385] : memref<2x32xf32, #tpu.memory_space<vmem>>, vector<1x32xf32>
    %cst_386 = arith.constant dense<0.000000e+00> : vector<32xf32>
    %431 = vector.multi_reduction <add>, %428, %cst_386 [0] : vector<64x32xf32> to vector<32xf32>
    %432 = vector.shape_cast %431 : vector<32xf32> to vector<1x32xf32>
    %433 = arith.mulf %428, %428 : vector<64x32xf32>
    %cst_387 = arith.constant dense<0.000000e+00> : vector<32xf32>
    %434 = vector.multi_reduction <add>, %433, %cst_387 [0] : vector<64x32xf32> to vector<32xf32>
    %435 = vector.shape_cast %434 : vector<32xf32> to vector<1x32xf32>
    %436 = tpu.concatenate %432, %435 in 0 : vector<1x32xf32>, vector<1x32xf32> -> vector<2x32xf32>
    %c0_388 = arith.constant 0 : index
    %c0_389 = arith.constant 0 : index
    %437 = vector.load %arg21[%c0_388, %c0_389] : memref<32x16xf32, #tpu.memory_space<vmem>>, vector<32x16xf32>
    %cst_390 = arith.constant dense<0.000000e+00> : vector<2x16xf32>
    %438 = tpu.matmul %436, %437, %cst_390 {dimension_numbers = #tpu.dot_dimension_numbers<[1], [0], [0], [1], [0, 0, 1, 1], [], []>} : vector<2x32xf32>, vector<32x16xf32>, vector<2x16xf32> -> vector<2x16xf32>
    %439 = vector.extract_strided_slice %438 {offsets = [0, 0], sizes = [1, 16], strides = [1, 1]} : vector<2x16xf32> to vector<1x16xf32>
    %cst_391 = arith.constant 1.280000e+02 : f32
    %440 = vector.broadcast %cst_391 : f32 to vector<1x16xf32>
    %441 = arith.divf %439, %440 : vector<1x16xf32>
    %442 = vector.extract_strided_slice %438 {offsets = [1, 0], sizes = [1, 16], strides = [1, 1]} : vector<2x16xf32> to vector<1x16xf32>
    %cst_392 = arith.constant 1.280000e+02 : f32
    %443 = vector.broadcast %cst_392 : f32 to vector<1x16xf32>
    %444 = arith.divf %442, %443 : vector<1x16xf32>
    %445 = arith.mulf %441, %441 : vector<1x16xf32>
    %446 = arith.subf %444, %445 : vector<1x16xf32>
    %cst_393 = arith.constant 9.99999974E-6 : f32
    %447 = vector.broadcast %cst_393 : f32 to vector<1x16xf32>
    %448 = arith.addf %446, %447 : vector<1x16xf32>
    %449 = math.rsqrt %448 : vector<1x16xf32>
    %450 = tpu.concatenate %441, %449 in 0 : vector<1x16xf32>, vector<1x16xf32> -> vector<2x16xf32>
    %c0_394 = arith.constant 0 : index
    %c0_395 = arith.constant 0 : index
    %451 = vector.load %arg22[%c0_394, %c0_395] : memref<16x32xf32, #tpu.memory_space<vmem>>, vector<16x32xf32>
    %cst_396 = arith.constant dense<0.000000e+00> : vector<2x32xf32>
    %452 = tpu.matmul %450, %451, %cst_396 {dimension_numbers = #tpu.dot_dimension_numbers<[1], [0], [0], [1], [0, 0, 1, 1], [], []>} : vector<2x16xf32>, vector<16x32xf32>, vector<2x32xf32> -> vector<2x32xf32>
    %453 = vector.extract_strided_slice %452 {offsets = [0, 0], sizes = [1, 32], strides = [1, 1]} : vector<2x32xf32> to vector<1x32xf32>
    %454 = vector.extract_strided_slice %452 {offsets = [1, 0], sizes = [1, 32], strides = [1, 1]} : vector<2x32xf32> to vector<1x32xf32>
    %455 = arith.mulf %454, %429 : vector<1x32xf32>
    %456 = arith.mulf %453, %455 : vector<1x32xf32>
    %457 = arith.subf %430, %456 : vector<1x32xf32>
    %458 = vector.broadcast %455 : vector<1x32xf32> to vector<64x32xf32>
    %459 = arith.mulf %428, %458 : vector<64x32xf32>
    %460 = vector.broadcast %457 : vector<1x32xf32> to vector<64x32xf32>
    %461 = arith.addf %459, %460 : vector<64x32xf32>
    %cst_397 = arith.constant 0.000000e+00 : f32
    %462 = vector.broadcast %cst_397 : f32 to vector<64x32xf32>
    %463 = arith.maximumf %461, %462 : vector<64x32xf32>
    %cst_398 = arith.constant 0.000000e+00 : f32
    %464 = vector.broadcast %cst_398 : f32 to vector<1x24x32xf32>
    %c0_399 = arith.constant 0 : index
    %c0_400 = arith.constant 0 : index
    %c0_401 = arith.constant 0 : index
    %465 = vector.load %arg43[%c0_399, %c0_400, %c0_401] : memref<10x24x32xf32, #tpu.memory_space<vmem>>, vector<1x24x32xf32>
    tpu.vector_store %arg43[%c0_399, %c0_400, %c0_401], %464 {strides = array<i32>} : memref<10x24x32xf32, #tpu.memory_space<vmem>>, vector<1x24x32xf32>,
    %c9_402 = arith.constant 9 : index
    %c0_403 = arith.constant 0 : index
    %c0_404 = arith.constant 0 : index
    %466 = vector.load %arg43[%c9_402, %c0_403, %c0_404] : memref<10x24x32xf32, #tpu.memory_space<vmem>>, vector<1x24x32xf32>
    tpu.vector_store %arg43[%c9_402, %c0_403, %c0_404], %464 {strides = array<i32>} : memref<10x24x32xf32, #tpu.memory_space<vmem>>, vector<1x24x32xf32>,
    %cst_405 = arith.constant 0.000000e+00 : f32
    %467 = vector.broadcast %cst_405 : f32 to vector<10x1x32xf32>
    %c0_406 = arith.constant 0 : index
    %c7_407 = arith.constant 7 : index
    %c0_408 = arith.constant 0 : index
    %468 = vector.load %arg43[%c0_406, %c7_407, %c0_408] : memref<10x24x32xf32, #tpu.memory_space<vmem>>, vector<10x1x32xf32>
    tpu.vector_store %arg43[%c0_406, %c7_407, %c0_408], %467 {strides = array<i32>} : memref<10x24x32xf32, #tpu.memory_space<vmem>>, vector<10x1x32xf32>,
    %c0_409 = arith.constant 0 : index
    %c16 = arith.constant 16 : index
    %c0_410 = arith.constant 0 : index
    %469 = vector.load %arg43[%c0_409, %c16, %c0_410] : memref<10x24x32xf32, #tpu.memory_space<vmem>>, vector<10x1x32xf32>
    tpu.vector_store %arg43[%c0_409, %c16, %c0_410], %467 {strides = array<i32>} : memref<10x24x32xf32, #tpu.memory_space<vmem>>, vector<10x1x32xf32>,
    %470 = vector.shape_cast %463 : vector<64x32xf32> to vector<8x8x32xf32>
    %c1_411 = arith.constant 1 : index
    %c8_412 = arith.constant 8 : index
    %c0_413 = arith.constant 0 : index
    %471 = vector.load %arg43[%c1_411, %c8_412, %c0_413] : memref<10x24x32xf32, #tpu.memory_space<vmem>>, vector<8x8x32xf32>
    tpu.vector_store %arg43[%c1_411, %c8_412, %c0_413], %470 {strides = array<i32>} : memref<10x24x32xf32, #tpu.memory_space<vmem>>, vector<8x8x32xf32>,
    %c0_414 = arith.constant 0 : index
    %c7_415 = arith.constant 7 : index
    %c0_416 = arith.constant 0 : index
    %472 = vector.load %arg43[%c0_414, %c7_415, %c0_416] : memref<10x24x32xf32, #tpu.memory_space<vmem>>, vector<8x8x32xf32>
    %473 = vector.shape_cast %472 : vector<8x8x32xf32> to vector<64x32xf32>
    %474 = arith.truncf %473 : vector<64x32xf32> to vector<64x32xbf16>
    %c0_417 = arith.constant 0 : index
    %c0_418 = arith.constant 0 : index
    %c0_419 = arith.constant 0 : index
    %475 = vector.load %arg23[%c0_417, %c0_418, %c0_419] : memref<9x32x64xbf16, #tpu.memory_space<vmem>>, vector<1x32x64xbf16>
    %476 = vector.shape_cast %475 : vector<1x32x64xbf16> to vector<32x64xbf16>
    %cst_420 = arith.constant dense<0.000000e+00> : vector<64x64xf32>
    %477 = tpu.matmul %474, %476, %cst_420 {dimension_numbers = #tpu.dot_dimension_numbers<[1], [0], [0], [1], [0, 0, 1, 1], [], []>} : vector<64x32xbf16>, vector<32x64xbf16>, vector<64x64xf32> -> vector<64x64xf32>
    %c0_421 = arith.constant 0 : index
    %c8_422 = arith.constant 8 : index
    %c0_423 = arith.constant 0 : index
    %478 = vector.load %arg43[%c0_421, %c8_422, %c0_423] : memref<10x24x32xf32, #tpu.memory_space<vmem>>, vector<8x8x32xf32>
    %479 = vector.shape_cast %478 : vector<8x8x32xf32> to vector<64x32xf32>
    %480 = arith.truncf %479 : vector<64x32xf32> to vector<64x32xbf16>
    %c1_424 = arith.constant 1 : index
    %c0_425 = arith.constant 0 : index
    %c0_426 = arith.constant 0 : index
    %481 = vector.load %arg23[%c1_424, %c0_425, %c0_426] : memref<9x32x64xbf16, #tpu.memory_space<vmem>>, vector<1x32x64xbf16>
    %482 = vector.shape_cast %481 : vector<1x32x64xbf16> to vector<32x64xbf16>
    %cst_427 = arith.constant dense<0.000000e+00> : vector<64x64xf32>
    %483 = tpu.matmul %480, %482, %cst_427 {dimension_numbers = #tpu.dot_dimension_numbers<[1], [0], [0], [1], [0, 0, 1, 1], [], []>} : vector<64x32xbf16>, vector<32x64xbf16>, vector<64x64xf32> -> vector<64x64xf32>
    %484 = arith.addf %477, %483 : vector<64x64xf32>
    %c0_428 = arith.constant 0 : index
    %c9_429 = arith.constant 9 : index
    %c0_430 = arith.constant 0 : index
    %485 = vector.load %arg43[%c0_428, %c9_429, %c0_430] : memref<10x24x32xf32, #tpu.memory_space<vmem>>, vector<8x8x32xf32>
    %486 = vector.shape_cast %485 : vector<8x8x32xf32> to vector<64x32xf32>
    %487 = arith.truncf %486 : vector<64x32xf32> to vector<64x32xbf16>
    %c2_431 = arith.constant 2 : index
    %c0_432 = arith.constant 0 : index
    %c0_433 = arith.constant 0 : index
    %488 = vector.load %arg23[%c2_431, %c0_432, %c0_433] : memref<9x32x64xbf16, #tpu.memory_space<vmem>>, vector<1x32x64xbf16>
    %489 = vector.shape_cast %488 : vector<1x32x64xbf16> to vector<32x64xbf16>
    %cst_434 = arith.constant dense<0.000000e+00> : vector<64x64xf32>
    %490 = tpu.matmul %487, %489, %cst_434 {dimension_numbers = #tpu.dot_dimension_numbers<[1], [0], [0], [1], [0, 0, 1, 1], [], []>} : vector<64x32xbf16>, vector<32x64xbf16>, vector<64x64xf32> -> vector<64x64xf32>
    %491 = arith.addf %484, %490 : vector<64x64xf32>
    %c1_435 = arith.constant 1 : index
    %c7_436 = arith.constant 7 : index
    %c0_437 = arith.constant 0 : index
    %492 = vector.load %arg43[%c1_435, %c7_436, %c0_437] : memref<10x24x32xf32, #tpu.memory_space<vmem>>, vector<8x8x32xf32>
    %493 = vector.shape_cast %492 : vector<8x8x32xf32> to vector<64x32xf32>
    %494 = arith.truncf %493 : vector<64x32xf32> to vector<64x32xbf16>
    %c3_438 = arith.constant 3 : index
    %c0_439 = arith.constant 0 : index
    %c0_440 = arith.constant 0 : index
    %495 = vector.load %arg23[%c3_438, %c0_439, %c0_440] : memref<9x32x64xbf16, #tpu.memory_space<vmem>>, vector<1x32x64xbf16>
    %496 = vector.shape_cast %495 : vector<1x32x64xbf16> to vector<32x64xbf16>
    %cst_441 = arith.constant dense<0.000000e+00> : vector<64x64xf32>
    %497 = tpu.matmul %494, %496, %cst_441 {dimension_numbers = #tpu.dot_dimension_numbers<[1], [0], [0], [1], [0, 0, 1, 1], [], []>} : vector<64x32xbf16>, vector<32x64xbf16>, vector<64x64xf32> -> vector<64x64xf32>
    %498 = arith.addf %491, %497 : vector<64x64xf32>
    %c1_442 = arith.constant 1 : index
    %c8_443 = arith.constant 8 : index
    %c0_444 = arith.constant 0 : index
    %499 = vector.load %arg43[%c1_442, %c8_443, %c0_444] : memref<10x24x32xf32, #tpu.memory_space<vmem>>, vector<8x8x32xf32>
    %500 = vector.shape_cast %499 : vector<8x8x32xf32> to vector<64x32xf32>
    %501 = arith.truncf %500 : vector<64x32xf32> to vector<64x32xbf16>
    %c4_445 = arith.constant 4 : index
    %c0_446 = arith.constant 0 : index
    %c0_447 = arith.constant 0 : index
    %502 = vector.load %arg23[%c4_445, %c0_446, %c0_447] : memref<9x32x64xbf16, #tpu.memory_space<vmem>>, vector<1x32x64xbf16>
    %503 = vector.shape_cast %502 : vector<1x32x64xbf16> to vector<32x64xbf16>
    %cst_448 = arith.constant dense<0.000000e+00> : vector<64x64xf32>
    %504 = tpu.matmul %501, %503, %cst_448 {dimension_numbers = #tpu.dot_dimension_numbers<[1], [0], [0], [1], [0, 0, 1, 1], [], []>} : vector<64x32xbf16>, vector<32x64xbf16>, vector<64x64xf32> -> vector<64x64xf32>
    %505 = arith.addf %498, %504 : vector<64x64xf32>
    %c1_449 = arith.constant 1 : index
    %c9_450 = arith.constant 9 : index
    %c0_451 = arith.constant 0 : index
    %506 = vector.load %arg43[%c1_449, %c9_450, %c0_451] : memref<10x24x32xf32, #tpu.memory_space<vmem>>, vector<8x8x32xf32>
    %507 = vector.shape_cast %506 : vector<8x8x32xf32> to vector<64x32xf32>
    %508 = arith.truncf %507 : vector<64x32xf32> to vector<64x32xbf16>
    %c5_452 = arith.constant 5 : index
    %c0_453 = arith.constant 0 : index
    %c0_454 = arith.constant 0 : index
    %509 = vector.load %arg23[%c5_452, %c0_453, %c0_454] : memref<9x32x64xbf16, #tpu.memory_space<vmem>>, vector<1x32x64xbf16>
    %510 = vector.shape_cast %509 : vector<1x32x64xbf16> to vector<32x64xbf16>
    %cst_455 = arith.constant dense<0.000000e+00> : vector<64x64xf32>
    %511 = tpu.matmul %508, %510, %cst_455 {dimension_numbers = #tpu.dot_dimension_numbers<[1], [0], [0], [1], [0, 0, 1, 1], [], []>} : vector<64x32xbf16>, vector<32x64xbf16>, vector<64x64xf32> -> vector<64x64xf32>
    %512 = arith.addf %505, %511 : vector<64x64xf32>
    %c2_456 = arith.constant 2 : index
    %c7_457 = arith.constant 7 : index
    %c0_458 = arith.constant 0 : index
    %513 = vector.load %arg43[%c2_456, %c7_457, %c0_458] : memref<10x24x32xf32, #tpu.memory_space<vmem>>, vector<8x8x32xf32>
    %514 = vector.shape_cast %513 : vector<8x8x32xf32> to vector<64x32xf32>
    %515 = arith.truncf %514 : vector<64x32xf32> to vector<64x32xbf16>
    %c6_459 = arith.constant 6 : index
    %c0_460 = arith.constant 0 : index
    %c0_461 = arith.constant 0 : index
    %516 = vector.load %arg23[%c6_459, %c0_460, %c0_461] : memref<9x32x64xbf16, #tpu.memory_space<vmem>>, vector<1x32x64xbf16>
    %517 = vector.shape_cast %516 : vector<1x32x64xbf16> to vector<32x64xbf16>
    %cst_462 = arith.constant dense<0.000000e+00> : vector<64x64xf32>
    %518 = tpu.matmul %515, %517, %cst_462 {dimension_numbers = #tpu.dot_dimension_numbers<[1], [0], [0], [1], [0, 0, 1, 1], [], []>} : vector<64x32xbf16>, vector<32x64xbf16>, vector<64x64xf32> -> vector<64x64xf32>
    %519 = arith.addf %512, %518 : vector<64x64xf32>
    %c2_463 = arith.constant 2 : index
    %c8_464 = arith.constant 8 : index
    %c0_465 = arith.constant 0 : index
    %520 = vector.load %arg43[%c2_463, %c8_464, %c0_465] : memref<10x24x32xf32, #tpu.memory_space<vmem>>, vector<8x8x32xf32>
    %521 = vector.shape_cast %520 : vector<8x8x32xf32> to vector<64x32xf32>
    %522 = arith.truncf %521 : vector<64x32xf32> to vector<64x32xbf16>
    %c7_466 = arith.constant 7 : index
    %c0_467 = arith.constant 0 : index
    %c0_468 = arith.constant 0 : index
    %523 = vector.load %arg23[%c7_466, %c0_467, %c0_468] : memref<9x32x64xbf16, #tpu.memory_space<vmem>>, vector<1x32x64xbf16>
    %524 = vector.shape_cast %523 : vector<1x32x64xbf16> to vector<32x64xbf16>
    %cst_469 = arith.constant dense<0.000000e+00> : vector<64x64xf32>
    %525 = tpu.matmul %522, %524, %cst_469 {dimension_numbers = #tpu.dot_dimension_numbers<[1], [0], [0], [1], [0, 0, 1, 1], [], []>} : vector<64x32xbf16>, vector<32x64xbf16>, vector<64x64xf32> -> vector<64x64xf32>
    %526 = arith.addf %519, %525 : vector<64x64xf32>
    %c2_470 = arith.constant 2 : index
    %c9_471 = arith.constant 9 : index
    %c0_472 = arith.constant 0 : index
    %527 = vector.load %arg43[%c2_470, %c9_471, %c0_472] : memref<10x24x32xf32, #tpu.memory_space<vmem>>, vector<8x8x32xf32>
    %528 = vector.shape_cast %527 : vector<8x8x32xf32> to vector<64x32xf32>
    %529 = arith.truncf %528 : vector<64x32xf32> to vector<64x32xbf16>
    %c8_473 = arith.constant 8 : index
    %c0_474 = arith.constant 0 : index
    %c0_475 = arith.constant 0 : index
    %530 = vector.load %arg23[%c8_473, %c0_474, %c0_475] : memref<9x32x64xbf16, #tpu.memory_space<vmem>>, vector<1x32x64xbf16>
    %531 = vector.shape_cast %530 : vector<1x32x64xbf16> to vector<32x64xbf16>
    %cst_476 = arith.constant dense<0.000000e+00> : vector<64x64xf32>
    %532 = tpu.matmul %529, %531, %cst_476 {dimension_numbers = #tpu.dot_dimension_numbers<[1], [0], [0], [1], [0, 0, 1, 1], [], []>} : vector<64x32xbf16>, vector<32x64xbf16>, vector<64x64xf32> -> vector<64x64xf32>
    %533 = arith.addf %526, %532 : vector<64x64xf32>
    %c0_477 = arith.constant 0 : index
    %c0_478 = arith.constant 0 : index
    %534 = vector.load %arg24[%c0_477, %c0_478] : memref<1x64xf32, #tpu.memory_space<vmem>>, vector<1x64xf32>
    %535 = vector.broadcast %534 : vector<1x64xf32> to vector<64x64xf32>
    %536 = arith.addf %533, %535 : vector<64x64xf32>
    %c0_479 = arith.constant 0 : index
    %c0_480 = arith.constant 0 : index
    %537 = vector.load %arg25[%c0_479, %c0_480] : memref<2x64xf32, #tpu.memory_space<vmem>>, vector<1x64xf32>
    %c1_481 = arith.constant 1 : index
    %c0_482 = arith.constant 0 : index
    %538 = vector.load %arg25[%c1_481, %c0_482] : memref<2x64xf32, #tpu.memory_space<vmem>>, vector<1x64xf32>
    %cst_483 = arith.constant dense<0.000000e+00> : vector<64xf32>
    %539 = vector.multi_reduction <add>, %536, %cst_483 [0] : vector<64x64xf32> to vector<64xf32>
    %540 = vector.shape_cast %539 : vector<64xf32> to vector<1x64xf32>
    %541 = arith.mulf %536, %536 : vector<64x64xf32>
    %cst_484 = arith.constant dense<0.000000e+00> : vector<64xf32>
    %542 = vector.multi_reduction <add>, %541, %cst_484 [0] : vector<64x64xf32> to vector<64xf32>
    %543 = vector.shape_cast %542 : vector<64xf32> to vector<1x64xf32>
    %544 = tpu.concatenate %540, %543 in 0 : vector<1x64xf32>, vector<1x64xf32> -> vector<2x64xf32>
    %c0_485 = arith.constant 0 : index
    %c0_486 = arith.constant 0 : index
    %545 = vector.load %arg26[%c0_485, %c0_486] : memref<64x16xf32, #tpu.memory_space<vmem>>, vector<64x16xf32>
    %cst_487 = arith.constant dense<0.000000e+00> : vector<2x16xf32>
    %546 = tpu.matmul %544, %545, %cst_487 {dimension_numbers = #tpu.dot_dimension_numbers<[1], [0], [0], [1], [0, 0, 1, 1], [], []>} : vector<2x64xf32>, vector<64x16xf32>, vector<2x16xf32> -> vector<2x16xf32>
    %547 = vector.extract_strided_slice %546 {offsets = [0, 0], sizes = [1, 16], strides = [1, 1]} : vector<2x16xf32> to vector<1x16xf32>
    %cst_488 = arith.constant 2.560000e+02 : f32
    %548 = vector.broadcast %cst_488 : f32 to vector<1x16xf32>
    %549 = arith.divf %547, %548 : vector<1x16xf32>
    %550 = vector.extract_strided_slice %546 {offsets = [1, 0], sizes = [1, 16], strides = [1, 1]} : vector<2x16xf32> to vector<1x16xf32>
    %cst_489 = arith.constant 2.560000e+02 : f32
    %551 = vector.broadcast %cst_489 : f32 to vector<1x16xf32>
    %552 = arith.divf %550, %551 : vector<1x16xf32>
    %553 = arith.mulf %549, %549 : vector<1x16xf32>
    %554 = arith.subf %552, %553 : vector<1x16xf32>
    %cst_490 = arith.constant 9.99999974E-6 : f32
    %555 = vector.broadcast %cst_490 : f32 to vector<1x16xf32>
    %556 = arith.addf %554, %555 : vector<1x16xf32>
    %557 = math.rsqrt %556 : vector<1x16xf32>
    %558 = tpu.concatenate %549, %557 in 0 : vector<1x16xf32>, vector<1x16xf32> -> vector<2x16xf32>
    %c0_491 = arith.constant 0 : index
    %c0_492 = arith.constant 0 : index
    %559 = vector.load %arg27[%c0_491, %c0_492] : memref<16x64xf32, #tpu.memory_space<vmem>>, vector<16x64xf32>
    %cst_493 = arith.constant dense<0.000000e+00> : vector<2x64xf32>
    %560 = tpu.matmul %558, %559, %cst_493 {dimension_numbers = #tpu.dot_dimension_numbers<[1], [0], [0], [1], [0, 0, 1, 1], [], []>} : vector<2x16xf32>, vector<16x64xf32>, vector<2x64xf32> -> vector<2x64xf32>
    %561 = vector.extract_strided_slice %560 {offsets = [0, 0], sizes = [1, 64], strides = [1, 1]} : vector<2x64xf32> to vector<1x64xf32>
    %562 = vector.extract_strided_slice %560 {offsets = [1, 0], sizes = [1, 64], strides = [1, 1]} : vector<2x64xf32> to vector<1x64xf32>
    %563 = arith.mulf %562, %537 : vector<1x64xf32>
    %564 = arith.mulf %561, %563 : vector<1x64xf32>
    %565 = arith.subf %538, %564 : vector<1x64xf32>
    %566 = vector.broadcast %563 : vector<1x64xf32> to vector<64x64xf32>
    %567 = arith.mulf %536, %566 : vector<64x64xf32>
    %568 = vector.broadcast %565 : vector<1x64xf32> to vector<64x64xf32>
    %569 = arith.addf %567, %568 : vector<64x64xf32>
    %cst_494 = arith.constant 0.000000e+00 : f32
    %570 = vector.broadcast %cst_494 : f32 to vector<64x64xf32>
    %571 = arith.maximumf %569, %570 : vector<64x64xf32>
    %cst_495 = arith.constant 0.000000e+00 : f32
    %572 = vector.broadcast %cst_495 : f32 to vector<1x24x64xf32>
    %c0_496 = arith.constant 0 : index
    %c0_497 = arith.constant 0 : index
    %c0_498 = arith.constant 0 : index
    %573 = vector.load %arg45[%c0_496, %c0_497, %c0_498] : memref<5x24x64xf32, #tpu.memory_space<vmem>>, vector<1x24x64xf32>
    tpu.vector_store %arg45[%c0_496, %c0_497, %c0_498], %572 {strides = array<i32>} : memref<5x24x64xf32, #tpu.memory_space<vmem>>, vector<1x24x64xf32>,
    %cst_499 = arith.constant 0.000000e+00 : f32
    %574 = vector.broadcast %cst_499 : f32 to vector<4x1x64xf32>
    %c0_500 = arith.constant 0 : index
    %c7_501 = arith.constant 7 : index
    %c0_502 = arith.constant 0 : index
    %575 = vector.load %arg44[%c0_500, %c7_501, %c0_502] : memref<4x24x64xf32, #tpu.memory_space<vmem>>, vector<4x1x64xf32>
    tpu.vector_store %arg44[%c0_500, %c7_501, %c0_502], %574 {strides = array<i32>} : memref<4x24x64xf32, #tpu.memory_space<vmem>>, vector<4x1x64xf32>,
    %c0_503 = arith.constant 0 : index
    %c16_504 = arith.constant 16 : index
    %c0_505 = arith.constant 0 : index
    %576 = vector.load %arg44[%c0_503, %c16_504, %c0_505] : memref<4x24x64xf32, #tpu.memory_space<vmem>>, vector<4x1x64xf32>
    tpu.vector_store %arg44[%c0_503, %c16_504, %c0_505], %574 {strides = array<i32>} : memref<4x24x64xf32, #tpu.memory_space<vmem>>, vector<4x1x64xf32>,
    %cst_506 = arith.constant 0.000000e+00 : f32
    %577 = vector.broadcast %cst_506 : f32 to vector<5x1x64xf32>
    %c0_507 = arith.constant 0 : index
    %c7_508 = arith.constant 7 : index
    %c0_509 = arith.constant 0 : index
    %578 = vector.load %arg45[%c0_507, %c7_508, %c0_509] : memref<5x24x64xf32, #tpu.memory_space<vmem>>, vector<5x1x64xf32>
    tpu.vector_store %arg45[%c0_507, %c7_508, %c0_509], %577 {strides = array<i32>} : memref<5x24x64xf32, #tpu.memory_space<vmem>>, vector<5x1x64xf32>,
    %c0_510 = arith.constant 0 : index
    %c16_511 = arith.constant 16 : index
    %c0_512 = arith.constant 0 : index
    %579 = vector.load %arg45[%c0_510, %c16_511, %c0_512] : memref<5x24x64xf32, #tpu.memory_space<vmem>>, vector<5x1x64xf32>
    tpu.vector_store %arg45[%c0_510, %c16_511, %c0_512], %577 {strides = array<i32>} : memref<5x24x64xf32, #tpu.memory_space<vmem>>, vector<5x1x64xf32>,
    %580 = vector.shape_cast %571 : vector<64x64xf32> to vector<4x2x8x64xf32>
    %581 = vector.extract_strided_slice %580 {offsets = [0, 0, 0, 0], sizes = [4, 1, 8, 64], strides = [1, 1, 1, 1]} : vector<4x2x8x64xf32> to vector<4x1x8x64xf32>
    %582 = vector.shape_cast %581 : vector<4x1x8x64xf32> to vector<4x8x64xf32>
    %c0_513 = arith.constant 0 : index
    %c8_514 = arith.constant 8 : index
    %c0_515 = arith.constant 0 : index
    %583 = vector.load %arg44[%c0_513, %c8_514, %c0_515] : memref<4x24x64xf32, #tpu.memory_space<vmem>>, vector<4x8x64xf32>
    tpu.vector_store %arg44[%c0_513, %c8_514, %c0_515], %582 {strides = array<i32>} : memref<4x24x64xf32, #tpu.memory_space<vmem>>, vector<4x8x64xf32>,
    %584 = vector.extract_strided_slice %580 {offsets = [0, 1, 0, 0], sizes = [4, 1, 8, 64], strides = [1, 1, 1, 1]} : vector<4x2x8x64xf32> to vector<4x1x8x64xf32>
    %585 = vector.shape_cast %584 : vector<4x1x8x64xf32> to vector<4x8x64xf32>
    %c1_516 = arith.constant 1 : index
    %c8_517 = arith.constant 8 : index
    %c0_518 = arith.constant 0 : index
    %586 = vector.load %arg45[%c1_516, %c8_517, %c0_518] : memref<5x24x64xf32, #tpu.memory_space<vmem>>, vector<4x8x64xf32>
    tpu.vector_store %arg45[%c1_516, %c8_517, %c0_518], %585 {strides = array<i32>} : memref<5x24x64xf32, #tpu.memory_space<vmem>>, vector<4x8x64xf32>,
    %c0_519 = arith.constant 0 : index
    %c7_520 = arith.constant 7 : index
    %c0_521 = arith.constant 0 : index
    %587 = vector.load %arg45[%c0_519, %c7_520, %c0_521] : memref<5x24x64xf32, #tpu.memory_space<vmem>>, vector<4x8x64xf32>
    %588 = vector.shape_cast %587 : vector<4x8x64xf32> to vector<32x64xf32>
    %589 = arith.truncf %588 : vector<32x64xf32> to vector<32x64xbf16>
    %c0_522 = arith.constant 0 : index
    %c0_523 = arith.constant 0 : index
    %c0_524 = arith.constant 0 : index
    %590 = vector.load %arg28[%c0_522, %c0_523, %c0_524] : memref<9x64x64xbf16, #tpu.memory_space<vmem>>, vector<1x64x64xbf16>
    %591 = vector.shape_cast %590 : vector<1x64x64xbf16> to vector<64x64xbf16>
    %cst_525 = arith.constant dense<0.000000e+00> : vector<32x64xf32>
    %592 = tpu.matmul %589, %591, %cst_525 {dimension_numbers = #tpu.dot_dimension_numbers<[1], [0], [0], [1], [0, 0, 1, 1], [], []>} : vector<32x64xbf16>, vector<64x64xbf16>, vector<32x64xf32> -> vector<32x64xf32>
    %c0_526 = arith.constant 0 : index
    %c8_527 = arith.constant 8 : index
    %c0_528 = arith.constant 0 : index
    %593 = vector.load %arg45[%c0_526, %c8_527, %c0_528] : memref<5x24x64xf32, #tpu.memory_space<vmem>>, vector<4x8x64xf32>
    %594 = vector.shape_cast %593 : vector<4x8x64xf32> to vector<32x64xf32>
    %595 = arith.truncf %594 : vector<32x64xf32> to vector<32x64xbf16>
    %c1_529 = arith.constant 1 : index
    %c0_530 = arith.constant 0 : index
    %c0_531 = arith.constant 0 : index
    %596 = vector.load %arg28[%c1_529, %c0_530, %c0_531] : memref<9x64x64xbf16, #tpu.memory_space<vmem>>, vector<1x64x64xbf16>
    %597 = vector.shape_cast %596 : vector<1x64x64xbf16> to vector<64x64xbf16>
    %cst_532 = arith.constant dense<0.000000e+00> : vector<32x64xf32>
    %598 = tpu.matmul %595, %597, %cst_532 {dimension_numbers = #tpu.dot_dimension_numbers<[1], [0], [0], [1], [0, 0, 1, 1], [], []>} : vector<32x64xbf16>, vector<64x64xbf16>, vector<32x64xf32> -> vector<32x64xf32>
    %599 = arith.addf %592, %598 : vector<32x64xf32>
    %c0_533 = arith.constant 0 : index
    %c9_534 = arith.constant 9 : index
    %c0_535 = arith.constant 0 : index
    %600 = vector.load %arg45[%c0_533, %c9_534, %c0_535] : memref<5x24x64xf32, #tpu.memory_space<vmem>>, vector<4x8x64xf32>
    %601 = vector.shape_cast %600 : vector<4x8x64xf32> to vector<32x64xf32>
    %602 = arith.truncf %601 : vector<32x64xf32> to vector<32x64xbf16>
    %c2_536 = arith.constant 2 : index
    %c0_537 = arith.constant 0 : index
    %c0_538 = arith.constant 0 : index
    %603 = vector.load %arg28[%c2_536, %c0_537, %c0_538] : memref<9x64x64xbf16, #tpu.memory_space<vmem>>, vector<1x64x64xbf16>
    %604 = vector.shape_cast %603 : vector<1x64x64xbf16> to vector<64x64xbf16>
    %cst_539 = arith.constant dense<0.000000e+00> : vector<32x64xf32>
    %605 = tpu.matmul %602, %604, %cst_539 {dimension_numbers = #tpu.dot_dimension_numbers<[1], [0], [0], [1], [0, 0, 1, 1], [], []>} : vector<32x64xbf16>, vector<64x64xbf16>, vector<32x64xf32> -> vector<32x64xf32>
    %606 = arith.addf %599, %605 : vector<32x64xf32>
    %c0_540 = arith.constant 0 : index
    %c7_541 = arith.constant 7 : index
    %c0_542 = arith.constant 0 : index
    %607 = vector.load %arg44[%c0_540, %c7_541, %c0_542] : memref<4x24x64xf32, #tpu.memory_space<vmem>>, vector<4x8x64xf32>
    %608 = vector.shape_cast %607 : vector<4x8x64xf32> to vector<32x64xf32>
    %609 = arith.truncf %608 : vector<32x64xf32> to vector<32x64xbf16>
    %c3_543 = arith.constant 3 : index
    %c0_544 = arith.constant 0 : index
    %c0_545 = arith.constant 0 : index
    %610 = vector.load %arg28[%c3_543, %c0_544, %c0_545] : memref<9x64x64xbf16, #tpu.memory_space<vmem>>, vector<1x64x64xbf16>
    %611 = vector.shape_cast %610 : vector<1x64x64xbf16> to vector<64x64xbf16>
    %cst_546 = arith.constant dense<0.000000e+00> : vector<32x64xf32>
    %612 = tpu.matmul %609, %611, %cst_546 {dimension_numbers = #tpu.dot_dimension_numbers<[1], [0], [0], [1], [0, 0, 1, 1], [], []>} : vector<32x64xbf16>, vector<64x64xbf16>, vector<32x64xf32> -> vector<32x64xf32>
    %613 = arith.addf %606, %612 : vector<32x64xf32>
    %c0_547 = arith.constant 0 : index
    %c8_548 = arith.constant 8 : index
    %c0_549 = arith.constant 0 : index
    %614 = vector.load %arg44[%c0_547, %c8_548, %c0_549] : memref<4x24x64xf32, #tpu.memory_space<vmem>>, vector<4x8x64xf32>
    %615 = vector.shape_cast %614 : vector<4x8x64xf32> to vector<32x64xf32>
    %616 = arith.truncf %615 : vector<32x64xf32> to vector<32x64xbf16>
    %c4_550 = arith.constant 4 : index
    %c0_551 = arith.constant 0 : index
    %c0_552 = arith.constant 0 : index
    %617 = vector.load %arg28[%c4_550, %c0_551, %c0_552] : memref<9x64x64xbf16, #tpu.memory_space<vmem>>, vector<1x64x64xbf16>
    %618 = vector.shape_cast %617 : vector<1x64x64xbf16> to vector<64x64xbf16>
    %cst_553 = arith.constant dense<0.000000e+00> : vector<32x64xf32>
    %619 = tpu.matmul %616, %618, %cst_553 {dimension_numbers = #tpu.dot_dimension_numbers<[1], [0], [0], [1], [0, 0, 1, 1], [], []>} : vector<32x64xbf16>, vector<64x64xbf16>, vector<32x64xf32> -> vector<32x64xf32>
    %620 = arith.addf %613, %619 : vector<32x64xf32>
    %c0_554 = arith.constant 0 : index
    %c9_555 = arith.constant 9 : index
    %c0_556 = arith.constant 0 : index
    %621 = vector.load %arg44[%c0_554, %c9_555, %c0_556] : memref<4x24x64xf32, #tpu.memory_space<vmem>>, vector<4x8x64xf32>
    %622 = vector.shape_cast %621 : vector<4x8x64xf32> to vector<32x64xf32>
    %623 = arith.truncf %622 : vector<32x64xf32> to vector<32x64xbf16>
    %c5_557 = arith.constant 5 : index
    %c0_558 = arith.constant 0 : index
    %c0_559 = arith.constant 0 : index
    %624 = vector.load %arg28[%c5_557, %c0_558, %c0_559] : memref<9x64x64xbf16, #tpu.memory_space<vmem>>, vector<1x64x64xbf16>
    %625 = vector.shape_cast %624 : vector<1x64x64xbf16> to vector<64x64xbf16>
    %cst_560 = arith.constant dense<0.000000e+00> : vector<32x64xf32>
    %626 = tpu.matmul %623, %625, %cst_560 {dimension_numbers = #tpu.dot_dimension_numbers<[1], [0], [0], [1], [0, 0, 1, 1], [], []>} : vector<32x64xbf16>, vector<64x64xbf16>, vector<32x64xf32> -> vector<32x64xf32>
    %627 = arith.addf %620, %626 : vector<32x64xf32>
    %c1_561 = arith.constant 1 : index
    %c7_562 = arith.constant 7 : index
    %c0_563 = arith.constant 0 : index
    %628 = vector.load %arg45[%c1_561, %c7_562, %c0_563] : memref<5x24x64xf32, #tpu.memory_space<vmem>>, vector<4x8x64xf32>
    %629 = vector.shape_cast %628 : vector<4x8x64xf32> to vector<32x64xf32>
    %630 = arith.truncf %629 : vector<32x64xf32> to vector<32x64xbf16>
    %c6_564 = arith.constant 6 : index
    %c0_565 = arith.constant 0 : index
    %c0_566 = arith.constant 0 : index
    %631 = vector.load %arg28[%c6_564, %c0_565, %c0_566] : memref<9x64x64xbf16, #tpu.memory_space<vmem>>, vector<1x64x64xbf16>
    %632 = vector.shape_cast %631 : vector<1x64x64xbf16> to vector<64x64xbf16>
    %cst_567 = arith.constant dense<0.000000e+00> : vector<32x64xf32>
    %633 = tpu.matmul %630, %632, %cst_567 {dimension_numbers = #tpu.dot_dimension_numbers<[1], [0], [0], [1], [0, 0, 1, 1], [], []>} : vector<32x64xbf16>, vector<64x64xbf16>, vector<32x64xf32> -> vector<32x64xf32>
    %634 = arith.addf %627, %633 : vector<32x64xf32>
    %c1_568 = arith.constant 1 : index
    %c8_569 = arith.constant 8 : index
    %c0_570 = arith.constant 0 : index
    %635 = vector.load %arg45[%c1_568, %c8_569, %c0_570] : memref<5x24x64xf32, #tpu.memory_space<vmem>>, vector<4x8x64xf32>
    %636 = vector.shape_cast %635 : vector<4x8x64xf32> to vector<32x64xf32>
    %637 = arith.truncf %636 : vector<32x64xf32> to vector<32x64xbf16>
    %c7_571 = arith.constant 7 : index
    %c0_572 = arith.constant 0 : index
    %c0_573 = arith.constant 0 : index
    %638 = vector.load %arg28[%c7_571, %c0_572, %c0_573] : memref<9x64x64xbf16, #tpu.memory_space<vmem>>, vector<1x64x64xbf16>
    %639 = vector.shape_cast %638 : vector<1x64x64xbf16> to vector<64x64xbf16>
    %cst_574 = arith.constant dense<0.000000e+00> : vector<32x64xf32>
    %640 = tpu.matmul %637, %639, %cst_574 {dimension_numbers = #tpu.dot_dimension_numbers<[1], [0], [0], [1], [0, 0, 1, 1], [], []>} : vector<32x64xbf16>, vector<64x64xbf16>, vector<32x64xf32> -> vector<32x64xf32>
    %641 = arith.addf %634, %640 : vector<32x64xf32>
    %c1_575 = arith.constant 1 : index
    %c9_576 = arith.constant 9 : index
    %c0_577 = arith.constant 0 : index
    %642 = vector.load %arg45[%c1_575, %c9_576, %c0_577] : memref<5x24x64xf32, #tpu.memory_space<vmem>>, vector<4x8x64xf32>
    %643 = vector.shape_cast %642 : vector<4x8x64xf32> to vector<32x64xf32>
    %644 = arith.truncf %643 : vector<32x64xf32> to vector<32x64xbf16>
    %c8_578 = arith.constant 8 : index
    %c0_579 = arith.constant 0 : index
    %c0_580 = arith.constant 0 : index
    %645 = vector.load %arg28[%c8_578, %c0_579, %c0_580] : memref<9x64x64xbf16, #tpu.memory_space<vmem>>, vector<1x64x64xbf16>
    %646 = vector.shape_cast %645 : vector<1x64x64xbf16> to vector<64x64xbf16>
    %cst_581 = arith.constant dense<0.000000e+00> : vector<32x64xf32>
    %647 = tpu.matmul %644, %646, %cst_581 {dimension_numbers = #tpu.dot_dimension_numbers<[1], [0], [0], [1], [0, 0, 1, 1], [], []>} : vector<32x64xbf16>, vector<64x64xbf16>, vector<32x64xf32> -> vector<32x64xf32>
    %648 = arith.addf %641, %647 : vector<32x64xf32>
    %649 = vector.shape_cast %428 : vector<64x32xf32> to vector<4x2x8x32xf32>
    %650 = vector.extract_strided_slice %649 {offsets = [0, 0, 0, 0], sizes = [4, 1, 8, 32], strides = [1, 1, 1, 1]} : vector<4x2x8x32xf32> to vector<4x1x8x32xf32>
    %651 = vector.shape_cast %650 : vector<4x1x8x32xf32> to vector<4x8x32xf32>
    %652 = vector.shape_cast %651 : vector<4x8x32xf32> to vector<32x32xf32>
    %653 = arith.truncf %652 : vector<32x32xf32> to vector<32x32xbf16>
    %c0_582 = arith.constant 0 : index
    %c0_583 = arith.constant 0 : index
    %654 = vector.load %arg29[%c0_582, %c0_583] : memref<32x64xbf16, #tpu.memory_space<vmem>>, vector<32x64xbf16>
    %cst_584 = arith.constant dense<0.000000e+00> : vector<32x64xf32>
    %655 = tpu.matmul %653, %654, %cst_584 {dimension_numbers = #tpu.dot_dimension_numbers<[1], [0], [0], [1], [0, 0, 1, 1], [], []>} : vector<32x32xbf16>, vector<32x64xbf16>, vector<32x64xf32> -> vector<32x64xf32>
    %656 = arith.addf %648, %655 : vector<32x64xf32>
    %c0_585 = arith.constant 0 : index
    %c0_586 = arith.constant 0 : index
    %657 = vector.load %arg31[%c0_585, %c0_586] : memref<16x32xbf16, #tpu.memory_space<vmem>>, vector<16x32xbf16>
    %658 = arith.truncf %656 : vector<32x64xf32> to vector<32x64xbf16>
    %cst_587 = arith.constant dense<0.000000e+00> : vector<16x64xf32>
    %659 = tpu.matmul %657, %658, %cst_587 {dimension_numbers = #tpu.dot_dimension_numbers<[1], [0], [0], [1], [0, 0, 1, 1], [], []>} : vector<16x32xbf16>, vector<32x64xbf16>, vector<16x64xf32> -> vector<16x64xf32>
    %c0_588 = arith.constant 0 : index
    %c0_589 = arith.constant 0 : index
    %660 = vector.load %arg30[%c0_588, %c0_589] : memref<1x64xf32, #tpu.memory_space<vmem>>, vector<1x64xf32>
    %661 = vector.broadcast %660 : vector<1x64xf32> to vector<16x64xf32>
    %662 = arith.addf %659, %661 : vector<16x64xf32>
    %c0_590 = arith.constant 0 : index
    %c0_591 = arith.constant 0 : index
    %663 = vector.load %arg32[%c0_590, %c0_591] : memref<2x64xf32, #tpu.memory_space<vmem>>, vector<1x64xf32>
    %c1_592 = arith.constant 1 : index
    %c0_593 = arith.constant 0 : index
    %664 = vector.load %arg32[%c1_592, %c0_593] : memref<2x64xf32, #tpu.memory_space<vmem>>, vector<1x64xf32>
    %cst_594 = arith.constant dense<0.000000e+00> : vector<64xf32>
    %665 = vector.multi_reduction <add>, %662, %cst_594 [0] : vector<16x64xf32> to vector<64xf32>
    %666 = vector.shape_cast %665 : vector<64xf32> to vector<1x64xf32>
    %667 = arith.mulf %662, %662 : vector<16x64xf32>
    %cst_595 = arith.constant dense<0.000000e+00> : vector<64xf32>
    %668 = vector.multi_reduction <add>, %667, %cst_595 [0] : vector<16x64xf32> to vector<64xf32>
    %669 = vector.shape_cast %668 : vector<64xf32> to vector<1x64xf32>
    %670 = tpu.concatenate %666, %669 in 0 : vector<1x64xf32>, vector<1x64xf32> -> vector<2x64xf32>
    %c0_596 = arith.constant 0 : index
    %c0_597 = arith.constant 0 : index
    %671 = vector.load %arg33[%c0_596, %c0_597] : memref<64x16xf32, #tpu.memory_space<vmem>>, vector<64x16xf32>
    %cst_598 = arith.constant dense<0.000000e+00> : vector<2x16xf32>
    %672 = tpu.matmul %670, %671, %cst_598 {dimension_numbers = #tpu.dot_dimension_numbers<[1], [0], [0], [1], [0, 0, 1, 1], [], []>} : vector<2x64xf32>, vector<64x16xf32>, vector<2x16xf32> -> vector<2x16xf32>
    %673 = vector.extract_strided_slice %672 {offsets = [0, 0], sizes = [1, 16], strides = [1, 1]} : vector<2x16xf32> to vector<1x16xf32>
    %cst_599 = arith.constant 6.400000e+01 : f32
    %674 = vector.broadcast %cst_599 : f32 to vector<1x16xf32>
    %675 = arith.divf %673, %674 : vector<1x16xf32>
    %676 = vector.extract_strided_slice %672 {offsets = [1, 0], sizes = [1, 16], strides = [1, 1]} : vector<2x16xf32> to vector<1x16xf32>
    %cst_600 = arith.constant 6.400000e+01 : f32
    %677 = vector.broadcast %cst_600 : f32 to vector<1x16xf32>
    %678 = arith.divf %676, %677 : vector<1x16xf32>
    %679 = arith.mulf %675, %675 : vector<1x16xf32>
    %680 = arith.subf %678, %679 : vector<1x16xf32>
    %cst_601 = arith.constant 9.99999974E-6 : f32
    %681 = vector.broadcast %cst_601 : f32 to vector<1x16xf32>
    %682 = arith.addf %680, %681 : vector<1x16xf32>
    %683 = math.rsqrt %682 : vector<1x16xf32>
    %684 = tpu.concatenate %675, %683 in 0 : vector<1x16xf32>, vector<1x16xf32> -> vector<2x16xf32>
    %c0_602 = arith.constant 0 : index
    %c0_603 = arith.constant 0 : index
    %685 = vector.load %arg34[%c0_602, %c0_603] : memref<16x64xf32, #tpu.memory_space<vmem>>, vector<16x64xf32>
    %cst_604 = arith.constant dense<0.000000e+00> : vector<2x64xf32>
    %686 = tpu.matmul %684, %685, %cst_604 {dimension_numbers = #tpu.dot_dimension_numbers<[1], [0], [0], [1], [0, 0, 1, 1], [], []>} : vector<2x16xf32>, vector<16x64xf32>, vector<2x64xf32> -> vector<2x64xf32>
    %687 = vector.extract_strided_slice %686 {offsets = [0, 0], sizes = [1, 64], strides = [1, 1]} : vector<2x64xf32> to vector<1x64xf32>
    %688 = vector.extract_strided_slice %686 {offsets = [1, 0], sizes = [1, 64], strides = [1, 1]} : vector<2x64xf32> to vector<1x64xf32>
    %689 = arith.mulf %688, %663 : vector<1x64xf32>
    %690 = arith.mulf %687, %689 : vector<1x64xf32>
    %691 = arith.subf %664, %690 : vector<1x64xf32>
    %692 = vector.broadcast %689 : vector<1x64xf32> to vector<16x64xf32>
    %693 = arith.mulf %662, %692 : vector<16x64xf32>
    %694 = vector.broadcast %691 : vector<1x64xf32> to vector<16x64xf32>
    %695 = arith.addf %693, %694 : vector<16x64xf32>
    %cst_605 = arith.constant 0.000000e+00 : f32
    %696 = vector.broadcast %cst_605 : f32 to vector<16x64xf32>
    %697 = arith.maximumf %695, %696 : vector<16x64xf32>
    %cst_606 = arith.constant dense<0.000000e+00> : vector<64xf32>
    %698 = vector.multi_reduction <add>, %697, %cst_606 [0] : vector<16x64xf32> to vector<64xf32>
    %699 = vector.shape_cast %698 : vector<64xf32> to vector<1x64xf32>
    %cst_607 = arith.constant 1.600000e+01 : f32
    %700 = vector.broadcast %cst_607 : f32 to vector<1x64xf32>
    %701 = arith.divf %699, %700 : vector<1x64xf32>
    %702 = arith.truncf %701 : vector<1x64xf32> to vector<1x64xbf16>
    %c0_608 = arith.constant 0 : index
    %c0_609 = arith.constant 0 : index
    %703 = vector.load %arg35[%c0_608, %c0_609] : memref<64x8xbf16, #tpu.memory_space<vmem>>, vector<64x8xbf16>
    %cst_610 = arith.constant dense<0.000000e+00> : vector<1x8xf32>
    %704 = tpu.matmul %702, %703, %cst_610 {dimension_numbers = #tpu.dot_dimension_numbers<[1], [0], [0], [1], [0, 0, 1, 1], [], []>} : vector<1x64xbf16>, vector<64x8xbf16>, vector<1x8xf32> -> vector<1x8xf32>
    %c0_611 = arith.constant 0 : index
    %c0_612 = arith.constant 0 : index
    %705 = vector.load %arg36[%c0_611, %c0_612] : memref<1x8xf32, #tpu.memory_space<vmem>>, vector<1x8xf32>
    %706 = arith.addf %704, %705 : vector<1x8xf32>
    %707 = vector.shape_cast %706 : vector<1x8xf32> to vector<1x1x8xf32>
    %c0_613 = arith.constant 0 : index
    %c0_614 = arith.constant 0 : index
    %c0_615 = arith.constant 0 : index
    %708 = vector.load %arg37[%c0_613, %c0_614, %c0_615] : memref<1x1x8xf32, #tpu.memory_space<vmem>>, vector<1x1x8xf32>
    tpu.vector_store %arg37[%c0_613, %c0_614, %c0_615], %707 {strides = array<i32>} : memref<1x1x8xf32, #tpu.memory_space<vmem>>, vector<1x1x8xf32>,
    return
  }
  func.func @transform_0(%arg0: i32) -> (i32, i32, i32) {
    %c0_i32 = arith.constant 0 : i32
    %c0_i32_0 = arith.constant 0 : i32
    %c0_i32_1 = arith.constant 0 : i32
    return %arg0, %c0_i32, %c0_i32_0 : i32, i32, i32
  }
  func.func @transform_1(%arg0: i32) -> (i32, i32) {
    %c0_i32 = arith.constant 0 : i32
    %c0_i32_0 = arith.constant 0 : i32
    %c0_i32_1 = arith.constant 0 : i32
    return %c0_i32, %c0_i32_0 : i32, i32
  }
  func.func @transform_2(%arg0: i32) -> (i32, i32) {
    %c0_i32 = arith.constant 0 : i32
    %c0_i32_0 = arith.constant 0 : i32
    %c0_i32_1 = arith.constant 0 : i32
    return %c0_i32, %c0_i32_0 : i32, i32
  }
  func.func @transform_3(%arg0: i32) -> (i32, i32) {
    %c0_i32 = arith.constant 0 : i32
    %c0_i32_0 = arith.constant 0 : i32
    %c0_i32_1 = arith.constant 0 : i32
    return %c0_i32, %c0_i32_0 : i32, i32
  }
  func.func @transform_4(%arg0: i32) -> (i32, i32, i32) {
    %c0_i32 = arith.constant 0 : i32
    %c0_i32_0 = arith.constant 0 : i32
    %c0_i32_1 = arith.constant 0 : i32
    %c0_i32_2 = arith.constant 0 : i32
    return %c0_i32, %c0_i32_0, %c0_i32_1 : i32, i32, i32
  }
  func.func @transform_5(%arg0: i32) -> (i32, i32) {
    %c0_i32 = arith.constant 0 : i32
    %c0_i32_0 = arith.constant 0 : i32
    %c0_i32_1 = arith.constant 0 : i32
    return %c0_i32, %c0_i32_0 : i32, i32
  }
  func.func @transform_6(%arg0: i32) -> (i32, i32) {
    %c0_i32 = arith.constant 0 : i32
    %c0_i32_0 = arith.constant 0 : i32
    %c0_i32_1 = arith.constant 0 : i32
    return %c0_i32, %c0_i32_0 : i32, i32
  }
  func.func @transform_7(%arg0: i32) -> (i32, i32, i32) {
    %c0_i32 = arith.constant 0 : i32
    %c0_i32_0 = arith.constant 0 : i32
    %c0_i32_1 = arith.constant 0 : i32
    %c0_i32_2 = arith.constant 0 : i32
    return %c0_i32, %c0_i32_0, %c0_i32_1 : i32, i32, i32
  }
  func.func @transform_8(%arg0: i32) -> (i32, i32) {
    %c0_i32 = arith.constant 0 : i32
    %c0_i32_0 = arith.constant 0 : i32
    %c0_i32_1 = arith.constant 0 : i32
    return %c0_i32, %c0_i32_0 : i32, i32
  }
  func.func @transform_9(%arg0: i32) -> (i32, i32) {
    %c0_i32 = arith.constant 0 : i32
    %c0_i32_0 = arith.constant 0 : i32
    %c0_i32_1 = arith.constant 0 : i32
    return %c0_i32, %c0_i32_0 : i32, i32
  }
  func.func @transform_10(%arg0: i32) -> (i32, i32, i32) {
    %c0_i32 = arith.constant 0 : i32
    %c0_i32_0 = arith.constant 0 : i32
    %c0_i32_1 = arith.constant 0 : i32
    %c0_i32_2 = arith.constant 0 : i32
    return %c0_i32, %c0_i32_0, %c0_i32_1 : i32, i32, i32
  }
  func.func @transform_11(%arg0: i32) -> (i32, i32) {
    %c0_i32 = arith.constant 0 : i32
    %c0_i32_0 = arith.constant 0 : i32
    %c0_i32_1 = arith.constant 0 : i32
    return %c0_i32, %c0_i32_0 : i32, i32
  }
  func.func @transform_12(%arg0: i32) -> (i32, i32) {
    %c0_i32 = arith.constant 0 : i32
    %c0_i32_0 = arith.constant 0 : i32
    %c0_i32_1 = arith.constant 0 : i32
    return %c0_i32, %c0_i32_0 : i32, i32
  }
  func.func @transform_13(%arg0: i32) -> (i32, i32) {
    %c0_i32 = arith.constant 0 : i32
    %c0_i32_0 = arith.constant 0 : i32
    %c0_i32_1 = arith.constant 0 : i32
    return %c0_i32, %c0_i32_0 : i32, i32
  }
  func.func @transform_14(%arg0: i32) -> (i32, i32) {
    %c0_i32 = arith.constant 0 : i32
    %c0_i32_0 = arith.constant 0 : i32
    %c0_i32_1 = arith.constant 0 : i32
    return %c0_i32, %c0_i32_0 : i32, i32
  }
  func.func @transform_15(%arg0: i32) -> (i32, i32, i32) {
    %c0_i32 = arith.constant 0 : i32
    %c0_i32_0 = arith.constant 0 : i32
    %c0_i32_1 = arith.constant 0 : i32
    %c0_i32_2 = arith.constant 0 : i32
    return %c0_i32, %c0_i32_0, %c0_i32_1 : i32, i32, i32
  }
  func.func @transform_16(%arg0: i32) -> (i32, i32) {
    %c0_i32 = arith.constant 0 : i32
    %c0_i32_0 = arith.constant 0 : i32
    %c0_i32_1 = arith.constant 0 : i32
    return %c0_i32, %c0_i32_0 : i32, i32
  }
  func.func @transform_17(%arg0: i32) -> (i32, i32) {
    %c0_i32 = arith.constant 0 : i32
    %c0_i32_0 = arith.constant 0 : i32
    %c0_i32_1 = arith.constant 0 : i32
    return %c0_i32, %c0_i32_0 : i32, i32
  }
  func.func @transform_18(%arg0: i32) -> (i32, i32) {
    %c0_i32 = arith.constant 0 : i32
    %c0_i32_0 = arith.constant 0 : i32
    %c0_i32_1 = arith.constant 0 : i32
    return %c0_i32, %c0_i32_0 : i32, i32
  }
  func.func @transform_19(%arg0: i32) -> (i32, i32) {
    %c0_i32 = arith.constant 0 : i32
    %c0_i32_0 = arith.constant 0 : i32
    %c0_i32_1 = arith.constant 0 : i32
    return %c0_i32, %c0_i32_0 : i32, i32
  }
  func.func @transform_20(%arg0: i32) -> (i32, i32) {
    %c0_i32 = arith.constant 0 : i32
    %c0_i32_0 = arith.constant 0 : i32
    %c0_i32_1 = arith.constant 0 : i32
    return %c0_i32, %c0_i32_0 : i32, i32
  }
  func.func @transform_21(%arg0: i32) -> (i32, i32) {
    %c0_i32 = arith.constant 0 : i32
    %c0_i32_0 = arith.constant 0 : i32
    %c0_i32_1 = arith.constant 0 : i32
    return %c0_i32, %c0_i32_0 : i32, i32
  }
  func.func @transform_22(%arg0: i32) -> (i32, i32, i32) {
    %c0_i32 = arith.constant 0 : i32
    %c0_i32_0 = arith.constant 0 : i32
    %c0_i32_1 = arith.constant 0 : i32
    %c0_i32_2 = arith.constant 0 : i32
    return %c0_i32, %c0_i32_0, %c0_i32_1 : i32, i32, i32
  }
  func.func @transform_23(%arg0: i32) -> (i32, i32) {
    %c0_i32 = arith.constant 0 : i32
    %c0_i32_0 = arith.constant 0 : i32
    %c0_i32_1 = arith.constant 0 : i32
    return %c0_i32, %c0_i32_0 : i32, i32
  }
  func.func @transform_24(%arg0: i32) -> (i32, i32) {
    %c0_i32 = arith.constant 0 : i32
    %c0_i32_0 = arith.constant 0 : i32
    %c0_i32_1 = arith.constant 0 : i32
    return %c0_i32, %c0_i32_0 : i32, i32
  }
  func.func @transform_25(%arg0: i32) -> (i32, i32) {
    %c0_i32 = arith.constant 0 : i32
    %c0_i32_0 = arith.constant 0 : i32
    %c0_i32_1 = arith.constant 0 : i32
    return %c0_i32, %c0_i32_0 : i32, i32
  }
  func.func @transform_26(%arg0: i32) -> (i32, i32) {
    %c0_i32 = arith.constant 0 : i32
    %c0_i32_0 = arith.constant 0 : i32
    %c0_i32_1 = arith.constant 0 : i32
    return %c0_i32, %c0_i32_0 : i32, i32
  }
  func.func @transform_27(%arg0: i32) -> (i32, i32, i32) {
    %c0_i32 = arith.constant 0 : i32
    %c0_i32_0 = arith.constant 0 : i32
    %c0_i32_1 = arith.constant 0 : i32
    %c0_i32_2 = arith.constant 0 : i32
    return %c0_i32, %c0_i32_0, %c0_i32_1 : i32, i32, i32
  }
  func.func @transform_28(%arg0: i32) -> (i32, i32) {
    %c0_i32 = arith.constant 0 : i32
    %c0_i32_0 = arith.constant 0 : i32
    %c0_i32_1 = arith.constant 0 : i32
    return %c0_i32, %c0_i32_0 : i32, i32
  }
  func.func @transform_29(%arg0: i32) -> (i32, i32) {
    %c0_i32 = arith.constant 0 : i32
    %c0_i32_0 = arith.constant 0 : i32
    %c0_i32_1 = arith.constant 0 : i32
    return %c0_i32, %c0_i32_0 : i32, i32
  }
  func.func @transform_30(%arg0: i32) -> (i32, i32) {
    %c0_i32 = arith.constant 0 : i32
    %c0_i32_0 = arith.constant 0 : i32
    %c0_i32_1 = arith.constant 0 : i32
    return %c0_i32, %c0_i32_0 : i32, i32
  }
  func.func @transform_31(%arg0: i32) -> (i32, i32) {
    %c0_i32 = arith.constant 0 : i32
    %c0_i32_0 = arith.constant 0 : i32
    %c0_i32_1 = arith.constant 0 : i32
    return %c0_i32, %c0_i32_0 : i32, i32
  }
  func.func @transform_32(%arg0: i32) -> (i32, i32) {
    %c0_i32 = arith.constant 0 : i32
    %c0_i32_0 = arith.constant 0 : i32
    %c0_i32_1 = arith.constant 0 : i32
    return %c0_i32, %c0_i32_0 : i32, i32
  }
  func.func @transform_33(%arg0: i32) -> (i32, i32) {
    %c0_i32 = arith.constant 0 : i32
    %c0_i32_0 = arith.constant 0 : i32
    %c0_i32_1 = arith.constant 0 : i32
    return %c0_i32, %c0_i32_0 : i32, i32
  }
  func.func @transform_34(%arg0: i32) -> (i32, i32) {
    %c0_i32 = arith.constant 0 : i32
    %c0_i32_0 = arith.constant 0 : i32
    %c0_i32_1 = arith.constant 0 : i32
    return %c0_i32, %c0_i32_0 : i32, i32
  }
  func.func @transform_35(%arg0: i32) -> (i32, i32) {
    %c0_i32 = arith.constant 0 : i32
    %c0_i32_0 = arith.constant 0 : i32
    %c0_i32_1 = arith.constant 0 : i32
    return %c0_i32, %c0_i32_0 : i32, i32
  }
  func.func @transform_36(%arg0: i32) -> (i32, i32, i32) {
    %c0_i32 = arith.constant 0 : i32
    %c0_i32_0 = arith.constant 0 : i32
    %c0_i32_1 = arith.constant 0 : i32
    return %arg0, %c0_i32, %c0_i32_0 : i32, i32, i32
  }
}

</mosaic_0001>

<bundles_post_ra>
// kernel: _lambda_.1
= control target key start
LH: loop header
LB: loop body
LE: loop exit
PB: predicated region body
PF: predicated region fallthrough
CT: control target
= control target key end

     0   :  { %s20354_s6 = smov 1   ;;  %s20355_s10 = smov 2   ;;  %s24609_s0 = inlined_call_operand.smem [shape: u32[37], index: -1, kind: input, shape index: {}] }
   0x1   :  { %s20402_s5 = sld [smem:[%s24609_s0]]   ;;  %s20356_s14 = smov 3  }
   0x2   :  { %s20407_s9 = sld [smem:[%s24609_s0 + %s20354_s6]]   ;;  %s20357_s18 = smov 4  }
   0x3   :  { %s20412_s13 = sld [smem:[%s24609_s0 + %s20355_s10]]   ;;  %s20358_s22 = smov 5  }
   0x4   :  { %s20417_s17 = sld [smem:[%s24609_s0 + %s20356_s14]]   ;;  %s20359_s26 = smov 6  }
   0x5   :  { %s20422_s21 = sld [smem:[%s24609_s0 + %s20357_s18]]   ;;  %s20360_s30 = smov 7  }
   0x6   :  { %s20427_s25 = sld [smem:[%s24609_s0 + %s20358_s22]]   ;;  %s20361_s4 = smov 8  }
   0x7   :  { %24684 = sst [smem:[#allocation13_spill]] %s20402_s5  ;;  %s20362_s10 = smov 9  }
   0x8   :  { %24685 = sst [smem:[#allocation14_spill]] %s20407_s9  ;;  %s20363_s15 = smov 10  }
   0x9   :  { %24686 = sst [smem:[#allocation15_spill]] %s20412_s13  ;;  %s20364_s20 = smov 11  }
   0xa   :  { %s20432_s29 = sld [smem:[%s24609_s0 + %s20359_s26]]   ;;  %s20365_s26 = smov 12  }
   0xb   :  { %s20437_s3 = sld [smem:[%s24609_s0 + %s20360_s30]]   ;;  %s20366_s1 = smov 13  }
   0xc   :  { %s20442_s8 = sld [smem:[%s24609_s0 + %s20361_s4]]   ;;  %s20367_s7 = smov 14  }
   0xd   :  { %s20447_s14 = sld [smem:[%s24609_s0 + %s20362_s10]]   ;;  %s20369_s22 = smov 16  }
   0xe   :  { %s20452_s19 = sld [smem:[%s24609_s0 + %s20363_s15]]   ;;  %s20368_s15 = smov 15  }
   0xf   :  { %s20457_s24 = sld [smem:[%s24609_s0 + %s20364_s20]]   ;;  %s20370_s28 = smov 17  }
  0x10   :  { %s20462_s30 = sld [smem:[%s24609_s0 + %s20365_s26]]  }
  0x11   :  { %24687 = sst [smem:[#allocation16_spill]] %s20437_s3 }
  0x12   :  { %24688 = sst [smem:[#allocation17_spill]] %s20442_s8 }
  0x13   :  { %s20467_s6 = sld [smem:[%s24609_s0 + %s20366_s1]]  }
  0x14   :  { %s20472_s12 = sld [smem:[%s24609_s0 + %s20367_s7]]   ;;  %s20371_s7 = smov 18  }
  0x15   :  { %s20477_s20 = sld [smem:[%s24609_s0 + %s20368_s15]]   ;;  %s20372_s15 = smov 19  }
  0x16   :  { %24689 = sst [smem:[#allocation18_spill]] %s20462_s30 }
  0x17   :  { %s20482_s27 = sld [smem:[%s24609_s0 + %s20369_s22]]   ;;  %s20373_s22 = smov 20  }
  0x18   :  { %s20487_s4 = sld [smem:[%s24609_s0 + %s20370_s28]]   ;;  %s20374_s28 = smov 21  }
  0x19   :  { %24690 = sst [smem:[#allocation19_spill]] %s20467_s6 }
  0x1a   :  { %24691 = sst [smem:[#allocation20_spill]] %s20472_s12 }
  0x1b   :  { %24692 = sst [smem:[#allocation21_spill]] %s20477_s20 }
  0x1c   :  { %s20492_s30 = sld [smem:[%s24609_s0 + %s20371_s7]]   ;;  %s20375_s7 = smov 22  }
  0x1d   :  { %24693 = sst [smem:[#allocation22_spill]] %s20482_s27 }
  0x1e   :  { %24694 = sst [smem:[#allocation23_spill]] %s20487_s4 }
  0x1f   :  { %s20497_s20 = sld [smem:[%s24609_s0 + %s20372_s15]]   ;;  %s20376_s15 = smov 23  }
  0x20   :  { %s20502_s27 = sld [smem:[%s24609_s0 + %s20373_s22]]   ;;  %s20377_s22 = smov 24  }
  0x21   :  { %s20507_s4 = sld [smem:[%s24609_s0 + %s20374_s28]]   ;;  %s20378_s28 = smov 25  }
  0x22   :  { %24695 = sst [smem:[#allocation24_spill]] %s20492_s30 }
  0x23   :  { %s20512_s30 = sld [smem:[%s24609_s0 + %s20375_s7]]   ;;  %s20379_s7 = smov 26  }
  0x25   :  { %24696 = sst [smem:[#allocation25_spill]] %s20497_s20 }
  0x26   :  { %24697 = sst [smem:[#allocation26_spill]] %s20502_s27 }
  0x27   :  { %24698 = sst [smem:[#allocation27_spill]] %s20507_s4 }
  0x28   :  { %s20517_s20 = sld [smem:[%s24609_s0 + %s20376_s15]]   ;;  %s20380_s15 = smov 27  }
  0x29   :  { %24699 = sst [smem:[#allocation28_spill]] %s20512_s30 }
  0x2a   :  { %s20522_s27 = sld [smem:[%s24609_s0 + %s20377_s22]]   ;;  %s20381_s22 = smov 28  }
  0x2b   :  { %s20527_s4 = sld [smem:[%s24609_s0 + %s20378_s28]]   ;;  %s20382_s28 = smov 29  }
  0x2c   :  { %s20532_s30 = sld [smem:[%s24609_s0 + %s20379_s7]]   ;;  %s20383_s7 = smov 30  }
  0x2e   :  { %24700 = sst [smem:[#allocation29_spill]] %s20517_s20 }
  0x2f   :  { %s20537_s20 = sld [smem:[%s24609_s0 + %s20380_s15]]   ;;  %s20384_s15 = smov 31  }
  0x30   :  { %24701 = sst [smem:[#allocation30_spill]] %s20522_s27 }
  0x31   :  { %24702 = sst [smem:[#allocation31_spill]] %s20527_s4 }
  0x32   :  { %24703 = sst [smem:[#allocation32_spill]] %s20532_s30 }
  0x33   :  { %s20542_s27 = sld [smem:[%s24609_s0 + %s20381_s22]]   ;;  %s20385_s22 = smov 32  }
  0x34   :  { %s20547_s4 = sld [smem:[%s24609_s0 + %s20382_s28]]   ;;  %s20386_s28 = smov 33  }
  0x35   :  { %24704 = sst [smem:[#allocation33_spill]] %s20537_s20 }
  0x36   :  { %s20552_s30 = sld [smem:[%s24609_s0 + %s20383_s7]]   ;;  %s20387_s7 = smov 34  }
  0x37   :  { %s20557_s20 = sld [smem:[%s24609_s0 + %s20384_s15]]   ;;  %s20388_s15 = smov 35  }
  0x39   :  { %24705 = sst [smem:[#allocation34_spill]] %s20542_s27 }
  0x3a   :  { %24706 = sst [smem:[#allocation35_spill]] %s20547_s4 }
  0x3b   :  { %s20562_s27 = sld [smem:[%s24609_s0 + %s20385_s22]]   ;;  %s20389_s22 = smov 36  }
  0x3c   :  { %24707 = sst [smem:[#allocation36_spill]] %s20552_s30 }
  0x3d   :  { %24708 = sst [smem:[#allocation37_spill]] %s20557_s20 }
  0x3e   :  { %s20567_s4 = sld [smem:[%s24609_s0 + %s20386_s28]]  }
  0x3f   :  { %s20572_s30 = sld [smem:[%s24609_s0 + %s20387_s7]]  }
  0x40   :  { %s20577_s20 = sld [smem:[%s24609_s0 + %s20388_s15]]  }
  0x41   :  { %24709 = sst [smem:[#allocation38_spill]] %s20562_s27 }
  0x42   :  { %s20582_s27 = sld [smem:[%s24609_s0 + %s20389_s22]]  }
  0x44   :  { %24710 = sst [smem:[#allocation39_spill]] %s20567_s4 }
  0x45   :  { %78 = vsyncpa [#allocation11], 0 }
  0x46   :  { %80 = vsyncpa [#allocation11 + $0x1], 0  ;;  %s20584_s28 = smov 0   ;;  %s20586_s1 = smov 0  }
  0x47   :  { %s20588_s2 = smov 0   ;;  %s20590_s7 = smov 0  }
  0x48 LB: > { %s24711_s12 = sld [smem:[#allocation20_spill]]  ;;  %s24712_s9 = sld [smem:[#allocation14_spill]]  ;;  %s20340_s28 = sphi %s20584_s28, %s24857_s28   ;;  %s20352_s7 = sphi %s20590_s7, %s24860_s7   ;;  %s20348_s2 = sphi %s20588_s2, %s24859_s2   ;;  %s20344_s1 = sphi %s20586_s1, %s24858_s1  }
  0x49   : > { %s24713_s4 = sld [smem:[#allocation39_spill]]  ;;  %s24714_s6 = sld [smem:[#allocation19_spill]] }
  0x4a   : > { %s24715_s3 = sld [smem:[#allocation16_spill]]  ;;  %s20605_s0 = sadd.s32 4294967295, %s20352_s7  }
  0x4b   : > { %s15861_s10 = sadd.s32 4294967294, %s20352_s7   ;;  %s20609_s11 = sadd.s32 1, %s20352_s7  }
  0x4c   : > { %s854_s15 = sadd.s32 1, %s20348_s2  ;;  %s851_s16 = ssub.s32 %s20352_s7, %s20609_s11 }
  0x4d   : > { %p864_p0 = scmp.ne.s32.totalorder %s20348_s2, %s20344_s1  ;;  %p852_p1 = scmp.eq.s32.totalorder %s851_s16, 0 }
  0x4e   : > { %p865_p2 = scmp.eq.s32.totalorder %s20605_s0, 1  ;;  %p870_p3 = scmp.ne.s32.totalorder %s20344_s1, %s20340_s28 }
  0x4f   : > { %p871_p4 = scmp.eq.s32.totalorder %s15861_s10, 1  ;;  %p15864_p7 = scmp.ge.s32.totalorder %s20352_s7, 1 }
  0x50   : > { %s20620_s18 = scalar_select %p852_p1, %s20348_s2, %s854_s15  }
  0x51   : > { %p20622_p5 = por %p865_p2, %p864_p0  ;;  %p20626_p6 = por %p871_p4, %p870_p3 }
  0x52   : > { %p1002_p8 = scmp.lt.s32.totalorder %s20352_s7, 3 }
  0x54   : > { %p1003_p9 = pnand %p15864_p7, %p1002_p8 }
  0x56   : > { %1006 = sbr.rel (%p1003_p9) target bundleno = 6811 (0x1a9b), region = 164 }
  0x5d   : > { %s24718_s5 = sld [smem:[#allocation13_spill]]  ;;  %v20162_v0 = vld [vmem:[%s24712_s9] sm:$0xff]   ;;  %v20163_v1 = vld [vmem:[%s24712_s9 + $0x8] sm:$0xff]   ;;  %p1091_p10 = scmp.lt.s32.totalorder %s20605_s0, 1  ;;  %vm1221_vm0 = vcmask 1041408   ;;  %vm1172_vm1 = vcmask 293888  }
  0x5e   : > { %17511 = vmatprep.subr.bf16.mxu0 %v20162_v0  ;;  %v20164_v2 = vld [vmem:[%s24712_s9 + $0x10] ss:$0 sps:$4 sm:$0x33]   ;;  %s24719_s13 = sld [smem:[#allocation15_spill]]  ;;  %vm1388_vm2 = vcmask 130048   ;;  %v24624_v58 = vmov 0.0  }
  0x5f   : > { %17512 = vmatpush3.bf16.msra.mxu0 %v20162_v0  ;;  %s1092_s26 = scalar_select %p1091_p10, %s20605_s0, 1  ;;  %v1223_v6 = vsel %vm1221_vm0, %v20164_v2, 0  ;;  %1674 = vst.msk [vmem:[#allocation2 + $0x8] sm:$0xff] %vm1388_vm2, %v24624_v58  ;;  %1675 = vst.msk [vmem:[#allocation2 + $0x10] sm:$0xff] %vm1388_vm2, %v24624_v58  ;;  %v20746_v60 = vld [vmem:[%s20422_s21 + $0x8] sm:$0xff]   ;;  %vm1682_vm3 = vcmask 122880  }
  0x60   : > { %17513 = vmatprep.subr.bf16.mxu0 %v20163_v1  ;;  %1673 = vst.msk [vmem:[#allocation2] sm:$0xff] %vm1388_vm2, %v24624_v58  ;;  %1676 = vst.msk [vmem:[#allocation2 + $0x18] sm:$0xff] %vm1388_vm2, %v24624_v58  ;;  %17549 = vmatprep.subr.bf16.mxu1 %v20746_v60  ;;  %s24767_s8 = sld [smem:[#allocation17_spill]]  ;;  %vm10483_vm4 = vcmask 261120   ;;  %vm20392_vm5 = vmmov 0   ;;  %vm10654_vm6 = vcmask 1040384  }
  0x61   : > { %s16761_s10 = sshll.u32 %s1092_s26, 8  ;;  %1678 = vst.msk [vmem:[#allocation2 + $0x220] sm:$0xff] %vm1388_vm2, %v24624_v58  ;;  %1679 = vst.msk [vmem:[#allocation2 + $0x228] sm:$0xff] %vm1388_vm2, %v24624_v58  ;;  %17550 = vmatpush3.bf16.msra.mxu1 %v20746_v60  ;;  %s24823_s16 = sld [smem:[#allocation21_spill]]  ;;  %vm10935_vm7 = vcmask 253952   ;;  %vm14156_vm8 = vcmask 523264  }
  0x62   : > { %1680 = vst.msk [vmem:[#allocation2 + $0x230] sm:$0xff] %vm1388_vm2, %v24624_v58  ;;  %1681 = vst.msk [vmem:[#allocation2 + $0x238] sm:$0xff] %vm1388_vm2, %v24624_v58  ;;  %s24824_s26 = sld [smem:[#allocation18_spill]]  ;;  %vm14417_vm9 = vcmask 516096   ;;  %vm15755_vm10 = vcmask 57344  }
  0x63   : > { %s20638_s15 = scalar_lea.vmem %s24718_s5, %s16761_s10  ;;  %17514 = vmatpush3.bf16.msra.mxu0 %v20163_v1  ;;  %4694 = vst.msk [vmem:[#allocation3] sm:$0xff] %vm1388_vm2, %v24624_v58  ;;  %4695 = vst.msk [vmem:[#allocation3 + $0x8] sm:$0xff] %vm1388_vm2, %v24624_v58  ;;  %s24827_s10 = sld [smem:[#allocation22_spill]] }
  0x64   : > { %v1097_v3 = vld [vmem:[%s20638_s15] sm:$0xff]  ;;  %v1098_v4 = vld [vmem:[%s20638_s15 + $0x8] sm:$0xff]  ;;  %v1099_v5 = vld [vmem:[%s20638_s15 + $0x10] sm:$0xff]  ;;  %20083 = vmatprep.subr.msk.bf16.mxu0 %vm1221_vm0, %v20164_v2  ;;  %4696 = vst.msk [vmem:[#allocation3 + $0x10] sm:$0xff] %vm1388_vm2, %v24624_v58  ;;  %s24843_s5 = sld [smem:[#allocation28_spill]] }
  0x65   : > { %v1129_v7 = vpack.c.bf16 %v1098_v4, %v1097_v3  ;;  %v1100_v8 = vld [vmem:[%s20638_s15 + $0x18] sm:$0xff]  ;;  %v1101_v9 = vld [vmem:[%s20638_s15 + $0x20] sm:$0xff]  ;;  %v1102_v10 = vld [vmem:[%s20638_s15 + $0x28] sm:$0xff]  ;;  %4697 = vst.msk [vmem:[#allocation3 + $0x18] sm:$0xff] %vm1388_vm2, %v24624_v58 }
  0x66   : > { %v1130_v11 = vpack.c.bf16 %v1100_v8, %v1099_v5  ;;  %v1131_v12 = vpack.c.bf16 %v1102_v10, %v1101_v9  ;;  %v1103_v13 = vld [vmem:[%s20638_s15 + $0x30] sm:$0xff]  ;;  %v1104_v14 = vld [vmem:[%s20638_s15 + $0x38] sm:$0xff]  ;;  %v1105_v15 = vld [vmem:[%s20638_s15 + $0x40] sm:$0xff]  ;;  %4699 = vst.msk [vmem:[#allocation3 + $0x220] sm:$0xff] %vm1388_vm2, %v24624_v58 }
  0x67   : > { %17517 = vmatprep.mubr.msk.bf16.mxu0 %vm1172_vm1, %v1129_v7  ;;  %17516 = vmatpush3.bf16.msra.mxu0 %v1223_v6  ;;  %v1106_v16 = vld [vmem:[%s20638_s15 + $0x48] sm:$0xff]  ;;  %v1132_v17 = vpack.c.bf16 %v1104_v14, %v1103_v13  ;;  %v1107_v19 = vld [vmem:[%s20638_s15 + $0x50] sm:$0xff]  ;;  %v1108_v20 = vld [vmem:[%s20638_s15 + $0x58] sm:$0xff]  ;;  %4700 = vst.msk [vmem:[#allocation3 + $0x228] sm:$0xff] %vm1388_vm2, %v24624_v58 }
  0x68   : > { %v1133_v18 = vpack.c.bf16 %v1106_v16, %v1105_v15  ;;  %v1109_v21 = vld [vmem:[%s20638_s15 + $0x60] sm:$0xff]  ;;  %v1110_v22 = vld [vmem:[%s20638_s15 + $0x68] sm:$0xff]  ;;  %v1134_v23 = vpack.c.bf16 %v1108_v20, %v1107_v19  ;;  %v1111_v25 = vld [vmem:[%s20638_s15 + $0x70] sm:$0xff]  ;;  %4701 = vst.msk [vmem:[#allocation3 + $0x230] sm:$0xff] %vm1388_vm2, %v24624_v58 }
  0x69   : > { %v1135_v24 = vpack.c.bf16 %v1110_v22, %v1109_v21  ;;  %v1112_v26 = vld [vmem:[%s20638_s15 + $0x78] sm:$0xff]  ;;  %v1113_v27 = vld [vmem:[%s20638_s15 + $0x80] sm:$0xff]  ;;  %v1114_v28 = vld [vmem:[%s20638_s15 + $0x88] sm:$0xff]  ;;  %4702 = vst.msk [vmem:[#allocation3 + $0x238] sm:$0xff] %vm1388_vm2, %v24624_v58 }
  0x6a   : > { %17518 = vmatmul.mubr.msk.bf16.vlgmr.msra.gmra.mrb[0].mxu0 %vm1172_vm1, %v1130_v11  ;;  %v1136_v29 = vpack.c.bf16 %v1112_v26, %v1111_v25  ;;  %v1137_v30 = vpack.c.bf16 %v1114_v28, %v1113_v27  ;;  %v1115_v31 = vld [vmem:[%s20638_s15 + $0x90] sm:$0xff]  ;;  %v1116_v32 = vld [vmem:[%s20638_s15 + $0x98] sm:$0xff]  ;;  %v1117_v33 = vld [vmem:[%s20638_s15 + $0xa0] sm:$0xff]  ;;  %7746 = vst.msk [vmem:[#allocation4] sm:$0xff] %vm1388_vm2, %v24624_v58 }
  0x6b   : > { %17521 = vmatprep.mubr.msk.bf16.mxu0 %vm1172_vm1, %v1131_v12  ;;  %v1118_v34 = vld [vmem:[%s20638_s15 + $0xa8] sm:$0xff]  ;;  %v1138_v35 = vpack.c.bf16 %v1116_v32, %v1115_v31  ;;  %v1119_v37 = vld [vmem:[%s20638_s15 + $0xb0] sm:$0xff]  ;;  %v1120_v38 = vld [vmem:[%s20638_s15 + $0xb8] sm:$0xff]  ;;  %7747 = vst.msk [vmem:[#allocation4 + $0x8] sm:$0xff] %vm1388_vm2, %v24624_v58 }
  0x6c   : > { %v1139_v36 = vpack.c.bf16 %v1118_v34, %v1117_v33  ;;  %v1121_v39 = vld [vmem:[%s20638_s15 + $0xc0] sm:$0xff]  ;;  %v1122_v40 = vld [vmem:[%s20638_s15 + $0xc8] sm:$0xff]  ;;  %v1140_v41 = vpack.c.bf16 %v1120_v38, %v1119_v37  ;;  %v1123_v43 = vld [vmem:[%s20638_s15 + $0xd0] sm:$0xff]  ;;  %7748 = vst.msk [vmem:[#allocation4 + $0x10] sm:$0xff] %vm1388_vm2, %v24624_v58 }
  0x6d   : > { %v1141_v42 = vpack.c.bf16 %v1122_v40, %v1121_v39  ;;  %v1124_v44 = vld [vmem:[%s20638_s15 + $0xd8] sm:$0xff]  ;;  %v1125_v45 = vld [vmem:[%s20638_s15 + $0xe0] sm:$0xff]  ;;  %v1126_v46 = vld [vmem:[%s20638_s15 + $0xe8] sm:$0xff]  ;;  %7749 = vst.msk [vmem:[#allocation4 + $0x18] sm:$0xff] %vm1388_vm2, %v24624_v58 }
  0x6e   : > { %v1142_v47 = vpack.c.bf16 %v1124_v44, %v1123_v43  ;;  %v1143_v48 = vpack.c.bf16 %v1126_v46, %v1125_v45  ;;  %v1127_v49 = vld [vmem:[%s20638_s15 + $0xf0] sm:$0xff]  ;;  %v1128_v50 = vld [vmem:[%s20638_s15 + $0xf8] sm:$0xff]  ;;  %v20689_v52 = vld [vmem:[%s24719_s13] ss:$0 sm:$0xff]  ;;  %7751 = vst.msk [vmem:[#allocation4 + $0x220] sm:$0xff] %vm1388_vm2, %v24624_v58  ;;  %s24828_s15 = sld [smem:[#allocation24_spill]] }
  0x6f   : > { %v1144_v51 = vpack.c.bf16 %v1128_v50, %v1127_v49  ;;  %7752 = vst.msk [vmem:[#allocation4 + $0x228] sm:$0xff] %vm1388_vm2, %v24624_v58  ;;  %7753 = vst.msk [vmem:[#allocation4 + $0x230] sm:$0xff] %vm1388_vm2, %v24624_v58  ;;  %v20985_v4 = vld [vmem:[%s20422_s21] sm:$0xff]   ;;  %v1802_v14 = vld [vmem:[#allocation2 + $0x8] sm:$0xff] }
  0x70   : > { %7754 = vst.msk [vmem:[#allocation4 + $0x238] sm:$0xff] %vm1388_vm2, %v24624_v58  ;;  %17583 = vmatprep.subr.bf16.mxu1 %v20985_v4  ;;  %v1803_v15 = vld [vmem:[#allocation2 + $0x10] sm:$0xff] }
  0x71   : > { %1683 = vst.msk [vmem:[#allocation2 + $0x7] sm:$0x1] %vm1682_vm3, %v24624_v58  ;;  %1684 = vst.msk [vmem:[#allocation2 + $0x27] sm:$0x1] %vm1682_vm3, %v24624_v58  ;;  %v1834_v20 = vpack.c.bf16 %v1803_v15, %v1802_v14 }
  0x72   : > { %17522 = vmatmul.mubr.msk.bf16.gmra.mrb[4].mxu0 %vm1172_vm1, %v1132_v17  ;;  %1685 = vst.msk [vmem:[#allocation2 + $0x47] sm:$0x1] %vm1682_vm3, %v24624_v58  ;;  %1686 = vst.msk [vmem:[#allocation2 + $0x67] sm:$0x1] %vm1682_vm3, %v24624_v58 }
  0x73   : > { %17525 = vmatprep.mubr.msk.bf16.mxu0 %vm1172_vm1, %v1133_v18  ;;  %1687 = vst.msk [vmem:[#allocation2 + $0x87] sm:$0x1] %vm1682_vm3, %v24624_v58  ;;  %1688 = vst.msk [vmem:[#allocation2 + $0xa7] sm:$0x1] %vm1682_vm3, %v24624_v58  ;;  %17551 = vmatprep.mubr.msk.bf16.mxu1 %vm1388_vm2, %v1834_v20 }
  0x74   : > { %1689 = vst.msk [vmem:[#allocation2 + $0xc7] sm:$0x1] %vm1682_vm3, %v24624_v58  ;;  %1690 = vst.msk [vmem:[#allocation2 + $0xe7] sm:$0x1] %vm1682_vm3, %v24624_v58 }
  0x75   : > { %1691 = vst.msk [vmem:[#allocation2 + $0x107] sm:$0x1] %vm1682_vm3, %v24624_v58  ;;  %1692 = vst.msk [vmem:[#allocation2 + $0x127] sm:$0x1] %vm1682_vm3, %v24624_v58 }
  0x76   : > { %1693 = vst.msk [vmem:[#allocation2 + $0x147] sm:$0x1] %vm1682_vm3, %v24624_v58  ;;  %1694 = vst.msk [vmem:[#allocation2 + $0x167] sm:$0x1] %vm1682_vm3, %v24624_v58 }
  0x77   : > { %1695 = vst.msk [vmem:[#allocation2 + $0x187] sm:$0x1] %vm1682_vm3, %v24624_v58  ;;  %1696 = vst.msk [vmem:[#allocation2 + $0x1a7] sm:$0x1] %vm1682_vm3, %v24624_v58 }
  0x78   : > { %1697 = vst.msk [vmem:[#allocation2 + $0x1c7] sm:$0x1] %vm1682_vm3, %v24624_v58  ;;  %1698 = vst.msk [vmem:[#allocation2 + $0x1e7] sm:$0x1] %vm1682_vm3, %v24624_v58 }
  0x79   : > { %1699 = vst.msk [vmem:[#allocation2 + $0x207] sm:$0x1] %vm1682_vm3, %v24624_v58  ;;  %1700 = vst.msk [vmem:[#allocation2 + $0x227] sm:$0x1] %vm1682_vm3, %v24624_v58 }
  0x7a   : > { %17526 = vmatmul.mubr.msk.bf16.gmra.mrb[8].mxu0 %vm1172_vm1, %v1134_v23  ;;  %1701 = vst.msk [vmem:[#allocation2 + $0x18] sm:$0x1] %vm1682_vm3, %v24624_v58  ;;  %1702 = vst.msk [vmem:[#allocation2 + $0x38] sm:$0x1] %vm1682_vm3, %v24624_v58 }
  0x7b   : > { %17529 = vmatprep.mubr.msk.bf16.mxu0 %vm1172_vm1, %v1135_v24  ;;  %1703 = vst.msk [vmem:[#allocation2 + $0x58] sm:$0x1] %vm1682_vm3, %v24624_v58  ;;  %1704 = vst.msk [vmem:[#allocation2 + $0x78] sm:$0x1] %vm1682_vm3, %v24624_v58 }
  0x7c   : > { %1705 = vst.msk [vmem:[#allocation2 + $0x98] sm:$0x1] %vm1682_vm3, %v24624_v58  ;;  %1706 = vst.msk [vmem:[#allocation2 + $0xb8] sm:$0x1] %vm1682_vm3, %v24624_v58 }
  0x7d   : > { %1707 = vst.msk [vmem:[#allocation2 + $0xd8] sm:$0x1] %vm1682_vm3, %v24624_v58  ;;  %1708 = vst.msk [vmem:[#allocation2 + $0xf8] sm:$0x1] %vm1682_vm3, %v24624_v58 }
  0x7e   : > { %1709 = vst.msk [vmem:[#allocation2 + $0x118] sm:$0x1] %vm1682_vm3, %v24624_v58  ;;  %1710 = vst.msk [vmem:[#allocation2 + $0x138] sm:$0x1] %vm1682_vm3, %v24624_v58 }
  0x7f   : > { %1711 = vst.msk [vmem:[#allocation2 + $0x158] sm:$0x1] %vm1682_vm3, %v24624_v58  ;;  %1712 = vst.msk [vmem:[#allocation2 + $0x178] sm:$0x1] %vm1682_vm3, %v24624_v58 }
  0x80   : > { %1713 = vst.msk [vmem:[#allocation2 + $0x198] sm:$0x1] %vm1682_vm3, %v24624_v58  ;;  %1714 = vst.msk [vmem:[#allocation2 + $0x1b8] sm:$0x1] %vm1682_vm3, %v24624_v58 }
  0x81   : > { %1715 = vst.msk [vmem:[#allocation2 + $0x1d8] sm:$0x1] %vm1682_vm3, %v24624_v58  ;;  %1716 = vst.msk [vmem:[#allocation2 + $0x1f8] sm:$0x1] %vm1682_vm3, %v24624_v58 }
  0x82   : > { %17530 = vmatmul.mubr.msk.bf16.gmra.mrb[12].mxu0 %vm1172_vm1, %v1136_v29  ;;  %1717 = vst.msk [vmem:[#allocation2 + $0x218] sm:$0x1] %vm1682_vm3, %v24624_v58  ;;  %1718 = vst.msk [vmem:[#allocation2 + $0x238] sm:$0x1] %vm1682_vm3, %v24624_v58 }
  0x83   : > { %17533 = vmatprep.mubr.msk.bf16.mxu0 %vm1172_vm1, %v1137_v30  ;;  %4703 = vst.msk [vmem:[#allocation3 + $0x7] sm:$0x1] %vm1682_vm3, %v24624_v58  ;;  %4704 = vst.msk [vmem:[#allocation3 + $0x27] sm:$0x1] %vm1682_vm3, %v24624_v58 }
  0x84   : > { %4705 = vst.msk [vmem:[#allocation3 + $0x47] sm:$0x1] %vm1682_vm3, %v24624_v58  ;;  %4706 = vst.msk [vmem:[#allocation3 + $0x67] sm:$0x1] %vm1682_vm3, %v24624_v58 }
  0x85   : > { %4707 = vst.msk [vmem:[#allocation3 + $0x87] sm:$0x1] %vm1682_vm3, %v24624_v58  ;;  %4708 = vst.msk [vmem:[#allocation3 + $0xa7] sm:$0x1] %vm1682_vm3, %v24624_v58 }
  0x86   : > { %4709 = vst.msk [vmem:[#allocation3 + $0xc7] sm:$0x1] %vm1682_vm3, %v24624_v58  ;;  %4710 = vst.msk [vmem:[#allocation3 + $0xe7] sm:$0x1] %vm1682_vm3, %v24624_v58 }
  0x87   : > { %4711 = vst.msk [vmem:[#allocation3 + $0x107] sm:$0x1] %vm1682_vm3, %v24624_v58  ;;  %4712 = vst.msk [vmem:[#allocation3 + $0x127] sm:$0x1] %vm1682_vm3, %v24624_v58 }
  0x88   : > { %4713 = vst.msk [vmem:[#allocation3 + $0x147] sm:$0x1] %vm1682_vm3, %v24624_v58  ;;  %4714 = vst.msk [vmem:[#allocation3 + $0x167] sm:$0x1] %vm1682_vm3, %v24624_v58 }
  0x89   : > { %4715 = vst.msk [vmem:[#allocation3 + $0x187] sm:$0x1] %vm1682_vm3, %v24624_v58  ;;  %4716 = vst.msk [vmem:[#allocation3 + $0x1a7] sm:$0x1] %vm1682_vm3, %v24624_v58 }
  0x8a   : > { %17534 = vmatmul.mubr.msk.bf16.gmra.mrb[16].mxu0 %vm1172_vm1, %v1138_v35  ;;  %4717 = vst.msk [vmem:[#allocation3 + $0x1c7] sm:$0x1] %vm1682_vm3, %v24624_v58  ;;  %4718 = vst.msk [vmem:[#allocation3 + $0x1e7] sm:$0x1] %vm1682_vm3, %v24624_v58 }
  0x8b   : > { %17537 = vmatprep.mubr.msk.bf16.mxu0 %vm1172_vm1, %v1139_v36  ;;  %4719 = vst.msk [vmem:[#allocation3 + $0x207] sm:$0x1] %vm1682_vm3, %v24624_v58  ;;  %4720 = vst.msk [vmem:[#allocation3 + $0x227] sm:$0x1] %vm1682_vm3, %v24624_v58 }
  0x8c   : > { %4721 = vst.msk [vmem:[#allocation3 + $0x18] sm:$0x1] %vm1682_vm3, %v24624_v58  ;;  %4722 = vst.msk [vmem:[#allocation3 + $0x38] sm:$0x1] %vm1682_vm3, %v24624_v58 }
  0x8d   : > { %4723 = vst.msk [vmem:[#allocation3 + $0x58] sm:$0x1] %vm1682_vm3, %v24624_v58  ;;  %4724 = vst.msk [vmem:[#allocation3 + $0x78] sm:$0x1] %vm1682_vm3, %v24624_v58 }
  0x8e   : > { %4725 = vst.msk [vmem:[#allocation3 + $0x98] sm:$0x1] %vm1682_vm3, %v24624_v58  ;;  %4726 = vst.msk [vmem:[#allocation3 + $0xb8] sm:$0x1] %vm1682_vm3, %v24624_v58 }
  0x8f   : > { %4727 = vst.msk [vmem:[#allocation3 + $0xd8] sm:$0x1] %vm1682_vm3, %v24624_v58  ;;  %4728 = vst.msk [vmem:[#allocation3 + $0xf8] sm:$0x1] %vm1682_vm3, %v24624_v58 }
  0x90   : > { %4729 = vst.msk [vmem:[#allocation3 + $0x118] sm:$0x1] %vm1682_vm3, %v24624_v58  ;;  %4730 = vst.msk [vmem:[#allocation3 + $0x138] sm:$0x1] %vm1682_vm3, %v24624_v58 }
  0x91   : > { %4731 = vst.msk [vmem:[#allocation3 + $0x158] sm:$0x1] %vm1682_vm3, %v24624_v58  ;;  %4732 = vst.msk [vmem:[#allocation3 + $0x178] sm:$0x1] %vm1682_vm3, %v24624_v58 }
  0x92   : > { %17538 = vmatmul.mubr.msk.bf16.gmra.mrb[20].mxu0 %vm1172_vm1, %v1140_v41  ;;  %4733 = vst.msk [vmem:[#allocation3 + $0x198] sm:$0x1] %vm1682_vm3, %v24624_v58  ;;  %4734 = vst.msk [vmem:[#allocation3 + $0x1b8] sm:$0x1] %vm1682_vm3, %v24624_v58 }
  0x93   : > { %17541 = vmatprep.mubr.msk.bf16.mxu0 %vm1172_vm1, %v1141_v42  ;;  %4735 = vst.msk [vmem:[#allocation3 + $0x1d8] sm:$0x1] %vm1682_vm3, %v24624_v58  ;;  %4736 = vst.msk [vmem:[#allocation3 + $0x1f8] sm:$0x1] %vm1682_vm3, %v24624_v58 }
  0x94   : > { %4737 = vst.msk [vmem:[#allocation3 + $0x218] sm:$0x1] %vm1682_vm3, %v24624_v58  ;;  %4738 = vst.msk [vmem:[#allocation3 + $0x238] sm:$0x1] %vm1682_vm3, %v24624_v58 }
  0x95   : > { %7755 = vst.msk [vmem:[#allocation4 + $0x7] sm:$0x1] %vm1682_vm3, %v24624_v58  ;;  %7756 = vst.msk [vmem:[#allocation4 + $0x27] sm:$0x1] %vm1682_vm3, %v24624_v58 }
  0x96   : > { %7757 = vst.msk [vmem:[#allocation4 + $0x47] sm:$0x1] %vm1682_vm3, %v24624_v58  ;;  %7758 = vst.msk [vmem:[#allocation4 + $0x67] sm:$0x1] %vm1682_vm3, %v24624_v58 }
  0x97   : > { %7759 = vst.msk [vmem:[#allocation4 + $0x87] sm:$0x1] %vm1682_vm3, %v24624_v58  ;;  %7760 = vst.msk [vmem:[#allocation4 + $0xa7] sm:$0x1] %vm1682_vm3, %v24624_v58 }
  0x98   : > { %7761 = vst.msk [vmem:[#allocation4 + $0xc7] sm:$0x1] %vm1682_vm3, %v24624_v58  ;;  %7762 = vst.msk [vmem:[#allocation4 + $0xe7] sm:$0x1] %vm1682_vm3, %v24624_v58 }
  0x99   : > { %7763 = vst.msk [vmem:[#allocation4 + $0x107] sm:$0x1] %vm1682_vm3, %v24624_v58  ;;  %7764 = vst.msk [vmem:[#allocation4 + $0x127] sm:$0x1] %vm1682_vm3, %v24624_v58 }
  0x9a   : > { %17542 = vmatmul.mubr.msk.bf16.gmra.mrb[24].mxu0 %vm1172_vm1, %v1142_v47  ;;  %7765 = vst.msk [vmem:[#allocation4 + $0x147] sm:$0x1] %vm1682_vm3, %v24624_v58  ;;  %7766 = vst.msk [vmem:[#allocation4 + $0x167] sm:$0x1] %vm1682_vm3, %v24624_v58 }
  0x9b   : > { %17545 = vmatprep.mubr.msk.bf16.mxu0 %vm1172_vm1, %v1143_v48  ;;  %7767 = vst.msk [vmem:[#allocation4 + $0x187] sm:$0x1] %vm1682_vm3, %v24624_v58  ;;  %7768 = vst.msk [vmem:[#allocation4 + $0x1a7] sm:$0x1] %vm1682_vm3, %v24624_v58 }
  0x9c   : > { %7769 = vst.msk [vmem:[#allocation4 + $0x1c7] sm:$0x1] %vm1682_vm3, %v24624_v58  ;;  %7770 = vst.msk [vmem:[#allocation4 + $0x1e7] sm:$0x1] %vm1682_vm3, %v24624_v58 }
  0x9d   : > { %7771 = vst.msk [vmem:[#allocation4 + $0x207] sm:$0x1] %vm1682_vm3, %v24624_v58  ;;  %7772 = vst.msk [vmem:[#allocation4 + $0x227] sm:$0x1] %vm1682_vm3, %v24624_v58 }
  0x9e   : > { %7773 = vst.msk [vmem:[#allocation4 + $0x18] sm:$0x1] %vm1682_vm3, %v24624_v58  ;;  %7774 = vst.msk [vmem:[#allocation4 + $0x38] sm:$0x1] %vm1682_vm3, %v24624_v58 }
  0x9f   : > { %7775 = vst.msk [vmem:[#allocation4 + $0x58] sm:$0x1] %vm1682_vm3, %v24624_v58  ;;  %7776 = vst.msk [vmem:[#allocation4 + $0x78] sm:$0x1] %vm1682_vm3, %v24624_v58 }
  0xa0   : > { %7777 = vst.msk [vmem:[#allocation4 + $0x98] sm:$0x1] %vm1682_vm3, %v24624_v58  ;;  %7778 = vst.msk [vmem:[#allocation4 + $0xb8] sm:$0x1] %vm1682_vm3, %v24624_v58 }
  0xa1   : > { %7779 = vst.msk [vmem:[#allocation4 + $0xd8] sm:$0x1] %vm1682_vm3, %v24624_v58  ;;  %7780 = vst.msk [vmem:[#allocation4 + $0xf8] sm:$0x1] %vm1682_vm3, %v24624_v58 }
  0xa2   : > { %17546 = vmatmul.mubr.msk.bf16.gmra.mrb[28].mxu0 %vm1172_vm1, %v1144_v51  ;;  %7781 = vst.msk [vmem:[#allocation4 + $0x118] sm:$0x1] %vm1682_vm3, %v24624_v58  ;;  %7782 = vst.msk [vmem:[#allocation4 + $0x138] sm:$0x1] %vm1682_vm3, %v24624_v58 }
  0xa3   : > { %7783 = vst.msk [vmem:[#allocation4 + $0x158] sm:$0x1] %vm1682_vm3, %v24624_v58  ;;  %7784 = vst.msk [vmem:[#allocation4 + $0x178] sm:$0x1] %vm1682_vm3, %v24624_v58 }
  0xa4   : > { %7785 = vst.msk [vmem:[#allocation4 + $0x198] sm:$0x1] %vm1682_vm3, %v24624_v58  ;;  %7786 = vst.msk [vmem:[#allocation4 + $0x1b8] sm:$0x1] %vm1682_vm3, %v24624_v58 }
  0xa5   : > { %7787 = vst.msk [vmem:[#allocation4 + $0x1d8] sm:$0x1] %vm1682_vm3, %v24624_v58  ;;  %7788 = vst.msk [vmem:[#allocation4 + $0x1f8] sm:$0x1] %vm1682_vm3, %v24624_v58 }
  0xa6   : > { %7789 = vst.msk [vmem:[#allocation4 + $0x218] sm:$0x1] %vm1682_vm3, %v24624_v58  ;;  %7790 = vst.msk [vmem:[#allocation4 + $0x238] sm:$0x1] %vm1682_vm3, %v24624_v58 }
 0x13d   : > { %v17519_v53 = vpop.f32.mrb[0].mxu0 }
 0x13e   : > { %v1259_v54 = vpop.f32.mrb[1].mxu0  ;;  %v20692_v55 = vadd.f32 %v17519_v53, %v20689_v52 }
 0x13f   : > { %v20695_v56 = vadd.f32 %v20689_v52, %v1259_v54  ;;  %v17520_v57 = vpop.f32.mrb[2].mxu0 }
 0x140   : > { %v1262_v59 = vpop.f32.mrb[3].mxu0  ;;  %v20753_v62 = vadd.f32 %v17520_v57, %v20689_v52  ;;  %v1460_v0 = vmul.f32 %v20692_v55, %v20692_v55  ;;  %v1392_v6 = vsel %vm1388_vm2, %v20692_v55, 0.0 }
 0x141   : > { %v20750_v61 = vmul.f32 %v20695_v56, %v20695_v56  ;;  %v20756_v63 = vadd.f32 %v20689_v52, %v1262_v59  ;;  %v1389_v1 = vsel %vm1388_vm2, %v20695_v56, 0.0 }
 0x142   : > { %v1461_v8 = vmul.f32 %v20753_v62, %v20753_v62  ;;  %v1493_v16 = vsel %vm1388_vm2, %v1460_v0, 0.0  ;;  %v1394_v17 = vsel %vm1388_vm2, %v20753_v62, 0.0 }
 0x143   : > { %v1390_v2 = vsel %vm1388_vm2, %v20756_v63, 0.0  ;;  %v1459_v3 = vmul.f32 %v20756_v63, %v20756_v63  ;;  %v1490_v7 = vsel %vm1388_vm2, %v20750_v61, 0.0 }
 0x144   : > { %v1391_v5 = vadd.f32 %v1390_v2, %v1389_v1  ;;  %v1495_v25 = vsel %vm1388_vm2, %v1461_v8, 0.0 }
 0x145   : > { %v1491_v9 = vsel %vm1388_vm2, %v1459_v3, 0.0  ;;  %v17523_v10 = vpop.f32.mrb[4].mxu0 }
 0x146   : > { %v1393_v11 = vadd.f32 %v1392_v6, %v1391_v5  ;;  %v1492_v12 = vadd.f32 %v1491_v9, %v1490_v7  ;;  %v1275_v13 = vpop.f32.mrb[5].mxu0  ;;  %v21002_v22 = vadd.f32 %v17523_v10, %v20689_v52 }
 0x147   : > { %v20999_v18 = vadd.f32 %v20689_v52, %v1275_v13  ;;  %v17524_v19 = vpop.f32.mrb[6].mxu0 }
 0x148   : > { %v1494_v21 = vadd.f32 %v1493_v16, %v1492_v12  ;;  %v1395_v23 = vadd.f32 %v1394_v17, %v1393_v11  ;;  %v1278_v24 = vpop.f32.mrb[7].mxu0  ;;  %v21014_v31 = vadd.f32 %v17524_v19, %v20689_v52  ;;  %v1464_v34 = vmul.f32 %v21002_v22, %v21002_v22 }
 0x149   : > { %v1396_v26 = vsel %vm1388_vm2, %v20999_v18, 0.0  ;;  %v1462_v27 = vmul.f32 %v20999_v18, %v20999_v18  ;;  %v21010_v28 = vadd.f32 %v20689_v52, %v1278_v24  ;;  %v1400_v38 = vsel %vm1388_vm2, %v21002_v22, 0.0 }
 0x14a   : > { %v1397_v29 = vadd.f32 %v1396_v26, %v1395_v23  ;;  %v1496_v30 = vadd.f32 %v1495_v25, %v1494_v21  ;;  %24721 = vst [vmem:[#allocation41_spill] sm:$0xff] %v21014_v31  ;;  %v1465_v40 = vmul.f32 %v21014_v31, %v21014_v31  ;;  %v1402_v44 = vsel %vm1388_vm2, %v21014_v31, 0.0 }
 0x14b   : > { %24720 = vst [vmem:[#allocation40_spill] sm:$0xff] %v21010_v28  ;;  %v1497_v32 = vsel %vm1388_vm2, %v1462_v27, 0.0  ;;  %v1398_v33 = vsel %vm1388_vm2, %v21010_v28, 0.0  ;;  %v1463_v37 = vmul.f32 %v21010_v28, %v21010_v28  ;;  %v1501_v48 = vsel %vm1388_vm2, %v1464_v34, 0.0 }
 0x14c   : > { %v1498_v35 = vadd.f32 %v1497_v32, %v1496_v30  ;;  %v1399_v36 = vadd.f32 %v1398_v33, %v1397_v29  ;;  %v1503_v60 = vsel %vm1388_vm2, %v1465_v40, 0.0 }
 0x14d   : > { %v17527_v39 = vpop.f32.mrb[8].mxu0  ;;  %v1499_v42 = vsel %vm1388_vm2, %v1463_v37, 0.0 }
 0x14e   : > { %v1401_v41 = vadd.f32 %v1400_v38, %v1399_v36  ;;  %v1291_v43 = vpop.f32.mrb[9].mxu0  ;;  %v1500_v45 = vadd.f32 %v1499_v42, %v1498_v35  ;;  %v21035_v49 = vadd.f32 %v17527_v39, %v20689_v52 }
 0x14f   : > { %v21031_v46 = vadd.f32 %v20689_v52, %v1291_v43  ;;  %v17528_v47 = vpop.f32.mrb[10].mxu0 }
 0x150   : > { %24723 = vst [vmem:[#allocation43_spill] sm:$0xff] %v21035_v49  ;;  %v1403_v50 = vadd.f32 %v1402_v44, %v1401_v41  ;;  %v1294_v51 = vpop.f32.mrb[11].mxu0  ;;  %v1502_v53 = vadd.f32 %v1501_v48, %v1500_v45  ;;  %v21046_v0 = vadd.f32 %v17528_v47, %v20689_v52  ;;  %v1468_v6 = vmul.f32 %v21035_v49, %v21035_v49 }
 0x151   : > { %24722 = vst [vmem:[#allocation42_spill] sm:$0xff] %v21031_v46  ;;  %v1404_v54 = vsel %vm1388_vm2, %v21031_v46, 0.0  ;;  %v1466_v57 = vmul.f32 %v21031_v46, %v21031_v46  ;;  %v21042_v59 = vadd.f32 %v20689_v52, %v1294_v51  ;;  %v1408_v8 = vsel %vm1388_vm2, %v21035_v49, 0.0 }
 0x152   : > { %v1405_v61 = vadd.f32 %v1404_v54, %v1403_v50  ;;  %24725 = vst [vmem:[#allocation45_spill] sm:$0xff] %v21046_v0  ;;  %v1504_v1 = vadd.f32 %v1503_v60, %v1502_v53  ;;  %v1469_v12 = vmul.f32 %v21046_v0, %v21046_v0  ;;  %v1410_v15 = vsel %vm1388_vm2, %v21046_v0, 0.0 }
 0x153   : > { %24724 = vst [vmem:[#allocation44_spill] sm:$0xff] %v21042_v59  ;;  %v1505_v2 = vsel %vm1388_vm2, %v1466_v57, 0.0  ;;  %v1406_v3 = vsel %vm1388_vm2, %v21042_v59, 0.0  ;;  %v1467_v5 = vmul.f32 %v21042_v59, %v21042_v59  ;;  %v1509_v20 = vsel %vm1388_vm2, %v1468_v6, 0.0 }
 0x154   : > { %v1407_v7 = vadd.f32 %v1406_v3, %v1405_v61  ;;  %v1506_v9 = vadd.f32 %v1505_v2, %v1504_v1  ;;  %v1511_v30 = vsel %vm1388_vm2, %v1469_v12, 0.0 }
 0x155   : > { %v1507_v10 = vsel %vm1388_vm2, %v1467_v5, 0.0  ;;  %v17531_v11 = vpop.f32.mrb[12].mxu0 }
 0x156   : > { %v1409_v13 = vadd.f32 %v1408_v8, %v1407_v7  ;;  %v1307_v14 = vpop.f32.mrb[13].mxu0  ;;  %v1508_v16 = vadd.f32 %v1507_v10, %v1506_v9  ;;  %v21067_v21 = vadd.f32 %v17531_v11, %v20689_v52 }
 0x157   : > { %v21063_v17 = vadd.f32 %v20689_v52, %v1307_v14  ;;  %v17532_v19 = vpop.f32.mrb[14].mxu0 }
 0x158   : > { %24727 = vst [vmem:[#allocation47_spill] sm:$0xff] %v21067_v21  ;;  %v1411_v23 = vadd.f32 %v1410_v15, %v1409_v13  ;;  %v1310_v24 = vpop.f32.mrb[15].mxu0  ;;  %v1510_v25 = vadd.f32 %v1509_v20, %v1508_v16  ;;  %v21078_v33 = vadd.f32 %v17532_v19, %v20689_v52  ;;  %v1472_v38 = vmul.f32 %v21067_v21, %v21067_v21 }
 0x159   : > { %24726 = vst [vmem:[#allocation46_spill] sm:$0xff] %v21063_v17  ;;  %v1412_v26 = vsel %vm1388_vm2, %v21063_v17, 0.0  ;;  %v1470_v27 = vmul.f32 %v21063_v17, %v21063_v17  ;;  %v21074_v29 = vadd.f32 %v20689_v52, %v1310_v24  ;;  %v1416_v40 = vsel %vm1388_vm2, %v21067_v21, 0.0 }
 0x15a   : > { %v1413_v32 = vadd.f32 %v1412_v26, %v1411_v23  ;;  %24729 = vst [vmem:[#allocation49_spill] sm:$0xff] %v21078_v33  ;;  %v1512_v34 = vadd.f32 %v1511_v30, %v1510_v25  ;;  %v1473_v44 = vmul.f32 %v21078_v33, %v21078_v33  ;;  %v1418_v48 = vsel %vm1388_vm2, %v21078_v33, 0.0 }
 0x15b   : > { %24728 = vst [vmem:[#allocation48_spill] sm:$0xff] %v21074_v29  ;;  %v1513_v35 = vsel %vm1388_vm2, %v1470_v27, 0.0  ;;  %v1414_v36 = vsel %vm1388_vm2, %v21074_v29, 0.0  ;;  %v1471_v37 = vmul.f32 %v21074_v29, %v21074_v29  ;;  %v1517_v54 = vsel %vm1388_vm2, %v1472_v38, 0.0 }
 0x15c   : > { %v1415_v39 = vadd.f32 %v1414_v36, %v1413_v32  ;;  %v1514_v41 = vadd.f32 %v1513_v35, %v1512_v34  ;;  %v1519_v6 = vsel %vm1388_vm2, %v1473_v44, 0.0 }
 0x15d   : > { %v1515_v42 = vsel %vm1388_vm2, %v1471_v37, 0.0  ;;  %v17535_v43 = vpop.f32.mrb[16].mxu0 }
 0x15e   : > { %v1417_v45 = vadd.f32 %v1416_v40, %v1415_v39  ;;  %v1323_v47 = vpop.f32.mrb[17].mxu0  ;;  %v1516_v50 = vadd.f32 %v1515_v42, %v1514_v41  ;;  %v21099_v57 = vadd.f32 %v17535_v43, %v20689_v52 }
 0x15f   : > { %v21095_v51 = vadd.f32 %v20689_v52, %v1323_v47  ;;  %v17536_v53 = vpop.f32.mrb[18].mxu0 }
 0x160   : > { %24731 = vst [vmem:[#allocation51_spill] sm:$0xff] %v21099_v57  ;;  %v1419_v60 = vadd.f32 %v1418_v48, %v1417_v45  ;;  %v1326_v61 = vpop.f32.mrb[19].mxu0  ;;  %v1518_v1 = vadd.f32 %v1517_v54, %v1516_v50  ;;  %v21110_v8 = vadd.f32 %v17536_v53, %v20689_v52  ;;  %v1476_v13 = vmul.f32 %v21099_v57, %v21099_v57 }
 0x161   : > { %24730 = vst [vmem:[#allocation50_spill] sm:$0xff] %v21095_v51  ;;  %v1420_v2 = vsel %vm1388_vm2, %v21095_v51, 0.0  ;;  %v1474_v3 = vmul.f32 %v21095_v51, %v21095_v51  ;;  %v21106_v5 = vadd.f32 %v20689_v52, %v1326_v61  ;;  %v1424_v15 = vsel %vm1388_vm2, %v21099_v57, 0.0 }
 0x162   : > { %v1421_v7 = vadd.f32 %v1420_v2, %v1419_v60  ;;  %24733 = vst [vmem:[#allocation53_spill] sm:$0xff] %v21110_v8  ;;  %v1520_v9 = vadd.f32 %v1519_v6, %v1518_v1  ;;  %v1477_v23 = vmul.f32 %v21110_v8, %v21110_v8  ;;  %v1426_v26 = vsel %vm1388_vm2, %v21110_v8, 0.0 }
 0x163   : > { %24732 = vst [vmem:[#allocation52_spill] sm:$0xff] %v21106_v5  ;;  %v1521_v10 = vsel %vm1388_vm2, %v1474_v3, 0.0  ;;  %v1422_v11 = vsel %vm1388_vm2, %v21106_v5, 0.0  ;;  %v1475_v12 = vmul.f32 %v21106_v5, %v21106_v5  ;;  %v1525_v34 = vsel %vm1388_vm2, %v1476_v13, 0.0 }
 0x164   : > { %v1423_v14 = vadd.f32 %v1422_v11, %v1421_v7  ;;  %v1522_v16 = vadd.f32 %v1521_v10, %v1520_v9  ;;  %v1527_v42 = vsel %vm1388_vm2, %v1477_v23, 0.0 }
 0x165   : > { %v1523_v19 = vsel %vm1388_vm2, %v1475_v12, 0.0  ;;  %v17539_v20 = vpop.f32.mrb[20].mxu0 }
 0x166   : > { %v1425_v24 = vadd.f32 %v1424_v15, %v1423_v14  ;;  %v1339_v25 = vpop.f32.mrb[21].mxu0  ;;  %v1524_v27 = vadd.f32 %v1523_v19, %v1522_v16  ;;  %v21131_v35 = vadd.f32 %v17539_v20, %v20689_v52 }
 0x167   : > { %v21127_v30 = vadd.f32 %v20689_v52, %v1339_v25  ;;  %v17540_v32 = vpop.f32.mrb[22].mxu0 }
 0x168   : > { %24735 = vst [vmem:[#allocation55_spill] sm:$0xff] %v21131_v35  ;;  %v1427_v36 = vadd.f32 %v1426_v26, %v1425_v24  ;;  %v1342_v37 = vpop.f32.mrb[23].mxu0  ;;  %v1526_v38 = vadd.f32 %v1525_v34, %v1524_v27  ;;  %v21142_v44 = vadd.f32 %v17540_v32, %v20689_v52  ;;  %v1480_v53 = vmul.f32 %v21131_v35, %v21131_v35 }
 0x169   : > { %24734 = vst [vmem:[#allocation54_spill] sm:$0xff] %v21127_v30  ;;  %v1428_v39 = vsel %vm1388_vm2, %v21127_v30, 0.0  ;;  %v1478_v40 = vmul.f32 %v21127_v30, %v21127_v30  ;;  %v21138_v41 = vadd.f32 %v20689_v52, %v1342_v37  ;;  %v1432_v60 = vsel %vm1388_vm2, %v21131_v35, 0.0 }
 0x16a   : > { %v1429_v43 = vadd.f32 %v1428_v39, %v1427_v36  ;;  %24737 = vst [vmem:[#allocation57_spill] sm:$0xff] %v21142_v44  ;;  %v1528_v45 = vadd.f32 %v1527_v42, %v1526_v38  ;;  %v1481_v3 = vmul.f32 %v21142_v44, %v21142_v44  ;;  %v1434_v9 = vsel %vm1388_vm2, %v21142_v44, 0.0 }
 0x16b   : > { %24736 = vst [vmem:[#allocation56_spill] sm:$0xff] %v21138_v41  ;;  %v1529_v47 = vsel %vm1388_vm2, %v1478_v40, 0.0  ;;  %v1430_v48 = vsel %vm1388_vm2, %v21138_v41, 0.0  ;;  %v1479_v50 = vmul.f32 %v21138_v41, %v21138_v41  ;;  %v1533_v13 = vsel %vm1388_vm2, %v1480_v53, 0.0 }
 0x16c   : > { %v1431_v54 = vadd.f32 %v1430_v48, %v1429_v43  ;;  %v1530_v61 = vadd.f32 %v1529_v47, %v1528_v45  ;;  %v1535_v25 = vsel %vm1388_vm2, %v1481_v3, 0.0 }
 0x16d   : > { %v1531_v1 = vsel %vm1388_vm2, %v1479_v50, 0.0  ;;  %v17543_v2 = vpop.f32.mrb[24].mxu0 }
 0x16e   : > { %v1433_v6 = vadd.f32 %v1432_v60, %v1431_v54  ;;  %v1355_v7 = vpop.f32.mrb[25].mxu0  ;;  %v1532_v10 = vadd.f32 %v1531_v1, %v1530_v61  ;;  %v21163_v14 = vadd.f32 %v17543_v2, %v20689_v52 }
 0x16f   : > { %v21159_v11 = vadd.f32 %v20689_v52, %v1355_v7  ;;  %v17544_v12 = vpop.f32.mrb[26].mxu0 }
 0x170   : > { %24739 = vst [vmem:[#allocation59_spill] sm:$0xff] %v21163_v14  ;;  %v1435_v15 = vadd.f32 %v1434_v9, %v1433_v6  ;;  %v1358_v16 = vpop.f32.mrb[27].mxu0  ;;  %v1534_v19 = vadd.f32 %v1533_v13, %v1532_v10  ;;  %v21174_v27 = vadd.f32 %v17544_v12, %v20689_v52  ;;  %v1484_v38 = vmul.f32 %v21163_v14, %v21163_v14 }
 0x171   : > { %24738 = vst [vmem:[#allocation58_spill] sm:$0xff] %v21159_v11  ;;  %v1436_v20 = vsel %vm1388_vm2, %v21159_v11, 0.0  ;;  %v1482_v23 = vmul.f32 %v21159_v11, %v21159_v11  ;;  %v21170_v24 = vadd.f32 %v20689_v52, %v1358_v16  ;;  %v1440_v40 = vsel %vm1388_vm2, %v21163_v14, 0.0 }
 0x172   : > { %v1437_v26 = vadd.f32 %v1436_v20, %v1435_v15  ;;  %24741 = vst [vmem:[#allocation61_spill] sm:$0xff] %v21174_v27  ;;  %v1536_v32 = vadd.f32 %v1535_v25, %v1534_v19  ;;  %v1485_v47 = vmul.f32 %v21174_v27, %v21174_v27  ;;  %v1442_v53 = vsel %vm1388_vm2, %v21174_v27, 0.0 }
 0x173   : > { %24740 = vst [vmem:[#allocation60_spill] sm:$0xff] %v21170_v24  ;;  %v1537_v34 = vsel %vm1388_vm2, %v1482_v23, 0.0  ;;  %v1438_v36 = vsel %vm1388_vm2, %v21170_v24, 0.0  ;;  %v1483_v37 = vmul.f32 %v21170_v24, %v21170_v24  ;;  %v1541_v1 = vsel %vm1388_vm2, %v1484_v38, 0.0 }
 0x174   : > { %v1439_v39 = vadd.f32 %v1438_v36, %v1437_v26  ;;  %v1538_v42 = vadd.f32 %v1537_v34, %v1536_v32  ;;  %v1543_v13 = vsel %vm1388_vm2, %v1485_v47, 0.0 }
 0x175   : > { %v1539_v43 = vsel %vm1388_vm2, %v1483_v37, 0.0  ;;  %v17547_v45 = vpop.f32.mrb[28].mxu0 }
 0x176   : > { %v1441_v48 = vadd.f32 %v1440_v40, %v1439_v39  ;;  %v1371_v50 = vpop.f32.mrb[29].mxu0  ;;  %v1540_v54 = vadd.f32 %v1539_v43, %v1538_v42  ;;  %v21195_v2 = vadd.f32 %v17547_v45, %v20689_v52 }
 0x177   : > { %v21191_v60 = vadd.f32 %v20689_v52, %v1371_v50  ;;  %v17548_v61 = vpop.f32.mrb[30].mxu0 }
 0x178   : > { %24743 = vst [vmem:[#allocation63_spill] sm:$0xff] %v21195_v2  ;;  %v1443_v3 = vadd.f32 %v1442_v53, %v1441_v48  ;;  %v1374_v6 = vpop.f32.mrb[31].mxu0  ;;  %v1542_v7 = vadd.f32 %v1541_v1, %v1540_v54  ;;  %v21206_v16 = vadd.f32 %v17548_v61, %v20689_v52  ;;  %v1488_v26 = vmul.f32 %v21195_v2, %v21195_v2 }
 0x179   : > { %24742 = vst [vmem:[#allocation62_spill] sm:$0xff] %v21191_v60  ;;  %v1444_v9 = vsel %vm1388_vm2, %v21191_v60, 0.0  ;;  %v1486_v10 = vmul.f32 %v21191_v60, %v21191_v60  ;;  %v21202_v12 = vadd.f32 %v20689_v52, %v1374_v6  ;;  %v1448_v34 = vsel %vm1388_vm2, %v21195_v2, 0.0 }
 0x17a   : > { %v1445_v15 = vadd.f32 %v1444_v9, %v1443_v3  ;;  %24745 = vst [vmem:[#allocation65_spill] sm:$0xff] %v21206_v16  ;;  %v1544_v19 = vadd.f32 %v1543_v13, %v1542_v7  ;;  %v1489_v37 = vmul.f32 %v21206_v16, %v21206_v16  ;;  %v1450_v39 = vsel %vm1388_vm2, %v21206_v16, 0.0 }
 0x17b   : > { %24744 = vst [vmem:[#allocation64_spill] sm:$0xff] %v21202_v12  ;;  %v1545_v20 = vsel %vm1388_vm2, %v1486_v10, 0.0  ;;  %v1446_v23 = vsel %vm1388_vm2, %v21202_v12, 0.0  ;;  %v1487_v25 = vmul.f32 %v21202_v12, %v21202_v12  ;;  %v1549_v42 = vsel %vm1388_vm2, %v1488_v26, 0.0 }
 0x17c   : > { %v1447_v32 = vadd.f32 %v1446_v23, %v1445_v15  ;;  %v1546_v36 = vadd.f32 %v1545_v20, %v1544_v19  ;;  %v1551_v47 = vsel %vm1388_vm2, %v1489_v37, 0.0 }
 0x17d   : > { %v1547_v52 = vsel %vm1388_vm2, %v1487_v25, 0.0 }
 0x17e   : > { %v1449_v38 = vadd.f32 %v1448_v34, %v1447_v32  ;;  %v1548_v40 = vadd.f32 %v1547_v52, %v1546_v36  ;;  %v1569_v32 = vlaneseq  ;;  %v1386_v36 = vld [vmem:[%s20417_s17] sm:$0x1] }
 0x180   : > { %v1451_v43 = vadd.f32 %v1450_v39, %v1449_v38  ;;  %v1550_v45 = vadd.f32 %v1549_v42, %v1548_v40  ;;  %v21224_v34 = vshrl.u32 %v1569_v32, 7  ;;  %v1387_v39 = vld [vmem:[%s20417_s17 + $0x1] sm:$0x1] }
 0x182   : > { %v1452_v48 = vrot.slane %v1451_v43, 4  ;;  %v1552_v50 = vadd.f32 %v1551_v47, %v1550_v45  ;;  %24746 = vst [vmem:[#allocation66_spill] sm:$0xff] %v21224_v34  ;;  %v21228_v52 = vsub.s32 0, %v21224_v34 }
 0x184   : > { %v1453_v53 = vadd.f32 %v1452_v48, %v1451_v43  ;;  %v1553_v54 = vrot.slane %v1552_v50, 4  ;;  %24747 = vst [vmem:[#allocation67_spill] sm:$0xff] %v21228_v52 }
 0x186   : > { %v1454_v61 = vrot.slane %v1453_v53, 2  ;;  %v1554_v1 = vadd.f32 %v1553_v54, %v1552_v50 }
 0x188   : > { %v1455_v3 = vadd.f32 %v1454_v61, %v1453_v53  ;;  %v1555_v6 = vrot.slane %v1554_v1, 2 }
 0x18a   : > { %v1456_v7 = vrot.slane %v1455_v3, 1  ;;  %v1556_v9 = vadd.f32 %v1555_v6, %v1554_v1 }
 0x18c   : > { %v1457_v10 = vadd.f32 %v1456_v7, %v1455_v3  ;;  %v1557_v13 = vrot.slane %v1556_v9, 1 }
 0x18e   : > { %v1560_v15 = vmul.f32 0.00390625, %v1457_v10  ;;  %v1558_v19 = vadd.f32 %v1557_v13, %v1556_v9 }
 0x190   : > { %v1562_v20 = vmul.f32 %v1560_v15, %v1560_v15  ;;  %v1561_v23 = vmul.f32 0.00390625, %v1558_v19 }
 0x192   : > { %v1563_v25 = vsub.f32 %v1561_v23, %v1562_v20 }
 0x194   : > { %v1564_v26 = vadd.f32 1e-05, %v1563_v25 }
 0x196   : > { %20276 = vrsqrt.f32 %v1564_v26 }
 0x1a0   : > { %v20277_v37 = vpop.eup %20276 }
 0x1a1   : > { %v1566_v38 = vmul.f32 %v20277_v37, %v1386_v36 }
 0x1a3   : > { %v1567_v40 = vmul.f32 %v1566_v38, %v1560_v15  ;;  %v1572_v42 = vrot.slane %v1566_v38, %v21228_v52 }
 0x1a5   : > { %v1568_v43 = vsub.f32 %v1387_v39, %v1567_v40  ;;  %v1602_v45 = vmul.f32 %v1572_v42, %v21202_v12  ;;  %v1573_v47 = vmul.f32 %v1572_v42, %v20695_v56  ;;  %v1574_v48 = vmul.f32 %v1572_v42, %v20756_v63 }
 0x1a6   : > { %v1575_v50 = vmul.f32 %v1572_v42, %v20692_v55  ;;  %v1576_v53 = vmul.f32 %v1572_v42, %v20753_v62  ;;  %v1577_v54 = vmul.f32 %v1572_v42, %v20999_v18  ;;  %v1578_v61 = vmul.f32 %v1572_v42, %v21010_v28 }
 0x1a7   : > { %v1608_v1 = vrot.slane %v1568_v43, %v21228_v52  ;;  %v1579_v3 = vmul.f32 %v1572_v42, %v21002_v22  ;;  %v1580_v6 = vmul.f32 %v1572_v42, %v21014_v31  ;;  %v1581_v7 = vmul.f32 %v1572_v42, %v21031_v46 }
 0x1a8   : > { %v1582_v9 = vmul.f32 %v1572_v42, %v21042_v59  ;;  %v1583_v10 = vmul.f32 %v1572_v42, %v21035_v49  ;;  %v1584_v13 = vmul.f32 %v1572_v42, %v21046_v0  ;;  %v1585_v15 = vmul.f32 %v1572_v42, %v21063_v17 }
 0x1a9   : > { %v1638_v19 = vadd.f32 %v1608_v1, %v1602_v45  ;;  %v1586_v20 = vmul.f32 %v1572_v42, %v21074_v29  ;;  %v1587_v23 = vmul.f32 %v1572_v42, %v21067_v21  ;;  %v1588_v25 = vmul.f32 %v1572_v42, %v21078_v33 }
 0x1aa   : > { %v1589_v26 = vmul.f32 %v1572_v42, %v21095_v51  ;;  %v1590_v32 = vmul.f32 %v1572_v42, %v21106_v5  ;;  %v1591_v36 = vmul.f32 %v1572_v42, %v21099_v57  ;;  %v1592_v37 = vmul.f32 %v1572_v42, %v21110_v8 }
 0x1ab   : > { %v1670_v38 = vmax.f32 %v1638_v19, 0.0  ;;  %v1593_v39 = vmul.f32 %v1572_v42, %v21127_v30  ;;  %v1594_v40 = vmul.f32 %v1572_v42, %v21138_v41  ;;  %v1595_v43 = vmul.f32 %v1572_v42, %v21131_v35 }
 0x1ac   : > { %v1596_v45 = vmul.f32 %v1572_v42, %v21142_v44  ;;  %v1597_v58 = vmul.f32 %v1572_v42, %v21159_v11  ;;  %v1598_v34 = vmul.f32 %v1572_v42, %v21170_v24  ;;  %v1599_v12 = vmul.f32 %v1572_v42, %v21163_v14 }
 0x1ad   : > { %1749 = vst.msk [vmem:[#allocation2 + $0x1f0] sm:$0xff] %vm1388_vm2, %v1670_v38  ;;  %v1600_v5 = vmul.f32 %v1572_v42, %v21174_v27  ;;  %v1601_v19 = vmul.f32 %v1572_v42, %v21191_v60  ;;  %v1603_v30 = vmul.f32 %v1572_v42, %v21195_v2  ;;  %v1604_v41 = vmul.f32 %v1572_v42, %v21206_v16 }
 0x1ae   : > { %v1609_v8 = vadd.f32 %v1608_v1, %v1573_v47  ;;  %v1610_v35 = vadd.f32 %v1608_v1, %v1574_v48  ;;  %v1611_v51 = vadd.f32 %v1608_v1, %v1575_v50  ;;  %v1612_v44 = vadd.f32 %v1608_v1, %v1576_v53 }
 0x1af   : > { %v1613_v57 = vadd.f32 %v1608_v1, %v1577_v54  ;;  %v1614_v11 = vadd.f32 %v1608_v1, %v1578_v61  ;;  %v1615_v29 = vadd.f32 %v1608_v1, %v1579_v3  ;;  %v1616_v24 = vadd.f32 %v1608_v1, %v1580_v6 }
 0x1b0   : > { %v1617_v33 = vadd.f32 %v1608_v1, %v1581_v7  ;;  %v1618_v14 = vadd.f32 %v1608_v1, %v1582_v9  ;;  %v1619_v17 = vadd.f32 %v1608_v1, %v1583_v10  ;;  %v1620_v38 = vadd.f32 %v1608_v1, %v1584_v13 }
 0x1b1   : > { %v1621_v21 = vadd.f32 %v1608_v1, %v1585_v15  ;;  %v1622_v27 = vadd.f32 %v1608_v1, %v1586_v20  ;;  %v1623_v59 = vadd.f32 %v1608_v1, %v1587_v23  ;;  %v1624_v60 = vadd.f32 %v1608_v1, %v1588_v25 }
 0x1b2   : > { %v1625_v0 = vadd.f32 %v1608_v1, %v1589_v26  ;;  %v1626_v2 = vadd.f32 %v1608_v1, %v1590_v32  ;;  %v1627_v46 = vadd.f32 %v1608_v1, %v1591_v36  ;;  %v1628_v42 = vadd.f32 %v1608_v1, %v1592_v37 }
 0x1b3   : > { %v1629_v47 = vadd.f32 %v1608_v1, %v1593_v39  ;;  %v21266_v48 = vadd.f32 %v1608_v1, %v1594_v40  ;;  %v21268_v50 = vadd.f32 %v1608_v1, %v1595_v43  ;;  %v21270_v53 = vadd.f32 %v1608_v1, %v1596_v45  ;;  %v21332_v45 = vld [vmem:[%s20422_s21 + $0x10] sm:$0xff]  }
 0x1b4   : > { %v21272_v54 = vadd.f32 %v1608_v1, %v1597_v58  ;;  %v21274_v61 = vadd.f32 %v1608_v1, %v1598_v34  ;;  %v21276_v3 = vadd.f32 %v1608_v1, %v1599_v12  ;;  %v21278_v6 = vadd.f32 %v1608_v1, %v1600_v5 }
 0x1b5   : > { %v21280_v7 = vadd.f32 %v1608_v1, %v1601_v19  ;;  %v21282_v9 = vadd.f32 %v1608_v1, %v1603_v30  ;;  %v21284_v10 = vadd.f32 %v1608_v1, %v1604_v41  ;;  %v1641_v13 = vmax.f32 %v1609_v8, 0.0 }
 0x1b6   : > { %v1642_v15 = vmax.f32 %v1610_v35, 0.0  ;;  %v1643_v20 = vmax.f32 %v1611_v51, 0.0  ;;  %v1644_v23 = vmax.f32 %v1612_v44, 0.0  ;;  %v1645_v25 = vmax.f32 %v1613_v57, 0.0 }
 0x1b7   : > { %v1646_v26 = vmax.f32 %v1614_v11, 0.0  ;;  %v1647_v58 = vmax.f32 %v1615_v29, 0.0  ;;  %v1648_v32 = vmax.f32 %v1616_v24, 0.0  ;;  %v1649_v34 = vmax.f32 %v1617_v33, 0.0  ;;  %1720 = vst.msk [vmem:[#allocation2 + $0x28] sm:$0xff] %vm1388_vm2, %v1641_v13 }
 0x1b8   : > { %v1650_v12 = vmax.f32 %v1618_v14, 0.0  ;;  %v1651_v5 = vmax.f32 %v1619_v17, 0.0  ;;  %v1652_v36 = vmax.f32 %v1620_v38, 0.0  ;;  %v1653_v37 = vmax.f32 %v1621_v21, 0.0  ;;  %1721 = vst.msk [vmem:[#allocation2 + $0x30] sm:$0xff] %vm1388_vm2, %v1642_v15  ;;  %1722 = vst.msk [vmem:[#allocation2 + $0x48] sm:$0xff] %vm1388_vm2, %v1643_v20 }
 0x1b9   : > { %1723 = vst.msk [vmem:[#allocation2 + $0x50] sm:$0xff] %vm1388_vm2, %v1644_v23  ;;  %1724 = vst.msk [vmem:[#allocation2 + $0x68] sm:$0xff] %vm1388_vm2, %v1645_v25  ;;  %v1654_v51 = vmax.f32 %v1622_v27, 0.0  ;;  %v1655_v57 = vmax.f32 %v1623_v59, 0.0  ;;  %v1656_v8 = vmax.f32 %v1624_v60, 0.0  ;;  %v1657_v29 = vmax.f32 %v1625_v0, 0.0 }
 0x1ba   : > { %1725 = vst.msk [vmem:[#allocation2 + $0x70] sm:$0xff] %vm1388_vm2, %v1646_v26  ;;  %1726 = vst.msk [vmem:[#allocation2 + $0x88] sm:$0xff] %vm1388_vm2, %v1647_v58  ;;  %v1658_v17 = vmax.f32 %v1626_v2, 0.0  ;;  %v1659_v21 = vmax.f32 %v1627_v46, 0.0  ;;  %v1660_v33 = vmax.f32 %v1628_v42, 0.0  ;;  %v1661_v30 = vmax.f32 %v1629_v47, 0.0 }
 0x1bb   : > { %1727 = vst.msk [vmem:[#allocation2 + $0x90] sm:$0xff] %vm1388_vm2, %v1648_v32  ;;  %1728 = vst.msk [vmem:[#allocation2 + $0xa8] sm:$0xff] %vm1388_vm2, %v1649_v34  ;;  %v1662_v59 = vmax.f32 %v21266_v48, 0.0  ;;  %v1663_v0 = vmax.f32 %v21268_v50, 0.0  ;;  %v1664_v35 = vmax.f32 %v21270_v53, 0.0  ;;  %v1665_v41 = vmax.f32 %v21272_v54, 0.0 }
 0x1bc   : > { %1729 = vst.msk [vmem:[#allocation2 + $0xb0] sm:$0xff] %vm1388_vm2, %v1650_v12  ;;  %1730 = vst.msk [vmem:[#allocation2 + $0xc8] sm:$0xff] %vm1388_vm2, %v1651_v5  ;;  %v1666_v46 = vmax.f32 %v21274_v61, 0.0  ;;  %v1667_v44 = vmax.f32 %v21276_v3, 0.0  ;;  %v1668_v11 = vmax.f32 %v21278_v6, 0.0  ;;  %v1669_v14 = vmax.f32 %v21280_v7, 0.0 }
 0x1bd   : > { %1731 = vst.msk [vmem:[#allocation2 + $0xd0] sm:$0xff] %vm1388_vm2, %v1652_v36  ;;  %1732 = vst.msk [vmem:[#allocation2 + $0xe8] sm:$0xff] %vm1388_vm2, %v1653_v37  ;;  %v1671_v24 = vmax.f32 %v21282_v9, 0.0  ;;  %v1672_v27 = vmax.f32 %v21284_v10, 0.0 }
 0x1be   : > { %1733 = vst.msk [vmem:[#allocation2 + $0xf0] sm:$0xff] %vm1388_vm2, %v1654_v51  ;;  %1734 = vst.msk [vmem:[#allocation2 + $0x108] sm:$0xff] %vm1388_vm2, %v1655_v57  ;;  %v1804_v60 = vld [vmem:[#allocation2 + $0x28] sm:$0xff] }
 0x1bf   : > { %1735 = vst.msk [vmem:[#allocation2 + $0x110] sm:$0xff] %vm1388_vm2, %v1656_v8  ;;  %1736 = vst.msk [vmem:[#allocation2 + $0x128] sm:$0xff] %vm1388_vm2, %v1657_v29  ;;  %v1805_v2 = vld [vmem:[#allocation2 + $0x30] sm:$0xff]  ;;  %v1806_v1 = vld [vmem:[#allocation2 + $0x48] sm:$0xff] }
 0x1c0   : > { %1737 = vst.msk [vmem:[#allocation2 + $0x130] sm:$0xff] %vm1388_vm2, %v1658_v17  ;;  %1738 = vst.msk [vmem:[#allocation2 + $0x148] sm:$0xff] %vm1388_vm2, %v1659_v21  ;;  %v1807_v39 = vld [vmem:[#allocation2 + $0x50] sm:$0xff]  ;;  %v21327_v40 = vpack.c.bf16 %v1805_v2, %v1804_v60  ;;  %v1808_v19 = vld [vmem:[#allocation2 + $0x68] sm:$0xff] }
 0x1c1   : > { %1739 = vst.msk [vmem:[#allocation2 + $0x150] sm:$0xff] %vm1388_vm2, %v1660_v33  ;;  %1740 = vst.msk [vmem:[#allocation2 + $0x168] sm:$0xff] %vm1388_vm2, %v1661_v30  ;;  %v21329_v43 = vpack.c.bf16 %v1807_v39, %v1806_v1  ;;  %v1809_v38 = vld [vmem:[#allocation2 + $0x70] sm:$0xff]  ;;  %v1810_v42 = vld [vmem:[#allocation2 + $0x88] sm:$0xff] }
 0x1c2   : > { %1741 = vst.msk [vmem:[#allocation2 + $0x170] sm:$0xff] %vm1388_vm2, %v1662_v59  ;;  %1742 = vst.msk [vmem:[#allocation2 + $0x188] sm:$0xff] %vm1388_vm2, %v1663_v0  ;;  %17552 = vmatmul.mubr.msk.bf16.vlgmr.msra.gmra.mrb[0].mxu1 %vm1388_vm2, %v21327_v40  ;;  %v1811_v47 = vld [vmem:[#allocation2 + $0x90] sm:$0xff]  ;;  %v21340_v48 = vpack.c.bf16 %v1809_v38, %v1808_v19  ;;  %v1812_v53 = vld [vmem:[#allocation2 + $0xa8] sm:$0xff] }
 0x1c3   : > { %1743 = vst.msk [vmem:[#allocation2 + $0x190] sm:$0xff] %vm1388_vm2, %v1664_v35  ;;  %1744 = vst.msk [vmem:[#allocation2 + $0x1a8] sm:$0xff] %vm1388_vm2, %v1665_v41  ;;  %17555 = vmatprep.mubr.msk.bf16.mxu1 %vm1388_vm2, %v21329_v43  ;;  %17584 = vmatpush3.bf16.msra.mxu1 %v20985_v4  ;;  %v21342_v50 = vpack.c.bf16 %v1811_v47, %v1810_v42  ;;  %v1813_v54 = vld [vmem:[#allocation2 + $0xb0] sm:$0xff]  ;;  %v1814_v61 = vld [vmem:[#allocation2 + $0xc8] sm:$0xff] }
 0x1c4   : > { %1745 = vst.msk [vmem:[#allocation2 + $0x1b0] sm:$0xff] %vm1388_vm2, %v1666_v46  ;;  %1746 = vst.msk [vmem:[#allocation2 + $0x1c8] sm:$0xff] %vm1388_vm2, %v1667_v44  ;;  %17617 = vmatprep.subr.bf16.mxu1 %v21332_v45  ;;  %v1815_v4 = vld [vmem:[#allocation2 + $0xd0] sm:$0xff]  ;;  %v21348_v3 = vpack.c.bf16 %v1813_v54, %v1812_v53  ;;  %v1816_v7 = vld [vmem:[#allocation2 + $0xe8] sm:$0xff] }
 0x1c5   : > { %1747 = vst.msk [vmem:[#allocation2 + $0x1d0] sm:$0xff] %vm1388_vm2, %v1668_v11  ;;  %1748 = vst.msk [vmem:[#allocation2 + $0x1e8] sm:$0xff] %vm1388_vm2, %v1669_v14  ;;  %v21350_v6 = vpack.c.bf16 %v1815_v4, %v1814_v61  ;;  %v1817_v9 = vld [vmem:[#allocation2 + $0xf0] sm:$0xff]  ;;  %v1818_v10 = vld [vmem:[#allocation2 + $0x108] sm:$0xff] }
 0x1c6   : > { %1750 = vst.msk [vmem:[#allocation2 + $0x208] sm:$0xff] %vm1388_vm2, %v1671_v24  ;;  %1751 = vst.msk [vmem:[#allocation2 + $0x210] sm:$0xff] %vm1388_vm2, %v1672_v27  ;;  %v1819_v13 = vld [vmem:[#allocation2 + $0x110] sm:$0xff]  ;;  %v21356_v15 = vpack.c.bf16 %v1817_v9, %v1816_v7  ;;  %v1820_v23 = vld [vmem:[#allocation2 + $0x128] sm:$0xff] }
 0x1c7   : > { %v21358_v20 = vpack.c.bf16 %v1819_v13, %v1818_v10  ;;  %v1821_v25 = vld [vmem:[#allocation2 + $0x130] sm:$0xff]  ;;  %v1822_v26 = vld [vmem:[#allocation2 + $0x148] sm:$0xff] }
 0x1c8   : > { %v1823_v58 = vld [vmem:[#allocation2 + $0x150] sm:$0xff]  ;;  %v21364_v32 = vpack.c.bf16 %v1821_v25, %v1820_v23  ;;  %v1824_v12 = vld [vmem:[#allocation2 + $0x168] sm:$0xff] }
 0x1c9   : > { %v21366_v34 = vpack.c.bf16 %v1823_v58, %v1822_v26  ;;  %v1825_v5 = vld [vmem:[#allocation2 + $0x170] sm:$0xff]  ;;  %v1826_v36 = vld [vmem:[#allocation2 + $0x188] sm:$0xff] }
 0x1ca   : > { %17556 = vmatmul.mubr.msk.bf16.gmra.mrb[4].mxu1 %vm1388_vm2, %v21340_v48  ;;  %v1827_v37 = vld [vmem:[#allocation2 + $0x190] sm:$0xff]  ;;  %v21372_v51 = vpack.c.bf16 %v1825_v5, %v1824_v12  ;;  %v1828_v8 = vld [vmem:[#allocation2 + $0x1a8] sm:$0xff] }
 0x1cb   : > { %17559 = vmatprep.mubr.msk.bf16.mxu1 %vm1388_vm2, %v21342_v50  ;;  %v21374_v57 = vpack.c.bf16 %v1827_v37, %v1826_v36  ;;  %v1829_v29 = vld [vmem:[#allocation2 + $0x1b0] sm:$0xff]  ;;  %v1830_v17 = vld [vmem:[#allocation2 + $0x1c8] sm:$0xff] }
 0x1cc   : > { %v1831_v21 = vld [vmem:[#allocation2 + $0x1d0] sm:$0xff]  ;;  %v21380_v33 = vpack.c.bf16 %v1829_v29, %v1828_v8  ;;  %v1752_v59 = vld [vmem:[#allocation2 + $0x7] sm:$0xff] }
 0x1cd   : > { %v21382_v30 = vpack.c.bf16 %v1831_v21, %v1830_v17  ;;  %v1753_v0 = vld [vmem:[#allocation2 + $0xf] sm:$0xff]  ;;  %v1754_v11 = vld [vmem:[#allocation2 + $0x27] sm:$0xff] }
 0x1ce   : > { %v1832_v35 = vld [vmem:[#allocation2 + $0x1e8] sm:$0xff]  ;;  %v1833_v41 = vld [vmem:[#allocation2 + $0x1f0] sm:$0xff]  ;;  %v1784_v46 = vpack.c.bf16 %v1753_v0, %v1752_v59 }
 0x1cf   : > { %v21388_v44 = vpack.c.bf16 %v1833_v41, %v1832_v35  ;;  %v1755_v14 = vld [vmem:[#allocation2 + $0x2f] sm:$0xff]  ;;  %v1756_v24 = vld [vmem:[#allocation2 + $0x47] sm:$0xff] }
 0x1d0   : > { %v1757_v27 = vld [vmem:[#allocation2 + $0x4f] sm:$0xff]  ;;  %v21393_v60 = vpack.c.bf16 %v1755_v14, %v1754_v11  ;;  %v1758_v39 = vld [vmem:[#allocation2 + $0x67] sm:$0xff] }
 0x1d1   : > { %v21396_v2 = vld [vmem:[%s20422_s21 + $0x18] sm:$0xff]   ;;  %v21398_v1 = vpack.c.bf16 %v1757_v27, %v1756_v24 }
 0x1d2   : > { %17560 = vmatmul.mubr.msk.bf16.gmra.mrb[8].mxu1 %vm1388_vm2, %v21348_v3  ;;  %v1759_v19 = vld [vmem:[#allocation2 + $0x6f] sm:$0xff]  ;;  %v1760_v38 = vld [vmem:[#allocation2 + $0x87] sm:$0xff] }
 0x1d3   : > { %17563 = vmatprep.mubr.msk.bf16.mxu1 %vm1388_vm2, %v21350_v6  ;;  %v1761_v42 = vld [vmem:[#allocation2 + $0x8f] sm:$0xff]  ;;  %v21406_v47 = vpack.c.bf16 %v1759_v19, %v1758_v39  ;;  %v1762_v54 = vld [vmem:[#allocation2 + $0xa7] sm:$0xff] }
 0x1d4   : > { %v21408_v53 = vpack.c.bf16 %v1761_v42, %v1760_v38  ;;  %v1763_v61 = vld [vmem:[#allocation2 + $0xaf] sm:$0xff]  ;;  %v1764_v4 = vld [vmem:[#allocation2 + $0xc7] sm:$0xff] }
 0x1d5   : > { %v21414_v7 = vpack.c.bf16 %v1763_v61, %v1762_v54  ;;  %v1766_v10 = vld [vmem:[#allocation2 + $0xe7] sm:$0xff]  ;;  %v1767_v13 = vld [vmem:[#allocation2 + $0xef] sm:$0xff] }
 0x1d6   : > { %v1768_v23 = vld [vmem:[#allocation2 + $0x107] sm:$0xff]  ;;  %v1769_v25 = vld [vmem:[#allocation2 + $0x10f] sm:$0xff]  ;;  %v21422_v26 = vpack.c.bf16 %v1767_v13, %v1766_v10 }
 0x1d7   : > { %v21424_v58 = vpack.c.bf16 %v1769_v25, %v1768_v23  ;;  %v1770_v12 = vld [vmem:[#allocation2 + $0x127] sm:$0xff]  ;;  %v1771_v5 = vld [vmem:[#allocation2 + $0x12f] sm:$0xff] }
 0x1d8   : > { %v1772_v36 = vld [vmem:[#allocation2 + $0x147] sm:$0xff]  ;;  %v1773_v37 = vld [vmem:[#allocation2 + $0x14f] sm:$0xff]  ;;  %v21430_v8 = vpack.c.bf16 %v1771_v5, %v1770_v12 }
 0x1d9   : > { %v21432_v29 = vpack.c.bf16 %v1773_v37, %v1772_v36  ;;  %v1774_v17 = vld [vmem:[#allocation2 + $0x167] sm:$0xff]  ;;  %v1775_v21 = vld [vmem:[#allocation2 + $0x16f] sm:$0xff] }
 0x1da   : > { %17564 = vmatmul.mubr.msk.bf16.gmra.mrb[12].mxu1 %vm1388_vm2, %v21356_v15  ;;  %v1776_v59 = vld [vmem:[#allocation2 + $0x187] sm:$0xff]  ;;  %v1777_v0 = vld [vmem:[#allocation2 + $0x18f] sm:$0xff]  ;;  %v21438_v35 = vpack.c.bf16 %v1775_v21, %v1774_v17 }
 0x1db   : > { %17567 = vmatprep.mubr.msk.bf16.mxu1 %vm1388_vm2, %v21358_v20  ;;  %v21440_v41 = vpack.c.bf16 %v1777_v0, %v1776_v59  ;;  %v1779_v11 = vld [vmem:[#allocation2 + $0x1af] sm:$0xff]  ;;  %v1780_v14 = vld [vmem:[#allocation2 + $0x1c7] sm:$0xff] }
 0x1dc   : > { %v1781_v24 = vld [vmem:[#allocation2 + $0x1cf] sm:$0xff]  ;;  %v1782_v42 = vld [vmem:[#allocation2 + $0x1e7] sm:$0xff] }
 0x1dd   : > { %v21448_v39 = vpack.c.bf16 %v1781_v24, %v1780_v14  ;;  %v2283_v19 = vld [vmem:[#allocation2 + $0x9] sm:$0xff]  ;;  %v2284_v38 = vld [vmem:[#allocation2 + $0x11] sm:$0xff] }
 0x1de   : > { %v1783_v54 = vld [vmem:[#allocation2 + $0x1ef] sm:$0xff]  ;;  %v2315_v61 = vpack.c.bf16 %v2284_v38, %v2283_v19 }
 0x1df   : > { %v2286_v10 = vld [vmem:[#allocation2 + $0x31] sm:$0xff]  ;;  %v2287_v13 = vld [vmem:[#allocation2 + $0x49] sm:$0xff] }
 0x1e0   : > { %v2288_v23 = vld [vmem:[#allocation2 + $0x51] sm:$0xff]  ;;  %v2289_v36 = vld [vmem:[#allocation2 + $0x69] sm:$0xff] }
 0x1e1   : > { %v20169_v12 = vld [vmem:[%s20422_s21 + $0x20] sm:$0xff]   ;;  %v21462_v5 = vpack.c.bf16 %v2288_v23, %v2287_v13 }
 0x1e2   : > { %17568 = vmatmul.mubr.msk.bf16.gmra.mrb[16].mxu1 %vm1388_vm2, %v21364_v32  ;;  %v2290_v37 = vld [vmem:[#allocation2 + $0x71] sm:$0xff]  ;;  %v2291_v17 = vld [vmem:[#allocation2 + $0x89] sm:$0xff] }
 0x1e3   : > { %17571 = vmatprep.mubr.msk.bf16.mxu1 %vm1388_vm2, %v21366_v34  ;;  %v2292_v21 = vld [vmem:[#allocation2 + $0x91] sm:$0xff]  ;;  %v21469_v59 = vpack.c.bf16 %v2290_v37, %v2289_v36  ;;  %v2295_v14 = vld [vmem:[#allocation2 + $0xc9] sm:$0xff] }
 0x1e4   : > { %v21471_v0 = vpack.c.bf16 %v2292_v21, %v2291_v17  ;;  %v2296_v24 = vld [vmem:[#allocation2 + $0xd1] sm:$0xff]  ;;  %v2297_v38 = vld [vmem:[#allocation2 + $0xe9] sm:$0xff] }
 0x1e5   : > { %v21479_v19 = vpack.c.bf16 %v2296_v24, %v2295_v14  ;;  %v2301_v13 = vld [vmem:[#allocation2 + $0x129] sm:$0xff]  ;;  %v2302_v23 = vld [vmem:[#allocation2 + $0x131] sm:$0xff] }
 0x1e6   : > { %v2303_v36 = vld [vmem:[#allocation2 + $0x149] sm:$0xff]  ;;  %v2304_v37 = vld [vmem:[#allocation2 + $0x151] sm:$0xff]  ;;  %v21493_v17 = vpack.c.bf16 %v2302_v23, %v2301_v13 }
 0x1e7   : > { %v21495_v21 = vpack.c.bf16 %v2304_v37, %v2303_v36  ;;  %v2307_v14 = vld [vmem:[#allocation2 + $0x189] sm:$0xff]  ;;  %v2308_v24 = vld [vmem:[#allocation2 + $0x191] sm:$0xff] }
 0x1e8   : > { %v2311_v13 = vld [vmem:[#allocation2 + $0x1c9] sm:$0xff]  ;;  %v2312_v23 = vld [vmem:[#allocation2 + $0x1d1] sm:$0xff] }
 0x1e9   : > { %v21511_v37 = vpack.c.bf16 %v2312_v23, %v2311_v13 }
 0x1ea   : > { %17572 = vmatmul.mubr.msk.bf16.gmra.mrb[20].mxu1 %vm1388_vm2, %v21372_v51 }
 0x1eb   : > { %17575 = vmatprep.mubr.msk.bf16.mxu1 %vm1388_vm2, %v21374_v57 }
 0x1f2   : > { %17576 = vmatmul.mubr.msk.bf16.gmra.mrb[24].mxu1 %vm1388_vm2, %v21380_v33 }
 0x1f3   : > { %17579 = vmatprep.mubr.msk.bf16.mxu1 %vm1388_vm2, %v21382_v30 }
 0x1fa   : > { %17580 = vmatmul.mubr.msk.bf16.gmra.mrb[28].mxu1 %vm1388_vm2, %v21388_v44 }
 0x1fb   : > { %17585 = vmatprep.mubr.msk.bf16.mxu1 %vm1388_vm2, %v1784_v46  ;;  %v1778_v46 = vld [vmem:[#allocation2 + $0x1a7] sm:$0xff] }
 0x1fc   : > { %v21446_v27 = vpack.c.bf16 %v1779_v11, %v1778_v46  ;;  %v2293_v46 = vld [vmem:[#allocation2 + $0xa9] sm:$0xff]  ;;  %v2294_v11 = vld [vmem:[#allocation2 + $0xb1] sm:$0xff] }
 0x202   : > { %17586 = vmatmul.mubr.msk.bf16.vlgmr.msra.gmra.mrb[0].mxu1 %vm1388_vm2, %v21393_v60 }
 0x203   : > { %17589 = vmatprep.mubr.msk.bf16.mxu1 %vm1388_vm2, %v21398_v1  ;;  %17618 = vmatpush3.bf16.msra.mxu1 %v21332_v45  ;;  %v1765_v45 = vld [vmem:[#allocation2 + $0xcf] sm:$0xff] }
 0x204   : > { %17651 = vmatprep.subr.bf16.mxu1 %v21396_v2  ;;  %v21416_v9 = vpack.c.bf16 %v1765_v45, %v1764_v4  ;;  %v21454_v4 = vpack.c.bf16 %v1783_v54, %v1782_v42  ;;  %v2285_v45 = vld [vmem:[#allocation2 + $0x29] sm:$0xff]  ;;  %v2298_v42 = vld [vmem:[#allocation2 + $0xf1] sm:$0xff] }
 0x205   : > { %v21459_v25 = vpack.c.bf16 %v2286_v10, %v2285_v45  ;;  %v2299_v54 = vld [vmem:[#allocation2 + $0x109] sm:$0xff]  ;;  %v21485_v45 = vpack.c.bf16 %v2298_v42, %v2297_v38  ;;  %v21503_v42 = vpack.c.bf16 %v2308_v24, %v2307_v14  ;;  %v20170_v24 = vld [vmem:[%s20422_s21 + $0x28] sm:$0xff]  }
 0x20a   : > { %17590 = vmatmul.mubr.msk.bf16.gmra.mrb[4].mxu1 %vm1388_vm2, %v21406_v47 }
 0x20b   : > { %17593 = vmatprep.mubr.msk.bf16.mxu1 %vm1388_vm2, %v21408_v53 }
 0x212   : > { %17594 = vmatmul.mubr.msk.bf16.gmra.mrb[8].mxu1 %vm1388_vm2, %v21414_v7 }
 0x213   : > { %17597 = vmatprep.mubr.msk.bf16.mxu1 %vm1388_vm2, %v21416_v9 }
 0x21a   : > { %17598 = vmatmul.mubr.msk.bf16.gmra.mrb[12].mxu1 %vm1388_vm2, %v21422_v26 }
 0x21b   : > { %17601 = vmatprep.mubr.msk.bf16.mxu1 %vm1388_vm2, %v21424_v58 }
 0x222   : > { %17602 = vmatmul.mubr.msk.bf16.gmra.mrb[16].mxu1 %vm1388_vm2, %v21430_v8 }
 0x223   : > { %17605 = vmatprep.mubr.msk.bf16.mxu1 %vm1388_vm2, %v21432_v29 }
 0x22a   : > { %17606 = vmatmul.mubr.msk.bf16.gmra.mrb[20].mxu1 %vm1388_vm2, %v21438_v35 }
 0x22b   : > { %17609 = vmatprep.mubr.msk.bf16.mxu1 %vm1388_vm2, %v21440_v41 }
 0x232   : > { %17610 = vmatmul.mubr.msk.bf16.gmra.mrb[24].mxu1 %vm1388_vm2, %v21446_v27 }
 0x233   : > { %17613 = vmatprep.mubr.msk.bf16.mxu1 %vm1388_vm2, %v21448_v39 }
 0x23a   : > { %17614 = vmatmul.mubr.msk.bf16.gmra.mrb[28].mxu1 %vm1388_vm2, %v21454_v4 }
 0x23b   : > { %17619 = vmatprep.mubr.msk.bf16.mxu1 %vm1388_vm2, %v2315_v61  ;;  %v2300_v61 = vld [vmem:[#allocation2 + $0x111] sm:$0xff] }
 0x23c   : > { %v21487_v10 = vpack.c.bf16 %v2300_v61, %v2299_v54  ;;  %v2309_v54 = vld [vmem:[#allocation2 + $0x1a9] sm:$0xff]  ;;  %v2310_v61 = vld [vmem:[#allocation2 + $0x1b1] sm:$0xff] }
 0x23d   : > { %v21509_v36 = vpack.c.bf16 %v2310_v61, %v2309_v54  ;;  %v20171_v61 = vld [vmem:[%s20422_s21 + $0x30] sm:$0xff]  }
 0x242   : > { %17620 = vmatmul.mubr.msk.bf16.vlgmr.msra.gmra.mrb[0].mxu1 %vm1388_vm2, %v21459_v25 }
 0x243   : > { %17623 = vmatprep.mubr.msk.bf16.mxu1 %vm1388_vm2, %v21462_v5  ;;  %17652 = vmatpush3.bf16.msra.mxu1 %v21396_v2  ;;  %v21477_v2 = vpack.c.bf16 %v2294_v11, %v2293_v46  ;;  %v2305_v46 = vld [vmem:[#allocation2 + $0x169] sm:$0xff]  ;;  %v2306_v11 = vld [vmem:[#allocation2 + $0x171] sm:$0xff] }
 0x244   : > { %17685 = vmatprep.subr.bf16.mxu1 %v20169_v12  ;;  %v21501_v38 = vpack.c.bf16 %v2306_v11, %v2305_v46  ;;  %v2313_v46 = vld [vmem:[#allocation2 + $0x1e9] sm:$0xff]  ;;  %v2314_v11 = vld [vmem:[#allocation2 + $0x1f1] sm:$0xff] }
 0x245   : > { %v21517_v14 = vpack.c.bf16 %v2314_v11, %v2313_v46  ;;  %v3788_v46 = vld [vmem:[#allocation2 + $0x128] sm:$0xff]  ;;  %v3789_v11 = vld [vmem:[#allocation2 + $0x130] sm:$0xff] }
 0x24a   : > { %17624 = vmatmul.mubr.msk.bf16.gmra.mrb[4].mxu1 %vm1388_vm2, %v21469_v59 }
 0x24b   : > { %17627 = vmatprep.mubr.msk.bf16.mxu1 %vm1388_vm2, %v21471_v0 }
 0x252   : > { %17628 = vmatmul.mubr.msk.bf16.gmra.mrb[8].mxu1 %vm1388_vm2, %v21477_v2 }
 0x253   : > { %17631 = vmatprep.mubr.msk.bf16.mxu1 %vm1388_vm2, %v21479_v19 }
 0x25a   : > { %17632 = vmatmul.mubr.msk.bf16.gmra.mrb[12].mxu1 %vm1388_vm2, %v21485_v45 }
 0x25b   : > { %17635 = vmatprep.mubr.msk.bf16.mxu1 %vm1388_vm2, %v21487_v10 }
 0x262   : > { %17636 = vmatmul.mubr.msk.bf16.gmra.mrb[16].mxu1 %vm1388_vm2, %v21493_v17 }
 0x263   : > { %17639 = vmatprep.mubr.msk.bf16.mxu1 %vm1388_vm2, %v21495_v21 }
 0x26a   : > { %17640 = vmatmul.mubr.msk.bf16.gmra.mrb[20].mxu1 %vm1388_vm2, %v21501_v38 }
 0x26b   : > { %17643 = vmatprep.mubr.msk.bf16.mxu1 %vm1388_vm2, %v21503_v42 }
 0x272   : > { %17644 = vmatmul.mubr.msk.bf16.gmra.mrb[24].mxu1 %vm1388_vm2, %v21509_v36 }
 0x273   : > { %17647 = vmatprep.mubr.msk.bf16.mxu1 %vm1388_vm2, %v21511_v37 }
 0x27a   : > { %17648 = vmatmul.mubr.msk.bf16.gmra.mrb[28].mxu1 %vm1388_vm2, %v21517_v14 }
 0x27b   : > { %17653 = vmatprep.mubr.msk.bf16.mxu1 %vm1388_vm2, %v21393_v60  ;;  %v2611_v60 = vld [vmem:[#allocation2 + $0x207] sm:$0xff] }
 0x282   : > { %17654 = vmatmul.mubr.msk.bf16.vlgmr.msra.gmra.mrb[0].mxu1 %vm1388_vm2, %v21398_v1 }
 0x283   : > { %17657 = vmatprep.mubr.msk.bf16.mxu1 %vm1388_vm2, %v21406_v47  ;;  %17686 = vmatpush3.bf16.msra.mxu1 %v20169_v12  ;;  %v2612_v12 = vld [vmem:[#allocation2 + $0x20f] sm:$0xff] }
 0x284   : > { %17719 = vmatprep.subr.bf16.mxu1 %v20170_v24  ;;  %v21552_v54 = vpack.c.bf16 %v2612_v12, %v2611_v60  ;;  %v3791_v60 = vld [vmem:[#allocation2 + $0x150] sm:$0xff]  ;;  %v3813_v12 = vpack.c.bf16 %v3789_v11, %v3788_v46 }
 0x28a   : > { %17658 = vmatmul.mubr.msk.bf16.gmra.mrb[4].mxu1 %vm1388_vm2, %v21408_v53 }
 0x28b   : > { %17661 = vmatprep.mubr.msk.bf16.mxu1 %vm1388_vm2, %v21414_v7 }
 0x292   : > { %17662 = vmatmul.mubr.msk.bf16.gmra.mrb[8].mxu1 %vm1388_vm2, %v21416_v9 }
 0x293   : > { %17665 = vmatprep.mubr.msk.bf16.mxu1 %vm1388_vm2, %v21422_v26 }
 0x29a   : > { %17666 = vmatmul.mubr.msk.bf16.gmra.mrb[12].mxu1 %vm1388_vm2, %v21424_v58 }
 0x29b   : > { %17669 = vmatprep.mubr.msk.bf16.mxu1 %vm1388_vm2, %v21430_v8 }
 0x2a2   : > { %17670 = vmatmul.mubr.msk.bf16.gmra.mrb[16].mxu1 %vm1388_vm2, %v21432_v29 }
 0x2a3   : > { %17673 = vmatprep.mubr.msk.bf16.mxu1 %vm1388_vm2, %v21438_v35 }
 0x2aa   : > { %17674 = vmatmul.mubr.msk.bf16.gmra.mrb[20].mxu1 %vm1388_vm2, %v21440_v41 }
 0x2ab   : > { %17677 = vmatprep.mubr.msk.bf16.mxu1 %vm1388_vm2, %v21446_v27 }
 0x2b2   : > { %17678 = vmatmul.mubr.msk.bf16.gmra.mrb[24].mxu1 %vm1388_vm2, %v21448_v39 }
 0x2b3   : > { %17681 = vmatprep.mubr.msk.bf16.mxu1 %vm1388_vm2, %v21454_v4 }
 0x2ba   : > { %17682 = vmatmul.mubr.msk.bf16.gmra.mrb[28].mxu1 %vm1388_vm2, %v21552_v54 }
 0x2bb   : > { %17687 = vmatprep.mubr.msk.bf16.mxu1 %vm1388_vm2, %v21327_v40  ;;  %v2909_v40 = vld [vmem:[#allocation2 + $0x208] sm:$0xff] }
 0x2c2   : > { %17688 = vmatmul.mubr.msk.bf16.vlgmr.msra.gmra.mrb[0].mxu1 %vm1388_vm2, %v21329_v43  ;;  %v2910_v43 = vld [vmem:[#allocation2 + $0x210] sm:$0xff] }
 0x2c3   : > { %17691 = vmatprep.mubr.msk.bf16.mxu1 %vm1388_vm2, %v21340_v48  ;;  %17720 = vmatpush3.bf16.msra.mxu1 %v20170_v24  ;;  %v21587_v48 = vpack.c.bf16 %v2910_v43, %v2909_v40  ;;  %v3790_v24 = vld [vmem:[#allocation2 + $0x148] sm:$0xff]  ;;  %v3793_v40 = vld [vmem:[#allocation2 + $0x170] sm:$0xff] }
 0x2c4   : > { %17753 = vmatprep.subr.bf16.mxu1 %v20171_v61  ;;  %v3794_v43 = vld [vmem:[#allocation2 + $0x188] sm:$0xff] }
 0x2ca   : > { %17692 = vmatmul.mubr.msk.bf16.gmra.mrb[4].mxu1 %vm1388_vm2, %v21342_v50  ;;  %v20172_v50 = vld [vmem:[%s20422_s21 + $0x38] sm:$0xff]  }
 0x2cb   : > { %17695 = vmatprep.mubr.msk.bf16.mxu1 %vm1388_vm2, %v21348_v3  ;;  %v3207_v3 = vld [vmem:[#allocation2 + $0x209] sm:$0xff] }
 0x2d2   : > { %17696 = vmatmul.mubr.msk.bf16.gmra.mrb[8].mxu1 %vm1388_vm2, %v21350_v6  ;;  %v3208_v6 = vld [vmem:[#allocation2 + $0x211] sm:$0xff] }
 0x2d3   : > { %17699 = vmatprep.mubr.msk.bf16.mxu1 %vm1388_vm2, %v21356_v15  ;;  %v21622_v15 = vpack.c.bf16 %v3208_v6, %v3207_v3 }
 0x2da   : > { %17700 = vmatmul.mubr.msk.bf16.gmra.mrb[12].mxu1 %vm1388_vm2, %v21358_v20  ;;  %v20173_v20 = vld [vmem:[%s20422_s21 + $0x40] sm:$0xff]  }
 0x2db   : > { %17703 = vmatprep.mubr.msk.bf16.mxu1 %vm1388_vm2, %v21364_v32  ;;  %v3506_v32 = vld [vmem:[#allocation2 + $0x227] sm:$0xff] }
 0x2e2   : > { %17704 = vmatmul.mubr.msk.bf16.gmra.mrb[16].mxu1 %vm1388_vm2, %v21366_v34  ;;  %v3507_v34 = vld [vmem:[#allocation2 + $0x22f] sm:$0xff] }
 0x2e3   : > { %17707 = vmatprep.mubr.msk.bf16.mxu1 %vm1388_vm2, %v21372_v51  ;;  %v3523_v51 = vpack.c.bf16 %v3507_v34, %v3506_v32  ;;  %v3797_v32 = vld [vmem:[#allocation2 + $0x1b0] sm:$0xff]  ;;  %v3798_v34 = vld [vmem:[#allocation2 + $0x1c8] sm:$0xff] }
 0x2ea   : > { %17708 = vmatmul.mubr.msk.bf16.gmra.mrb[20].mxu1 %vm1388_vm2, %v21374_v57  ;;  %v3774_v57 = vld [vmem:[#allocation2 + $0x48] sm:$0xff] }
 0x2eb   : > { %17711 = vmatprep.mubr.msk.bf16.mxu1 %vm1388_vm2, %v21380_v33  ;;  %v3775_v33 = vld [vmem:[#allocation2 + $0x50] sm:$0xff] }
 0x2f2   : > { %17712 = vmatmul.mubr.msk.bf16.gmra.mrb[24].mxu1 %vm1388_vm2, %v21382_v30  ;;  %v3806_v30 = vpack.c.bf16 %v3775_v33, %v3774_v57 }
 0x2f3   : > { %17715 = vmatprep.mubr.msk.bf16.mxu1 %vm1388_vm2, %v21388_v44  ;;  %v3776_v44 = vld [vmem:[#allocation2 + $0x68] sm:$0xff] }
 0x2fa   : > { %17716 = vmatmul.mubr.msk.bf16.gmra.mrb[28].mxu1 %vm1388_vm2, %v21587_v48 }
 0x2fb   : > { %17721 = vmatprep.mubr.msk.bf16.mxu1 %vm1388_vm2, %v21459_v25  ;;  %v3787_v25 = vld [vmem:[#allocation2 + $0x110] sm:$0xff] }
 0x302   : > { %17722 = vmatmul.mubr.msk.bf16.vlgmr.msra.gmra.mrb[0].mxu1 %vm1388_vm2, %v21462_v5 }
 0x303   : > { %17725 = vmatprep.mubr.msk.bf16.mxu1 %vm1388_vm2, %v21469_v59  ;;  %17754 = vmatpush3.bf16.msra.mxu1 %v20171_v61  ;;  %v3792_v61 = vld [vmem:[#allocation2 + $0x168] sm:$0xff] }
 0x304   : > { %17787 = vmatprep.subr.bf16.mxu1 %v20172_v50  ;;  %v3815_v3 = vpack.c.bf16 %v3793_v40, %v3792_v61 }
 0x30a   : > { %17726 = vmatmul.mubr.msk.bf16.gmra.mrb[4].mxu1 %vm1388_vm2, %v21471_v0 }
 0x30b   : > { %17729 = vmatprep.mubr.msk.bf16.mxu1 %vm1388_vm2, %v21477_v2 }
 0x312   : > { %17730 = vmatmul.mubr.msk.bf16.gmra.mrb[8].mxu1 %vm1388_vm2, %v21479_v19 }
 0x313   : > { %17733 = vmatprep.mubr.msk.bf16.mxu1 %vm1388_vm2, %v21485_v45 }
 0x31a   : > { %17734 = vmatmul.mubr.msk.bf16.gmra.mrb[12].mxu1 %vm1388_vm2, %v21487_v10 }
 0x31b   : > { %17737 = vmatprep.mubr.msk.bf16.mxu1 %vm1388_vm2, %v21493_v17 }
 0x322   : > { %17738 = vmatmul.mubr.msk.bf16.gmra.mrb[16].mxu1 %vm1388_vm2, %v21495_v21 }
 0x323   : > { %17741 = vmatprep.mubr.msk.bf16.mxu1 %vm1388_vm2, %v21501_v38 }
 0x32a   : > { %17742 = vmatmul.mubr.msk.bf16.gmra.mrb[20].mxu1 %vm1388_vm2, %v21503_v42 }
 0x32b   : > { %17745 = vmatprep.mubr.msk.bf16.mxu1 %vm1388_vm2, %v21509_v36 }
 0x332   : > { %17746 = vmatmul.mubr.msk.bf16.gmra.mrb[24].mxu1 %vm1388_vm2, %v21511_v37 }
 0x333   : > { %17749 = vmatprep.mubr.msk.bf16.mxu1 %vm1388_vm2, %v21517_v14 }
 0x33a   : > { %17750 = vmatmul.mubr.msk.bf16.gmra.mrb[28].mxu1 %vm1388_vm2, %v21622_v15 }
 0x33b   : > { %17755 = vmatprep.mubr.msk.bf16.mxu1 %vm1388_vm2, %v21398_v1  ;;  %v3777_v1 = vld [vmem:[#allocation2 + $0x70] sm:$0xff] }
 0x342   : > { %17756 = vmatmul.mubr.msk.bf16.vlgmr.msra.gmra.mrb[0].mxu1 %vm1388_vm2, %v21406_v47  ;;  %v3778_v47 = vld [vmem:[#allocation2 + $0x88] sm:$0xff] }
 0x343   : > { %17759 = vmatprep.mubr.msk.bf16.mxu1 %vm1388_vm2, %v21408_v53  ;;  %17788 = vmatpush3.bf16.msra.mxu1 %v20172_v50  ;;  %v3779_v53 = vld [vmem:[#allocation2 + $0x90] sm:$0xff] }
 0x344   : > { %17821 = vmatprep.subr.bf16.mxu1 %v20173_v20  ;;  %v3795_v50 = vld [vmem:[#allocation2 + $0x190] sm:$0xff] }
 0x345   : > { %v3816_v6 = vpack.c.bf16 %v3795_v50, %v3794_v43 }
 0x34a   : > { %17760 = vmatmul.mubr.msk.bf16.gmra.mrb[4].mxu1 %vm1388_vm2, %v21414_v7  ;;  %v3807_v7 = vpack.c.bf16 %v3777_v1, %v3776_v44  ;;  %v3801_v44 = vld [vmem:[#allocation2 + $0x1f0] sm:$0xff] }
 0x34b   : > { %17763 = vmatprep.mubr.msk.bf16.mxu1 %vm1388_vm2, %v21416_v9  ;;  %v3808_v9 = vpack.c.bf16 %v3779_v53, %v3778_v47  ;;  %v3804_v47 = vld [vmem:[#allocation2 + $0x228] sm:$0xff]  ;;  %v3805_v53 = vld [vmem:[#allocation2 + $0x230] sm:$0xff] }
 0x352   : > { %17764 = vmatmul.mubr.msk.bf16.gmra.mrb[8].mxu1 %vm1388_vm2, %v21422_v26  ;;  %v3780_v26 = vld [vmem:[#allocation2 + $0xa8] sm:$0xff] }
 0x353   : > { %17767 = vmatprep.mubr.msk.bf16.mxu1 %vm1388_vm2, %v21424_v58  ;;  %v3781_v58 = vld [vmem:[#allocation2 + $0xb0] sm:$0xff] }
 0x35a   : > { %17768 = vmatmul.mubr.msk.bf16.gmra.mrb[12].mxu1 %vm1388_vm2, %v21430_v8  ;;  %v3782_v8 = vld [vmem:[#allocation2 + $0xc8] sm:$0xff] }
 0x35b   : > { %17771 = vmatprep.mubr.msk.bf16.mxu1 %vm1388_vm2, %v21432_v29  ;;  %v3783_v29 = vld [vmem:[#allocation2 + $0xd0] sm:$0xff] }
 0x362   : > { %17772 = vmatmul.mubr.msk.bf16.gmra.mrb[16].mxu1 %vm1388_vm2, %v21438_v35  ;;  %v3809_v35 = vpack.c.bf16 %v3781_v58, %v3780_v26 }
 0x363   : > { %17775 = vmatprep.mubr.msk.bf16.mxu1 %vm1388_vm2, %v21440_v41  ;;  %v3810_v41 = vpack.c.bf16 %v3783_v29, %v3782_v8 }
 0x36a   : > { %17776 = vmatmul.mubr.msk.bf16.gmra.mrb[20].mxu1 %vm1388_vm2, %v21446_v27  ;;  %v3784_v27 = vld [vmem:[#allocation2 + $0xe8] sm:$0xff] }
 0x36b   : > { %17779 = vmatprep.mubr.msk.bf16.mxu1 %vm1388_vm2, %v21448_v39  ;;  %v3785_v39 = vld [vmem:[#allocation2 + $0xf0] sm:$0xff] }
 0x36c   : > { %v3811_v13 = vpack.c.bf16 %v3785_v39, %v3784_v27 }
 0x372   : > { %17780 = vmatmul.mubr.msk.bf16.gmra.mrb[24].mxu1 %vm1388_vm2, %v21454_v4  ;;  %v3786_v4 = vld [vmem:[#allocation2 + $0x108] sm:$0xff] }
 0x373   : > { %17783 = vmatprep.mubr.msk.bf16.mxu1 %vm1388_vm2, %v21552_v54  ;;  %v3812_v23 = vpack.c.bf16 %v3787_v25, %v3786_v4  ;;  %v3814_v54 = vpack.c.bf16 %v3791_v60, %v3790_v24 }
 0x37a   : > { %17784 = vmatmul.mubr.msk.bf16.gmra.mrb[28].mxu1 %vm1388_vm2, %v3523_v51  ;;  %v3799_v51 = vld [vmem:[#allocation2 + $0x1d0] sm:$0xff] }
 0x37b   : > { %17789 = vmatprep.mubr.msk.bf16.mxu1 %vm1388_vm2, %v3806_v30  ;;  %v3818_v33 = vpack.c.bf16 %v3799_v51, %v3798_v34  ;;  %v3800_v30 = vld [vmem:[#allocation2 + $0x1e8] sm:$0xff] }
 0x37c   : > { %v3819_v1 = vpack.c.bf16 %v3801_v44, %v3800_v30 }
 0x382   : > { %17790 = vmatmul.mubr.msk.bf16.vlgmr.msra.gmra.mrb[0].mxu1 %vm1388_vm2, %v3807_v7  ;;  %v3821_v7 = vpack.c.bf16 %v3805_v53, %v3804_v47 }
 0x383   : > { %17793 = vmatprep.mubr.msk.bf16.mxu1 %vm1388_vm2, %v3808_v9  ;;  %17822 = vmatpush3.bf16.msra.mxu1 %v20173_v20  ;;  %v3796_v20 = vld [vmem:[#allocation2 + $0x1a8] sm:$0xff] }
 0x384   : > { %v3817_v57 = vpack.c.bf16 %v3797_v32, %v3796_v20 }
 0x38a   : > { %17794 = vmatmul.mubr.msk.bf16.gmra.mrb[4].mxu1 %vm1388_vm2, %v3809_v35  ;;  %v21734_v35 = vld [vmem:[%s24715_s3] sm:$0xff]  }
 0x38b   : > { %17797 = vmatprep.mubr.msk.bf16.mxu1 %vm1388_vm2, %v3810_v41 }
 0x392   : > { %17798 = vmatmul.mubr.msk.bf16.gmra.mrb[8].mxu1 %vm1388_vm2, %v3811_v13 }
 0x393   : > { %17801 = vmatprep.mubr.msk.bf16.mxu1 %vm1388_vm2, %v3812_v23 }
 0x39a   : > { %17802 = vmatmul.mubr.msk.bf16.gmra.mrb[12].mxu1 %vm1388_vm2, %v3813_v12 }
 0x39b   : > { %17805 = vmatprep.mubr.msk.bf16.mxu1 %vm1388_vm2, %v3814_v54 }
 0x3a2   : > { %17806 = vmatmul.mubr.msk.bf16.gmra.mrb[16].mxu1 %vm1388_vm2, %v3815_v3 }
 0x3a3   : > { %17809 = vmatprep.mubr.msk.bf16.mxu1 %vm1388_vm2, %v3816_v6 }
 0x3aa   : > { %17810 = vmatmul.mubr.msk.bf16.gmra.mrb[20].mxu1 %vm1388_vm2, %v3817_v57 }
 0x3ab   : > { %17813 = vmatprep.mubr.msk.bf16.mxu1 %vm1388_vm2, %v3818_v33 }
 0x3b2   : > { %17814 = vmatmul.mubr.msk.bf16.gmra.mrb[24].mxu1 %vm1388_vm2, %v3819_v1 }
 0x3b3   : > { %17817 = vmatprep.mubr.msk.bf16.mxu1 %vm1388_vm2, %v21587_v48 }
 0x3ba   : > { %17818 = vmatmul.mubr.msk.bf16.gmra.mrb[28].mxu1 %vm1388_vm2, %v3821_v7 }
 0x3bb   : > { %17823 = vmatprep.mubr.msk.bf16.mxu1 %vm1388_vm2, %v21462_v5  ;;  %v4102_v5 = vld [vmem:[#allocation2 + $0x229] sm:$0xff] }
 0x3c2   : > { %17824 = vmatmul.mubr.msk.bf16.vlgmr.msra.gmra.mrb[0].mxu1 %vm1388_vm2, %v21469_v59  ;;  %v4103_v59 = vld [vmem:[#allocation2 + $0x231] sm:$0xff] }
 0x3c3   : > { %17827 = vmatprep.mubr.msk.bf16.mxu1 %vm1388_vm2, %v21471_v0  ;;  %v4119_v0 = vpack.c.bf16 %v4103_v59, %v4102_v5 }
 0x3ca   : > { %17828 = vmatmul.mubr.msk.bf16.gmra.mrb[4].mxu1 %vm1388_vm2, %v21477_v2  ;;  %v20174_v2 = vld [vmem:[%s24715_s3 + $0x8] sm:$0xff]  }
 0x3cb   : > { %17831 = vmatprep.mubr.msk.bf16.mxu1 %vm1388_vm2, %v21479_v19  ;;  %17855 = vmatprep.subr.bf16.mxu0 %v20174_v2  ;;  %v21708_v19 = vld [vmem:[%s20427_s25] ss:$0 sm:$0xff] }
 0x3cc   : > { %19069 = vmatprep.subr.bf16.mxu1 %v20174_v2  ;;  %17856 = vmatpush3.bf16.msra.mxu0 %v20174_v2 }
 0x3cd   : > { %19070 = vmatpush3.bf16.msra.mxu1 %v20174_v2  ;;  %17889 = vmatprep.subr.bf16.mxu0 %v21734_v35 }
 0x3d2   : > { %17832 = vmatmul.mubr.msk.bf16.gmra.mrb[8].mxu1 %vm1388_vm2, %v21485_v45 }
 0x3d3   : > { %17835 = vmatprep.mubr.msk.bf16.mxu1 %vm1388_vm2, %v21487_v10 }
 0x3da   : > { %17836 = vmatmul.mubr.msk.bf16.gmra.mrb[12].mxu1 %vm1388_vm2, %v21493_v17 }
 0x3db   : > { %17839 = vmatprep.mubr.msk.bf16.mxu1 %vm1388_vm2, %v21495_v21 }
 0x3e2   : > { %17840 = vmatmul.mubr.msk.bf16.gmra.mrb[16].mxu1 %vm1388_vm2, %v21501_v38 }
 0x3e3   : > { %17843 = vmatprep.mubr.msk.bf16.mxu1 %vm1388_vm2, %v21503_v42 }
 0x3ea   : > { %17844 = vmatmul.mubr.msk.bf16.gmra.mrb[20].mxu1 %vm1388_vm2, %v21509_v36  ;;  %v4822_v36 = vld [vmem:[#allocation3 + $0x8] sm:$0xff] }
 0x3eb   : > { %17847 = vmatprep.mubr.msk.bf16.mxu1 %vm1388_vm2, %v21511_v37  ;;  %v4823_v37 = vld [vmem:[#allocation3 + $0x10] sm:$0xff] }
 0x3ec   : > { %v4854_v9 = vpack.c.bf16 %v4823_v37, %v4822_v36 }
 0x3ee   : > { %17857 = vmatprep.mubr.msk.bf16.mxu0 %vm1388_vm2, %v4854_v9 }
 0x3f2   : > { %17848 = vmatmul.mubr.msk.bf16.gmra.mrb[24].mxu1 %vm1388_vm2, %v21517_v14 }
 0x3f3   : > { %17851 = vmatprep.mubr.msk.bf16.mxu1 %vm1388_vm2, %v21622_v15 }
 0x3fa   : > { %17852 = vmatmul.mubr.msk.bf16.gmra.mrb[28].mxu1 %vm1388_vm2, %v4119_v0 }
 0x495   : > { %v17825_v45 = vpop.f32.mrb[0].mxu1 }
 0x496   : > { %v4211_v10 = vpop.f32.mrb[1].mxu1  ;;  %v21711_v17 = vadd.f32 %v17825_v45, %v21708_v19 }
 0x497   : > { %v21714_v21 = vadd.f32 %v21708_v19, %v4211_v10  ;;  %v17826_v38 = vpop.f32.mrb[2].mxu1 }
 0x498   : > { %v4214_v42 = vpop.f32.mrb[3].mxu1  ;;  %v21719_v48 = vadd.f32 %v17826_v38, %v21708_v19  ;;  %v4482_v26 = vmul.f32 %v21711_v17, %v21711_v17  ;;  %v4414_v27 = vsel %vm1388_vm2, %v21711_v17, 0.0 }
 0x499   : > { %v4480_v14 = vmul.f32 %v21714_v21, %v21714_v21  ;;  %v21722_v15 = vadd.f32 %v21708_v19, %v4214_v42  ;;  %v4411_v58 = vsel %vm1388_vm2, %v21714_v21, 0.0 }
 0x49a   : > { %v4483_v4 = vmul.f32 %v21719_v48, %v21719_v48  ;;  %v4515_v24 = vsel %vm1388_vm2, %v4482_v26, 0.0  ;;  %v4416_v60 = vsel %vm1388_vm2, %v21719_v48, 0.0 }
 0x49b   : > { %v4412_v8 = vsel %vm1388_vm2, %v21722_v15, 0.0  ;;  %v4481_v29 = vmul.f32 %v21722_v15, %v21722_v15  ;;  %v4512_v39 = vsel %vm1388_vm2, %v4480_v14, 0.0 }
 0x49c   : > { %v4413_v41 = vadd.f32 %v4412_v8, %v4411_v58  ;;  %v4517_v3 = vsel %vm1388_vm2, %v4483_v4, 0.0 }
 0x49d   : > { %v4513_v25 = vsel %vm1388_vm2, %v4481_v29, 0.0  ;;  %v17829_v13 = vpop.f32.mrb[4].mxu1 }
 0x49e   : > { %v4415_v23 = vadd.f32 %v4414_v27, %v4413_v41  ;;  %v4514_v46 = vadd.f32 %v4513_v25, %v4512_v39  ;;  %v4227_v11 = vpop.f32.mrb[5].mxu1  ;;  %v21750_v40 = vadd.f32 %v17829_v13, %v21708_v19 }
 0x49f   : > { %v21747_v12 = vadd.f32 %v21708_v19, %v4227_v11  ;;  %v17830_v54 = vpop.f32.mrb[6].mxu1 }
 0x4a0   : > { %v4516_v61 = vadd.f32 %v4515_v24, %v4514_v46  ;;  %v4417_v43 = vadd.f32 %v4416_v60, %v4415_v23  ;;  %v4230_v50 = vpop.f32.mrb[7].mxu1  ;;  %v21761_v57 = vadd.f32 %v17830_v54, %v21708_v19  ;;  %v4486_v44 = vmul.f32 %v21750_v40, %v21750_v40 }
 0x4a1   : > { %v4418_v6 = vsel %vm1388_vm2, %v21747_v12, 0.0  ;;  %v4484_v20 = vmul.f32 %v21747_v12, %v21747_v12  ;;  %v21758_v32 = vadd.f32 %v21708_v19, %v4230_v50  ;;  %v4422_v7 = vsel %vm1388_vm2, %v21750_v40, 0.0 }
 0x4a2   : > { %v4419_v34 = vadd.f32 %v4418_v6, %v4417_v43  ;;  %v4518_v51 = vadd.f32 %v4517_v3, %v4516_v61  ;;  %v4487_v59 = vmul.f32 %v21761_v57, %v21761_v57  ;;  %v4424_v10 = vsel %vm1388_vm2, %v21761_v57, 0.0 }
 0x4a3   : > { %v4519_v33 = vsel %vm1388_vm2, %v4484_v20, 0.0  ;;  %v4420_v30 = vsel %vm1388_vm2, %v21758_v32, 0.0  ;;  %v4485_v53 = vmul.f32 %v21758_v32, %v21758_v32  ;;  %v4523_v37 = vsel %vm1388_vm2, %v4486_v44, 0.0 }
 0x4a4   : > { %v4520_v1 = vadd.f32 %v4519_v33, %v4518_v51  ;;  %v4421_v47 = vadd.f32 %v4420_v30, %v4419_v34  ;;  %v4525_v27 = vsel %vm1388_vm2, %v4487_v59, 0.0 }
 0x4a5   : > { %v17833_v5 = vpop.f32.mrb[8].mxu1  ;;  %v4521_v2 = vsel %vm1388_vm2, %v4485_v53, 0.0 }
 0x4a6   : > { %v4423_v0 = vadd.f32 %v4422_v7, %v4421_v47  ;;  %v4243_v45 = vpop.f32.mrb[9].mxu1  ;;  %v4522_v38 = vadd.f32 %v4521_v2, %v4520_v1  ;;  %v21782_v14 = vadd.f32 %v17833_v5, %v21708_v19 }
 0x4a7   : > { %v21778_v42 = vadd.f32 %v21708_v19, %v4243_v45  ;;  %v17834_v36 = vpop.f32.mrb[10].mxu1 }
 0x4a8   : > { %v4425_v9 = vadd.f32 %v4424_v10, %v4423_v0  ;;  %v4246_v26 = vpop.f32.mrb[11].mxu1  ;;  %v4524_v58 = vadd.f32 %v4523_v37, %v4522_v38  ;;  %v21793_v4 = vadd.f32 %v17834_v36, %v21708_v19  ;;  %v4490_v11 = vmul.f32 %v21782_v14, %v21782_v14 }
 0x4a9   : > { %v4426_v8 = vsel %vm1388_vm2, %v21778_v42, 0.0  ;;  %v4488_v29 = vmul.f32 %v21778_v42, %v21778_v42  ;;  %v21789_v41 = vadd.f32 %v21708_v19, %v4246_v26  ;;  %v4430_v60 = vsel %vm1388_vm2, %v21782_v14, 0.0 }
 0x4aa   : > { %v4427_v39 = vadd.f32 %v4426_v8, %v4425_v9  ;;  %v4526_v25 = vadd.f32 %v4525_v27, %v4524_v58  ;;  %v4491_v50 = vmul.f32 %v21793_v4, %v21793_v4  ;;  %v4432_v20 = vsel %vm1388_vm2, %v21793_v4, 0.0 }
 0x4ab   : > { %v4527_v13 = vsel %vm1388_vm2, %v4488_v29, 0.0  ;;  %v4428_v23 = vsel %vm1388_vm2, %v21789_v41, 0.0  ;;  %v4489_v46 = vmul.f32 %v21789_v41, %v21789_v41  ;;  %v4531_v30 = vsel %vm1388_vm2, %v4490_v11, 0.0 }
 0x4ac   : > { %v4429_v24 = vadd.f32 %v4428_v23, %v4427_v39  ;;  %v4528_v54 = vadd.f32 %v4527_v13, %v4526_v25  ;;  %v4533_v0 = vsel %vm1388_vm2, %v4491_v50, 0.0 }
 0x4ad   : > { %v4529_v61 = vsel %vm1388_vm2, %v4489_v46, 0.0  ;;  %v17837_v43 = vpop.f32.mrb[12].mxu1 }
 0x4ae   : > { %v4431_v3 = vadd.f32 %v4430_v60, %v4429_v24  ;;  %v4259_v6 = vpop.f32.mrb[13].mxu1  ;;  %v4530_v34 = vadd.f32 %v4529_v61, %v4528_v54  ;;  %v21814_v44 = vadd.f32 %v17837_v43, %v21708_v19 }
 0x4af   : > { %v21810_v51 = vadd.f32 %v21708_v19, %v4259_v6  ;;  %v17838_v33 = vpop.f32.mrb[14].mxu1 }
 0x4b0   : > { %v4433_v1 = vadd.f32 %v4432_v20, %v4431_v3  ;;  %v4262_v47 = vpop.f32.mrb[15].mxu1  ;;  %v4532_v53 = vadd.f32 %v4531_v30, %v4530_v34  ;;  %v21825_v45 = vadd.f32 %v17838_v33, %v21708_v19  ;;  %v4494_v9 = vmul.f32 %v21814_v44, %v21814_v44 }
 0x4b1   : > { %v4434_v7 = vsel %vm1388_vm2, %v21810_v51, 0.0  ;;  %v4492_v5 = vmul.f32 %v21810_v51, %v21810_v51  ;;  %v21821_v59 = vadd.f32 %v21708_v19, %v4262_v47  ;;  %v4438_v58 = vsel %vm1388_vm2, %v21814_v44, 0.0 }
 0x4b2   : > { %v4435_v2 = vadd.f32 %v4434_v7, %v4433_v1  ;;  %v4534_v10 = vadd.f32 %v4533_v0, %v4532_v53  ;;  %v4495_v39 = vmul.f32 %v21825_v45, %v21825_v45  ;;  %v4440_v23 = vsel %vm1388_vm2, %v21825_v45, 0.0 }
 0x4b3   : > { %v4535_v38 = vsel %vm1388_vm2, %v4492_v5, 0.0  ;;  %v4436_v36 = vsel %vm1388_vm2, %v21821_v59, 0.0  ;;  %v4493_v37 = vmul.f32 %v21821_v59, %v21821_v59  ;;  %v4539_v60 = vsel %vm1388_vm2, %v4494_v9, 0.0 }
 0x4b4   : > { %v4437_v26 = vadd.f32 %v4436_v36, %v4435_v2  ;;  %v4536_v8 = vadd.f32 %v4535_v38, %v4534_v10  ;;  %v4541_v34 = vsel %vm1388_vm2, %v4495_v39, 0.0 }
 0x4b5   : > { %v4537_v29 = vsel %vm1388_vm2, %v4493_v37, 0.0  ;;  %v17841_v27 = vpop.f32.mrb[16].mxu1 }
 0x4b6   : > { %v4439_v25 = vadd.f32 %v4438_v58, %v4437_v26  ;;  %v4275_v13 = vpop.f32.mrb[17].mxu1  ;;  %v4538_v46 = vadd.f32 %v4537_v29, %v4536_v8  ;;  %v21846_v54 = vadd.f32 %v17841_v27, %v21708_v19 }
 0x4b7   : > { %v21842_v11 = vadd.f32 %v21708_v19, %v4275_v13  ;;  %v17842_v24 = vpop.f32.mrb[18].mxu1 }
 0x4b8   : > { %v4441_v61 = vadd.f32 %v4440_v23, %v4439_v25  ;;  %v4278_v43 = vpop.f32.mrb[19].mxu1  ;;  %v4540_v50 = vadd.f32 %v4539_v60, %v4538_v46  ;;  %v21857_v30 = vadd.f32 %v17842_v24, %v21708_v19  ;;  %v4498_v5 = vmul.f32 %v21846_v54, %v21846_v54 }
 0x4b9   : > { %v4442_v3 = vsel %vm1388_vm2, %v21842_v11, 0.0  ;;  %v4496_v6 = vmul.f32 %v21842_v11, %v21842_v11  ;;  %v21853_v20 = vadd.f32 %v21708_v19, %v4278_v43  ;;  %v4446_v2 = vsel %vm1388_vm2, %v21846_v54, 0.0 }
 0x4ba   : > { %v4443_v33 = vadd.f32 %v4442_v3, %v4441_v61  ;;  %v4542_v1 = vadd.f32 %v4541_v34, %v4540_v50  ;;  %v4499_v37 = vmul.f32 %v21857_v30, %v21857_v30  ;;  %v4448_v58 = vsel %vm1388_vm2, %v21857_v30, 0.0 }
 0x4bb   : > { %v4543_v47 = vsel %vm1388_vm2, %v4496_v6, 0.0  ;;  %v4444_v53 = vsel %vm1388_vm2, %v21853_v20, 0.0  ;;  %v4497_v7 = vmul.f32 %v21853_v20, %v21853_v20  ;;  %v4547_v39 = vsel %vm1388_vm2, %v4498_v5, 0.0 }
 0x4bc   : > { %v4445_v0 = vadd.f32 %v4444_v53, %v4443_v33  ;;  %v4544_v10 = vadd.f32 %v4543_v47, %v4542_v1  ;;  %v4549_v43 = vsel %vm1388_vm2, %v4499_v37, 0.0 }
 0x4bd   : > { %v4545_v38 = vsel %vm1388_vm2, %v4497_v7, 0.0  ;;  %v17845_v36 = vpop.f32.mrb[20].mxu1 }
 0x4be   : > { %v4447_v9 = vadd.f32 %v4446_v2, %v4445_v0  ;;  %v4291_v26 = vpop.f32.mrb[21].mxu1  ;;  %v4546_v8 = vadd.f32 %v4545_v38, %v4544_v10  ;;  %v21878_v25 = vadd.f32 %v17845_v36, %v21708_v19 }
 0x4bf   : > { %v21874_v29 = vadd.f32 %v21708_v19, %v4291_v26  ;;  %v17846_v27 = vpop.f32.mrb[22].mxu1 }
 0x4c0   : > { %v4449_v13 = vadd.f32 %v4448_v58, %v4447_v9  ;;  %v4294_v23 = vpop.f32.mrb[23].mxu1  ;;  %v4548_v46 = vadd.f32 %v4547_v39, %v4546_v8  ;;  %v21889_v3 = vadd.f32 %v17846_v27, %v21708_v19  ;;  %v4502_v47 = vmul.f32 %v21878_v25, %v21878_v25 }
 0x4c1   : > { %v4450_v24 = vsel %vm1388_vm2, %v21874_v29, 0.0  ;;  %v4500_v60 = vmul.f32 %v21874_v29, %v21874_v29  ;;  %v21885_v61 = vadd.f32 %v21708_v19, %v4294_v23  ;;  %v4454_v7 = vsel %vm1388_vm2, %v21878_v25, 0.0 }
 0x4c2   : > { %v4451_v50 = vadd.f32 %v4450_v24, %v4449_v13  ;;  %v4550_v6 = vadd.f32 %v4549_v43, %v4548_v46  ;;  %v4503_v10 = vmul.f32 %v21889_v3, %v21889_v3  ;;  %v4456_v37 = vsel %vm1388_vm2, %v21889_v3, 0.0 }
 0x4c3   : > { %v4551_v34 = vsel %vm1388_vm2, %v4500_v60, 0.0  ;;  %v4452_v33 = vsel %vm1388_vm2, %v21885_v61, 0.0  ;;  %v4501_v1 = vmul.f32 %v21885_v61, %v21885_v61  ;;  %v4555_v8 = vsel %vm1388_vm2, %v4502_v47, 0.0 }
 0x4c4   : > { %v4453_v53 = vadd.f32 %v4452_v33, %v4451_v50  ;;  %v4552_v5 = vadd.f32 %v4551_v34, %v4550_v6  ;;  %v4557_v43 = vsel %vm1388_vm2, %v4503_v10, 0.0 }
 0x4c5   : > { %v4553_v0 = vsel %vm1388_vm2, %v4501_v1, 0.0  ;;  %v17849_v2 = vpop.f32.mrb[24].mxu1 }
 0x4c6   : > { %v4455_v38 = vadd.f32 %v4454_v7, %v4453_v53  ;;  %v4307_v36 = vpop.f32.mrb[25].mxu1  ;;  %v4554_v9 = vadd.f32 %v4553_v0, %v4552_v5  ;;  %v21910_v27 = vadd.f32 %v17849_v2, %v21708_v19 }
 0x4c7   : > { %v21906_v26 = vadd.f32 %v21708_v19, %v4307_v36  ;;  %v17850_v58 = vpop.f32.mrb[26].mxu1 }
 0x4c8   : > { %v4457_v39 = vadd.f32 %v4456_v37, %v4455_v38  ;;  %v4310_v13 = vpop.f32.mrb[27].mxu1  ;;  %v4556_v23 = vadd.f32 %v4555_v8, %v4554_v9  ;;  %v21921_v6 = vadd.f32 %v17850_v58, %v21708_v19  ;;  %v4506_v53 = vmul.f32 %v21910_v27, %v21910_v27 }
 0x4c9   : > { %v4458_v46 = vsel %vm1388_vm2, %v21906_v26, 0.0  ;;  %v4504_v24 = vmul.f32 %v21906_v26, %v21906_v26  ;;  %v21917_v60 = vadd.f32 %v21708_v19, %v4310_v13  ;;  %v4462_v5 = vsel %vm1388_vm2, %v21910_v27, 0.0 }
 0x4ca   : > { %v4459_v50 = vadd.f32 %v4458_v46, %v4457_v39  ;;  %v4558_v34 = vadd.f32 %v4557_v43, %v4556_v23  ;;  %v4507_v38 = vmul.f32 %v21921_v6, %v21921_v6  ;;  %v4464_v9 = vsel %vm1388_vm2, %v21921_v6, 0.0 }
 0x4cb   : > { %v4559_v33 = vsel %vm1388_vm2, %v4504_v24, 0.0  ;;  %v4460_v1 = vsel %vm1388_vm2, %v21917_v60, 0.0  ;;  %v4505_v47 = vmul.f32 %v21917_v60, %v21917_v60  ;;  %v4563_v13 = vsel %vm1388_vm2, %v4506_v53, 0.0 }
 0x4cc   : > { %v4461_v7 = vadd.f32 %v4460_v1, %v4459_v50  ;;  %v4560_v0 = vadd.f32 %v4559_v33, %v4558_v34  ;;  %v4565_v1 = vsel %vm1388_vm2, %v4507_v38, 0.0 }
 0x4cd   : > { %v4561_v2 = vsel %vm1388_vm2, %v4505_v47, 0.0  ;;  %v17853_v10 = vpop.f32.mrb[28].mxu1 }
 0x4ce   : > { %v4463_v36 = vadd.f32 %v4462_v5, %v4461_v7  ;;  %v4323_v37 = vpop.f32.mrb[29].mxu1  ;;  %v4562_v58 = vadd.f32 %v4561_v2, %v4560_v0  ;;  %v21942_v23 = vadd.f32 %v17853_v10, %v21708_v19 }
 0x4cf   : > { %v21938_v8 = vadd.f32 %v21708_v19, %v4323_v37  ;;  %v17854_v39 = vpop.f32.mrb[30].mxu1 }
 0x4d0   : > { %v4465_v46 = vadd.f32 %v4464_v9, %v4463_v36  ;;  %v4326_v24 = vpop.f32.mrb[31].mxu1  ;;  %v4564_v43 = vadd.f32 %v4563_v13, %v4562_v58  ;;  %v21951_v7 = vadd.f32 %v17854_v39, %v21708_v19  ;;  %v4510_v10 = vmul.f32 %v21942_v23, %v21942_v23 }
 0x4d1   : > { %v4466_v50 = vsel %vm1388_vm2, %v21938_v8, 0.0  ;;  %v4508_v34 = vmul.f32 %v21938_v8, %v21938_v8  ;;  %v4406_v33 = vadd.f32 %v21708_v19, %v4326_v24  ;;  %v4470_v37 = vsel %vm1388_vm2, %v21942_v23, 0.0 }
 0x4d2   : > { %v4467_v47 = vadd.f32 %v4466_v50, %v4465_v46  ;;  %v4566_v53 = vadd.f32 %v4565_v1, %v4564_v43  ;;  %v4511_v19 = vmul.f32 %v21951_v7, %v21951_v7  ;;  %v4472_v39 = vsel %vm1388_vm2, %v21951_v7, 0.0 }
 0x4d3   : > { %v4567_v5 = vsel %vm1388_vm2, %v4508_v34, 0.0  ;;  %v4468_v0 = vsel %vm1388_vm2, %v4406_v33, 0.0  ;;  %v4509_v2 = vmul.f32 %v4406_v33, %v4406_v33  ;;  %v4571_v46 = vsel %vm1388_vm2, %v4510_v10, 0.0 }
 0x4d4   : > { %v4469_v36 = vadd.f32 %v4468_v0, %v4467_v47  ;;  %v4568_v9 = vadd.f32 %v4567_v5, %v4566_v53  ;;  %v4573_v50 = vsel %vm1388_vm2, %v4511_v19, 0.0 }
 0x4d5   : > { %v4569_v38 = vsel %vm1388_vm2, %v4509_v2, 0.0 }
 0x4d6   : > { %v4471_v58 = vadd.f32 %v4470_v37, %v4469_v36  ;;  %v4570_v13 = vadd.f32 %v4569_v38, %v4568_v9 }
 0x4d8   : > { %v4473_v24 = vadd.f32 %v4472_v39, %v4471_v58  ;;  %v4572_v43 = vadd.f32 %v4571_v46, %v4570_v13  ;;  %v4409_v46 = vld [vmem:[%s20432_s29] sm:$0x1] }
 0x4da   : > { %v4474_v34 = vrot.slane %v4473_v24, 4  ;;  %v4574_v1 = vadd.f32 %v4573_v50, %v4572_v43  ;;  %v4410_v50 = vld [vmem:[%s20432_s29 + $0x1] sm:$0x1] }
 0x4dc   : > { %v4475_v47 = vadd.f32 %v4474_v34, %v4473_v24  ;;  %v4575_v53 = vrot.slane %v4574_v1, 4 }
 0x4de   : > { %v4476_v5 = vrot.slane %v4475_v47, 2  ;;  %v4576_v0 = vadd.f32 %v4575_v53, %v4574_v1 }
 0x4e0   : > { %v4477_v2 = vadd.f32 %v4476_v5, %v4475_v47  ;;  %v4577_v36 = vrot.slane %v4576_v0, 2 }
 0x4e2   : > { %v4478_v37 = vrot.slane %v4477_v2, 1  ;;  %v4578_v16 = vadd.f32 %v4577_v36, %v4576_v0 }
 0x4e4   : > { %v4479_v49 = vadd.f32 %v4478_v37, %v4477_v2  ;;  %v4579_v9 = vrot.slane %v4578_v16, 1 }
 0x4e6   : > { %v4581_v38 = vmul.f32 0.00390625, %v4479_v49  ;;  %v4580_v10 = vadd.f32 %v4579_v9, %v4578_v16 }
 0x4e8   : > { %v4583_v58 = vmul.f32 %v4581_v38, %v4581_v38  ;;  %v4582_v39 = vmul.f32 0.00390625, %v4580_v10 }
 0x4ea   : > { %v4584_v13 = vsub.f32 %v4582_v39, %v4583_v58 }
 0x4ec   : > { %v4585_v19 = vadd.f32 1e-05, %v4584_v13 }
 0x4ee   : > { %20278 = vrsqrt.f32 %v4585_v19 }
 0x4f8   : > { %v20279_v24 = vpop.eup %20278 }
 0x4f9   : > { %v4587_v43 = vmul.f32 %v20279_v24, %v4409_v46 }
 0x4fb   : > { %v4588_v34 = vmul.f32 %v4587_v43, %v4581_v38  ;;  %v4593_v1 = vrot.slane %v4587_v43, %v21228_v52 }
 0x4fd   : > { %v4589_v47 = vsub.f32 %v4410_v50, %v4588_v34  ;;  %v4623_v53 = vmul.f32 %v4593_v1, %v4406_v33  ;;  %v4594_v5 = vmul.f32 %v4593_v1, %v21714_v21  ;;  %v4595_v0 = vmul.f32 %v4593_v1, %v21722_v15 }
 0x4fe   : > { %v4596_v49 = vmul.f32 %v4593_v1, %v21711_v17  ;;  %v4597_v16 = vmul.f32 %v4593_v1, %v21719_v48  ;;  %v4598_v2 = vmul.f32 %v4593_v1, %v21747_v12  ;;  %v4599_v36 = vmul.f32 %v4593_v1, %v21758_v32 }
 0x4ff   : > { %v4629_v37 = vrot.slane %v4589_v47, %v21228_v52  ;;  %v4600_v9 = vmul.f32 %v4593_v1, %v21750_v40  ;;  %v4601_v38 = vmul.f32 %v4593_v1, %v21761_v57  ;;  %v4602_v33 = vmul.f32 %v4593_v1, %v21778_v42 }
 0x500   : > { %v4603_v21 = vmul.f32 %v4593_v1, %v21789_v41  ;;  %v4604_v15 = vmul.f32 %v4593_v1, %v21782_v14  ;;  %v4605_v17 = vmul.f32 %v4593_v1, %v21793_v4  ;;  %v4606_v48 = vmul.f32 %v4593_v1, %v21810_v51 }
 0x501   : > { %v4659_v10 = vadd.f32 %v4629_v37, %v4623_v53  ;;  %v4607_v12 = vmul.f32 %v4593_v1, %v21821_v59  ;;  %v4608_v32 = vmul.f32 %v4593_v1, %v21814_v44  ;;  %v4609_v58 = vmul.f32 %v4593_v1, %v21825_v45 }
 0x502   : > { %v4610_v40 = vmul.f32 %v4593_v1, %v21842_v11  ;;  %v4611_v57 = vmul.f32 %v4593_v1, %v21853_v20  ;;  %v4612_v42 = vmul.f32 %v4593_v1, %v21846_v54  ;;  %v4613_v41 = vmul.f32 %v4593_v1, %v21857_v30 }
 0x503   : > { %v4691_v14 = vmax.f32 %v4659_v10, 0.0  ;;  %v4614_v4 = vmul.f32 %v4593_v1, %v21874_v29  ;;  %v4615_v51 = vmul.f32 %v4593_v1, %v21885_v61  ;;  %v4616_v39 = vmul.f32 %v4593_v1, %v21878_v25 }
 0x504   : > { %v4617_v59 = vmul.f32 %v4593_v1, %v21889_v3  ;;  %v4618_v44 = vmul.f32 %v4593_v1, %v21906_v26  ;;  %v4619_v45 = vmul.f32 %v4593_v1, %v21917_v60  ;;  %v4620_v11 = vmul.f32 %v4593_v1, %v21910_v27 }
 0x505   : > { %4769 = vst.msk [vmem:[#allocation3 + $0x1f0] sm:$0xff] %vm1388_vm2, %v4691_v14  ;;  %v4621_v54 = vmul.f32 %v4593_v1, %v21921_v6  ;;  %v4622_v20 = vmul.f32 %v4593_v1, %v21938_v8  ;;  %v4624_v30 = vmul.f32 %v4593_v1, %v21942_v23  ;;  %v4625_v29 = vmul.f32 %v4593_v1, %v21951_v7 }
 0x506   : > { %v4630_v61 = vadd.f32 %v4629_v37, %v4594_v5  ;;  %v4631_v25 = vadd.f32 %v4629_v37, %v4595_v0  ;;  %v4632_v13 = vadd.f32 %v4629_v37, %v4596_v49  ;;  %v4633_v3 = vadd.f32 %v4629_v37, %v4597_v16 }
 0x507   : > { %v4634_v19 = vadd.f32 %v4629_v37, %v4598_v2  ;;  %v4635_v26 = vadd.f32 %v4629_v37, %v4599_v36  ;;  %v4636_v46 = vadd.f32 %v4629_v37, %v4600_v9  ;;  %v4637_v60 = vadd.f32 %v4629_v37, %v4601_v38 }
 0x508   : > { %v4638_v24 = vadd.f32 %v4629_v37, %v4602_v33  ;;  %v4639_v27 = vadd.f32 %v4629_v37, %v4603_v21  ;;  %v4640_v43 = vadd.f32 %v4629_v37, %v4604_v15  ;;  %v4641_v50 = vadd.f32 %v4629_v37, %v4605_v17 }
 0x509   : > { %v4642_v34 = vadd.f32 %v4629_v37, %v4606_v48  ;;  %v4643_v6 = vadd.f32 %v4629_v37, %v4607_v12  ;;  %v4644_v47 = vadd.f32 %v4629_v37, %v4608_v32  ;;  %v4645_v8 = vadd.f32 %v4629_v37, %v4609_v58 }
 0x50a   : > { %v4646_v53 = vadd.f32 %v4629_v37, %v4610_v40  ;;  %v4647_v23 = vadd.f32 %v4629_v37, %v4611_v57  ;;  %v4648_v10 = vadd.f32 %v4629_v37, %v4612_v42  ;;  %v4649_v7 = vadd.f32 %v4629_v37, %v4613_v41 }
 0x50b   : > { %v4650_v1 = vadd.f32 %v4629_v37, %v4614_v4  ;;  %v22002_v5 = vadd.f32 %v4629_v37, %v4615_v51  ;;  %v22004_v0 = vadd.f32 %v4629_v37, %v4616_v39  ;;  %v22006_v49 = vadd.f32 %v4629_v37, %v4617_v59 }
 0x50c   : > { %v22008_v16 = vadd.f32 %v4629_v37, %v4618_v44  ;;  %v22010_v2 = vadd.f32 %v4629_v37, %v4619_v45  ;;  %v22012_v36 = vadd.f32 %v4629_v37, %v4620_v11  ;;  %v22014_v9 = vadd.f32 %v4629_v37, %v4621_v54 }
 0x50d   : > { %v22016_v38 = vadd.f32 %v4629_v37, %v4622_v20  ;;  %v22018_v33 = vadd.f32 %v4629_v37, %v4624_v30  ;;  %v22020_v21 = vadd.f32 %v4629_v37, %v4625_v29  ;;  %v4662_v15 = vmax.f32 %v4630_v61, 0.0 }
 0x50e   : > { %v4663_v17 = vmax.f32 %v4631_v25, 0.0  ;;  %v4664_v48 = vmax.f32 %v4632_v13, 0.0  ;;  %v4665_v12 = vmax.f32 %v4633_v3, 0.0  ;;  %v4666_v32 = vmax.f32 %v4634_v19, 0.0 }
 0x50f   : > { %v4667_v58 = vmax.f32 %v4635_v26, 0.0  ;;  %v4668_v40 = vmax.f32 %v4636_v46, 0.0  ;;  %v4669_v57 = vmax.f32 %v4637_v60, 0.0  ;;  %v4670_v42 = vmax.f32 %v4638_v24, 0.0  ;;  %4740 = vst.msk [vmem:[#allocation3 + $0x28] sm:$0xff] %vm1388_vm2, %v4662_v15  ;;  %v4772_v24 = vld [vmem:[#allocation3 + $0x7] sm:$0xff] }
 0x510   : > { %v4671_v41 = vmax.f32 %v4639_v27, 0.0  ;;  %v4672_v14 = vmax.f32 %v4640_v43, 0.0  ;;  %v4673_v4 = vmax.f32 %v4641_v50, 0.0  ;;  %v4674_v51 = vmax.f32 %v4642_v34, 0.0  ;;  %4741 = vst.msk [vmem:[#allocation3 + $0x30] sm:$0xff] %vm1388_vm2, %v4663_v17  ;;  %4742 = vst.msk [vmem:[#allocation3 + $0x48] sm:$0xff] %vm1388_vm2, %v4664_v48 }
 0x511   : > { %4743 = vst.msk [vmem:[#allocation3 + $0x50] sm:$0xff] %vm1388_vm2, %v4665_v12  ;;  %4744 = vst.msk [vmem:[#allocation3 + $0x68] sm:$0xff] %vm1388_vm2, %v4666_v32  ;;  %v4675_v37 = vmax.f32 %v4643_v6, 0.0  ;;  %v4676_v39 = vmax.f32 %v4644_v47, 0.0  ;;  %v4677_v59 = vmax.f32 %v4645_v8, 0.0  ;;  %v4678_v44 = vmax.f32 %v4646_v53, 0.0 }
 0x512   : > { %4745 = vst.msk [vmem:[#allocation3 + $0x70] sm:$0xff] %vm1388_vm2, %v4667_v58  ;;  %4746 = vst.msk [vmem:[#allocation3 + $0x88] sm:$0xff] %vm1388_vm2, %v4668_v40  ;;  %v4679_v45 = vmax.f32 %v4647_v23, 0.0  ;;  %v4680_v11 = vmax.f32 %v4648_v10, 0.0  ;;  %v4681_v54 = vmax.f32 %v4649_v7, 0.0  ;;  %v4682_v20 = vmax.f32 %v4650_v1, 0.0 }
 0x513   : > { %4747 = vst.msk [vmem:[#allocation3 + $0x90] sm:$0xff] %vm1388_vm2, %v4669_v57  ;;  %4748 = vst.msk [vmem:[#allocation3 + $0xa8] sm:$0xff] %vm1388_vm2, %v4670_v42  ;;  %v4683_v30 = vmax.f32 %v22002_v5, 0.0  ;;  %v4684_v29 = vmax.f32 %v22004_v0, 0.0  ;;  %v4685_v61 = vmax.f32 %v22006_v49, 0.0  ;;  %v4686_v25 = vmax.f32 %v22008_v16, 0.0 }
 0x514   : > { %4749 = vst.msk [vmem:[#allocation3 + $0xb0] sm:$0xff] %vm1388_vm2, %v4671_v41  ;;  %4750 = vst.msk [vmem:[#allocation3 + $0xc8] sm:$0xff] %vm1388_vm2, %v4672_v14  ;;  %v4687_v13 = vmax.f32 %v22010_v2, 0.0  ;;  %v4688_v3 = vmax.f32 %v22012_v36, 0.0  ;;  %v4689_v19 = vmax.f32 %v22014_v9, 0.0  ;;  %v4690_v26 = vmax.f32 %v22016_v38, 0.0 }
 0x515   : > { %4751 = vst.msk [vmem:[#allocation3 + $0xd0] sm:$0xff] %vm1388_vm2, %v4673_v4  ;;  %4752 = vst.msk [vmem:[#allocation3 + $0xe8] sm:$0xff] %vm1388_vm2, %v4674_v51  ;;  %v4692_v46 = vmax.f32 %v22018_v33, 0.0  ;;  %v4693_v60 = vmax.f32 %v22020_v21, 0.0  ;;  %v4773_v27 = vld [vmem:[#allocation3 + $0xf] sm:$0xff]  ;;  %v20176_v0 = vld [vmem:[%s24715_s3 + $0x10] sm:$0xff]  }
 0x516   : > { %4753 = vst.msk [vmem:[#allocation3 + $0xf0] sm:$0xff] %vm1388_vm2, %v4675_v37  ;;  %4754 = vst.msk [vmem:[#allocation3 + $0x108] sm:$0xff] %vm1388_vm2, %v4676_v39  ;;  %v4824_v43 = vld [vmem:[#allocation3 + $0x28] sm:$0xff]  ;;  %v4804_v7 = vpack.c.bf16 %v4773_v27, %v4772_v24 }
 0x517   : > { %4755 = vst.msk [vmem:[#allocation3 + $0x110] sm:$0xff] %vm1388_vm2, %v4677_v59  ;;  %4756 = vst.msk [vmem:[#allocation3 + $0x128] sm:$0xff] %vm1388_vm2, %v4678_v44  ;;  %v4825_v50 = vld [vmem:[#allocation3 + $0x30] sm:$0xff]  ;;  %v4826_v34 = vld [vmem:[#allocation3 + $0x48] sm:$0xff] }
 0x518   : > { %4757 = vst.msk [vmem:[#allocation3 + $0x130] sm:$0xff] %vm1388_vm2, %v4679_v45  ;;  %4758 = vst.msk [vmem:[#allocation3 + $0x148] sm:$0xff] %vm1388_vm2, %v4680_v11  ;;  %v4827_v6 = vld [vmem:[#allocation3 + $0x50] sm:$0xff]  ;;  %v22063_v47 = vpack.c.bf16 %v4825_v50, %v4824_v43  ;;  %v4828_v53 = vld [vmem:[#allocation3 + $0x68] sm:$0xff] }
 0x519   : > { %4759 = vst.msk [vmem:[#allocation3 + $0x150] sm:$0xff] %vm1388_vm2, %v4681_v54  ;;  %4760 = vst.msk [vmem:[#allocation3 + $0x168] sm:$0xff] %vm1388_vm2, %v4682_v20  ;;  %v22065_v8 = vpack.c.bf16 %v4827_v6, %v4826_v34  ;;  %v4829_v23 = vld [vmem:[#allocation3 + $0x70] sm:$0xff]  ;;  %v4830_v10 = vld [vmem:[#allocation3 + $0x88] sm:$0xff] }
 0x51a   : > { %4761 = vst.msk [vmem:[#allocation3 + $0x170] sm:$0xff] %vm1388_vm2, %v4683_v30  ;;  %4762 = vst.msk [vmem:[#allocation3 + $0x188] sm:$0xff] %vm1388_vm2, %v4684_v29  ;;  %v22067_v1 = vpack.c.bf16 %v4829_v23, %v4828_v53  ;;  %v4831_v5 = vld [vmem:[#allocation3 + $0x90] sm:$0xff]  ;;  %17858 = vmatmul.mubr.msk.bf16.vlgmr.msra.gmra.mrb[32].mxu0 %vm1388_vm2, %v22063_v47  ;;  %v4832_v16 = vld [vmem:[#allocation3 + $0xa8] sm:$0xff] }
 0x51b   : > { %4763 = vst.msk [vmem:[#allocation3 + $0x190] sm:$0xff] %vm1388_vm2, %v4685_v61  ;;  %4764 = vst.msk [vmem:[#allocation3 + $0x1a8] sm:$0xff] %vm1388_vm2, %v4686_v25  ;;  %17861 = vmatprep.mubr.msk.bf16.mxu1 %vm1388_vm2, %v22065_v8  ;;  %v22074_v49 = vpack.c.bf16 %v4831_v5, %v4830_v10  ;;  %17890 = vmatpush3.bf16.msra.mxu0 %v21734_v35  ;;  %v4833_v2 = vld [vmem:[#allocation3 + $0xb0] sm:$0xff]  ;;  %v4834_v36 = vld [vmem:[#allocation3 + $0xc8] sm:$0xff] }
 0x51c   : > { %4765 = vst.msk [vmem:[#allocation3 + $0x1b0] sm:$0xff] %vm1388_vm2, %v4687_v13  ;;  %4766 = vst.msk [vmem:[#allocation3 + $0x1c8] sm:$0xff] %vm1388_vm2, %v4688_v3  ;;  %17862 = vmatmul.mubr.msk.bf16.vlgmr.msra.gmra.mrb[32].mxu1 %vm1388_vm2, %v22067_v1  ;;  %17891 = vmatprep.mubr.msk.bf16.mxu0 %vm1388_vm2, %v4804_v7  ;;  %v4835_v9 = vld [vmem:[#allocation3 + $0xd0] sm:$0xff]  ;;  %v22082_v38 = vpack.c.bf16 %v4833_v2, %v4832_v16  ;;  %v4774_v33 = vld [vmem:[#allocation3 + $0x27] sm:$0xff] }
 0x51d   : > { %4767 = vst.msk [vmem:[#allocation3 + $0x1d0] sm:$0xff] %vm1388_vm2, %v4689_v19  ;;  %4768 = vst.msk [vmem:[#allocation3 + $0x1e8] sm:$0xff] %vm1388_vm2, %v4690_v26  ;;  %17865 = vmatprep.mubr.msk.bf16.mxu1 %vm1388_vm2, %v22074_v49  ;;  %17923 = vmatprep.subr.bf16.mxu0 %v20176_v0  ;;  %v4775_v21 = vld [vmem:[#allocation3 + $0x2f] sm:$0xff]  ;;  %v22084_v15 = vpack.c.bf16 %v4835_v9, %v4834_v36  ;;  %v4776_v17 = vld [vmem:[#allocation3 + $0x47] sm:$0xff] }
 0x51e   : > { %4770 = vst.msk [vmem:[#allocation3 + $0x208] sm:$0xff] %vm1388_vm2, %v4692_v46  ;;  %4771 = vst.msk [vmem:[#allocation3 + $0x210] sm:$0xff] %vm1388_vm2, %v4693_v60  ;;  %v4777_v48 = vld [vmem:[#allocation3 + $0x4f] sm:$0xff]  ;;  %v22090_v35 = vpack.c.bf16 %v4775_v21, %v4774_v33  ;;  %v4778_v14 = vld [vmem:[#allocation3 + $0x67] sm:$0xff] }
 0x51f   : > { %v22093_v12 = vld [vmem:[%s24715_s3 + $0x18] sm:$0xff]   ;;  %v22095_v32 = vpack.c.bf16 %v4777_v48, %v4776_v17  ;;  %v4837_v40 = vld [vmem:[#allocation3 + $0xf0] sm:$0xff] }
 0x520   : > { %v4836_v58 = vld [vmem:[#allocation3 + $0xe8] sm:$0xff]  ;;  %v4839_v42 = vld [vmem:[#allocation3 + $0x110] sm:$0xff] }
 0x521   : > { %v4838_v57 = vld [vmem:[#allocation3 + $0x108] sm:$0xff]  ;;  %v22102_v41 = vpack.c.bf16 %v4837_v40, %v4836_v58  ;;  %v4841_v11 = vld [vmem:[#allocation3 + $0x130] sm:$0xff] }
 0x522   : > { %v4779_v4 = vld [vmem:[#allocation3 + $0x6f] sm:$0xff]  ;;  %v22104_v51 = vpack.c.bf16 %v4839_v42, %v4838_v57  ;;  %v4780_v37 = vld [vmem:[#allocation3 + $0x87] sm:$0xff] }
 0x523   : > { %v4781_v39 = vld [vmem:[#allocation3 + $0x8f] sm:$0xff]  ;;  %v22110_v59 = vpack.c.bf16 %v4779_v4, %v4778_v14  ;;  %v4782_v29 = vld [vmem:[#allocation3 + $0xa7] sm:$0xff] }
 0x524   : > { %17866 = vmatmul.mubr.msk.bf16.gmra.mrb[36].mxu1 %vm1388_vm2, %v22082_v38  ;;  %v22112_v44 = vpack.c.bf16 %v4781_v39, %v4780_v37  ;;  %v4840_v45 = vld [vmem:[#allocation3 + $0x128] sm:$0xff]  ;;  %v4843_v20 = vld [vmem:[#allocation3 + $0x150] sm:$0xff] }
 0x525   : > { %17869 = vmatprep.mubr.msk.bf16.mxu1 %vm1388_vm2, %v22084_v15  ;;  %v4842_v54 = vld [vmem:[#allocation3 + $0x148] sm:$0xff]  ;;  %v22118_v30 = vpack.c.bf16 %v4841_v11, %v4840_v45  ;;  %v4845_v60 = vld [vmem:[#allocation3 + $0x170] sm:$0xff] }
 0x526   : > { %17892 = vmatmul.mubr.msk.bf16.vlgmr.msra.gmra.mrb[32].mxu0 %vm1388_vm2, %v22090_v35  ;;  %v4783_v61 = vld [vmem:[#allocation3 + $0xaf] sm:$0xff]  ;;  %v22120_v25 = vpack.c.bf16 %v4843_v20, %v4842_v54  ;;  %v4784_v13 = vld [vmem:[#allocation3 + $0xc7] sm:$0xff] }
 0x527   : > { %17895 = vmatprep.mubr.msk.bf16.mxu0 %vm1388_vm2, %v22095_v32  ;;  %17924 = vmatpush3.bf16.msra.mxu0 %v20176_v0  ;;  %v4785_v3 = vld [vmem:[#allocation3 + $0xcf] sm:$0xff]  ;;  %v22126_v19 = vpack.c.bf16 %v4783_v61, %v4782_v29  ;;  %v4786_v50 = vld [vmem:[#allocation3 + $0xe7] sm:$0xff] }
 0x528   : > { %17957 = vmatprep.subr.bf16.mxu0 %v22093_v12  ;;  %v22128_v26 = vpack.c.bf16 %v4785_v3, %v4784_v13  ;;  %v4844_v46 = vld [vmem:[#allocation3 + $0x168] sm:$0xff]  ;;  %v4847_v27 = vld [vmem:[#allocation3 + $0x190] sm:$0xff] }
 0x529   : > { %v4846_v24 = vld [vmem:[#allocation3 + $0x188] sm:$0xff]  ;;  %v22134_v43 = vpack.c.bf16 %v4845_v60, %v4844_v46  ;;  %v4849_v0 = vld [vmem:[#allocation3 + $0x1b0] sm:$0xff] }
 0x52a   : > { %v4787_v34 = vld [vmem:[#allocation3 + $0xef] sm:$0xff]  ;;  %v22136_v6 = vpack.c.bf16 %v4847_v27, %v4846_v24  ;;  %v4788_v53 = vld [vmem:[#allocation3 + $0x107] sm:$0xff] }
 0x52b   : > { %v4789_v23 = vld [vmem:[#allocation3 + $0x10f] sm:$0xff]  ;;  %v22142_v10 = vpack.c.bf16 %v4787_v34, %v4786_v50  ;;  %v4790_v9 = vld [vmem:[#allocation3 + $0x127] sm:$0xff] }
 0x52c   : > { %17870 = vmatmul.mubr.msk.bf16.gmra.mrb[40].mxu1 %vm1388_vm2, %v22102_v41  ;;  %v22144_v7 = vpack.c.bf16 %v4789_v23, %v4788_v53  ;;  %v4848_v5 = vld [vmem:[#allocation3 + $0x1a8] sm:$0xff]  ;;  %v4851_v2 = vld [vmem:[#allocation3 + $0x1d0] sm:$0xff] }
 0x52d   : > { %17873 = vmatprep.mubr.msk.bf16.mxu1 %vm1388_vm2, %v22104_v51  ;;  %v4850_v16 = vld [vmem:[#allocation3 + $0x1c8] sm:$0xff]  ;;  %v22150_v36 = vpack.c.bf16 %v4849_v0, %v4848_v5  ;;  %v4853_v42 = vld [vmem:[#allocation3 + $0x1f0] sm:$0xff] }
 0x52e   : > { %17896 = vmatmul.mubr.msk.bf16.gmra.mrb[36].mxu0 %vm1388_vm2, %v22110_v59  ;;  %v4791_v33 = vld [vmem:[#allocation3 + $0x12f] sm:$0xff]  ;;  %v22152_v21 = vpack.c.bf16 %v4851_v2, %v4850_v16  ;;  %v4792_v17 = vld [vmem:[#allocation3 + $0x147] sm:$0xff] }
 0x52f   : > { %17899 = vmatprep.mubr.msk.bf16.mxu0 %vm1388_vm2, %v22112_v44  ;;  %v4793_v48 = vld [vmem:[#allocation3 + $0x14f] sm:$0xff]  ;;  %v22158_v58 = vpack.c.bf16 %v4791_v33, %v4790_v9  ;;  %v4794_v4 = vld [vmem:[#allocation3 + $0x167] sm:$0xff] }
 0x530   : > { %v22160_v40 = vpack.c.bf16 %v4793_v48, %v4792_v17  ;;  %v4852_v57 = vld [vmem:[#allocation3 + $0x1e8] sm:$0xff]  ;;  %v5304_v24 = vld [vmem:[#allocation3 + $0x11] sm:$0xff] }
 0x531   : > { %v22166_v14 = vpack.c.bf16 %v4853_v42, %v4852_v57  ;;  %v4795_v37 = vld [vmem:[#allocation3 + $0x16f] sm:$0xff]  ;;  %v4796_v39 = vld [vmem:[#allocation3 + $0x187] sm:$0xff] }
 0x532   : > { %v4797_v45 = vld [vmem:[#allocation3 + $0x18f] sm:$0xff]  ;;  %v22170_v11 = vpack.c.bf16 %v4795_v37, %v4794_v4  ;;  %v4798_v20 = vld [vmem:[#allocation3 + $0x1a7] sm:$0xff] }
 0x533   : > { %v22172_v54 = vpack.c.bf16 %v4797_v45, %v4796_v39  ;;  %v4799_v29 = vld [vmem:[#allocation3 + $0x1af] sm:$0xff]  ;;  %v4800_v61 = vld [vmem:[#allocation3 + $0x1c7] sm:$0xff] }
 0x534   : > { %17874 = vmatmul.mubr.msk.bf16.gmra.mrb[44].mxu1 %vm1388_vm2, %v22118_v30  ;;  %v4801_v13 = vld [vmem:[#allocation3 + $0x1cf] sm:$0xff]  ;;  %v22178_v3 = vpack.c.bf16 %v4799_v29, %v4798_v20  ;;  %v4802_v27 = vld [vmem:[#allocation3 + $0x1e7] sm:$0xff] }
 0x535   : > { %17877 = vmatprep.mubr.msk.bf16.mxu1 %vm1388_vm2, %v22120_v25  ;;  %v22180_v46 = vpack.c.bf16 %v4801_v13, %v4800_v61  ;;  %v5303_v60 = vld [vmem:[#allocation3 + $0x9] sm:$0xff]  ;;  %v5306_v5 = vld [vmem:[#allocation3 + $0x31] sm:$0xff] }
 0x536   : > { %17900 = vmatmul.mubr.msk.bf16.gmra.mrb[40].mxu0 %vm1388_vm2, %v22126_v19  ;;  %v4803_v50 = vld [vmem:[#allocation3 + $0x1ef] sm:$0xff]  ;;  %v5335_v34 = vpack.c.bf16 %v5304_v24, %v5303_v60 }
 0x537   : > { %17903 = vmatprep.mubr.msk.bf16.mxu0 %vm1388_vm2, %v22128_v26  ;;  %v22186_v53 = vpack.c.bf16 %v4803_v50, %v4802_v27  ;;  %v5305_v23 = vld [vmem:[#allocation3 + $0x29] sm:$0xff]  ;;  %v5308_v16 = vld [vmem:[#allocation3 + $0x51] sm:$0xff] }
 0x538   : > { %v5307_v0 = vld [vmem:[#allocation3 + $0x49] sm:$0xff]  ;;  %v22191_v2 = vpack.c.bf16 %v5306_v5, %v5305_v23  ;;  %v5310_v48 = vld [vmem:[#allocation3 + $0x71] sm:$0xff] }
 0x539   : > { %v20178_v9 = vld [vmem:[%s24715_s3 + $0x20] sm:$0xff]   ;;  %v22194_v33 = vpack.c.bf16 %v5308_v16, %v5307_v0 }
 0x53a   : > { %v5309_v17 = vld [vmem:[#allocation3 + $0x69] sm:$0xff]  ;;  %v5312_v42 = vld [vmem:[#allocation3 + $0x91] sm:$0xff] }
 0x53b   : > { %v5311_v57 = vld [vmem:[#allocation3 + $0x89] sm:$0xff]  ;;  %v22201_v4 = vpack.c.bf16 %v5310_v48, %v5309_v17  ;;  %v5314_v45 = vld [vmem:[#allocation3 + $0xb1] sm:$0xff] }
 0x53c   : > { %17878 = vmatmul.mubr.msk.bf16.gmra.mrb[48].mxu1 %vm1388_vm2, %v22134_v43  ;;  %v22203_v37 = vpack.c.bf16 %v5312_v42, %v5311_v57  ;;  %v5313_v39 = vld [vmem:[#allocation3 + $0xa9] sm:$0xff]  ;;  %v5316_v29 = vld [vmem:[#allocation3 + $0xd1] sm:$0xff] }
 0x53d   : > { %17881 = vmatprep.mubr.msk.bf16.mxu1 %vm1388_vm2, %v22136_v6  ;;  %v5315_v20 = vld [vmem:[#allocation3 + $0xc9] sm:$0xff]  ;;  %v5318_v60 = vld [vmem:[#allocation3 + $0xf1] sm:$0xff] }
 0x53e   : > { %17904 = vmatmul.mubr.msk.bf16.gmra.mrb[44].mxu0 %vm1388_vm2, %v22142_v10  ;;  %v22211_v61 = vpack.c.bf16 %v5316_v29, %v5315_v20  ;;  %v5317_v13 = vld [vmem:[#allocation3 + $0xe9] sm:$0xff]  ;;  %v5320_v27 = vld [vmem:[#allocation3 + $0x111] sm:$0xff] }
 0x53f   : > { %17907 = vmatprep.mubr.msk.bf16.mxu0 %vm1388_vm2, %v22144_v7  ;;  %v5319_v24 = vld [vmem:[#allocation3 + $0x109] sm:$0xff]  ;;  %v22217_v50 = vpack.c.bf16 %v5318_v60, %v5317_v13  ;;  %v5322_v5 = vld [vmem:[#allocation3 + $0x131] sm:$0xff] }
 0x540   : > { %v5321_v23 = vld [vmem:[#allocation3 + $0x129] sm:$0xff]  ;;  %v5324_v16 = vld [vmem:[#allocation3 + $0x151] sm:$0xff] }
 0x541   : > { %v5323_v0 = vld [vmem:[#allocation3 + $0x149] sm:$0xff]  ;;  %v22225_v17 = vpack.c.bf16 %v5322_v5, %v5321_v23  ;;  %v5326_v42 = vld [vmem:[#allocation3 + $0x171] sm:$0xff] }
 0x542   : > { %v22227_v48 = vpack.c.bf16 %v5324_v16, %v5323_v0  ;;  %v5325_v57 = vld [vmem:[#allocation3 + $0x169] sm:$0xff]  ;;  %v5330_v60 = vld [vmem:[#allocation3 + $0x1b1] sm:$0xff] }
 0x543   : > { %v22233_v20 = vpack.c.bf16 %v5326_v42, %v5325_v57  ;;  %v5329_v13 = vld [vmem:[#allocation3 + $0x1a9] sm:$0xff]  ;;  %v5334_v16 = vld [vmem:[#allocation3 + $0x1f1] sm:$0xff] }
 0x544   : > { %17882 = vmatmul.mubr.msk.bf16.gmra.mrb[52].mxu1 %vm1388_vm2, %v22150_v36  ;;  %v22241_v23 = vpack.c.bf16 %v5330_v60, %v5329_v13  ;;  %v5333_v0 = vld [vmem:[#allocation3 + $0x1e9] sm:$0xff]  ;;  %v20179_v42 = vld [vmem:[%s24715_s3 + $0x28] sm:$0xff]  }
 0x545   : > { %17885 = vmatprep.mubr.msk.bf16.mxu1 %vm1388_vm2, %v22152_v21  ;;  %v22249_v57 = vpack.c.bf16 %v5334_v16, %v5333_v0  ;;  %v5930_v28 = vld [vmem:[#allocation3 + $0x210] sm:$0xff] }
 0x546   : > { %17908 = vmatmul.mubr.msk.bf16.gmra.mrb[48].mxu0 %vm1388_vm2, %v22158_v58 }
 0x547   : > { %17911 = vmatprep.mubr.msk.bf16.mxu0 %vm1388_vm2, %v22160_v40 }
 0x54c   : > { %17886 = vmatmul.mubr.msk.bf16.gmra.mrb[56].mxu1 %vm1388_vm2, %v22166_v14 }
 0x54e   : > { %17912 = vmatmul.mubr.msk.bf16.gmra.mrb[52].mxu0 %vm1388_vm2, %v22170_v11 }
 0x54f   : > { %17915 = vmatprep.mubr.msk.bf16.mxu0 %vm1388_vm2, %v22172_v54 }
 0x556   : > { %17916 = vmatmul.mubr.msk.bf16.gmra.mrb[56].mxu0 %vm1388_vm2, %v22178_v3 }
 0x557   : > { %17919 = vmatprep.mubr.msk.bf16.mxu0 %vm1388_vm2, %v22180_v46 }
 0x55e   : > { %17920 = vmatmul.mubr.msk.bf16.gmra.mrb[60].mxu0 %vm1388_vm2, %v22186_v53 }
 0x55f   : > { %17925 = vmatprep.mubr.msk.bf16.mxu0 %vm1388_vm2, %v5335_v34  ;;  %v22219_v34 = vpack.c.bf16 %v5320_v27, %v5319_v24  ;;  %v5331_v24 = vld [vmem:[#allocation3 + $0x1c9] sm:$0xff]  ;;  %v5332_v27 = vld [vmem:[#allocation3 + $0x1d1] sm:$0xff] }
 0x560   : > { %v22243_v5 = vpack.c.bf16 %v5332_v27, %v5331_v24 }
 0x566   : > { %17926 = vmatmul.mubr.msk.bf16.vlgmr.msra.gmra.mrb[32].mxu0 %vm1388_vm2, %v22191_v2 }
 0x567   : > { %17929 = vmatprep.mubr.msk.bf16.mxu0 %vm1388_vm2, %v22194_v33  ;;  %17958 = vmatpush3.bf16.msra.mxu0 %v22093_v12  ;;  %v22209_v12 = vpack.c.bf16 %v5314_v45, %v5313_v39  ;;  %v5327_v39 = vld [vmem:[#allocation3 + $0x189] sm:$0xff]  ;;  %v5328_v45 = vld [vmem:[#allocation3 + $0x191] sm:$0xff] }
 0x568   : > { %17991 = vmatprep.subr.bf16.mxu0 %v20178_v9  ;;  %v22235_v29 = vpack.c.bf16 %v5328_v45, %v5327_v39  ;;  %v20180_v45 = vld [vmem:[%s24715_s3 + $0x30] sm:$0xff]  }
 0x56e   : > { %17930 = vmatmul.mubr.msk.bf16.gmra.mrb[36].mxu0 %vm1388_vm2, %v22201_v4 }
 0x56f   : > { %17933 = vmatprep.mubr.msk.bf16.mxu0 %vm1388_vm2, %v22203_v37 }
 0x576   : > { %17934 = vmatmul.mubr.msk.bf16.gmra.mrb[40].mxu0 %vm1388_vm2, %v22209_v12 }
 0x577   : > { %17937 = vmatprep.mubr.msk.bf16.mxu0 %vm1388_vm2, %v22211_v61 }
 0x57e   : > { %17938 = vmatmul.mubr.msk.bf16.gmra.mrb[44].mxu0 %vm1388_vm2, %v22217_v50 }
 0x57f   : > { %17941 = vmatprep.mubr.msk.bf16.mxu0 %vm1388_vm2, %v22219_v34 }
 0x586   : > { %17942 = vmatmul.mubr.msk.bf16.gmra.mrb[48].mxu0 %vm1388_vm2, %v22225_v17 }
 0x587   : > { %17945 = vmatprep.mubr.msk.bf16.mxu0 %vm1388_vm2, %v22227_v48 }
 0x58e   : > { %17946 = vmatmul.mubr.msk.bf16.gmra.mrb[52].mxu0 %vm1388_vm2, %v22233_v20 }
 0x58f   : > { %17949 = vmatprep.mubr.msk.bf16.mxu0 %vm1388_vm2, %v22235_v29 }
 0x596   : > { %17950 = vmatmul.mubr.msk.bf16.gmra.mrb[56].mxu0 %vm1388_vm2, %v22241_v23 }
 0x597   : > { %17953 = vmatprep.mubr.msk.bf16.mxu0 %vm1388_vm2, %v22243_v5 }
 0x59e   : > { %17954 = vmatmul.mubr.msk.bf16.gmra.mrb[60].mxu0 %vm1388_vm2, %v22249_v57 }
 0x59f   : > { %17959 = vmatprep.mubr.msk.bf16.mxu0 %vm1388_vm2, %v22090_v35  ;;  %v5631_v35 = vld [vmem:[#allocation3 + $0x207] sm:$0xff] }
 0x5a6   : > { %17960 = vmatmul.mubr.msk.bf16.vlgmr.msra.gmra.mrb[32].mxu0 %vm1388_vm2, %v22095_v32 }
 0x5a7   : > { %17963 = vmatprep.mubr.msk.bf16.mxu0 %vm1388_vm2, %v22110_v59  ;;  %17992 = vmatpush3.bf16.msra.mxu0 %v20178_v9  ;;  %v5632_v9 = vld [vmem:[#allocation3 + $0x20f] sm:$0xff] }
 0x5a8   : > { %18025 = vmatprep.subr.bf16.mxu0 %v20179_v42  ;;  %v22284_v39 = vpack.c.bf16 %v5632_v9, %v5631_v35 }
 0x5ae   : > { %17964 = vmatmul.mubr.msk.bf16.gmra.mrb[36].mxu0 %vm1388_vm2, %v22112_v44 }
 0x5af   : > { %17967 = vmatprep.mubr.msk.bf16.mxu0 %vm1388_vm2, %v22126_v19 }
 0x5b6   : > { %17968 = vmatmul.mubr.msk.bf16.gmra.mrb[40].mxu0 %vm1388_vm2, %v22128_v26 }
 0x5b7   : > { %17971 = vmatprep.mubr.msk.bf16.mxu0 %vm1388_vm2, %v22142_v10 }
 0x5be   : > { %17972 = vmatmul.mubr.msk.bf16.gmra.mrb[44].mxu0 %vm1388_vm2, %v22144_v7 }
 0x5bf   : > { %17975 = vmatprep.mubr.msk.bf16.mxu0 %vm1388_vm2, %v22158_v58 }
 0x5c6   : > { %17976 = vmatmul.mubr.msk.bf16.gmra.mrb[48].mxu0 %vm1388_vm2, %v22160_v40 }
 0x5c7   : > { %17979 = vmatprep.mubr.msk.bf16.mxu0 %vm1388_vm2, %v22170_v11 }
 0x5ce   : > { %17980 = vmatmul.mubr.msk.bf16.gmra.mrb[52].mxu0 %vm1388_vm2, %v22172_v54 }
 0x5cf   : > { %17983 = vmatprep.mubr.msk.bf16.mxu0 %vm1388_vm2, %v22178_v3 }
 0x5d6   : > { %17984 = vmatmul.mubr.msk.bf16.gmra.mrb[56].mxu0 %vm1388_vm2, %v22180_v46 }
 0x5d7   : > { %17987 = vmatprep.mubr.msk.bf16.mxu0 %vm1388_vm2, %v22186_v53 }
 0x5de   : > { %17988 = vmatmul.mubr.msk.bf16.gmra.mrb[60].mxu0 %vm1388_vm2, %v22284_v39 }
 0x5df   : > { %17993 = vmatprep.mubr.msk.bf16.mxu0 %vm1388_vm2, %v22063_v47 }
 0x5e6   : > { %17994 = vmatmul.mubr.msk.bf16.vlgmr.msra.gmra.mrb[32].mxu0 %vm1388_vm2, %v22065_v8 }
 0x5e7   : > { %17997 = vmatprep.mubr.msk.bf16.mxu0 %vm1388_vm2, %v22067_v1  ;;  %18026 = vmatpush3.bf16.msra.mxu0 %v20179_v42 }
 0x5e8   : > { %18059 = vmatprep.subr.bf16.mxu0 %v20180_v45 }
 0x5ee   : > { %17998 = vmatmul.mubr.msk.bf16.gmra.mrb[36].mxu0 %vm1388_vm2, %v22074_v49 }
 0x5ef   : > { %v22295_v13 = vpop.f32.mrb[32].mxu1  ;;  %18001 = vmatprep.mubr.msk.bf16.mxu0 %vm1388_vm2, %v22082_v38 }
 0x5f0   : > { %v22299_v60 = vpop.f32.mrb[33].mxu1 }
 0x5f1   : > { %v22303_v47 = vpop.f32.mrb[34].mxu1 }
 0x5f2   : > { %v22305_v24 = vpop.f32.mrb[35].mxu1 }
 0x5f6   : > { %18002 = vmatmul.mubr.msk.bf16.gmra.mrb[40].mxu0 %vm1388_vm2, %v22084_v15 }
 0x5f7   : > { %v22307_v27 = vpop.f32.mrb[36].mxu1  ;;  %18005 = vmatprep.mubr.msk.bf16.mxu0 %vm1388_vm2, %v22102_v41 }
 0x5f8   : > { %24748 = vst [vmem:[#allocation68_spill] sm:$0xff] %v22307_v27  ;;  %v22311_v0 = vpop.f32.mrb[37].mxu1 }
 0x5f9   : > { %24749 = vst [vmem:[#allocation69_spill] sm:$0xff] %v22311_v0  ;;  %v22315_v16 = vpop.f32.mrb[38].mxu1 }
 0x5fa   : > { %24750 = vst [vmem:[#allocation70_spill] sm:$0xff] %v22315_v16  ;;  %v22317_v42 = vpop.f32.mrb[39].mxu1 }
 0x5fb   : > { %24751 = vst [vmem:[#allocation71_spill] sm:$0xff] %v22317_v42 }
 0x5fe   : > { %18006 = vmatmul.mubr.msk.bf16.gmra.mrb[44].mxu0 %vm1388_vm2, %v22104_v51 }
 0x5ff   : > { %v22319_v35 = vpop.f32.mrb[40].mxu1  ;;  %18009 = vmatprep.mubr.msk.bf16.mxu0 %vm1388_vm2, %v22118_v30 }
 0x600   : > { %24752 = vst [vmem:[#allocation72_spill] sm:$0xff] %v22319_v35  ;;  %v22323_v9 = vpop.f32.mrb[41].mxu1 }
 0x601   : > { %24753 = vst [vmem:[#allocation73_spill] sm:$0xff] %v22323_v9  ;;  %v22327_v52 = vpop.f32.mrb[42].mxu1 }
 0x602   : > { %24754 = vst [vmem:[#allocation74_spill] sm:$0xff] %v22327_v52  ;;  %v22329_v0 = vpop.f32.mrb[43].mxu1 }
 0x603   : > { %24755 = vst [vmem:[#allocation75_spill] sm:$0xff] %v22329_v0 }
 0x606   : > { %18010 = vmatmul.mubr.msk.bf16.gmra.mrb[48].mxu0 %vm1388_vm2, %v22120_v25 }
 0x607   : > { %v22331_v27 = vpop.f32.mrb[44].mxu1  ;;  %18013 = vmatprep.mubr.msk.bf16.mxu0 %vm1388_vm2, %v22134_v43 }
 0x608   : > { %24756 = vst [vmem:[#allocation76_spill] sm:$0xff] %v22331_v27  ;;  %v22335_v42 = vpop.f32.mrb[45].mxu1 }
 0x609   : > { %24757 = vst [vmem:[#allocation77_spill] sm:$0xff] %v22335_v42  ;;  %v22339_v35 = vpop.f32.mrb[46].mxu1 }
 0x60a   : > { %24758 = vst [vmem:[#allocation78_spill] sm:$0xff] %v22339_v35  ;;  %v22341_v9 = vpop.f32.mrb[47].mxu1  ;;  %v5929_v35 = vld [vmem:[#allocation3 + $0x208] sm:$0xff] }
 0x60b   : > { %24759 = vst [vmem:[#allocation79_spill] sm:$0xff] %v22341_v9 }
 0x60e   : > { %18014 = vmatmul.mubr.msk.bf16.gmra.mrb[52].mxu0 %vm1388_vm2, %v22136_v6 }
 0x60f   : > { %v22343_v16 = vpop.f32.mrb[48].mxu1  ;;  %18017 = vmatprep.mubr.msk.bf16.mxu0 %vm1388_vm2, %v22150_v36 }
 0x610   : > { %24760 = vst [vmem:[#allocation80_spill] sm:$0xff] %v22343_v16  ;;  %v22347_v0 = vpop.f32.mrb[49].mxu1 }
 0x611   : > { %24761 = vst [vmem:[#allocation81_spill] sm:$0xff] %v22347_v0  ;;  %v22351_v27 = vpop.f32.mrb[50].mxu1 }
 0x612   : > { %24762 = vst [vmem:[#allocation82_spill] sm:$0xff] %v22351_v27  ;;  %v22353_v42 = vpop.f32.mrb[51].mxu1  ;;  %v22367_v27 = vpack.c.bf16 %v5930_v28, %v5929_v35  ;;  %v6227_v28 = vld [vmem:[#allocation3 + $0x209] sm:$0xff] }
 0x613   : > { %24763 = vst [vmem:[#allocation83_spill] sm:$0xff] %v22353_v42  ;;  %v20182_v35 = vld [vmem:[%s24715_s3 + $0x40] sm:$0xff]  }
 0x616   : > { %18018 = vmatmul.mubr.msk.bf16.gmra.mrb[56].mxu0 %vm1388_vm2, %v22152_v21 }
 0x617   : > { %v22355_v52 = vpop.f32.mrb[52].mxu1  ;;  %18021 = vmatprep.mubr.msk.bf16.mxu0 %vm1388_vm2, %v22166_v14 }
 0x618   : > { %24764 = vst [vmem:[#allocation84_spill] sm:$0xff] %v22355_v52  ;;  %v22359_v9 = vpop.f32.mrb[53].mxu1 }
 0x619   : > { %24765 = vst [vmem:[#allocation85_spill] sm:$0xff] %v22359_v9  ;;  %v22363_v16 = vpop.f32.mrb[54].mxu1 }
 0x61a   : > { %24766 = vst [vmem:[#allocation86_spill] sm:$0xff] %v22363_v16  ;;  %v22365_v0 = vpop.f32.mrb[55].mxu1  ;;  %v20181_v16 = vld [vmem:[%s24715_s3 + $0x38] sm:$0xff]   ;;  %s24841_s3 = sld [smem:[#allocation23_spill]] }
 0x61e   : > { %18022 = vmatmul.mubr.msk.bf16.gmra.mrb[60].mxu0 %vm1388_vm2, %v22367_v27 }
 0x61f   : > { %v22369_v42 = vpop.f32.mrb[56].mxu1  ;;  %18027 = vmatprep.mubr.msk.bf16.mxu0 %vm1388_vm2, %v22191_v2  ;;  %v6228_v2 = vld [vmem:[#allocation3 + $0x211] sm:$0xff] }
 0x620   : > { %v22373_v52 = vpop.f32.mrb[57].mxu1 }
 0x621   : > { %v22377_v9 = vpop.f32.mrb[58].mxu1 }
 0x622   : > { %v22379_v31 = vpop.f32.mrb[59].mxu1 }
 0x626   : > { %18028 = vmatmul.mubr.msk.bf16.vlgmr.msra.gmra.mrb[32].mxu0 %vm1388_vm2, %v22194_v33 }
 0x627   : > { %18031 = vmatprep.mubr.msk.bf16.mxu0 %vm1388_vm2, %v22201_v4  ;;  %18060 = vmatpush3.bf16.msra.mxu0 %v20180_v45  ;;  %v6244_v45 = vpack.c.bf16 %v6228_v2, %v6227_v28 }
 0x628   : > { %18093 = vmatprep.subr.bf16.mxu0 %v20181_v16 }
 0x62e   : > { %18032 = vmatmul.mubr.msk.bf16.gmra.mrb[36].mxu0 %vm1388_vm2, %v22203_v37 }
 0x62f   : > { %18035 = vmatprep.mubr.msk.bf16.mxu0 %vm1388_vm2, %v22209_v12 }
 0x636   : > { %18036 = vmatmul.mubr.msk.bf16.gmra.mrb[40].mxu0 %vm1388_vm2, %v22211_v61 }
 0x637   : > { %18039 = vmatprep.mubr.msk.bf16.mxu0 %vm1388_vm2, %v22217_v50 }
 0x63e   : > { %18040 = vmatmul.mubr.msk.bf16.gmra.mrb[44].mxu0 %vm1388_vm2, %v22219_v34 }
 0x63f   : > { %18043 = vmatprep.mubr.msk.bf16.mxu0 %vm1388_vm2, %v22225_v17 }
 0x646   : > { %18044 = vmatmul.mubr.msk.bf16.gmra.mrb[48].mxu0 %vm1388_vm2, %v22227_v48 }
 0x647   : > { %18047 = vmatprep.mubr.msk.bf16.mxu0 %vm1388_vm2, %v22233_v20 }
 0x64e   : > { %18048 = vmatmul.mubr.msk.bf16.gmra.mrb[52].mxu0 %vm1388_vm2, %v22235_v29 }
 0x64f   : > { %18051 = vmatprep.mubr.msk.bf16.mxu0 %vm1388_vm2, %v22241_v23 }
 0x656   : > { %18052 = vmatmul.mubr.msk.bf16.gmra.mrb[56].mxu0 %vm1388_vm2, %v22243_v5 }
 0x657   : > { %18055 = vmatprep.mubr.msk.bf16.mxu0 %vm1388_vm2, %v22249_v57 }
 0x65e   : > { %18056 = vmatmul.mubr.msk.bf16.gmra.mrb[60].mxu0 %vm1388_vm2, %v6244_v45 }
 0x65f   : > { %18061 = vmatprep.mubr.msk.bf16.mxu0 %vm1388_vm2, %v22095_v32  ;;  %v6526_v32 = vld [vmem:[#allocation3 + $0x227] sm:$0xff] }
 0x666   : > { %18062 = vmatmul.mubr.msk.bf16.vlgmr.msra.gmra.mrb[32].mxu0 %vm1388_vm2, %v22110_v59  ;;  %v6527_v59 = vld [vmem:[#allocation3 + $0x22f] sm:$0xff] }
 0x667   : > { %18065 = vmatprep.mubr.msk.bf16.mxu0 %vm1388_vm2, %v22112_v44  ;;  %18094 = vmatpush3.bf16.msra.mxu0 %v20181_v16  ;;  %v6543_v44 = vpack.c.bf16 %v6527_v59, %v6526_v32 }
 0x668   : > { %18127 = vmatprep.subr.bf16.mxu0 %v20182_v35 }
 0x66e   : > { %18066 = vmatmul.mubr.msk.bf16.gmra.mrb[36].mxu0 %vm1388_vm2, %v22126_v19 }
 0x66f   : > { %18069 = vmatprep.mubr.msk.bf16.mxu0 %vm1388_vm2, %v22128_v26 }
 0x676   : > { %18070 = vmatmul.mubr.msk.bf16.gmra.mrb[40].mxu0 %vm1388_vm2, %v22142_v10 }
 0x677   : > { %18073 = vmatprep.mubr.msk.bf16.mxu0 %vm1388_vm2, %v22144_v7 }
 0x67e   : > { %18074 = vmatmul.mubr.msk.bf16.gmra.mrb[44].mxu0 %vm1388_vm2, %v22158_v58 }
 0x67f   : > { %18077 = vmatprep.mubr.msk.bf16.mxu0 %vm1388_vm2, %v22160_v40 }
 0x686   : > { %18078 = vmatmul.mubr.msk.bf16.gmra.mrb[48].mxu0 %vm1388_vm2, %v22170_v11 }
 0x687   : > { %18081 = vmatprep.mubr.msk.bf16.mxu0 %vm1388_vm2, %v22172_v54 }
 0x68e   : > { %18082 = vmatmul.mubr.msk.bf16.gmra.mrb[52].mxu0 %vm1388_vm2, %v22178_v3 }
 0x68f   : > { %18085 = vmatprep.mubr.msk.bf16.mxu0 %vm1388_vm2, %v22180_v46 }
 0x696   : > { %18086 = vmatmul.mubr.msk.bf16.gmra.mrb[56].mxu0 %vm1388_vm2, %v22186_v53 }
 0x697   : > { %18089 = vmatprep.mubr.msk.bf16.mxu0 %vm1388_vm2, %v22284_v39 }
 0x69e   : > { %18090 = vmatmul.mubr.msk.bf16.gmra.mrb[60].mxu0 %vm1388_vm2, %v6543_v44 }
 0x69f   : > { %18095 = vmatprep.mubr.msk.bf16.mxu0 %vm1388_vm2, %v22065_v8  ;;  %v6824_v8 = vld [vmem:[#allocation3 + $0x228] sm:$0xff] }
 0x6a6   : > { %18096 = vmatmul.mubr.msk.bf16.vlgmr.msra.gmra.mrb[32].mxu0 %vm1388_vm2, %v22067_v1  ;;  %v6825_v1 = vld [vmem:[#allocation3 + $0x230] sm:$0xff] }
 0x6a7   : > { %18099 = vmatprep.mubr.msk.bf16.mxu0 %vm1388_vm2, %v22074_v49  ;;  %18128 = vmatpush3.bf16.msra.mxu0 %v20182_v35  ;;  %v6841_v49 = vpack.c.bf16 %v6825_v1, %v6824_v8 }
 0x6ae   : > { %18100 = vmatmul.mubr.msk.bf16.gmra.mrb[36].mxu0 %vm1388_vm2, %v22082_v38  ;;  %v7122_v38 = vld [vmem:[#allocation3 + $0x229] sm:$0xff] }
 0x6af   : > { %18103 = vmatprep.mubr.msk.bf16.mxu0 %vm1388_vm2, %v22084_v15  ;;  %v7123_v15 = vld [vmem:[#allocation3 + $0x231] sm:$0xff] }
 0x6b6   : > { %18104 = vmatmul.mubr.msk.bf16.gmra.mrb[40].mxu0 %vm1388_vm2, %v22102_v41  ;;  %v7139_v41 = vpack.c.bf16 %v7123_v15, %v7122_v38 }
 0x6b7   : > { %18107 = vmatprep.mubr.msk.bf16.mxu0 %vm1388_vm2, %v22104_v51 }
 0x6be   : > { %18108 = vmatmul.mubr.msk.bf16.gmra.mrb[44].mxu0 %vm1388_vm2, %v22118_v30  ;;  %v22505_v30 = vld [vmem:[%s24767_s8] ss:$0 sm:$0xff] }
 0x6bf   : > { %18111 = vmatprep.mubr.msk.bf16.mxu0 %vm1388_vm2, %v22120_v25 }
 0x6c6   : > { %18112 = vmatmul.mubr.msk.bf16.gmra.mrb[48].mxu0 %vm1388_vm2, %v22134_v43 }
 0x6c7   : > { %18115 = vmatprep.mubr.msk.bf16.mxu0 %vm1388_vm2, %v22136_v6 }
 0x6ce   : > { %18116 = vmatmul.mubr.msk.bf16.gmra.mrb[52].mxu0 %vm1388_vm2, %v22150_v36 }
 0x6cf   : > { %18119 = vmatprep.mubr.msk.bf16.mxu0 %vm1388_vm2, %v22152_v21 }
 0x6d6   : > { %18120 = vmatmul.mubr.msk.bf16.gmra.mrb[56].mxu0 %vm1388_vm2, %v22166_v14 }
 0x6d7   : > { %18123 = vmatprep.mubr.msk.bf16.mxu0 %vm1388_vm2, %v22367_v27 }
 0x6de   : > { %18124 = vmatmul.mubr.msk.bf16.gmra.mrb[60].mxu0 %vm1388_vm2, %v6841_v49 }
 0x6df   : > { %18129 = vmatprep.mubr.msk.bf16.mxu0 %vm1388_vm2, %v22194_v33 }
 0x6e6   : > { %18130 = vmatmul.mubr.msk.bf16.vlgmr.msra.gmra.mrb[32].mxu0 %vm1388_vm2, %v22201_v4 }
 0x6e7   : > { %18133 = vmatprep.mubr.msk.bf16.mxu0 %vm1388_vm2, %v22203_v37 }
 0x6ee   : > { %18134 = vmatmul.mubr.msk.bf16.gmra.mrb[36].mxu0 %vm1388_vm2, %v22209_v12 }
 0x6ef   : > { %18137 = vmatprep.mubr.msk.bf16.mxu0 %vm1388_vm2, %v22211_v61 }
 0x6f6   : > { %18138 = vmatmul.mubr.msk.bf16.gmra.mrb[40].mxu0 %vm1388_vm2, %v22217_v50 }
 0x6f7   : > { %18141 = vmatprep.mubr.msk.bf16.mxu0 %vm1388_vm2, %v22219_v34 }
 0x6fe   : > { %18142 = vmatmul.mubr.msk.bf16.gmra.mrb[44].mxu0 %vm1388_vm2, %v22225_v17 }
 0x6ff   : > { %18145 = vmatprep.mubr.msk.bf16.mxu0 %vm1388_vm2, %v22227_v48 }
 0x706   : > { %18146 = vmatmul.mubr.msk.bf16.gmra.mrb[48].mxu0 %vm1388_vm2, %v22233_v20 }
 0x707   : > { %18149 = vmatprep.mubr.msk.bf16.mxu0 %vm1388_vm2, %v22235_v29  ;;  %v20183_v29 = vld [vmem:[%s20452_s19 + $0x8] sm:$0xff]  }
 0x708   : > { %18161 = vmatprep.subr.bf16.mxu1 %v20183_v29 }
 0x709   : > { %18162 = vmatpush3.bf16.msra.mxu1 %v20183_v29 }
 0x70e   : > { %18150 = vmatmul.mubr.msk.bf16.gmra.mrb[52].mxu0 %vm1388_vm2, %v22241_v23  ;;  %v7874_v23 = vld [vmem:[#allocation4 + $0x8] sm:$0xff] }
 0x70f   : > { %18153 = vmatprep.mubr.msk.bf16.mxu0 %vm1388_vm2, %v22243_v5  ;;  %v7875_v5 = vld [vmem:[#allocation4 + $0x10] sm:$0xff] }
 0x716   : > { %18154 = vmatmul.mubr.msk.bf16.gmra.mrb[56].mxu0 %vm1388_vm2, %v22249_v57 }
 0x717   : > { %18157 = vmatprep.mubr.msk.bf16.mxu0 %vm1388_vm2, %v6244_v45  ;;  %v24769_v45 = vld [vmem:[#allocation40_spill] sm:$0xff] }
 0x71e   : > { %18158 = vmatmul.mubr.msk.bf16.gmra.mrb[60].mxu0 %vm1388_vm2, %v7139_v41 }
 0x7b9   : > { %v18131_v51 = vpop.f32.mrb[32].mxu0 }
 0x7ba   : > { %v7392_v25 = vadd.f32 %v18131_v51, %v20692_v55  ;;  %v7231_v19 = vpop.f32.mrb[33].mxu0 }
 0x7bb   : > { %v7390_v26 = vadd.f32 %v7231_v19, %v20695_v56  ;;  %v18132_v43 = vpop.f32.mrb[34].mxu0 }
 0x7bc   : > { %v22510_v6 = vadd.f32 %v22505_v30, %v7392_v25  ;;  %v7234_v10 = vpop.f32.mrb[35].mxu0  ;;  %v7393_v36 = vadd.f32 %v18132_v43, %v20753_v62 }
 0x7bd   : > { %v22513_v7 = vadd.f32 %v22505_v30, %v7390_v26  ;;  %v7391_v21 = vadd.f32 %v7234_v10, %v20756_v63 }
 0x7be   : > { %v7534_v58 = vmul.f32 %v22510_v6, %v22510_v6  ;;  %v22527_v14 = vadd.f32 %v22505_v30, %v7393_v36  ;;  %v7466_v54 = vsel %vm1388_vm2, %v22510_v6, 0.0 }
 0x7bf   : > { %v7532_v55 = vmul.f32 %v22513_v7, %v22513_v7  ;;  %v22522_v56 = vadd.f32 %v22505_v30, %v7391_v21  ;;  %v7463_v40 = vsel %vm1388_vm2, %v22513_v7, 0.0 }
 0x7c0   : > { %v7567_v33 = vsel %vm1388_vm2, %v7534_v58, 0.0  ;;  %v7535_v57 = vmul.f32 %v22527_v14, %v22527_v14 }
 0x7c1   : > { %v7464_v62 = vsel %vm1388_vm2, %v22522_v56, 0.0  ;;  %v7533_v63 = vmul.f32 %v22522_v56, %v22522_v56  ;;  %v18135_v11 = vpop.f32.mrb[36].mxu0  ;;  %v7564_v4 = vsel %vm1388_vm2, %v7532_v55, 0.0  ;;  %v24770_v55 = vld [vmem:[#allocation68_spill] sm:$0xff] }
 0x7c2   : > { %v7465_v3 = vadd.f32 %v7464_v62, %v7463_v40  ;;  %v19071_v46 = vadd.f32 %v18135_v11, %v22295_v13  ;;  %v7247_v53 = vpop.f32.mrb[37].mxu0  ;;  %v7569_v59 = vsel %vm1388_vm2, %v7535_v57, 0.0  ;;  %v24771_v11 = vld [vmem:[#allocation69_spill] sm:$0xff] }
 0x7c3   : > { %v7565_v37 = vsel %vm1388_vm2, %v7533_v63, 0.0  ;;  %v19072_v12 = vadd.f32 %v7247_v53, %v22299_v60  ;;  %v18136_v61 = vpop.f32.mrb[38].mxu0  ;;  %v7906_v60 = vpack.c.bf16 %v7875_v5, %v7874_v23  ;;  %v24773_v53 = vld [vmem:[#allocation71_spill] sm:$0xff]  ;;  %v24777_v23 = vld [vmem:[#allocation44_spill] sm:$0xff] }
 0x7c4   : > { %v7467_v50 = vadd.f32 %v7466_v54, %v7465_v3  ;;  %v7566_v34 = vadd.f32 %v7565_v37, %v7564_v4  ;;  %v7396_v17 = vadd.f32 %v19071_v46, %v21002_v22  ;;  %v19073_v48 = vadd.f32 %v18136_v61, %v22303_v47  ;;  %v7250_v20 = vpop.f32.mrb[39].mxu0  ;;  %v24768_v22 = vld [vmem:[#allocation41_spill] sm:$0xff]  ;;  %v24772_v3 = vld [vmem:[#allocation70_spill] sm:$0xff]  ;;  %v24774_v61 = vld [vmem:[#allocation43_spill] sm:$0xff] }
 0x7c5   : > { %v7394_v39 = vadd.f32 %v19072_v12, %v20999_v18  ;;  %v19074_v13 = vadd.f32 %v7250_v20, %v22305_v24  ;;  %v7468_v47 = vsel %vm1388_vm2, %v22527_v14, 0.0  ;;  %18163 = vmatprep.mubr.msk.bf16.mxu1 %vm1388_vm2, %v7906_v60  ;;  %v22559_v18 = vld [vmem:[%s20452_s19] sm:$0xff]  }
 0x7c6   : > { %v7568_v27 = vadd.f32 %v7567_v33, %v7566_v34  ;;  %v22548_v16 = vadd.f32 %v22505_v30, %v7396_v17  ;;  %v7397_v28 = vadd.f32 %v19073_v48, %v24768_v22  ;;  %v7469_v24 = vadd.f32 %v7468_v47, %v7467_v50  ;;  %18195 = vmatprep.subr.bf16.mxu1 %v22559_v18  ;;  %v24775_v17 = vld [vmem:[#allocation42_spill] sm:$0xff]  ;;  %v24776_v20 = vld [vmem:[#allocation45_spill] sm:$0xff] }
 0x7c7   : > { %v22554_v2 = vadd.f32 %v22505_v30, %v7394_v39  ;;  %v7395_v35 = vadd.f32 %v19074_v13, %v24769_v45 }
 0x7c8   : > { %v22562_v32 = vadd.f32 %v22505_v30, %v7397_v28  ;;  %v7538_v38 = vmul.f32 %v22548_v16, %v22548_v16  ;;  %v7570_v41 = vadd.f32 %v7569_v59, %v7568_v27  ;;  %v7474_v25 = vsel %vm1388_vm2, %v22548_v16, 0.0 }
 0x7c9   : > { %v7470_v44 = vsel %vm1388_vm2, %v22554_v2, 0.0  ;;  %v7536_v8 = vmul.f32 %v22554_v2, %v22554_v2  ;;  %v22570_v1 = vadd.f32 %v22505_v30, %v7395_v35  ;;  %v18139_v49 = vpop.f32.mrb[40].mxu0  ;;  %v24778_v35 = vld [vmem:[#allocation72_spill] sm:$0xff] }
 0x7ca   : > { %v7471_v15 = vadd.f32 %v7470_v44, %v7469_v24  ;;  %v7263_v51 = vpop.f32.mrb[41].mxu0  ;;  %v7539_v21 = vmul.f32 %v22562_v32, %v22562_v32  ;;  %v19075_v40 = vadd.f32 %v18139_v49, %v24770_v55  ;;  %v7575_v4 = vsel %vm1388_vm2, %v7538_v38, 0.0 }
 0x7cb   : > { %v7571_v19 = vsel %vm1388_vm2, %v7536_v8, 0.0  ;;  %v7472_v26 = vsel %vm1388_vm2, %v22570_v1, 0.0  ;;  %v7537_v43 = vmul.f32 %v22570_v1, %v22570_v1  ;;  %v18140_v10 = vpop.f32.mrb[42].mxu0  ;;  %v19076_v54 = vadd.f32 %v7263_v51, %v24771_v11 }
 0x7cc   : > { %v7572_v36 = vadd.f32 %v7571_v19, %v7570_v41  ;;  %v7473_v58 = vadd.f32 %v7472_v26, %v7471_v15  ;;  %v7266_v62 = vpop.f32.mrb[43].mxu0  ;;  %v19077_v46 = vadd.f32 %v18140_v10, %v24772_v3  ;;  %v7400_v50 = vadd.f32 %v19075_v40, %v24774_v61 }
 0x7cd   : > { %v7573_v63 = vsel %vm1388_vm2, %v7537_v43, 0.0  ;;  %v19078_v33 = vadd.f32 %v7266_v62, %v24773_v53  ;;  %v7476_v34 = vsel %vm1388_vm2, %v22562_v32, 0.0  ;;  %v7398_v48 = vadd.f32 %v19076_v54, %v24775_v17  ;;  %v24779_v43 = vld [vmem:[#allocation47_spill] sm:$0xff]  ;;  %v24781_v62 = vld [vmem:[#allocation74_spill] sm:$0xff] }
 0x7ce   : > { %v7475_v37 = vadd.f32 %v7474_v25, %v7473_v58  ;;  %v7574_v12 = vadd.f32 %v7573_v63, %v7572_v36  ;;  %v7401_v29 = vadd.f32 %v19077_v46, %v24776_v20  ;;  %v22597_v39 = vadd.f32 %v22505_v30, %v7400_v50  ;;  %v24780_v36 = vld [vmem:[#allocation73_spill] sm:$0xff]  ;;  %v24782_v54 = vld [vmem:[#allocation46_spill] sm:$0xff]  ;;  %v24783_v46 = vld [vmem:[#allocation75_spill] sm:$0xff] }
 0x7cf   : > { %v7399_v5 = vadd.f32 %v19078_v33, %v24777_v23  ;;  %v7577_v60 = vsel %vm1388_vm2, %v7539_v21, 0.0  ;;  %v22601_v27 = vadd.f32 %v22505_v30, %v7398_v48  ;;  %v24785_v48 = vld [vmem:[#allocation48_spill] sm:$0xff] }
 0x7d0   : > { %v7576_v57 = vadd.f32 %v7575_v4, %v7574_v12  ;;  %v7477_v13 = vadd.f32 %v7476_v34, %v7475_v37  ;;  %v22604_v22 = vadd.f32 %v22505_v30, %v7401_v29  ;;  %v7542_v38 = vmul.f32 %v22597_v39, %v22597_v39  ;;  %v24784_v12 = vld [vmem:[#allocation49_spill] sm:$0xff] }
 0x7d1   : > { %v22607_v28 = vadd.f32 %v22505_v30, %v7399_v5  ;;  %v18143_v47 = vpop.f32.mrb[44].mxu0  ;;  %v7478_v44 = vsel %vm1388_vm2, %v22601_v27, 0.0  ;;  %v7540_v8 = vmul.f32 %v22601_v27, %v22601_v27  ;;  %v7482_v11 = vsel %vm1388_vm2, %v22597_v39, 0.0 }
 0x7d2   : > { %v7578_v45 = vadd.f32 %v7577_v60, %v7576_v57  ;;  %v19079_v24 = vadd.f32 %v18143_v47, %v24778_v35  ;;  %v7279_v59 = vpop.f32.mrb[45].mxu0  ;;  %v7479_v15 = vadd.f32 %v7478_v44, %v7477_v13  ;;  %v7543_v26 = vmul.f32 %v22604_v22, %v22604_v22  ;;  %v24786_v13 = vld [vmem:[#allocation76_spill] sm:$0xff] }
 0x7d3   : > { %v18144_v49 = vpop.f32.mrb[46].mxu0  ;;  %v7480_v41 = vsel %vm1388_vm2, %v22607_v28, 0.0  ;;  %v7541_v51 = vmul.f32 %v22607_v28, %v22607_v28  ;;  %v7579_v19 = vsel %vm1388_vm2, %v7540_v8, 0.0  ;;  %v19080_v21 = vadd.f32 %v7279_v59, %v24780_v36 }
 0x7d4   : > { %v7282_v25 = vpop.f32.mrb[47].mxu0  ;;  %v7404_v10 = vadd.f32 %v19079_v24, %v24779_v43  ;;  %v7580_v58 = vadd.f32 %v7579_v19, %v7578_v45  ;;  %v7481_v55 = vadd.f32 %v7480_v41, %v7479_v15  ;;  %v19081_v63 = vadd.f32 %v18144_v49, %v24781_v62  ;;  %v24787_v19 = vld [vmem:[#allocation51_spill] sm:$0xff]  ;;  %v24789_v62 = vld [vmem:[#allocation78_spill] sm:$0xff] }
 0x7d5   : > { %v7581_v40 = vsel %vm1388_vm2, %v7541_v51, 0.0  ;;  %v7402_v3 = vadd.f32 %v19080_v21, %v24782_v54  ;;  %v19082_v53 = vadd.f32 %v7282_v25, %v24783_v46  ;;  %v7583_v50 = vsel %vm1388_vm2, %v7542_v38, 0.0  ;;  %v24788_v21 = vld [vmem:[#allocation77_spill] sm:$0xff] }
 0x7d6   : > { %v7483_v33 = vadd.f32 %v7482_v11, %v7481_v55  ;;  %v7582_v4 = vadd.f32 %v7581_v40, %v7580_v58  ;;  %v22632_v37 = vadd.f32 %v22505_v30, %v7404_v10  ;;  %v7405_v61 = vadd.f32 %v19081_v63, %v24784_v12  ;;  %v24790_v11 = vld [vmem:[#allocation79_spill] sm:$0xff] }
 0x7d7   : > { %v7484_v34 = vsel %vm1388_vm2, %v22604_v22, 0.0  ;;  %v22639_v17 = vadd.f32 %v22505_v30, %v7402_v3  ;;  %v7403_v20 = vadd.f32 %v19082_v53, %v24785_v48  ;;  %v7585_v23 = vsel %vm1388_vm2, %v7543_v26, 0.0  ;;  %v24793_v48 = vld [vmem:[#allocation52_spill] sm:$0xff] }
 0x7d8   : > { %v7584_v5 = vadd.f32 %v7583_v50, %v7582_v4  ;;  %v7485_v57 = vadd.f32 %v7484_v34, %v7483_v33  ;;  %v22649_v24 = vadd.f32 %v22505_v30, %v7405_v61  ;;  %v7546_v8 = vmul.f32 %v22632_v37, %v22632_v37  ;;  %v24791_v33 = vld [vmem:[#allocation50_spill] sm:$0xff]  ;;  %v24792_v50 = vld [vmem:[#allocation53_spill] sm:$0xff] }
 0x7d9   : > { %v18147_v29 = vpop.f32.mrb[48].mxu0  ;;  %v7486_v45 = vsel %vm1388_vm2, %v22639_v17, 0.0  ;;  %v7544_v35 = vmul.f32 %v22639_v17, %v22639_v17  ;;  %v22652_v59 = vadd.f32 %v22505_v30, %v7403_v20  ;;  %v7490_v43 = vsel %vm1388_vm2, %v22632_v37, 0.0 }
 0x7da   : > { %v19083_v60 = vadd.f32 %v18147_v29, %v24786_v13  ;;  %v7295_v47 = vpop.f32.mrb[49].mxu0  ;;  %v7487_v49 = vadd.f32 %v7486_v45, %v7485_v57  ;;  %v7586_v38 = vadd.f32 %v7585_v23, %v7584_v5  ;;  %v7547_v55 = vmul.f32 %v22649_v24, %v22649_v24  ;;  %v24795_v13 = vld [vmem:[#allocation80_spill] sm:$0xff] }
 0x7db   : > { %v18148_v44 = vpop.f32.mrb[50].mxu0  ;;  %v7587_v41 = vsel %vm1388_vm2, %v7544_v35, 0.0  ;;  %v7488_v51 = vsel %vm1388_vm2, %v22652_v59, 0.0  ;;  %v7545_v25 = vmul.f32 %v22652_v59, %v22652_v59  ;;  %v19084_v58 = vadd.f32 %v7295_v47, %v24788_v21 }
 0x7dc   : > { %v7298_v15 = vpop.f32.mrb[51].mxu0  ;;  %v7408_v26 = vadd.f32 %v19083_v60, %v24787_v19  ;;  %v7588_v10 = vadd.f32 %v7587_v41, %v7586_v38  ;;  %v7489_v36 = vadd.f32 %v7488_v51, %v7487_v49  ;;  %v19085_v63 = vadd.f32 %v18148_v44, %v24789_v62 }
 0x7dd   : > { %v7589_v40 = vsel %vm1388_vm2, %v7545_v25, 0.0  ;;  %v19086_v54 = vadd.f32 %v7298_v15, %v24790_v11  ;;  %v7406_v4 = vadd.f32 %v19084_v58, %v24791_v33  ;;  %v7591_v12 = vsel %vm1388_vm2, %v7546_v8, 0.0  ;;  %v24797_v8 = vld [vmem:[#allocation81_spill] sm:$0xff]  ;;  %v24798_v58 = vld [vmem:[#allocation55_spill] sm:$0xff] }
 0x7de   : > { %v7491_v3 = vadd.f32 %v7490_v43, %v7489_v36  ;;  %v7590_v46 = vadd.f32 %v7589_v40, %v7588_v10  ;;  %v22671_v53 = vadd.f32 %v22505_v30, %v7408_v26  ;;  %v7492_v61 = vsel %vm1388_vm2, %v22649_v24, 0.0  ;;  %v24799_v40 = vld [vmem:[#allocation54_spill] sm:$0xff] }
 0x7df   : > { %v7409_v34 = vadd.f32 %v19085_v63, %v24792_v50  ;;  %v7407_v20 = vadd.f32 %v19086_v54, %v24793_v48  ;;  %v22680_v5 = vadd.f32 %v22505_v30, %v7406_v4  ;;  %v7593_v45 = vsel %vm1388_vm2, %v7547_v55, 0.0  ;;  %v24802_v48 = vld [vmem:[#allocation57_spill] sm:$0xff] }
 0x7e0   : > { %v7592_v23 = vadd.f32 %v7591_v12, %v7590_v46  ;;  %v7493_v57 = vadd.f32 %v7492_v61, %v7491_v3  ;;  %v7550_v15 = vmul.f32 %v22671_v53, %v22671_v53  ;;  %v7498_v26 = vsel %vm1388_vm2, %v22671_v53, 0.0  ;;  %v24800_v3 = vld [vmem:[#allocation82_spill] sm:$0xff] }
 0x7e1   : > { %v18151_v29 = vpop.f32.mrb[52].mxu0  ;;  %24794 = vst [vmem:[#allocation41_spill] sm:$0xff] %v22680_v5  ;;  %v22685_v35 = vadd.f32 %v22505_v30, %v7409_v34  ;;  %v22688_v44 = vadd.f32 %v22505_v30, %v7407_v20  ;;  %v7494_v41 = vsel %vm1388_vm2, %v22680_v5, 0.0  ;;  %v7548_v51 = vmul.f32 %v22680_v5, %v22680_v5 }
 0x7e2   : > { %v19087_v60 = vadd.f32 %v18151_v29, %v24795_v13  ;;  %v7311_v47 = vpop.f32.mrb[53].mxu0  ;;  %v7594_v25 = vadd.f32 %v7593_v45, %v7592_v23  ;;  %v7495_v43 = vadd.f32 %v7494_v41, %v7493_v57  ;;  %v7599_v33 = vsel %vm1388_vm2, %v7550_v15, 0.0  ;;  %v24803_v29 = vld [vmem:[#allocation83_spill] sm:$0xff]  ;;  %v24804_v45 = vld [vmem:[#allocation84_spill] sm:$0xff] }
 0x7e3   : > { %24796 = vst [vmem:[#allocation40_spill] sm:$0xff] %v22688_v44  ;;  %v19088_v49 = vadd.f32 %v7311_v47, %v24797_v8  ;;  %v18152_v38 = vpop.f32.mrb[54].mxu0  ;;  %v7496_v10 = vsel %vm1388_vm2, %v22688_v44, 0.0  ;;  %v7595_v36 = vsel %vm1388_vm2, %v7548_v51, 0.0  ;;  %v7549_v21 = vmul.f32 %v22688_v44, %v22688_v44  ;;  %v24805_v51 = vld [vmem:[#allocation56_spill] sm:$0xff] }
 0x7e4   : > { %v7314_v19 = vpop.f32.mrb[55].mxu0  ;;  %v7412_v55 = vadd.f32 %v19087_v60, %v24798_v58  ;;  %v7596_v63 = vadd.f32 %v7595_v36, %v7594_v25  ;;  %v7551_v11 = vmul.f32 %v22685_v35, %v22685_v35  ;;  %v7497_v54 = vadd.f32 %v7496_v10, %v7495_v43  ;;  %v24806_v10 = vld [vmem:[#allocation85_spill] sm:$0xff] }
 0x7e5   : > { %v7410_v62 = vadd.f32 %v19088_v49, %v24799_v40  ;;  %v19089_v46 = vadd.f32 %v18152_v38, %v24800_v3  ;;  %v7500_v4 = vsel %vm1388_vm2, %v22685_v35, 0.0  ;;  %v7597_v12 = vsel %vm1388_vm2, %v7549_v21, 0.0  ;;  %v24807_v21 = vld [vmem:[#allocation86_spill] sm:$0xff] }
 0x7e6   : > { %v7499_v50 = vadd.f32 %v7498_v26, %v7497_v54  ;;  %v7598_v34 = vadd.f32 %v7597_v12, %v7596_v63  ;;  %v19090_v23 = vadd.f32 %v7314_v19, %v24803_v29  ;;  %v22719_v13 = vadd.f32 %v22505_v30, %v7412_v55  ;;  %v24810_v3 = vld [vmem:[#allocation58_spill] sm:$0xff] }
 0x7e7   : > { %v22714_v61 = vadd.f32 %v22505_v30, %v7410_v62  ;;  %v7413_v20 = vadd.f32 %v19089_v46, %v24802_v48  ;;  %v7601_v38 = vsel %vm1388_vm2, %v7551_v11, 0.0  ;;  %v24809_v11 = vld [vmem:[#allocation59_spill] sm:$0xff] }
 0x7e8   : > { %v7600_v15 = vadd.f32 %v7599_v33, %v7598_v34  ;;  %v7501_v41 = vadd.f32 %v7500_v4, %v7499_v50  ;;  %v7411_v25 = vadd.f32 %v19090_v23, %v24805_v51  ;;  %v7554_v33 = vmul.f32 %v22719_v13, %v22719_v13  ;;  %v24812_v23 = vld [vmem:[#allocation61_spill] sm:$0xff] }
 0x7e9   : > { %24801 = vst [vmem:[#allocation68_spill] sm:$0xff] %v22714_v61  ;;  %v18155_v57 = vpop.f32.mrb[56].mxu0  ;;  %v7502_v60 = vsel %vm1388_vm2, %v22714_v61, 0.0  ;;  %v7552_v47 = vmul.f32 %v22714_v61, %v22714_v61  ;;  %v22730_v43 = vadd.f32 %v22505_v30, %v7413_v20 }
 0x7ea   : > { %v19091_v8 = vadd.f32 %v18155_v57, %v24804_v45  ;;  %v7327_v49 = vpop.f32.mrb[57].mxu0  ;;  %v7503_v40 = vadd.f32 %v7502_v60, %v7501_v41  ;;  %v7602_v62 = vadd.f32 %v7601_v38, %v7600_v15  ;;  %v22735_v63 = vadd.f32 %v22505_v30, %v7411_v25  ;;  %v24813_v60 = vld [vmem:[#allocation60_spill] sm:$0xff] }
 0x7eb   : > { %v18156_v19 = vpop.f32.mrb[58].mxu0  ;;  %v7603_v26 = vsel %vm1388_vm2, %v7552_v47, 0.0  ;;  %v19092_v36 = vadd.f32 %v7327_v49, %v24806_v10  ;;  %v7555_v50 = vmul.f32 %v22730_v43, %v22730_v43  ;;  %v7607_v41 = vsel %vm1388_vm2, %v7554_v33, 0.0 }
 0x7ec   : > { %v19093_v58 = vadd.f32 %v18156_v19, %v24807_v21  ;;  %v7330_v55 = vpop.f32.mrb[59].mxu0  ;;  %24808 = vst [vmem:[#allocation69_spill] sm:$0xff] %v22735_v63  ;;  %v7416_v54 = vadd.f32 %v19091_v8, %v24809_v11  ;;  %v7604_v4 = vadd.f32 %v7603_v26, %v7602_v62  ;;  %v7504_v34 = vsel %vm1388_vm2, %v22735_v63, 0.0 }
 0x7ed   : > { %v7414_v46 = vadd.f32 %v19092_v36, %v24810_v3  ;;  %v19094_v12 = vadd.f32 %v7330_v55, %v22365_v0  ;;  %v7553_v48 = vmul.f32 %v22735_v63, %v22735_v63  ;;  %v7505_v20 = vadd.f32 %v7504_v34, %v7503_v40 }
 0x7ee   : > { %v7417_v57 = vadd.f32 %v19093_v58, %v24812_v23  ;;  %v7506_v0 = vsel %vm1388_vm2, %v22719_v13, 0.0  ;;  %v22757_v49 = vadd.f32 %v22505_v30, %v7416_v54  ;;  %v7508_v10 = vsel %vm1388_vm2, %v22730_v43, 0.0 }
 0x7ef   : > { %v22749_v29 = vadd.f32 %v22505_v30, %v7414_v46  ;;  %v7415_v47 = vadd.f32 %v19094_v12, %v24813_v60  ;;  %v7605_v8 = vsel %vm1388_vm2, %v7553_v48, 0.0  ;;  %v7507_v51 = vadd.f32 %v7506_v0, %v7505_v20 }
 0x7f0   : > { %v7606_v25 = vadd.f32 %v7605_v8, %v7604_v4  ;;  %v7609_v36 = vsel %vm1388_vm2, %v7555_v50, 0.0  ;;  %v22772_v62 = vadd.f32 %v22505_v30, %v7417_v57  ;;  %v7558_v54 = vmul.f32 %v22757_v49, %v22757_v49  ;;  %v24815_v50 = vld [vmem:[#allocation62_spill] sm:$0xff] }
 0x7f1   : > { %24811 = vst [vmem:[#allocation70_spill] sm:$0xff] %v22749_v29  ;;  %v18159_v45 = vpop.f32.mrb[60].mxu0  ;;  %v7556_v19 = vmul.f32 %v22749_v29, %v22749_v29  ;;  %v7510_v21 = vsel %vm1388_vm2, %v22749_v29, 0.0  ;;  %v22769_v58 = vadd.f32 %v22505_v30, %v7415_v47  ;;  %v7509_v40 = vadd.f32 %v7508_v10, %v7507_v51 }
 0x7f2   : > { %v19095_v38 = vadd.f32 %v18159_v45, %v22369_v42  ;;  %v7343_v15 = vpop.f32.mrb[61].mxu0  ;;  %v7608_v55 = vadd.f32 %v7607_v41, %v7606_v25  ;;  %v7559_v47 = vmul.f32 %v22772_v62, %v22772_v62  ;;  %v7514_v8 = vsel %vm1388_vm2, %v22757_v49, 0.0 }
 0x7f3   : > { %v18160_v26 = vpop.f32.mrb[62].mxu0  ;;  %24814 = vst [vmem:[#allocation71_spill] sm:$0xff] %v22769_v58  ;;  %v19096_v11 = vadd.f32 %v7343_v15, %v22373_v52  ;;  %v7611_v3 = vsel %vm1388_vm2, %v7556_v19, 0.0  ;;  %v7512_v46 = vsel %vm1388_vm2, %v22769_v58, 0.0  ;;  %v7557_v33 = vmul.f32 %v22769_v58, %v22769_v58  ;;  %v24816_v52 = vld [vmem:[#allocation63_spill] sm:$0xff]  ;;  %v24818_v15 = vld [vmem:[#allocation65_spill] sm:$0xff] }
 0x7f4   : > { %v7346_v42 = vpop.f32.mrb[63].mxu0  ;;  %v7511_v4 = vadd.f32 %v7510_v21, %v7509_v40  ;;  %v7610_v12 = vadd.f32 %v7609_v36, %v7608_v55  ;;  %v19097_v48 = vadd.f32 %v18160_v26, %v22377_v9  ;;  %v7420_v23 = vadd.f32 %v19095_v38, %v24816_v52  ;;  %v24819_v9 = vld [vmem:[#allocation64_spill] sm:$0xff] }
 0x7f5   : > { %v7418_v34 = vadd.f32 %v19096_v11, %v24815_v50  ;;  %v7613_v20 = vsel %vm1388_vm2, %v7557_v33, 0.0  ;;  %v19098_v57 = vadd.f32 %v7346_v42, %v22379_v31  ;;  %v7615_v31 = vsel %vm1388_vm2, %v7558_v54, 0.0 }
 0x7f6   : > { %v7612_v60 = vadd.f32 %v7611_v3, %v7610_v12  ;;  %v7513_v45 = vadd.f32 %v7512_v46, %v7511_v4  ;;  %v7421_v41 = vadd.f32 %v19097_v48, %v24818_v15  ;;  %v7516_v10 = vsel %vm1388_vm2, %v22772_v62, 0.0 }
 0x7f7   : > { %v22790_v0 = vadd.f32 %v22505_v30, %v7418_v34  ;;  %v7419_v51 = vadd.f32 %v19098_v57, %v24819_v9  ;;  %v22804_v36 = vadd.f32 %v22505_v30, %v7420_v23  ;;  %v7617_v55 = vsel %vm1388_vm2, %v7559_v47, 0.0 }
 0x7f8   : > { %v7515_v25 = vadd.f32 %v7514_v8, %v7513_v45  ;;  %v7614_v19 = vadd.f32 %v7613_v20, %v7612_v60  ;;  %v22814_v3 = vadd.f32 %v22505_v30, %v7421_v41 }
 0x7f9   : > { %24817 = vst [vmem:[#allocation43_spill] sm:$0xff] %v22790_v0  ;;  %v7560_v26 = vmul.f32 %v22790_v0, %v22790_v0  ;;  %v7518_v21 = vsel %vm1388_vm2, %v22790_v0, 0.0  ;;  %v22809_v42 = vadd.f32 %v22505_v30, %v7419_v51  ;;  %v7562_v34 = vmul.f32 %v22804_v36, %v22804_v36 }
 0x7fa   : > { %v7616_v40 = vadd.f32 %v7615_v31, %v7614_v19  ;;  %v7517_v11 = vadd.f32 %v7516_v10, %v7515_v25  ;;  %v7522_v30 = vsel %vm1388_vm2, %v22804_v36, 0.0  ;;  %v7563_v23 = vmul.f32 %v22814_v3, %v22814_v3 }
 0x7fb   : > { %24820 = vst [vmem:[#allocation42_spill] sm:$0xff] %v22809_v42  ;;  %v7619_v54 = vsel %vm1388_vm2, %v7560_v26, 0.0  ;;  %v7520_v46 = vsel %vm1388_vm2, %v22809_v42, 0.0  ;;  %v7561_v33 = vmul.f32 %v22809_v42, %v22809_v42  ;;  %v7623_v47 = vsel %vm1388_vm2, %v7562_v34, 0.0 }
 0x7fc   : > { %v7519_v4 = vadd.f32 %v7518_v21, %v7517_v11  ;;  %v7618_v12 = vadd.f32 %v7617_v55, %v7616_v40  ;;  %v7524_v45 = vsel %vm1388_vm2, %v22814_v3, 0.0  ;;  %v7625_v41 = vsel %vm1388_vm2, %v7563_v23, 0.0  ;;  %v7462_v23 = vld [vmem:[%s20447_s14 + $0x1] sm:$0x1] }
 0x7fd   : > { %v7621_v48 = vsel %vm1388_vm2, %v7561_v33, 0.0 }
 0x7fe   : > { %v7620_v20 = vadd.f32 %v7619_v54, %v7618_v12  ;;  %v7521_v52 = vadd.f32 %v7520_v46, %v7519_v4 }
 0x800   : > { %v7523_v57 = vadd.f32 %v7522_v30, %v7521_v52  ;;  %v7622_v60 = vadd.f32 %v7621_v48, %v7620_v20  ;;  %v7461_v20 = vld [vmem:[%s20447_s14] sm:$0x1] }
 0x802   : > { %v7525_v8 = vadd.f32 %v7524_v45, %v7523_v57  ;;  %v7624_v15 = vadd.f32 %v7623_v47, %v7622_v60  ;;  %v24821_v60 = vld [vmem:[#allocation67_spill] sm:$0xff] }
 0x804   : > { %v7526_v9 = vrot.slane %v7525_v8, 4  ;;  %v7626_v51 = vadd.f32 %v7625_v41, %v7624_v15 }
 0x806   : > { %v7527_v31 = vadd.f32 %v7526_v9, %v7525_v8  ;;  %v7627_v25 = vrot.slane %v7626_v51, 4 }
 0x808   : > { %v7528_v19 = vrot.slane %v7527_v31, 2  ;;  %v7628_v26 = vadd.f32 %v7627_v25, %v7626_v51 }
 0x80a   : > { %v7529_v10 = vadd.f32 %v7528_v19, %v7527_v31  ;;  %v7629_v21 = vrot.slane %v7628_v26, 2 }
 0x80c   : > { %v7530_v55 = vrot.slane %v7529_v10, 1  ;;  %v7630_v40 = vadd.f32 %v7629_v21, %v7628_v26 }
 0x80e   : > { %v7531_v11 = vadd.f32 %v7530_v55, %v7529_v10  ;;  %v7631_v54 = vrot.slane %v7630_v40, 1 }
 0x810   : > { %v7632_v46 = vadd.f32 %v7631_v54, %v7630_v40  ;;  %v7633_v33 = vmul.f32 0.00390625, %v7531_v11 }
 0x812   : > { %v7634_v4 = vmul.f32 0.00390625, %v7632_v46  ;;  %v7635_v12 = vmul.f32 %v7633_v33, %v7633_v33 }
 0x814   : > { %v7636_v34 = vsub.f32 %v7634_v4, %v7635_v12 }
 0x816   : > { %v7637_v48 = vadd.f32 1e-05, %v7636_v34 }
 0x818   : > { %20280 = vrsqrt.f32 %v7637_v48 }
 0x822   : > { %v20281_v52 = vpop.eup %20280 }
 0x823   : > { %v7639_v30 = vmul.f32 %v20281_v52, %v7461_v20 }
 0x825   : > { %v7640_v57 = vmul.f32 %v7639_v30, %v7633_v33  ;;  %v7645_v47 = vrot.slane %v7639_v30, %v24821_v60 }
 0x827   : > { %v7641_v45 = vsub.f32 %v7462_v23, %v7640_v57  ;;  %v7675_v8 = vmul.f32 %v7645_v47, %v22809_v42  ;;  %v7646_v15 = vmul.f32 %v7645_v47, %v22513_v7  ;;  %v7647_v41 = vmul.f32 %v7645_v47, %v22522_v56 }
 0x828   : > { %v7648_v9 = vmul.f32 %v7645_v47, %v22510_v6  ;;  %v7649_v51 = vmul.f32 %v7645_v47, %v22527_v14  ;;  %v7650_v31 = vmul.f32 %v7645_v47, %v22554_v2  ;;  %v7651_v25 = vmul.f32 %v7645_v47, %v22570_v1 }
 0x829   : > { %v7681_v19 = vrot.slane %v7641_v45, %v24821_v60  ;;  %v7652_v26 = vmul.f32 %v7645_v47, %v22548_v16  ;;  %v7653_v10 = vmul.f32 %v7645_v47, %v22562_v32  ;;  %v7654_v21 = vmul.f32 %v7645_v47, %v22601_v27 }
 0x82a   : > { %v7655_v55 = vmul.f32 %v7645_v47, %v22607_v28  ;;  %v7656_v40 = vmul.f32 %v7645_v47, %v22597_v39  ;;  %v7657_v6 = vmul.f32 %v7645_v47, %v22604_v22  ;;  %v7658_v14 = vmul.f32 %v7645_v47, %v22639_v17 }
 0x82b   : > { %v7711_v11 = vadd.f32 %v7681_v19, %v7675_v8  ;;  %v7659_v54 = vmul.f32 %v7645_v47, %v22652_v59  ;;  %v7660_v46 = vmul.f32 %v7645_v47, %v22632_v37  ;;  %v7661_v33 = vmul.f32 %v7645_v47, %v22649_v24 }
 0x82c   : > { %v7662_v16 = vmul.f32 %v7645_v47, %v22680_v5  ;;  %v7663_v32 = vmul.f32 %v7645_v47, %v22688_v44  ;;  %v7664_v4 = vmul.f32 %v7645_v47, %v22671_v53  ;;  %v7665_v12 = vmul.f32 %v7645_v47, %v22685_v35 }
 0x82d   : > { %v7743_v39 = vmax.f32 %v7711_v11, 0.0  ;;  %v7666_v22 = vmul.f32 %v7645_v47, %v22714_v61  ;;  %v7667_v34 = vmul.f32 %v7645_v47, %v22735_v63  ;;  %v7668_v48 = vmul.f32 %v7645_v47, %v22719_v13 }
 0x82e   : > { %v7669_v20 = vmul.f32 %v7645_v47, %v22730_v43  ;;  %v7670_v37 = vmul.f32 %v7645_v47, %v22749_v29  ;;  %v7671_v24 = vmul.f32 %v7645_v47, %v22769_v58  ;;  %v7672_v52 = vmul.f32 %v7645_v47, %v22757_v49 }
 0x82f   : > { %7821 = vst.msk [vmem:[#allocation4 + $0x1f0] sm:$0xff] %vm1388_vm2, %v7743_v39  ;;  %v7673_v53 = vmul.f32 %v7645_v47, %v22772_v62  ;;  %v7674_v35 = vmul.f32 %v7645_v47, %v22790_v0  ;;  %v7676_v30 = vmul.f32 %v7645_v47, %v22804_v36  ;;  %v7677_v23 = vmul.f32 %v7645_v47, %v22814_v3 }
 0x830   : > { %v7682_v57 = vadd.f32 %v7681_v19, %v7646_v15  ;;  %v7683_v13 = vadd.f32 %v7681_v19, %v7647_v41  ;;  %v7684_v45 = vadd.f32 %v7681_v19, %v7648_v9  ;;  %v7685_v43 = vadd.f32 %v7681_v19, %v7649_v51 }
 0x831   : > { %v7686_v8 = vadd.f32 %v7681_v19, %v7650_v31  ;;  %v7687_v11 = vadd.f32 %v7681_v19, %v7651_v25  ;;  %v7688_v50 = vadd.f32 %v7681_v19, %v7652_v26  ;;  %v7689_v38 = vadd.f32 %v7681_v19, %v7653_v10 }
 0x832   : > { %v7690_v42 = vadd.f32 %v7681_v19, %v7654_v21  ;;  %v7691_v49 = vadd.f32 %v7681_v19, %v7655_v55  ;;  %v7692_v29 = vadd.f32 %v7681_v19, %v7656_v40  ;;  %v7693_v39 = vadd.f32 %v7681_v19, %v7657_v6 }
 0x833   : > { %v7694_v58 = vadd.f32 %v7681_v19, %v7658_v14  ;;  %v7695_v62 = vadd.f32 %v7681_v19, %v7659_v54  ;;  %v7696_v63 = vadd.f32 %v7681_v19, %v7660_v46  ;;  %v7697_v0 = vadd.f32 %v7681_v19, %v7661_v33 }
 0x834   : > { %v7698_v61 = vadd.f32 %v7681_v19, %v7662_v16  ;;  %v7699_v36 = vadd.f32 %v7681_v19, %v7663_v32  ;;  %v7700_v44 = vadd.f32 %v7681_v19, %v7664_v4  ;;  %v7701_v3 = vadd.f32 %v7681_v19, %v7665_v12 }
 0x835   : > { %v7702_v47 = vadd.f32 %v7681_v19, %v7666_v22  ;;  %v22870_v15 = vadd.f32 %v7681_v19, %v7667_v34  ;;  %v22872_v41 = vadd.f32 %v7681_v19, %v7668_v48  ;;  %v22874_v9 = vadd.f32 %v7681_v19, %v7669_v20 }
 0x836   : > { %v22876_v51 = vadd.f32 %v7681_v19, %v7670_v37  ;;  %v22878_v31 = vadd.f32 %v7681_v19, %v7671_v24  ;;  %v22880_v25 = vadd.f32 %v7681_v19, %v7672_v52  ;;  %v22882_v26 = vadd.f32 %v7681_v19, %v7673_v53 }
 0x837   : > { %v22884_v10 = vadd.f32 %v7681_v19, %v7674_v35  ;;  %v22886_v21 = vadd.f32 %v7681_v19, %v7676_v30  ;;  %v22888_v55 = vadd.f32 %v7681_v19, %v7677_v23  ;;  %v7714_v40 = vmax.f32 %v7682_v57, 0.0 }
 0x838   : > { %v7715_v6 = vmax.f32 %v7683_v13, 0.0  ;;  %v7716_v14 = vmax.f32 %v7684_v45, 0.0  ;;  %v7717_v54 = vmax.f32 %v7685_v43, 0.0  ;;  %v7718_v46 = vmax.f32 %v7686_v8, 0.0 }
 0x839   : > { %v7719_v33 = vmax.f32 %v7687_v11, 0.0  ;;  %v7720_v16 = vmax.f32 %v7688_v50, 0.0  ;;  %v7721_v32 = vmax.f32 %v7689_v38, 0.0  ;;  %v7722_v4 = vmax.f32 %v7690_v42, 0.0  ;;  %7792 = vst.msk [vmem:[#allocation4 + $0x28] sm:$0xff] %vm1388_vm2, %v7714_v40 }
 0x83a   : > { %v7723_v12 = vmax.f32 %v7691_v49, 0.0  ;;  %v7724_v22 = vmax.f32 %v7692_v29, 0.0  ;;  %v7725_v34 = vmax.f32 %v7693_v39, 0.0  ;;  %v7726_v48 = vmax.f32 %v7694_v58, 0.0  ;;  %7793 = vst.msk [vmem:[#allocation4 + $0x30] sm:$0xff] %vm1388_vm2, %v7715_v6  ;;  %7794 = vst.msk [vmem:[#allocation4 + $0x48] sm:$0xff] %vm1388_vm2, %v7716_v14 }
 0x83b   : > { %7795 = vst.msk [vmem:[#allocation4 + $0x50] sm:$0xff] %vm1388_vm2, %v7717_v54  ;;  %7796 = vst.msk [vmem:[#allocation4 + $0x68] sm:$0xff] %vm1388_vm2, %v7718_v46  ;;  %v7727_v19 = vmax.f32 %v7695_v62, 0.0  ;;  %v7728_v20 = vmax.f32 %v7696_v63, 0.0  ;;  %v7729_v37 = vmax.f32 %v7697_v0, 0.0  ;;  %v7730_v50 = vmax.f32 %v7698_v61, 0.0 }
 0x83c   : > { %7797 = vst.msk [vmem:[#allocation4 + $0x70] sm:$0xff] %vm1388_vm2, %v7719_v33  ;;  %7798 = vst.msk [vmem:[#allocation4 + $0x88] sm:$0xff] %vm1388_vm2, %v7720_v16  ;;  %v7731_v29 = vmax.f32 %v7699_v36, 0.0  ;;  %v7732_v58 = vmax.f32 %v7700_v44, 0.0  ;;  %v7733_v38 = vmax.f32 %v7701_v3, 0.0  ;;  %v7734_v42 = vmax.f32 %v7702_v47, 0.0 }
 0x83d   : > { %7799 = vst.msk [vmem:[#allocation4 + $0x90] sm:$0xff] %vm1388_vm2, %v7721_v32  ;;  %7800 = vst.msk [vmem:[#allocation4 + $0xa8] sm:$0xff] %vm1388_vm2, %v7722_v4  ;;  %v7735_v61 = vmax.f32 %v22870_v15, 0.0  ;;  %v7736_v63 = vmax.f32 %v22872_v41, 0.0  ;;  %v7737_v0 = vmax.f32 %v22874_v9, 0.0  ;;  %v7738_v24 = vmax.f32 %v22876_v51, 0.0 }
 0x83e   : > { %7801 = vst.msk [vmem:[#allocation4 + $0xb0] sm:$0xff] %vm1388_vm2, %v7723_v12  ;;  %7802 = vst.msk [vmem:[#allocation4 + $0xc8] sm:$0xff] %vm1388_vm2, %v7724_v22  ;;  %v7739_v44 = vmax.f32 %v22878_v31, 0.0  ;;  %v7740_v52 = vmax.f32 %v22880_v25, 0.0  ;;  %v7741_v53 = vmax.f32 %v22882_v26, 0.0  ;;  %v7742_v35 = vmax.f32 %v22884_v10, 0.0 }
 0x83f   : > { %7803 = vst.msk [vmem:[#allocation4 + $0xd0] sm:$0xff] %vm1388_vm2, %v7725_v34  ;;  %7804 = vst.msk [vmem:[#allocation4 + $0xe8] sm:$0xff] %vm1388_vm2, %v7726_v48  ;;  %v7744_v30 = vmax.f32 %v22886_v21, 0.0  ;;  %v7745_v23 = vmax.f32 %v22888_v55, 0.0  ;;  %v22936_v49 = vld [vmem:[%s20452_s19 + $0x10] sm:$0xff]  }
 0x840   : > { %7805 = vst.msk [vmem:[#allocation4 + $0xf0] sm:$0xff] %vm1388_vm2, %v7727_v19  ;;  %7806 = vst.msk [vmem:[#allocation4 + $0x108] sm:$0xff] %vm1388_vm2, %v7728_v20  ;;  %v7876_v57 = vld [vmem:[#allocation4 + $0x28] sm:$0xff] }
 0x841   : > { %7807 = vst.msk [vmem:[#allocation4 + $0x110] sm:$0xff] %vm1388_vm2, %v7729_v37  ;;  %7808 = vst.msk [vmem:[#allocation4 + $0x128] sm:$0xff] %vm1388_vm2, %v7730_v50  ;;  %v7877_v13 = vld [vmem:[#allocation4 + $0x30] sm:$0xff]  ;;  %v7878_v45 = vld [vmem:[#allocation4 + $0x48] sm:$0xff] }
 0x842   : > { %7809 = vst.msk [vmem:[#allocation4 + $0x130] sm:$0xff] %vm1388_vm2, %v7731_v29  ;;  %7810 = vst.msk [vmem:[#allocation4 + $0x148] sm:$0xff] %vm1388_vm2, %v7732_v58  ;;  %v7879_v43 = vld [vmem:[#allocation4 + $0x50] sm:$0xff]  ;;  %v22931_v8 = vpack.c.bf16 %v7877_v13, %v7876_v57  ;;  %v7880_v39 = vld [vmem:[#allocation4 + $0x68] sm:$0xff] }
 0x843   : > { %7811 = vst.msk [vmem:[#allocation4 + $0x150] sm:$0xff] %vm1388_vm2, %v7733_v38  ;;  %7812 = vst.msk [vmem:[#allocation4 + $0x168] sm:$0xff] %vm1388_vm2, %v7734_v42  ;;  %v22933_v11 = vpack.c.bf16 %v7879_v43, %v7878_v45  ;;  %v7881_v62 = vld [vmem:[#allocation4 + $0x70] sm:$0xff]  ;;  %v7882_v36 = vld [vmem:[#allocation4 + $0x88] sm:$0xff] }
 0x844   : > { %7813 = vst.msk [vmem:[#allocation4 + $0x170] sm:$0xff] %vm1388_vm2, %v7735_v61  ;;  %7814 = vst.msk [vmem:[#allocation4 + $0x188] sm:$0xff] %vm1388_vm2, %v7736_v63  ;;  %18164 = vmatmul.mubr.msk.bf16.vlgmr.msra.gmra.mrb[60].mxu1 %vm1388_vm2, %v22931_v8  ;;  %v7883_v3 = vld [vmem:[#allocation4 + $0x90] sm:$0xff]  ;;  %v22944_v47 = vpack.c.bf16 %v7881_v62, %v7880_v39  ;;  %v7884_v41 = vld [vmem:[#allocation4 + $0xa8] sm:$0xff] }
 0x845   : > { %7815 = vst.msk [vmem:[#allocation4 + $0x190] sm:$0xff] %vm1388_vm2, %v7737_v0  ;;  %7816 = vst.msk [vmem:[#allocation4 + $0x1a8] sm:$0xff] %vm1388_vm2, %v7738_v24  ;;  %18167 = vmatprep.mubr.msk.bf16.mxu1 %vm1388_vm2, %v22933_v11  ;;  %18196 = vmatpush3.bf16.msra.mxu1 %v22559_v18  ;;  %v22946_v15 = vpack.c.bf16 %v7883_v3, %v7882_v36  ;;  %v7885_v9 = vld [vmem:[#allocation4 + $0xb0] sm:$0xff]  ;;  %v7886_v51 = vld [vmem:[#allocation4 + $0xc8] sm:$0xff] }
 0x846   : > { %7817 = vst.msk [vmem:[#allocation4 + $0x1b0] sm:$0xff] %vm1388_vm2, %v7739_v44  ;;  %7818 = vst.msk [vmem:[#allocation4 + $0x1c8] sm:$0xff] %vm1388_vm2, %v7740_v52  ;;  %18229 = vmatprep.subr.bf16.mxu1 %v22936_v49  ;;  %v7887_v18 = vld [vmem:[#allocation4 + $0xd0] sm:$0xff]  ;;  %v22952_v31 = vpack.c.bf16 %v7885_v9, %v7884_v41  ;;  %v7888_v26 = vld [vmem:[#allocation4 + $0xe8] sm:$0xff] }
 0x847   : > { %7819 = vst.msk [vmem:[#allocation4 + $0x1d0] sm:$0xff] %vm1388_vm2, %v7741_v53  ;;  %7820 = vst.msk [vmem:[#allocation4 + $0x1e8] sm:$0xff] %vm1388_vm2, %v7742_v35  ;;  %v22954_v25 = vpack.c.bf16 %v7887_v18, %v7886_v51  ;;  %v7889_v10 = vld [vmem:[#allocation4 + $0xf0] sm:$0xff]  ;;  %v7890_v21 = vld [vmem:[#allocation4 + $0x108] sm:$0xff] }
 0x848   : > { %7822 = vst.msk [vmem:[#allocation4 + $0x208] sm:$0xff] %vm1388_vm2, %v7744_v30  ;;  %7823 = vst.msk [vmem:[#allocation4 + $0x210] sm:$0xff] %vm1388_vm2, %v7745_v23  ;;  %v7891_v55 = vld [vmem:[#allocation4 + $0x110] sm:$0xff]  ;;  %v22960_v40 = vpack.c.bf16 %v7889_v10, %v7888_v26  ;;  %v7892_v14 = vld [vmem:[#allocation4 + $0x128] sm:$0xff] }
 0x849   : > { %v22962_v6 = vpack.c.bf16 %v7891_v55, %v7890_v21  ;;  %v7893_v54 = vld [vmem:[#allocation4 + $0x130] sm:$0xff]  ;;  %v7894_v46 = vld [vmem:[#allocation4 + $0x148] sm:$0xff] }
 0x84a   : > { %v7895_v33 = vld [vmem:[#allocation4 + $0x150] sm:$0xff]  ;;  %v22968_v16 = vpack.c.bf16 %v7893_v54, %v7892_v14  ;;  %v7896_v4 = vld [vmem:[#allocation4 + $0x168] sm:$0xff] }
 0x84b   : > { %v22970_v32 = vpack.c.bf16 %v7895_v33, %v7894_v46  ;;  %v7897_v12 = vld [vmem:[#allocation4 + $0x170] sm:$0xff]  ;;  %v7898_v22 = vld [vmem:[#allocation4 + $0x188] sm:$0xff] }
 0x84c   : > { %18168 = vmatmul.mubr.msk.bf16.gmra.mrb[64].mxu1 %vm1388_vm2, %v22944_v47  ;;  %v7899_v34 = vld [vmem:[#allocation4 + $0x190] sm:$0xff]  ;;  %v22976_v48 = vpack.c.bf16 %v7897_v12, %v7896_v4  ;;  %v7900_v20 = vld [vmem:[#allocation4 + $0x1a8] sm:$0xff] }
 0x84d   : > { %18171 = vmatprep.mubr.msk.bf16.mxu1 %vm1388_vm2, %v22946_v15  ;;  %v22978_v19 = vpack.c.bf16 %v7899_v34, %v7898_v22  ;;  %v7901_v37 = vld [vmem:[#allocation4 + $0x1b0] sm:$0xff]  ;;  %v7902_v50 = vld [vmem:[#allocation4 + $0x1c8] sm:$0xff] }
 0x84e   : > { %v7903_v29 = vld [vmem:[#allocation4 + $0x1d0] sm:$0xff]  ;;  %v22984_v58 = vpack.c.bf16 %v7901_v37, %v7900_v20  ;;  %v7824_v42 = vld [vmem:[#allocation4 + $0x7] sm:$0xff] }
 0x84f   : > { %v22986_v38 = vpack.c.bf16 %v7903_v29, %v7902_v50  ;;  %v7825_v61 = vld [vmem:[#allocation4 + $0xf] sm:$0xff]  ;;  %v7826_v52 = vld [vmem:[#allocation4 + $0x27] sm:$0xff] }
 0x850   : > { %v7904_v63 = vld [vmem:[#allocation4 + $0x1e8] sm:$0xff]  ;;  %v7905_v0 = vld [vmem:[#allocation4 + $0x1f0] sm:$0xff]  ;;  %v7856_v24 = vpack.c.bf16 %v7825_v61, %v7824_v42 }
 0x851   : > { %v22992_v44 = vpack.c.bf16 %v7905_v0, %v7904_v63  ;;  %v7827_v53 = vld [vmem:[#allocation4 + $0x2f] sm:$0xff]  ;;  %v7828_v35 = vld [vmem:[#allocation4 + $0x47] sm:$0xff] }
 0x852   : > { %v7829_v30 = vld [vmem:[#allocation4 + $0x4f] sm:$0xff]  ;;  %v22997_v23 = vpack.c.bf16 %v7827_v53, %v7826_v52  ;;  %v7830_v45 = vld [vmem:[#allocation4 + $0x67] sm:$0xff] }
 0x853   : > { %v23000_v57 = vld [vmem:[%s20452_s19 + $0x18] sm:$0xff]   ;;  %v23002_v13 = vpack.c.bf16 %v7829_v30, %v7828_v35 }
 0x854   : > { %18172 = vmatmul.mubr.msk.bf16.gmra.mrb[68].mxu1 %vm1388_vm2, %v22952_v31  ;;  %v7831_v43 = vld [vmem:[#allocation4 + $0x6f] sm:$0xff]  ;;  %v7832_v39 = vld [vmem:[#allocation4 + $0x87] sm:$0xff] }
 0x855   : > { %18175 = vmatprep.mubr.msk.bf16.mxu1 %vm1388_vm2, %v22954_v25  ;;  %v7833_v62 = vld [vmem:[#allocation4 + $0x8f] sm:$0xff]  ;;  %v23010_v36 = vpack.c.bf16 %v7831_v43, %v7830_v45  ;;  %v7834_v41 = vld [vmem:[#allocation4 + $0xa7] sm:$0xff] }
 0x856   : > { %v23012_v3 = vpack.c.bf16 %v7833_v62, %v7832_v39  ;;  %v7835_v9 = vld [vmem:[#allocation4 + $0xaf] sm:$0xff]  ;;  %v7836_v51 = vld [vmem:[#allocation4 + $0xc7] sm:$0xff] }
 0x857   : > { %v23018_v18 = vpack.c.bf16 %v7835_v9, %v7834_v41  ;;  %v7838_v10 = vld [vmem:[#allocation4 + $0xe7] sm:$0xff]  ;;  %v7839_v21 = vld [vmem:[#allocation4 + $0xef] sm:$0xff] }
 0x858   : > { %v7840_v55 = vld [vmem:[#allocation4 + $0x107] sm:$0xff]  ;;  %v7841_v14 = vld [vmem:[#allocation4 + $0x10f] sm:$0xff]  ;;  %v23026_v54 = vpack.c.bf16 %v7839_v21, %v7838_v10 }
 0x859   : > { %v23028_v46 = vpack.c.bf16 %v7841_v14, %v7840_v55  ;;  %v7842_v33 = vld [vmem:[#allocation4 + $0x127] sm:$0xff]  ;;  %v7843_v4 = vld [vmem:[#allocation4 + $0x12f] sm:$0xff] }
 0x85a   : > { %v7844_v12 = vld [vmem:[#allocation4 + $0x147] sm:$0xff]  ;;  %v7845_v22 = vld [vmem:[#allocation4 + $0x14f] sm:$0xff]  ;;  %v23034_v34 = vpack.c.bf16 %v7843_v4, %v7842_v33 }
 0x85b   : > { %v23036_v20 = vpack.c.bf16 %v7845_v22, %v7844_v12  ;;  %v7846_v37 = vld [vmem:[#allocation4 + $0x167] sm:$0xff]  ;;  %v7847_v50 = vld [vmem:[#allocation4 + $0x16f] sm:$0xff] }
 0x85c   : > { %18176 = vmatmul.mubr.msk.bf16.gmra.mrb[72].mxu1 %vm1388_vm2, %v22960_v40  ;;  %v7848_v29 = vld [vmem:[#allocation4 + $0x187] sm:$0xff]  ;;  %v7849_v42 = vld [vmem:[#allocation4 + $0x18f] sm:$0xff]  ;;  %v23042_v61 = vpack.c.bf16 %v7847_v50, %v7846_v37 }
 0x85d   : > { %18179 = vmatprep.mubr.msk.bf16.mxu1 %vm1388_vm2, %v22962_v6  ;;  %v23044_v63 = vpack.c.bf16 %v7849_v42, %v7848_v29  ;;  %v7850_v0 = vld [vmem:[#allocation4 + $0x1a7] sm:$0xff]  ;;  %v7853_v53 = vld [vmem:[#allocation4 + $0x1cf] sm:$0xff] }
 0x85e   : > { %v7852_v52 = vld [vmem:[#allocation4 + $0x1c7] sm:$0xff]  ;;  %v8356_v43 = vld [vmem:[#allocation4 + $0x11] sm:$0xff] }
 0x85f   : > { %v23052_v30 = vpack.c.bf16 %v7853_v53, %v7852_v52  ;;  %v8355_v45 = vld [vmem:[#allocation4 + $0x9] sm:$0xff]  ;;  %v8360_v21 = vld [vmem:[#allocation4 + $0x51] sm:$0xff] }
 0x860   : > { %v7854_v39 = vld [vmem:[#allocation4 + $0x1e7] sm:$0xff]  ;;  %v7855_v62 = vld [vmem:[#allocation4 + $0x1ef] sm:$0xff]  ;;  %v8387_v41 = vpack.c.bf16 %v8356_v43, %v8355_v45 }
 0x861   : > { %v23058_v9 = vpack.c.bf16 %v7855_v62, %v7854_v39  ;;  %v8359_v10 = vld [vmem:[#allocation4 + $0x49] sm:$0xff]  ;;  %v8362_v12 = vld [vmem:[#allocation4 + $0x71] sm:$0xff] }
 0x862   : > { %v20187_v14 = vld [vmem:[%s20452_s19 + $0x20] sm:$0xff]   ;;  %v23066_v33 = vpack.c.bf16 %v8360_v21, %v8359_v10 }
 0x863   : > { %v8361_v4 = vld [vmem:[#allocation4 + $0x69] sm:$0xff]  ;;  %v8364_v37 = vld [vmem:[#allocation4 + $0x91] sm:$0xff] }
 0x864   : > { %18180 = vmatmul.mubr.msk.bf16.gmra.mrb[76].mxu1 %vm1388_vm2, %v22968_v16  ;;  %v8363_v22 = vld [vmem:[#allocation4 + $0x89] sm:$0xff]  ;;  %v23073_v50 = vpack.c.bf16 %v8362_v12, %v8361_v4  ;;  %v8368_v52 = vld [vmem:[#allocation4 + $0xd1] sm:$0xff] }
 0x865   : > { %18183 = vmatprep.mubr.msk.bf16.mxu1 %vm1388_vm2, %v22970_v32  ;;  %v23075_v29 = vpack.c.bf16 %v8364_v37, %v8363_v22  ;;  %v8365_v42 = vld [vmem:[#allocation4 + $0xa9] sm:$0xff]  ;;  %v8370_v43 = vld [vmem:[#allocation4 + $0xf1] sm:$0xff] }
 0x866   : > { %v8369_v45 = vld [vmem:[#allocation4 + $0xe9] sm:$0xff]  ;;  %v8372_v62 = vld [vmem:[#allocation4 + $0x111] sm:$0xff] }
 0x867   : > { %v8371_v39 = vld [vmem:[#allocation4 + $0x109] sm:$0xff]  ;;  %v8374_v10 = vld [vmem:[#allocation4 + $0x131] sm:$0xff] }
 0x868   : > { %v8375_v21 = vld [vmem:[#allocation4 + $0x149] sm:$0xff]  ;;  %v8376_v4 = vld [vmem:[#allocation4 + $0x151] sm:$0xff] }
 0x869   : > { %v23099_v22 = vpack.c.bf16 %v8376_v4, %v8375_v21  ;;  %v8377_v37 = vld [vmem:[#allocation4 + $0x169] sm:$0xff] }
 0x86a   : > { %v8385_v4 = vld [vmem:[#allocation4 + $0x1e9] sm:$0xff] }
 0x86c   : > { %18184 = vmatmul.mubr.msk.bf16.gmra.mrb[80].mxu1 %vm1388_vm2, %v22976_v48 }
 0x86d   : > { %18187 = vmatprep.mubr.msk.bf16.mxu1 %vm1388_vm2, %v22978_v19 }
 0x874   : > { %18188 = vmatmul.mubr.msk.bf16.gmra.mrb[84].mxu1 %vm1388_vm2, %v22984_v58 }
 0x875   : > { %18191 = vmatprep.mubr.msk.bf16.mxu1 %vm1388_vm2, %v22986_v38 }
 0x87c   : > { %18192 = vmatmul.mubr.msk.bf16.gmra.mrb[88].mxu1 %vm1388_vm2, %v22992_v44 }
 0x87d   : > { %18197 = vmatprep.mubr.msk.bf16.mxu1 %vm1388_vm2, %v7856_v24  ;;  %v7851_v24 = vld [vmem:[#allocation4 + $0x1af] sm:$0xff] }
 0x87e   : > { %v23050_v35 = vpack.c.bf16 %v7851_v24, %v7850_v0  ;;  %v8366_v0 = vld [vmem:[#allocation4 + $0xb1] sm:$0xff]  ;;  %v8367_v24 = vld [vmem:[#allocation4 + $0xc9] sm:$0xff] }
 0x87f   : > { %v23083_v53 = vpack.c.bf16 %v8368_v52, %v8367_v24  ;;  %v8380_v24 = vld [vmem:[#allocation4 + $0x191] sm:$0xff] }
 0x884   : > { %18198 = vmatmul.mubr.msk.bf16.vlgmr.msra.gmra.mrb[60].mxu1 %vm1388_vm2, %v22997_v23 }
 0x885   : > { %18201 = vmatprep.mubr.msk.bf16.mxu1 %vm1388_vm2, %v23002_v13  ;;  %18230 = vmatpush3.bf16.msra.mxu1 %v22936_v49  ;;  %v7837_v49 = vld [vmem:[#allocation4 + $0xcf] sm:$0xff] }
 0x886   : > { %18263 = vmatprep.subr.bf16.mxu1 %v23000_v57  ;;  %v23020_v26 = vpack.c.bf16 %v7837_v49, %v7836_v51  ;;  %v8357_v51 = vld [vmem:[#allocation4 + $0x29] sm:$0xff]  ;;  %v8358_v49 = vld [vmem:[#allocation4 + $0x31] sm:$0xff] }
 0x887   : > { %v23063_v55 = vpack.c.bf16 %v8358_v49, %v8357_v51  ;;  %v23091_v51 = vpack.c.bf16 %v8372_v62, %v8371_v39  ;;  %v8373_v49 = vld [vmem:[#allocation4 + $0x129] sm:$0xff]  ;;  %v8382_v39 = vld [vmem:[#allocation4 + $0x1b1] sm:$0xff] }
 0x888   : > { %v23097_v12 = vpack.c.bf16 %v8374_v10, %v8373_v49  ;;  %v8383_v62 = vld [vmem:[#allocation4 + $0x1c9] sm:$0xff]  ;;  %v8384_v49 = vld [vmem:[#allocation4 + $0x1d1] sm:$0xff] }
 0x889   : > { %v23115_v21 = vpack.c.bf16 %v8384_v49, %v8383_v62  ;;  %v20190_v49 = vld [vmem:[%s20452_s19 + $0x38] sm:$0xff]  }
 0x88c   : > { %18202 = vmatmul.mubr.msk.bf16.gmra.mrb[64].mxu1 %vm1388_vm2, %v23010_v36 }
 0x88d   : > { %18205 = vmatprep.mubr.msk.bf16.mxu1 %vm1388_vm2, %v23012_v3 }
 0x894   : > { %18206 = vmatmul.mubr.msk.bf16.gmra.mrb[68].mxu1 %vm1388_vm2, %v23018_v18 }
 0x895   : > { %18209 = vmatprep.mubr.msk.bf16.mxu1 %vm1388_vm2, %v23020_v26 }
 0x89c   : > { %18210 = vmatmul.mubr.msk.bf16.gmra.mrb[72].mxu1 %vm1388_vm2, %v23026_v54 }
 0x89d   : > { %18213 = vmatprep.mubr.msk.bf16.mxu1 %vm1388_vm2, %v23028_v46 }
 0x8a4   : > { %18214 = vmatmul.mubr.msk.bf16.gmra.mrb[76].mxu1 %vm1388_vm2, %v23034_v34 }
 0x8a5   : > { %18217 = vmatprep.mubr.msk.bf16.mxu1 %vm1388_vm2, %v23036_v20 }
 0x8ac   : > { %18218 = vmatmul.mubr.msk.bf16.gmra.mrb[80].mxu1 %vm1388_vm2, %v23042_v61 }
 0x8ad   : > { %18221 = vmatprep.mubr.msk.bf16.mxu1 %vm1388_vm2, %v23044_v63 }
 0x8b4   : > { %18222 = vmatmul.mubr.msk.bf16.gmra.mrb[84].mxu1 %vm1388_vm2, %v23050_v35 }
 0x8b5   : > { %18225 = vmatprep.mubr.msk.bf16.mxu1 %vm1388_vm2, %v23052_v30 }
 0x8bc   : > { %18226 = vmatmul.mubr.msk.bf16.gmra.mrb[88].mxu1 %vm1388_vm2, %v23058_v9 }
 0x8bd   : > { %18231 = vmatprep.mubr.msk.bf16.mxu1 %vm1388_vm2, %v8387_v41  ;;  %v23089_v41 = vpack.c.bf16 %v8370_v43, %v8369_v45  ;;  %v8381_v43 = vld [vmem:[#allocation4 + $0x1a9] sm:$0xff] }
 0x8be   : > { %v23113_v10 = vpack.c.bf16 %v8382_v39, %v8381_v43  ;;  %v20189_v43 = vld [vmem:[%s20452_s19 + $0x30] sm:$0xff]   ;;  %v8982_v39 = vld [vmem:[#allocation4 + $0x210] sm:$0xff] }
 0x8c4   : > { %18232 = vmatmul.mubr.msk.bf16.vlgmr.msra.gmra.mrb[60].mxu1 %vm1388_vm2, %v23063_v55 }
 0x8c5   : > { %18235 = vmatprep.mubr.msk.bf16.mxu1 %vm1388_vm2, %v23066_v33  ;;  %18264 = vmatpush3.bf16.msra.mxu1 %v23000_v57  ;;  %v23081_v57 = vpack.c.bf16 %v8366_v0, %v8365_v42  ;;  %v8378_v42 = vld [vmem:[#allocation4 + $0x171] sm:$0xff]  ;;  %v8379_v0 = vld [vmem:[#allocation4 + $0x189] sm:$0xff] }
 0x8c6   : > { %18297 = vmatprep.subr.bf16.mxu1 %v20187_v14  ;;  %v23105_v52 = vpack.c.bf16 %v8378_v42, %v8377_v37  ;;  %v23107_v45 = vpack.c.bf16 %v8380_v24, %v8379_v0  ;;  %v8386_v37 = vld [vmem:[#allocation4 + $0x1f1] sm:$0xff] }
 0x8c7   : > { %v23121_v42 = vpack.c.bf16 %v8386_v37, %v8385_v4  ;;  %v20188_v0 = vld [vmem:[%s20452_s19 + $0x28] sm:$0xff]  }
 0x8c8   : > { %v9280_v4 = vld [vmem:[#allocation4 + $0x211] sm:$0xff] }
 0x8cc   : > { %18236 = vmatmul.mubr.msk.bf16.gmra.mrb[64].mxu1 %vm1388_vm2, %v23073_v50 }
 0x8cd   : > { %18239 = vmatprep.mubr.msk.bf16.mxu1 %vm1388_vm2, %v23075_v29 }
 0x8d4   : > { %18240 = vmatmul.mubr.msk.bf16.gmra.mrb[68].mxu1 %vm1388_vm2, %v23081_v57 }
 0x8d5   : > { %18243 = vmatprep.mubr.msk.bf16.mxu1 %vm1388_vm2, %v23083_v53 }
 0x8dc   : > { %18244 = vmatmul.mubr.msk.bf16.gmra.mrb[72].mxu1 %vm1388_vm2, %v23089_v41 }
 0x8dd   : > { %18247 = vmatprep.mubr.msk.bf16.mxu1 %vm1388_vm2, %v23091_v51 }
 0x8e4   : > { %18248 = vmatmul.mubr.msk.bf16.gmra.mrb[76].mxu1 %vm1388_vm2, %v23097_v12 }
 0x8e5   : > { %18251 = vmatprep.mubr.msk.bf16.mxu1 %vm1388_vm2, %v23099_v22 }
 0x8ec   : > { %18252 = vmatmul.mubr.msk.bf16.gmra.mrb[80].mxu1 %vm1388_vm2, %v23105_v52 }
 0x8ed   : > { %18255 = vmatprep.mubr.msk.bf16.mxu1 %vm1388_vm2, %v23107_v45 }
 0x8f4   : > { %18256 = vmatmul.mubr.msk.bf16.gmra.mrb[84].mxu1 %vm1388_vm2, %v23113_v10 }
 0x8f5   : > { %18259 = vmatprep.mubr.msk.bf16.mxu1 %vm1388_vm2, %v23115_v21 }
 0x8fc   : > { %18260 = vmatmul.mubr.msk.bf16.gmra.mrb[88].mxu1 %vm1388_vm2, %v23121_v42 }
 0x8fd   : > { %18265 = vmatprep.mubr.msk.bf16.mxu1 %vm1388_vm2, %v22997_v23  ;;  %v8683_v23 = vld [vmem:[#allocation4 + $0x207] sm:$0xff] }
 0x904   : > { %18266 = vmatmul.mubr.msk.bf16.vlgmr.msra.gmra.mrb[60].mxu1 %vm1388_vm2, %v23002_v13 }
 0x905   : > { %18269 = vmatprep.mubr.msk.bf16.mxu1 %vm1388_vm2, %v23010_v36  ;;  %18298 = vmatpush3.bf16.msra.mxu1 %v20187_v14  ;;  %v8684_v14 = vld [vmem:[#allocation4 + $0x20f] sm:$0xff] }
 0x906   : > { %18331 = vmatprep.subr.bf16.mxu1 %v20188_v0  ;;  %v23156_v24 = vpack.c.bf16 %v8684_v14, %v8683_v23 }
 0x90c   : > { %18270 = vmatmul.mubr.msk.bf16.gmra.mrb[64].mxu1 %vm1388_vm2, %v23012_v3 }
 0x90d   : > { %18273 = vmatprep.mubr.msk.bf16.mxu1 %vm1388_vm2, %v23018_v18 }
 0x914   : > { %18274 = vmatmul.mubr.msk.bf16.gmra.mrb[68].mxu1 %vm1388_vm2, %v23020_v26 }
 0x915   : > { %18277 = vmatprep.mubr.msk.bf16.mxu1 %vm1388_vm2, %v23026_v54 }
 0x91c   : > { %18278 = vmatmul.mubr.msk.bf16.gmra.mrb[72].mxu1 %vm1388_vm2, %v23028_v46 }
 0x91d   : > { %18281 = vmatprep.mubr.msk.bf16.mxu1 %vm1388_vm2, %v23034_v34 }
 0x924   : > { %18282 = vmatmul.mubr.msk.bf16.gmra.mrb[76].mxu1 %vm1388_vm2, %v23036_v20 }
 0x925   : > { %18285 = vmatprep.mubr.msk.bf16.mxu1 %vm1388_vm2, %v23042_v61 }
 0x92c   : > { %18286 = vmatmul.mubr.msk.bf16.gmra.mrb[80].mxu1 %vm1388_vm2, %v23044_v63 }
 0x92d   : > { %18289 = vmatprep.mubr.msk.bf16.mxu1 %vm1388_vm2, %v23050_v35 }
 0x934   : > { %18290 = vmatmul.mubr.msk.bf16.gmra.mrb[84].mxu1 %vm1388_vm2, %v23052_v30 }
 0x935   : > { %18293 = vmatprep.mubr.msk.bf16.mxu1 %vm1388_vm2, %v23058_v9 }
 0x93c   : > { %18294 = vmatmul.mubr.msk.bf16.gmra.mrb[88].mxu1 %vm1388_vm2, %v23156_v24 }
 0x93d   : > { %18299 = vmatprep.mubr.msk.bf16.mxu1 %vm1388_vm2, %v22931_v8  ;;  %v8981_v8 = vld [vmem:[#allocation4 + $0x208] sm:$0xff] }
 0x93e   : > { %v8998_v62 = vpack.c.bf16 %v8982_v39, %v8981_v8 }
 0x944   : > { %18300 = vmatmul.mubr.msk.bf16.vlgmr.msra.gmra.mrb[60].mxu1 %vm1388_vm2, %v22933_v11 }
 0x945   : > { %18303 = vmatprep.mubr.msk.bf16.mxu1 %vm1388_vm2, %v22944_v47  ;;  %18332 = vmatpush3.bf16.msra.mxu1 %v20188_v0  ;;  %v20191_v0 = vld [vmem:[%s20452_s19 + $0x40] sm:$0xff]  }
 0x946   : > { %18365 = vmatprep.subr.bf16.mxu1 %v20189_v43 }
 0x94c   : > { %18304 = vmatmul.mubr.msk.bf16.gmra.mrb[64].mxu1 %vm1388_vm2, %v22946_v15 }
 0x94d   : > { %18307 = vmatprep.mubr.msk.bf16.mxu1 %vm1388_vm2, %v22952_v31 }
 0x954   : > { %18308 = vmatmul.mubr.msk.bf16.gmra.mrb[68].mxu1 %vm1388_vm2, %v22954_v25 }
 0x955   : > { %18311 = vmatprep.mubr.msk.bf16.mxu1 %vm1388_vm2, %v22960_v40 }
 0x95c   : > { %18312 = vmatmul.mubr.msk.bf16.gmra.mrb[72].mxu1 %vm1388_vm2, %v22962_v6 }
 0x95d   : > { %18315 = vmatprep.mubr.msk.bf16.mxu1 %vm1388_vm2, %v22968_v16 }
 0x964   : > { %18316 = vmatmul.mubr.msk.bf16.gmra.mrb[76].mxu1 %vm1388_vm2, %v22970_v32 }
 0x965   : > { %18319 = vmatprep.mubr.msk.bf16.mxu1 %vm1388_vm2, %v22976_v48 }
 0x96c   : > { %18320 = vmatmul.mubr.msk.bf16.gmra.mrb[80].mxu1 %vm1388_vm2, %v22978_v19 }
 0x96d   : > { %18323 = vmatprep.mubr.msk.bf16.mxu1 %vm1388_vm2, %v22984_v58 }
 0x974   : > { %18324 = vmatmul.mubr.msk.bf16.gmra.mrb[84].mxu1 %vm1388_vm2, %v22986_v38 }
 0x975   : > { %18327 = vmatprep.mubr.msk.bf16.mxu1 %vm1388_vm2, %v22992_v44 }
 0x97c   : > { %18328 = vmatmul.mubr.msk.bf16.gmra.mrb[88].mxu1 %vm1388_vm2, %v8998_v62 }
 0x97d   : > { %18333 = vmatprep.mubr.msk.bf16.mxu1 %vm1388_vm2, %v23063_v55  ;;  %v9279_v55 = vld [vmem:[#allocation4 + $0x209] sm:$0xff] }
 0x97e   : > { %v9296_v37 = vpack.c.bf16 %v9280_v4, %v9279_v55 }
 0x984   : > { %18334 = vmatmul.mubr.msk.bf16.vlgmr.msra.gmra.mrb[60].mxu1 %vm1388_vm2, %v23066_v33 }
 0x985   : > { %18337 = vmatprep.mubr.msk.bf16.mxu1 %vm1388_vm2, %v23073_v50  ;;  %18366 = vmatpush3.bf16.msra.mxu1 %v20189_v43 }
 0x986   : > { %18399 = vmatprep.subr.bf16.mxu1 %v20190_v49 }
 0x98c   : > { %18338 = vmatmul.mubr.msk.bf16.gmra.mrb[64].mxu1 %vm1388_vm2, %v23075_v29 }
 0x98d   : > { %18341 = vmatprep.mubr.msk.bf16.mxu1 %vm1388_vm2, %v23081_v57 }
 0x994   : > { %18342 = vmatmul.mubr.msk.bf16.gmra.mrb[68].mxu1 %vm1388_vm2, %v23083_v53 }
 0x995   : > { %18345 = vmatprep.mubr.msk.bf16.mxu1 %vm1388_vm2, %v23089_v41 }
 0x99c   : > { %18346 = vmatmul.mubr.msk.bf16.gmra.mrb[72].mxu1 %vm1388_vm2, %v23091_v51 }
 0x99d   : > { %18349 = vmatprep.mubr.msk.bf16.mxu1 %vm1388_vm2, %v23097_v12 }
 0x9a4   : > { %18350 = vmatmul.mubr.msk.bf16.gmra.mrb[76].mxu1 %vm1388_vm2, %v23099_v22 }
 0x9a5   : > { %18353 = vmatprep.mubr.msk.bf16.mxu1 %vm1388_vm2, %v23105_v52 }
 0x9ac   : > { %18354 = vmatmul.mubr.msk.bf16.gmra.mrb[80].mxu1 %vm1388_vm2, %v23107_v45 }
 0x9ad   : > { %18357 = vmatprep.mubr.msk.bf16.mxu1 %vm1388_vm2, %v23113_v10 }
 0x9b4   : > { %18358 = vmatmul.mubr.msk.bf16.gmra.mrb[84].mxu1 %vm1388_vm2, %v23115_v21 }
 0x9b5   : > { %18361 = vmatprep.mubr.msk.bf16.mxu1 %vm1388_vm2, %v23121_v42 }
 0x9bc   : > { %18362 = vmatmul.mubr.msk.bf16.gmra.mrb[88].mxu1 %vm1388_vm2, %v9296_v37 }
 0x9bd   : > { %18367 = vmatprep.mubr.msk.bf16.mxu1 %vm1388_vm2, %v23002_v13  ;;  %v9578_v13 = vld [vmem:[#allocation4 + $0x227] sm:$0xff] }
 0x9c4   : > { %18368 = vmatmul.mubr.msk.bf16.vlgmr.msra.gmra.mrb[60].mxu1 %vm1388_vm2, %v23010_v36  ;;  %v9579_v36 = vld [vmem:[#allocation4 + $0x22f] sm:$0xff] }
 0x9c5   : > { %18371 = vmatprep.mubr.msk.bf16.mxu1 %vm1388_vm2, %v23012_v3  ;;  %18400 = vmatpush3.bf16.msra.mxu1 %v20190_v49  ;;  %v9595_v3 = vpack.c.bf16 %v9579_v36, %v9578_v13 }
 0x9c6   : > { %18433 = vmatprep.subr.bf16.mxu1 %v20191_v0 }
 0x9cc   : > { %18372 = vmatmul.mubr.msk.bf16.gmra.mrb[64].mxu1 %vm1388_vm2, %v23018_v18  ;;  %v23349_v18 = vld [vmem:[%s20457_s24] ss:$0 sm:$0xff] }
 0x9cd   : > { %18375 = vmatprep.mubr.msk.bf16.mxu1 %vm1388_vm2, %v23020_v26 }
 0x9d4   : > { %18376 = vmatmul.mubr.msk.bf16.gmra.mrb[68].mxu1 %vm1388_vm2, %v23026_v54 }
 0x9d5   : > { %18379 = vmatprep.mubr.msk.bf16.mxu1 %vm1388_vm2, %v23028_v46 }
 0x9dc   : > { %18380 = vmatmul.mubr.msk.bf16.gmra.mrb[72].mxu1 %vm1388_vm2, %v23034_v34 }
 0x9dd   : > { %18383 = vmatprep.mubr.msk.bf16.mxu1 %vm1388_vm2, %v23036_v20 }
 0x9e4   : > { %18384 = vmatmul.mubr.msk.bf16.gmra.mrb[76].mxu1 %vm1388_vm2, %v23042_v61 }
 0x9e5   : > { %18387 = vmatprep.mubr.msk.bf16.mxu1 %vm1388_vm2, %v23044_v63 }
 0x9ec   : > { %18388 = vmatmul.mubr.msk.bf16.gmra.mrb[80].mxu1 %vm1388_vm2, %v23050_v35 }
 0x9ed   : > { %18391 = vmatprep.mubr.msk.bf16.mxu1 %vm1388_vm2, %v23052_v30 }
 0x9f4   : > { %18392 = vmatmul.mubr.msk.bf16.gmra.mrb[84].mxu1 %vm1388_vm2, %v23058_v9 }
 0x9f5   : > { %18395 = vmatprep.mubr.msk.bf16.mxu1 %vm1388_vm2, %v23156_v24 }
 0x9fc   : > { %18396 = vmatmul.mubr.msk.bf16.gmra.mrb[88].mxu1 %vm1388_vm2, %v9595_v3 }
 0x9fd   : > { %18401 = vmatprep.mubr.msk.bf16.mxu1 %vm1388_vm2, %v22933_v11  ;;  %v9876_v11 = vld [vmem:[#allocation4 + $0x228] sm:$0xff] }
 0xa04   : > { %18402 = vmatmul.mubr.msk.bf16.vlgmr.msra.gmra.mrb[60].mxu1 %vm1388_vm2, %v22944_v47  ;;  %v9877_v47 = vld [vmem:[#allocation4 + $0x230] sm:$0xff] }
 0xa05   : > { %18405 = vmatprep.mubr.msk.bf16.mxu1 %vm1388_vm2, %v22946_v15  ;;  %18434 = vmatpush3.bf16.msra.mxu1 %v20191_v0  ;;  %v9893_v15 = vpack.c.bf16 %v9877_v47, %v9876_v11 }
 0xa0c   : > { %18406 = vmatmul.mubr.msk.bf16.gmra.mrb[64].mxu1 %vm1388_vm2, %v22952_v31  ;;  %v10174_v31 = vld [vmem:[#allocation4 + $0x229] sm:$0xff] }
 0xa0d   : > { %18409 = vmatprep.mubr.msk.bf16.mxu1 %vm1388_vm2, %v22954_v25  ;;  %v10175_v25 = vld [vmem:[#allocation4 + $0x231] sm:$0xff] }
 0xa14   : > { %18410 = vmatmul.mubr.msk.bf16.gmra.mrb[68].mxu1 %vm1388_vm2, %v22960_v40  ;;  %v10191_v40 = vpack.c.bf16 %v10175_v25, %v10174_v31 }
 0xa15   : > { %18413 = vmatprep.mubr.msk.bf16.mxu1 %vm1388_vm2, %v22962_v6  ;;  %v24822_v6 = vmov 0.0  }
 0xa16   : > { %10931 = vst.msk [vmem:[#allocation6] sm:$0xff] %vm10483_vm4, %v24822_v6  ;;  %10932 = vst.msk [vmem:[#allocation6 + $0x8] sm:$0xff] %vm10483_vm4, %v24822_v6  ;;  %18475 = vmatprep.mubr.msk.f32.mxu0 %vm20392_vm5, %v24822_v6 }
 0xa17   : > { %10933 = vst.msk [vmem:[#allocation6 + $0x10] sm:$0xff] %vm10483_vm4, %v24822_v6  ;;  %10934 = vst.msk [vmem:[#allocation6 + $0x18] sm:$0xff] %vm10483_vm4, %v24822_v6 }
 0xa18   : > { %13093 = vst.msk [vmem:[#allocation7] sm:$0xff] %vm10483_vm4, %v24822_v6  ;;  %13094 = vst.msk [vmem:[#allocation7 + $0x8] sm:$0xff] %vm10483_vm4, %v24822_v6 }
 0xa19   : > { %13095 = vst.msk [vmem:[#allocation7 + $0x10] sm:$0xff] %vm10483_vm4, %v24822_v6  ;;  %13097 = vst.msk [vmem:[#allocation7 + $0xd8] sm:$0xff] %vm10483_vm4, %v24822_v6 }
 0xa1a   : > { %13098 = vst.msk [vmem:[#allocation7 + $0xe0] sm:$0xff] %vm10483_vm4, %v24822_v6  ;;  %13099 = vst.msk [vmem:[#allocation7 + $0xe8] sm:$0xff] %vm10483_vm4, %v24822_v6 }
 0xa1b   : > { %10952 = vst.msk [vmem:[#allocation6 + $0x7] sm:$0x1] %vm10935_vm7, %v24822_v6  ;;  %10936 = vst.msk [vmem:[#allocation5 + $0x7] sm:$0x1] %vm10935_vm7, %v24822_v6 }
 0xa1c   : > { %18414 = vmatmul.mubr.msk.bf16.gmra.mrb[72].mxu1 %vm1388_vm2, %v22968_v16  ;;  %v10656_v16 = vld [vmem:[%s24714_s6] sm:$0xff]  ;;  %10937 = vst.msk [vmem:[#allocation5 + $0x27] sm:$0x1] %vm10935_vm7, %v24822_v6  ;;  %10938 = vst.msk [vmem:[#allocation5 + $0x47] sm:$0x1] %vm10935_vm7, %v24822_v6 }
 0xa1d   : > { %18417 = vmatprep.mubr.msk.bf16.mxu1 %vm1388_vm2, %v22970_v32  ;;  %v10657_v32 = vld [vmem:[%s24714_s6 + $0x8] sm:$0xff]  ;;  %10939 = vst.msk [vmem:[#allocation5 + $0x67] sm:$0x1] %vm10935_vm7, %v24822_v6  ;;  %10940 = vst.msk [vmem:[#allocation5 + $0x87] sm:$0x1] %vm10935_vm7, %v24822_v6 }
 0xa1e   : > { %10941 = vst.msk [vmem:[#allocation5 + $0xa7] sm:$0x1] %vm10935_vm7, %v24822_v6  ;;  %10942 = vst.msk [vmem:[#allocation5 + $0xc7] sm:$0x1] %vm10935_vm7, %v24822_v6 }
 0xa1f   : > { %10943 = vst.msk [vmem:[#allocation5 + $0xe7] sm:$0x1] %vm10935_vm7, %v24822_v6  ;;  %10944 = vst.msk [vmem:[#allocation5 + $0x18] sm:$0x1] %vm10935_vm7, %v24822_v6 }
 0xa20   : > { %10945 = vst.msk [vmem:[#allocation5 + $0x38] sm:$0x1] %vm10935_vm7, %v24822_v6  ;;  %10946 = vst.msk [vmem:[#allocation5 + $0x58] sm:$0x1] %vm10935_vm7, %v24822_v6 }
 0xa21   : > { %10947 = vst.msk [vmem:[#allocation5 + $0x78] sm:$0x1] %vm10935_vm7, %v24822_v6  ;;  %10948 = vst.msk [vmem:[#allocation5 + $0x98] sm:$0x1] %vm10935_vm7, %v24822_v6 }
 0xa22   : > { %10949 = vst.msk [vmem:[#allocation5 + $0xb8] sm:$0x1] %vm10935_vm7, %v24822_v6  ;;  %10950 = vst.msk [vmem:[#allocation5 + $0xd8] sm:$0x1] %vm10935_vm7, %v24822_v6 }
 0xa23   : > { %10951 = vst.msk [vmem:[#allocation5 + $0xf8] sm:$0x1] %vm10935_vm7, %v24822_v6  ;;  %10953 = vst.msk [vmem:[#allocation6 + $0x27] sm:$0x1] %vm10935_vm7, %v24822_v6 }
 0xa24   : > { %18418 = vmatmul.mubr.msk.bf16.gmra.mrb[76].mxu1 %vm1388_vm2, %v22976_v48  ;;  %v24662_v48 = vmov 0.0|0.0   ;;  %10954 = vst.msk [vmem:[#allocation6 + $0x47] sm:$0x1] %vm10935_vm7, %v24822_v6  ;;  %10955 = vst.msk [vmem:[#allocation6 + $0x67] sm:$0x1] %vm10935_vm7, %v24822_v6 }
 0xa25   : > { %18421 = vmatprep.mubr.msk.bf16.mxu1 %vm1388_vm2, %v22978_v19  ;;  %19021 = vmatprep.subr.bf16.mxu0 %v24662_v48  ;;  %v19022_v19 = vpack.c.bf16 %v10657_v32, %v10656_v16  ;;  %10956 = vst.msk [vmem:[#allocation6 + $0x87] sm:$0x1] %vm10935_vm7, %v24822_v6  ;;  %10957 = vst.msk [vmem:[#allocation6 + $0xa7] sm:$0x1] %vm10935_vm7, %v24822_v6 }
 0xa26   : > { %19051 = vmatprep.subr.bf16.mxu1 %v24662_v48  ;;  %10958 = vst.msk [vmem:[#allocation6 + $0xc7] sm:$0x1] %vm10935_vm7, %v24822_v6  ;;  %10959 = vst.msk [vmem:[#allocation6 + $0xe7] sm:$0x1] %vm10935_vm7, %v24822_v6 }
 0xa27   : > { %19023 = vmatpush3.bf16.msra.mxu0 %v19022_v19  ;;  %10960 = vst.msk [vmem:[#allocation6 + $0x107] sm:$0x1] %vm10935_vm7, %v24822_v6  ;;  %10961 = vst.msk [vmem:[#allocation6 + $0x18] sm:$0x1] %vm10935_vm7, %v24822_v6 }
 0xa28   : > { %19024 = vmatprep.subr.bf16.mxu0 %v24662_v48  ;;  %10962 = vst.msk [vmem:[#allocation6 + $0x38] sm:$0x1] %vm10935_vm7, %v24822_v6  ;;  %10963 = vst.msk [vmem:[#allocation6 + $0x58] sm:$0x1] %vm10935_vm7, %v24822_v6 }
 0xa29   : > { %10964 = vst.msk [vmem:[#allocation6 + $0x78] sm:$0x1] %vm10935_vm7, %v24822_v6  ;;  %10965 = vst.msk [vmem:[#allocation6 + $0x98] sm:$0x1] %vm10935_vm7, %v24822_v6 }
 0xa2a   : > { %10966 = vst.msk [vmem:[#allocation6 + $0xb8] sm:$0x1] %vm10935_vm7, %v24822_v6  ;;  %10967 = vst.msk [vmem:[#allocation6 + $0xd8] sm:$0x1] %vm10935_vm7, %v24822_v6 }
 0xa2b   : > { %10968 = vst.msk [vmem:[#allocation6 + $0xf8] sm:$0x1] %vm10935_vm7, %v24822_v6  ;;  %10969 = vst.msk [vmem:[#allocation6 + $0x118] sm:$0x1] %vm10935_vm7, %v24822_v6 }
 0xa2c   : > { %18422 = vmatmul.mubr.msk.bf16.gmra.mrb[80].mxu1 %vm1388_vm2, %v22984_v58  ;;  %v10658_v58 = vld [vmem:[%s24714_s6 + $0x10] sm:$0xff]  ;;  %13100 = vst.msk [vmem:[#allocation7 + $0x7] sm:$0x1] %vm10935_vm7, %v24822_v6  ;;  %13101 = vst.msk [vmem:[#allocation7 + $0x1f] sm:$0x1] %vm10935_vm7, %v24822_v6 }
 0xa2d   : > { %18425 = vmatprep.mubr.msk.bf16.mxu1 %vm1388_vm2, %v22986_v38  ;;  %v10659_v38 = vld [vmem:[%s24714_s6 + $0x18] sm:$0xff]  ;;  %13102 = vst.msk [vmem:[#allocation7 + $0x37] sm:$0x1] %vm10935_vm7, %v24822_v6  ;;  %13103 = vst.msk [vmem:[#allocation7 + $0x4f] sm:$0x1] %vm10935_vm7, %v24822_v6  ;;  %s24844_s6 = sld [smem:[#allocation25_spill]] }
 0xa2e   : > { %13104 = vst.msk [vmem:[#allocation7 + $0x67] sm:$0x1] %vm10935_vm7, %v24822_v6  ;;  %13105 = vst.msk [vmem:[#allocation7 + $0x7f] sm:$0x1] %vm10935_vm7, %v24822_v6 }
 0xa2f   : > { %13106 = vst.msk [vmem:[#allocation7 + $0x97] sm:$0x1] %vm10935_vm7, %v24822_v6  ;;  %13107 = vst.msk [vmem:[#allocation7 + $0xaf] sm:$0x1] %vm10935_vm7, %v24822_v6 }
 0xa30   : > { %13108 = vst.msk [vmem:[#allocation7 + $0xc7] sm:$0x1] %vm10935_vm7, %v24822_v6  ;;  %13109 = vst.msk [vmem:[#allocation7 + $0xdf] sm:$0x1] %vm10935_vm7, %v24822_v6 }
 0xa31   : > { %13110 = vst.msk [vmem:[#allocation7 + $0x10] sm:$0x1] %vm10935_vm7, %v24822_v6  ;;  %13111 = vst.msk [vmem:[#allocation7 + $0x28] sm:$0x1] %vm10935_vm7, %v24822_v6 }
 0xa32   : > { %13112 = vst.msk [vmem:[#allocation7 + $0x40] sm:$0x1] %vm10935_vm7, %v24822_v6  ;;  %13113 = vst.msk [vmem:[#allocation7 + $0x58] sm:$0x1] %vm10935_vm7, %v24822_v6 }
 0xa33   : > { %13114 = vst.msk [vmem:[#allocation7 + $0x70] sm:$0x1] %vm10935_vm7, %v24822_v6  ;;  %13115 = vst.msk [vmem:[#allocation7 + $0x88] sm:$0x1] %vm10935_vm7, %v24822_v6 }
 0xa34   : > { %18426 = vmatmul.mubr.msk.bf16.gmra.mrb[84].mxu1 %vm1388_vm2, %v22992_v44  ;;  %v19025_v44 = vpack.c.bf16 %v10659_v38, %v10658_v58  ;;  %13116 = vst.msk [vmem:[#allocation7 + $0xa0] sm:$0x1] %vm10935_vm7, %v24822_v6  ;;  %13117 = vst.msk [vmem:[#allocation7 + $0xb8] sm:$0x1] %vm10935_vm7, %v24822_v6 }
 0xa35   : > { %18429 = vmatprep.mubr.msk.bf16.mxu1 %vm1388_vm2, %v8998_v62  ;;  %13118 = vst.msk [vmem:[#allocation7 + $0xd0] sm:$0x1] %vm10935_vm7, %v24822_v6  ;;  %13119 = vst.msk [vmem:[#allocation7 + $0xe8] sm:$0x1] %vm10935_vm7, %v24822_v6 }
 0xa36   : > { %19026 = vmatpush3.bf16.msra.mxu0 %v19025_v44  ;;  %14414 = vst.msk [vmem:[#allocation9] sm:$0xff] %vm14156_vm8, %v24822_v6  ;;  %14415 = vst.msk [vmem:[#allocation9 + $0x8] sm:$0xff] %vm14156_vm8, %v24822_v6 }
 0xa37   : > { %19027 = vmatprep.subr.bf16.mxu0 %v24662_v48  ;;  %14416 = vst.msk [vmem:[#allocation9 + $0x10] sm:$0xff] %vm14156_vm8, %v24822_v6 }
 0xa38   : > { %14426 = vst.msk [vmem:[#allocation9 + $0x7] sm:$0x1] %vm14417_vm9, %v24822_v6  ;;  %14427 = vst.msk [vmem:[#allocation9 + $0x1f] sm:$0x1] %vm14417_vm9, %v24822_v6 }
 0xa39   : > { %14418 = vst.msk [vmem:[#allocation8 + $0x7] sm:$0x1] %vm14417_vm9, %v24822_v6  ;;  %14419 = vst.msk [vmem:[#allocation8 + $0x1f] sm:$0x1] %vm14417_vm9, %v24822_v6 }
 0xa3a   : > { %14420 = vst.msk [vmem:[#allocation8 + $0x37] sm:$0x1] %vm14417_vm9, %v24822_v6  ;;  %14421 = vst.msk [vmem:[#allocation8 + $0x4f] sm:$0x1] %vm14417_vm9, %v24822_v6 }
 0xa3b   : > { %14422 = vst.msk [vmem:[#allocation8 + $0x10] sm:$0x1] %vm14417_vm9, %v24822_v6  ;;  %14423 = vst.msk [vmem:[#allocation8 + $0x28] sm:$0x1] %vm14417_vm9, %v24822_v6 }
 0xa3c   : > { %18430 = vmatmul.mubr.msk.bf16.gmra.mrb[88].mxu1 %vm1388_vm2, %v9893_v15  ;;  %14424 = vst.msk [vmem:[#allocation8 + $0x40] sm:$0x1] %vm14417_vm9, %v24822_v6  ;;  %14425 = vst.msk [vmem:[#allocation8 + $0x58] sm:$0x1] %vm14417_vm9, %v24822_v6 }
 0xa3d   : > { %18435 = vmatprep.mubr.msk.bf16.mxu1 %vm1388_vm2, %v23066_v33  ;;  %14428 = vst.msk [vmem:[#allocation9 + $0x37] sm:$0x1] %vm14417_vm9, %v24822_v6  ;;  %14429 = vst.msk [vmem:[#allocation9 + $0x4f] sm:$0x1] %vm14417_vm9, %v24822_v6 }
 0xa3e   : > { %14430 = vst.msk [vmem:[#allocation9 + $0x67] sm:$0x1] %vm14417_vm9, %v24822_v6  ;;  %14431 = vst.msk [vmem:[#allocation9 + $0x10] sm:$0x1] %vm14417_vm9, %v24822_v6 }
 0xa3f   : > { %14432 = vst.msk [vmem:[#allocation9 + $0x28] sm:$0x1] %vm14417_vm9, %v24822_v6  ;;  %14433 = vst.msk [vmem:[#allocation9 + $0x40] sm:$0x1] %vm14417_vm9, %v24822_v6 }
 0xa40   : > { %14434 = vst.msk [vmem:[#allocation9 + $0x58] sm:$0x1] %vm14417_vm9, %v24822_v6  ;;  %14435 = vst.msk [vmem:[#allocation9 + $0x70] sm:$0x1] %vm14417_vm9, %v24822_v6 }
 0xa44   : > { %18436 = vmatmul.mubr.msk.bf16.vlgmr.msra.gmra.mrb[60].mxu1 %vm1388_vm2, %v23073_v50 }
 0xa45   : > { %18439 = vmatprep.mubr.msk.bf16.mxu1 %vm1388_vm2, %v23075_v29 }
 0xa4c   : > { %18440 = vmatmul.mubr.msk.bf16.gmra.mrb[64].mxu1 %vm1388_vm2, %v23081_v57 }
 0xa4d   : > { %18443 = vmatprep.mubr.msk.bf16.mxu1 %vm1388_vm2, %v23083_v53 }
 0xa54   : > { %18444 = vmatmul.mubr.msk.bf16.gmra.mrb[68].mxu1 %vm1388_vm2, %v23089_v41 }
 0xa55   : > { %18447 = vmatprep.mubr.msk.bf16.mxu1 %vm1388_vm2, %v23091_v51 }
 0xa5c   : > { %18448 = vmatmul.mubr.msk.bf16.gmra.mrb[72].mxu1 %vm1388_vm2, %v23097_v12 }
 0xa5d   : > { %18451 = vmatprep.mubr.msk.bf16.mxu1 %vm1388_vm2, %v23099_v22 }
 0xa64   : > { %18452 = vmatmul.mubr.msk.bf16.gmra.mrb[76].mxu1 %vm1388_vm2, %v23105_v52 }
 0xa65   : > { %18455 = vmatprep.mubr.msk.bf16.mxu1 %vm1388_vm2, %v23107_v45 }
 0xa6c   : > { %18456 = vmatmul.mubr.msk.bf16.gmra.mrb[80].mxu1 %vm1388_vm2, %v23113_v10 }
 0xa6d   : > { %18459 = vmatprep.mubr.msk.bf16.mxu1 %vm1388_vm2, %v23115_v21 }
 0xa74   : > { %18460 = vmatmul.mubr.msk.bf16.gmra.mrb[84].mxu1 %vm1388_vm2, %v23121_v42 }
 0xa75   : > { %18463 = vmatprep.mubr.msk.bf16.mxu1 %vm1388_vm2, %v9296_v37 }
 0xa7c   : > { %18464 = vmatmul.mubr.msk.bf16.gmra.mrb[88].mxu1 %vm1388_vm2, %v10191_v40 }
 0xa7d   : > { %18856 = vmatprep.mubr.msk.f32.mxu1 %vm20392_vm5, %v24822_v6 }
 0xb17   : > { %v18437_v26 = vpop.f32.mrb[60].mxu1 }
 0xb18   : > { %v10283_v54 = vpop.f32.mrb[61].mxu1  ;;  %v23352_v46 = vadd.f32 %v18437_v26, %v23349_v18 }
 0xb19   : > { %v23355_v34 = vadd.f32 %v23349_v18, %v10283_v54  ;;  %v18438_v20 = vpop.f32.mrb[62].mxu1 }
 0xb1a   : > { %v10286_v61 = vpop.f32.mrb[63].mxu1  ;;  %v23360_v35 = vadd.f32 %v18438_v20, %v23349_v18  ;;  %v10555_v9 = vmul.f32 %v23352_v46, %v23352_v46  ;;  %v10487_v53 = vsel %vm10483_vm4, %v23352_v46, 0.0 }
 0xb1b   : > { %v10553_v63 = vmul.f32 %v23355_v34, %v23355_v34  ;;  %v23363_v30 = vadd.f32 %v23349_v18, %v10286_v61  ;;  %v10484_v33 = vsel %vm10483_vm4, %v23355_v34, 0.0 }
 0xb1c   : > { %v10556_v51 = vmul.f32 %v23360_v35, %v23360_v35  ;;  %v10588_v21 = vsel %vm10483_vm4, %v10555_v9, 0.0  ;;  %v10489_v42 = vsel %vm10483_vm4, %v23360_v35, 0.0 }
 0xb1d   : > { %v10485_v50 = vsel %vm10483_vm4, %v23363_v30, 0.0  ;;  %v10554_v29 = vmul.f32 %v23363_v30, %v23363_v30  ;;  %v10585_v41 = vsel %vm10483_vm4, %v10553_v63, 0.0 }
 0xb1e   : > { %v10486_v57 = vadd.f32 %v10485_v50, %v10484_v33  ;;  %v10590_v62 = vsel %vm10483_vm4, %v10556_v51, 0.0 }
 0xb1f   : > { %v10586_v12 = vsel %vm10483_vm4, %v10554_v29, 0.0  ;;  %v18441_v22 = vpop.f32.mrb[64].mxu1 }
 0xb20   : > { %v10488_v52 = vadd.f32 %v10487_v53, %v10486_v57  ;;  %v10587_v45 = vadd.f32 %v10586_v12, %v10585_v41  ;;  %v10299_v10 = vpop.f32.mrb[65].mxu1  ;;  %v23386_v43 = vadd.f32 %v18441_v22, %v23349_v18 }
 0xb21   : > { %v23383_v23 = vadd.f32 %v23349_v18, %v10299_v10  ;;  %v18442_v14 = vpop.f32.mrb[66].mxu1 }
 0xb22   : > { %v10589_v24 = vadd.f32 %v10588_v21, %v10587_v45  ;;  %v10490_v8 = vadd.f32 %v10489_v42, %v10488_v52  ;;  %v10302_v39 = vpop.f32.mrb[67].mxu1  ;;  %v23397_v13 = vadd.f32 %v18442_v14, %v23349_v18  ;;  %v10559_v11 = vmul.f32 %v23386_v43, %v23386_v43 }
 0xb23   : > { %v10491_v49 = vsel %vm10483_vm4, %v23383_v23, 0.0  ;;  %v10557_v55 = vmul.f32 %v23383_v23, %v23383_v23  ;;  %v23394_v4 = vadd.f32 %v23349_v18, %v10302_v39  ;;  %v10495_v25 = vsel %vm10483_vm4, %v23386_v43, 0.0 }
 0xb24   : > { %v10492_v37 = vadd.f32 %v10491_v49, %v10490_v8  ;;  %v10591_v0 = vadd.f32 %v10590_v62, %v10589_v24  ;;  %v10560_v16 = vmul.f32 %v23397_v13, %v23397_v13  ;;  %v10497_v38 = vsel %vm10483_vm4, %v23397_v13, 0.0 }
 0xb25   : > { %v10592_v36 = vsel %vm10483_vm4, %v10557_v55, 0.0  ;;  %v10493_v3 = vsel %vm10483_vm4, %v23394_v4, 0.0  ;;  %v10558_v31 = vmul.f32 %v23394_v4, %v23394_v4  ;;  %v10596_v20 = vsel %vm10483_vm4, %v10559_v11, 0.0 }
 0xb26   : > { %v10593_v47 = vadd.f32 %v10592_v36, %v10591_v0  ;;  %v10494_v15 = vadd.f32 %v10493_v3, %v10492_v37  ;;  %v10598_v53 = vsel %vm10483_vm4, %v10560_v16, 0.0 }
 0xb27   : > { %v18445_v40 = vpop.f32.mrb[68].mxu1  ;;  %v10594_v19 = vsel %vm10483_vm4, %v10558_v31, 0.0 }
 0xb28   : > { %v10496_v32 = vadd.f32 %v10495_v25, %v10494_v15  ;;  %v10315_v58 = vpop.f32.mrb[69].mxu1  ;;  %v10595_v44 = vadd.f32 %v10594_v19, %v10593_v47  ;;  %v23418_v61 = vadd.f32 %v18445_v40, %v23349_v18 }
 0xb29   : > { %v23414_v26 = vadd.f32 %v23349_v18, %v10315_v58  ;;  %v18446_v54 = vpop.f32.mrb[70].mxu1 }
 0xb2a   : > { %v10498_v63 = vadd.f32 %v10497_v38, %v10496_v32  ;;  %v10318_v9 = vpop.f32.mrb[71].mxu1  ;;  %v10597_v33 = vadd.f32 %v10596_v20, %v10595_v44  ;;  %v23429_v51 = vadd.f32 %v18446_v54, %v23349_v18  ;;  %v10563_v10 = vmul.f32 %v23418_v61, %v23418_v61 }
 0xb2b   : > { %v10499_v50 = vsel %vm10483_vm4, %v23414_v26, 0.0  ;;  %v10561_v29 = vmul.f32 %v23414_v26, %v23414_v26  ;;  %v23425_v57 = vadd.f32 %v23349_v18, %v10318_v9  ;;  %v10503_v42 = vsel %vm10483_vm4, %v23418_v61, 0.0 }
 0xb2c   : > { %v10500_v41 = vadd.f32 %v10499_v50, %v10498_v63  ;;  %v10599_v12 = vadd.f32 %v10598_v53, %v10597_v33  ;;  %v10564_v39 = vmul.f32 %v23429_v51, %v23429_v51  ;;  %v10505_v55 = vsel %vm10483_vm4, %v23429_v51, 0.0 }
 0xb2d   : > { %v10600_v22 = vsel %vm10483_vm4, %v10561_v29, 0.0  ;;  %v10501_v52 = vsel %vm10483_vm4, %v23425_v57, 0.0  ;;  %v10562_v45 = vmul.f32 %v23425_v57, %v23425_v57  ;;  %v10604_v3 = vsel %vm10483_vm4, %v10563_v10, 0.0 }
 0xb2e   : > { %v10502_v21 = vadd.f32 %v10501_v52, %v10500_v41  ;;  %v10601_v14 = vadd.f32 %v10600_v22, %v10599_v12  ;;  %v10606_v32 = vsel %vm10483_vm4, %v10564_v39, 0.0 }
 0xb2f   : > { %v10602_v24 = vsel %vm10483_vm4, %v10562_v45, 0.0  ;;  %v18449_v8 = vpop.f32.mrb[72].mxu1 }
 0xb30   : > { %v10504_v62 = vadd.f32 %v10503_v42, %v10502_v21  ;;  %v10331_v49 = vpop.f32.mrb[73].mxu1  ;;  %v10603_v37 = vadd.f32 %v10602_v24, %v10601_v14  ;;  %v23450_v11 = vadd.f32 %v18449_v8, %v23349_v18 }
 0xb31   : > { %v23446_v0 = vadd.f32 %v23349_v18, %v10331_v49  ;;  %v18450_v36 = vpop.f32.mrb[74].mxu1 }
 0xb32   : > { %v10506_v47 = vadd.f32 %v10505_v55, %v10504_v62  ;;  %v10334_v15 = vpop.f32.mrb[75].mxu1  ;;  %v10605_v31 = vadd.f32 %v10604_v3, %v10603_v37  ;;  %v23461_v58 = vadd.f32 %v18450_v36, %v23349_v18  ;;  %v10567_v63 = vmul.f32 %v23450_v11, %v23450_v11 }
 0xb33   : > { %v10507_v25 = vsel %vm10483_vm4, %v23446_v0, 0.0  ;;  %v10565_v40 = vmul.f32 %v23446_v0, %v23446_v0  ;;  %v23457_v16 = vadd.f32 %v23349_v18, %v10334_v15  ;;  %v10511_v33 = vsel %vm10483_vm4, %v23450_v11, 0.0 }
 0xb34   : > { %v10508_v19 = vadd.f32 %v10507_v25, %v10506_v47  ;;  %v10607_v38 = vadd.f32 %v10606_v32, %v10605_v31  ;;  %v10568_v41 = vmul.f32 %v23461_v58, %v23461_v58  ;;  %v10513_v52 = vsel %vm10483_vm4, %v23461_v58, 0.0 }
 0xb35   : > { %v10608_v44 = vsel %vm10483_vm4, %v10565_v40, 0.0  ;;  %v10509_v54 = vsel %vm10483_vm4, %v23457_v16, 0.0  ;;  %v10566_v20 = vmul.f32 %v23457_v16, %v23457_v16  ;;  %v10612_v42 = vsel %vm10483_vm4, %v10567_v63, 0.0 }
 0xb36   : > { %v10510_v9 = vadd.f32 %v10509_v54, %v10508_v19  ;;  %v10609_v50 = vadd.f32 %v10608_v44, %v10607_v38  ;;  %v10614_v37 = vsel %vm10483_vm4, %v10568_v41, 0.0 }
 0xb37   : > { %v10610_v29 = vsel %vm10483_vm4, %v10566_v20, 0.0  ;;  %v18453_v53 = vpop.f32.mrb[76].mxu1 }
 0xb38   : > { %v10512_v12 = vadd.f32 %v10511_v33, %v10510_v9  ;;  %v10347_v22 = vpop.f32.mrb[77].mxu1  ;;  %v10611_v45 = vadd.f32 %v10610_v29, %v10609_v50  ;;  %v23482_v14 = vadd.f32 %v18453_v53, %v23349_v18 }
 0xb39   : > { %v23478_v10 = vadd.f32 %v23349_v18, %v10347_v22  ;;  %v18454_v21 = vpop.f32.mrb[78].mxu1 }
 0xb3a   : > { %v10514_v24 = vadd.f32 %v10513_v52, %v10512_v12  ;;  %v10350_v8 = vpop.f32.mrb[79].mxu1  ;;  %v10613_v39 = vadd.f32 %v10612_v42, %v10611_v45  ;;  %v23493_v3 = vadd.f32 %v18454_v21, %v23349_v18  ;;  %v10571_v40 = vmul.f32 %v23482_v14, %v23482_v14 }
 0xb3b   : > { %v10515_v62 = vsel %vm10483_vm4, %v23478_v10, 0.0  ;;  %v10569_v49 = vmul.f32 %v23478_v10, %v23478_v10  ;;  %v23489_v55 = vadd.f32 %v23349_v18, %v10350_v8  ;;  %v10519_v19 = vsel %vm10483_vm4, %v23482_v14, 0.0 }
 0xb3c   : > { %v10516_v36 = vadd.f32 %v10515_v62, %v10514_v24  ;;  %v10615_v47 = vadd.f32 %v10614_v37, %v10613_v39  ;;  %v10572_v20 = vmul.f32 %v23493_v3, %v23493_v3  ;;  %v10521_v33 = vsel %vm10483_vm4, %v23493_v3, 0.0 }
 0xb3d   : > { %v10616_v15 = vsel %vm10483_vm4, %v10569_v49, 0.0  ;;  %v10517_v31 = vsel %vm10483_vm4, %v23489_v55, 0.0  ;;  %v10570_v25 = vmul.f32 %v23489_v55, %v23489_v55  ;;  %v10620_v41 = vsel %vm10483_vm4, %v10571_v40, 0.0 }
 0xb3e   : > { %v10518_v32 = vadd.f32 %v10517_v31, %v10516_v36  ;;  %v10617_v38 = vadd.f32 %v10616_v15, %v10615_v47  ;;  %v10622_v8 = vsel %vm10483_vm4, %v10572_v20, 0.0 }
 0xb3f   : > { %v10618_v44 = vsel %vm10483_vm4, %v10570_v25, 0.0  ;;  %v18457_v54 = vpop.f32.mrb[80].mxu1 }
 0xb40   : > { %v10520_v63 = vadd.f32 %v10519_v19, %v10518_v32  ;;  %v10363_v9 = vpop.f32.mrb[81].mxu1  ;;  %v10619_v50 = vadd.f32 %v10618_v44, %v10617_v38  ;;  %v23514_v12 = vadd.f32 %v18457_v54, %v23349_v18 }
 0xb41   : > { %v23510_v29 = vadd.f32 %v23349_v18, %v10363_v9  ;;  %v18458_v53 = vpop.f32.mrb[82].mxu1 }
 0xb42   : > { %v10522_v22 = vadd.f32 %v10521_v33, %v10520_v63  ;;  %v10366_v52 = vpop.f32.mrb[83].mxu1  ;;  %v10621_v45 = vadd.f32 %v10620_v41, %v10619_v50  ;;  %v23525_v62 = vadd.f32 %v18458_v53, %v23349_v18  ;;  %v10575_v15 = vmul.f32 %v23514_v12, %v23514_v12 }
 0xb43   : > { %v10523_v21 = vsel %vm10483_vm4, %v23510_v29, 0.0  ;;  %v10573_v42 = vmul.f32 %v23510_v29, %v23510_v29  ;;  %v23521_v24 = vadd.f32 %v23349_v18, %v10366_v52  ;;  %v10527_v25 = vsel %vm10483_vm4, %v23514_v12, 0.0 }
 0xb44   : > { %v10524_v39 = vadd.f32 %v10523_v21, %v10522_v22  ;;  %v10623_v49 = vadd.f32 %v10622_v8, %v10621_v45  ;;  %v10576_v38 = vmul.f32 %v23525_v62, %v23525_v62  ;;  %v10529_v20 = vsel %vm10483_vm4, %v23525_v62, 0.0 }
 0xb45   : > { %v10624_v37 = vsel %vm10483_vm4, %v10573_v42, 0.0  ;;  %v10525_v36 = vsel %vm10483_vm4, %v23521_v24, 0.0  ;;  %v10574_v47 = vmul.f32 %v23521_v24, %v23521_v24  ;;  %v10628_v50 = vsel %vm10483_vm4, %v10575_v15, 0.0 }
 0xb46   : > { %v10526_v31 = vadd.f32 %v10525_v36, %v10524_v39  ;;  %v10625_v40 = vadd.f32 %v10624_v37, %v10623_v49  ;;  %v10630_v8 = vsel %vm10483_vm4, %v10576_v38, 0.0 }
 0xb47   : > { %v10626_v32 = vsel %vm10483_vm4, %v10574_v47, 0.0  ;;  %v18461_v19 = vpop.f32.mrb[84].mxu1 }
 0xb48   : > { %v10528_v44 = vadd.f32 %v10527_v25, %v10526_v31  ;;  %v10379_v54 = vpop.f32.mrb[85].mxu1  ;;  %v10627_v63 = vadd.f32 %v10626_v32, %v10625_v40  ;;  %v23546_v53 = vadd.f32 %v18461_v19, %v23349_v18 }
 0xb49   : > { %v23542_v9 = vadd.f32 %v23349_v18, %v10379_v54  ;;  %v18462_v33 = vpop.f32.mrb[86].mxu1 }
 0xb4a   : > { %v10530_v41 = vadd.f32 %v10529_v20, %v10528_v44  ;;  %v10382_v22 = vpop.f32.mrb[87].mxu1  ;;  %v10629_v52 = vadd.f32 %v10628_v50, %v10627_v63  ;;  %v23557_v49 = vadd.f32 %v18462_v33, %v23349_v18  ;;  %v10579_v31 = vmul.f32 %v23546_v53, %v23546_v53 }
 0xb4b   : > { %v10531_v45 = vsel %vm10483_vm4, %v23542_v9, 0.0  ;;  %v10577_v21 = vmul.f32 %v23542_v9, %v23542_v9  ;;  %v23553_v42 = vadd.f32 %v23349_v18, %v10382_v22  ;;  %v10535_v40 = vsel %vm10483_vm4, %v23546_v53, 0.0 }
 0xb4c   : > { %v10532_v39 = vadd.f32 %v10531_v45, %v10530_v41  ;;  %v10631_v37 = vadd.f32 %v10630_v8, %v10629_v52  ;;  %v10580_v44 = vmul.f32 %v23557_v49, %v23557_v49  ;;  %v10537_v63 = vsel %vm10483_vm4, %v23557_v49, 0.0 }
 0xb4d   : > { %v10632_v36 = vsel %vm10483_vm4, %v10577_v21, 0.0  ;;  %v10533_v47 = vsel %vm10483_vm4, %v23553_v42, 0.0  ;;  %v10578_v15 = vmul.f32 %v23553_v42, %v23553_v42  ;;  %v10636_v22 = vsel %vm10483_vm4, %v10579_v31, 0.0 }
 0xb4e   : > { %v10534_v25 = vadd.f32 %v10533_v47, %v10532_v39  ;;  %v10633_v32 = vadd.f32 %v10632_v36, %v10631_v37  ;;  %v10638_v47 = vsel %vm10483_vm4, %v10580_v44, 0.0 }
 0xb4f   : > { %v10634_v19 = vsel %vm10483_vm4, %v10578_v15, 0.0  ;;  %v18465_v38 = vpop.f32.mrb[88].mxu1 }
 0xb50   : > { %v10536_v54 = vadd.f32 %v10535_v40, %v10534_v25  ;;  %v10395_v20 = vpop.f32.mrb[89].mxu1  ;;  %v10635_v33 = vadd.f32 %v10634_v19, %v10633_v32  ;;  %v23578_v52 = vadd.f32 %v18465_v38, %v23349_v18 }
 0xb51   : > { %v23574_v50 = vadd.f32 %v23349_v18, %v10395_v20  ;;  %v18466_v41 = vpop.f32.mrb[90].mxu1 }
 0xb52   : > { %v10538_v45 = vadd.f32 %v10537_v63, %v10536_v54  ;;  %v10398_v21 = vpop.f32.mrb[91].mxu1  ;;  %v10637_v8 = vadd.f32 %v10636_v22, %v10635_v33  ;;  %v23589_v31 = vadd.f32 %v18466_v41, %v23349_v18  ;;  %v10583_v38 = vmul.f32 %v23578_v52, %v23578_v52 }
 0xb53   : > { %v10539_v39 = vsel %vm10483_vm4, %v23574_v50, 0.0  ;;  %v10581_v37 = vmul.f32 %v23574_v50, %v23574_v50  ;;  %v23585_v36 = vadd.f32 %v23349_v18, %v10398_v21  ;;  %v10543_v44 = vsel %vm10483_vm4, %v23578_v52, 0.0 }
 0xb54   : > { %v10540_v15 = vadd.f32 %v10539_v39, %v10538_v45  ;;  %v10639_v25 = vadd.f32 %v10638_v47, %v10637_v8  ;;  %v10584_v63 = vmul.f32 %v23589_v31, %v23589_v31  ;;  %v10545_v41 = vsel %vm10483_vm4, %v23589_v31, 0.0 }
 0xb55   : > { %v10640_v40 = vsel %vm10483_vm4, %v10581_v37, 0.0  ;;  %v10541_v32 = vsel %vm10483_vm4, %v23585_v36, 0.0  ;;  %v10582_v19 = vmul.f32 %v23585_v36, %v23585_v36  ;;  %v10644_v45 = vsel %vm10483_vm4, %v10583_v38, 0.0 }
 0xb56   : > { %v10542_v54 = vadd.f32 %v10541_v32, %v10540_v15  ;;  %v10641_v20 = vadd.f32 %v10640_v40, %v10639_v25  ;;  %v10646_v39 = vsel %vm10483_vm4, %v10584_v63, 0.0  ;;  %v10743_v63 = vld [vmem:[%s24711_s12] sm:$0xff] }
 0xb57   : > { %v10642_v18 = vsel %vm10483_vm4, %v10582_v19, 0.0 }
 0xb58   : > { %v10544_v33 = vadd.f32 %v10543_v44, %v10542_v54  ;;  %v10643_v22 = vadd.f32 %v10642_v18, %v10641_v20 }
 0xb5a   : > { %v10546_v21 = vadd.f32 %v10545_v41, %v10544_v33  ;;  %v10645_v8 = vadd.f32 %v10644_v45, %v10643_v22  ;;  %v10744_v33 = vld [vmem:[%s24711_s12 + $0x8] sm:$0xff] }
 0xb5b   : > { %v19028_v41 = vpack.c.bf16 %v10744_v33, %v10743_v63 }
 0xb5c   : > { %v10547_v37 = vrot.slane %v10546_v21, 4  ;;  %v10647_v47 = vadd.f32 %v10646_v39, %v10645_v8 }
 0xb5e   : > { %v10548_v15 = vadd.f32 %v10547_v37, %v10546_v21  ;;  %v10648_v25 = vrot.slane %v10647_v47, 4 }
 0xb60   : > { %v10549_v40 = vrot.slane %v10548_v15, 2  ;;  %v10649_v32 = vadd.f32 %v10648_v25, %v10647_v47  ;;  %v20193_v25 = vld [vmem:[%s24823_s16 + $0x18] sm:$0xff]  }
 0xb62   : > { %v10550_v19 = vadd.f32 %v10549_v40, %v10548_v15  ;;  %v10650_v54 = vrot.slane %v10649_v32, 2  ;;  %v20192_v15 = vld [vmem:[%s24823_s16 + $0x10] sm:$0xff]   ;;  %v11031_v40 = vld [vmem:[#allocation6 + $0x8] sm:$0xff] }
 0xb64   : > { %v10551_v44 = vrot.slane %v10550_v19, 1  ;;  %v10651_v48 = vadd.f32 %v10650_v54, %v10649_v32  ;;  %v11032_v32 = vld [vmem:[#allocation6 + $0x10] sm:$0xff] }
 0xb65   : > { %v23619_v54 = vld [vmem:[%s24823_s16] sm:$0xff]  }
 0xb66   : > { %v10652_v5 = vrot.slane %v10651_v48, 1  ;;  %v10552_v20 = vadd.f32 %v10551_v44, %v10550_v19  ;;  %v11047_v19 = vpack.c.bf16 %v11032_v32, %v11031_v40  ;;  %v10481_v44 = vld [vmem:[%s24824_s26] sm:$0x1] }
 0xb68   : > { %v10653_v38 = vadd.f32 %v10652_v5, %v10651_v48 }
 0xb6a   : > { %v10655_v18 = vsel %vm10654_vm6, %v10552_v20, %v10653_v38  ;;  %v10819_v20 = vrot.slane %v10481_v44, 7  ;;  %v24825_v38 = vld [vmem:[#allocation66_spill] sm:$0xff] }
 0xb6b   : > { %18476 = vmatmul.mubr.msk.f32.vlgmr.msra.gmra.mrb[64].mxu0 %vm10483_vm4, %v10655_v18  ;;  %v23732_v18 = vsub.s32 1, %v24825_v38 }
 0xb6c   : > { %18482 = vmatprep.mubr.msk.f32.mxu0 %vm20392_vm5, %v24822_v6  ;;  %19029 = vmatpush3.bf16.msra.mxu0 %v19028_v41 }
 0xb6d   : > { %18485 = vmatprep.subr.bf16.mxu0 %v20192_v15  ;;  %24826 = vst [vmem:[#allocation45_spill] sm:$0xff] %v23732_v18 }
 0xc3e   : > { %v10729_v22 = vpop.f32.mrb[64].mxu0 }
 0xc3f   : > { %v10734_v45 = vmul.f32 0.001953125, %v10729_v22  ;;  %v18477_v21 = vpop.f32.mrb[65].mxu0 }
 0xc40   : > { %v10482_v21 = vld [vmem:[%s24824_s26 + $0x1] sm:$0x1] }
 0xc41   : > { %v10735_v8 = vmul.f32 %v10734_v45, %v10734_v45 }
 0xc43   : > { %v10737_v39 = vrot.slane %v10735_v8, 7 }
 0xc45   : > { %v10739_v5 = vsub.f32 %v10734_v45, %v10737_v39 }
 0xc47   : > { %v10740_v48 = vadd.f32 1e-05, %v10739_v5 }
 0xc49   : > { %20282 = vrsqrt.f32 %v10740_v48 }
 0xc53   : > { %v20283_v37 = vpop.eup %20282 }
 0xc54   : > { %v10742_v47 = vsel %vm10654_vm6, %v10734_v45, %v20283_v37 }
 0xc55   : > { %18483 = vmatmul.mubr.msk.f32.vlgmr.msra.gmra.mrb[66].mxu0 %vm1388_vm2, %v10742_v47 }
 0xc56   : > { %18486 = vmatpush3.bf16.msra.mxu0 %v20192_v15  ;;  %18489 = vmatprep.mubr.msk.bf16.mxu0 %vm10483_vm4, %v11047_v19 }
 0xc57   : > { %18487 = vmatprep.subr.bf16.mxu0 %v20193_v25 }
 0xc5a   : > { %18488 = vmatpush3.bf16.msra.mxu0 %v20193_v25 }
 0xc5b   : > { %18505 = vmatprep.subr.bf16.mxu0 %v23619_v54 }
 0xd28   : > { %v10814_v63 = vpop.f32.mrb[66].mxu0 }
 0xd29   : > { %v10821_v33 = vmul.f32 %v10819_v20, %v10814_v63  ;;  %v18484_v41 = vpop.f32.mrb[67].mxu0 }
 0xd2b   : > { %v10823_v22 = vrot.slane %v10821_v33, 1  ;;  %v10830_v45 = vrot.slane %v10821_v33, %v23732_v18 }
 0xd2d   : > { %v10825_v8 = vmul.f32 %v10823_v22, %v10814_v63  ;;  %v10831_v39 = vmul.f32 %v10830_v45, %v23355_v34  ;;  %v10832_v5 = vmul.f32 %v10830_v45, %v23363_v30  ;;  %v10833_v48 = vmul.f32 %v10830_v45, %v23352_v46 }
 0xd2e   : > { %v10834_v37 = vmul.f32 %v10830_v45, %v23360_v35  ;;  %v10835_v47 = vmul.f32 %v10830_v45, %v23383_v23  ;;  %v10836_v15 = vmul.f32 %v10830_v45, %v23394_v4  ;;  %v10837_v25 = vmul.f32 %v10830_v45, %v23386_v43 }
 0xd2f   : > { %v10826_v40 = vsub.f32 %v10482_v21, %v10825_v8  ;;  %v10838_v32 = vmul.f32 %v10830_v45, %v23397_v13  ;;  %v10839_v19 = vmul.f32 %v10830_v45, %v23414_v26  ;;  %v10840_v44 = vmul.f32 %v10830_v45, %v23425_v57 }
 0xd30   : > { %v10841_v34 = vmul.f32 %v10830_v45, %v23418_v61  ;;  %v10842_v30 = vmul.f32 %v10830_v45, %v23429_v51  ;;  %v10843_v46 = vmul.f32 %v10830_v45, %v23446_v0  ;;  %v10844_v35 = vmul.f32 %v10830_v45, %v23457_v16 }
 0xd31   : > { %v10866_v23 = vrot.slane %v10826_v40, %v24821_v60  ;;  %v10845_v4 = vmul.f32 %v10830_v45, %v23450_v11  ;;  %v10846_v43 = vmul.f32 %v10830_v45, %v23461_v58  ;;  %v10847_v13 = vmul.f32 %v10830_v45, %v23478_v10 }
 0xd32   : > { %v10848_v26 = vmul.f32 %v10830_v45, %v23489_v55  ;;  %v10849_v57 = vmul.f32 %v10830_v45, %v23482_v14  ;;  %v10850_v61 = vmul.f32 %v10830_v45, %v23493_v3  ;;  %v10851_v51 = vmul.f32 %v10830_v45, %v23510_v29 }
 0xd33   : > { %v10852_v0 = vmul.f32 %v10830_v45, %v23521_v24  ;;  %v10853_v16 = vmul.f32 %v10830_v45, %v23514_v12  ;;  %v10854_v20 = vmul.f32 %v10830_v45, %v23525_v62  ;;  %v10855_v11 = vmul.f32 %v10830_v45, %v23542_v9 }
 0xd34   : > { %v10856_v58 = vmul.f32 %v10830_v45, %v23553_v42  ;;  %v10857_v10 = vmul.f32 %v10830_v45, %v23546_v53  ;;  %v10858_v55 = vmul.f32 %v10830_v45, %v23557_v49  ;;  %v10859_v14 = vmul.f32 %v10830_v45, %v23574_v50 }
 0xd35   : > { %v10860_v3 = vmul.f32 %v10830_v45, %v23585_v36  ;;  %v10861_v29 = vmul.f32 %v10830_v45, %v23578_v52  ;;  %v10862_v24 = vmul.f32 %v10830_v45, %v23589_v31  ;;  %v10867_v38 = vadd.f32 %v10866_v23, %v10831_v39 }
 0xd36   : > { %v10868_v12 = vadd.f32 %v10866_v23, %v10832_v5  ;;  %v10869_v63 = vadd.f32 %v10866_v23, %v10833_v48  ;;  %v10870_v62 = vadd.f32 %v10866_v23, %v10834_v37  ;;  %v10871_v33 = vadd.f32 %v10866_v23, %v10835_v47 }
 0xd37   : > { %v10872_v9 = vadd.f32 %v10866_v23, %v10836_v15  ;;  %v10873_v41 = vadd.f32 %v10866_v23, %v10837_v25  ;;  %v10874_v42 = vadd.f32 %v10866_v23, %v10838_v32  ;;  %v10875_v22 = vadd.f32 %v10866_v23, %v10839_v19 }
 0xd38   : > { %v10876_v53 = vadd.f32 %v10866_v23, %v10840_v44  ;;  %v10877_v21 = vadd.f32 %v10866_v23, %v10841_v34  ;;  %v10878_v49 = vadd.f32 %v10866_v23, %v10842_v30  ;;  %v10879_v8 = vadd.f32 %v10866_v23, %v10843_v46 }
 0xd39   : > { %v10880_v50 = vadd.f32 %v10866_v23, %v10844_v35  ;;  %v10881_v40 = vadd.f32 %v10866_v23, %v10845_v4  ;;  %v10882_v36 = vadd.f32 %v10866_v23, %v10846_v43  ;;  %v10883_v60 = vadd.f32 %v10866_v23, %v10847_v13 }
 0xd3a   : > { %v10884_v52 = vadd.f32 %v10866_v23, %v10848_v26  ;;  %v23769_v18 = vadd.f32 %v10866_v23, %v10849_v57  ;;  %v23771_v31 = vadd.f32 %v10866_v23, %v10850_v61  ;;  %v10887_v45 = vadd.f32 %v10866_v23, %v10851_v51 }
 0xd3b   : > { %v23773_v39 = vadd.f32 %v10866_v23, %v10852_v0  ;;  %v23775_v5 = vadd.f32 %v10866_v23, %v10853_v16  ;;  %v23777_v48 = vadd.f32 %v10866_v23, %v10854_v20  ;;  %v23779_v37 = vadd.f32 %v10866_v23, %v10855_v11 }
 0xd3c   : > { %v23781_v47 = vadd.f32 %v10866_v23, %v10856_v58  ;;  %v23783_v15 = vadd.f32 %v10866_v23, %v10857_v10  ;;  %v23785_v25 = vadd.f32 %v10866_v23, %v10858_v55  ;;  %v23787_v32 = vadd.f32 %v10866_v23, %v10859_v14 }
 0xd3d   : > { %v23789_v19 = vadd.f32 %v10866_v23, %v10860_v3  ;;  %v23791_v44 = vadd.f32 %v10866_v23, %v10861_v29  ;;  %v23793_v34 = vadd.f32 %v10866_v23, %v10862_v24  ;;  %v10899_v30 = vmax.f32 %v10867_v38, 0.0 }
 0xd3e   : > { %v10900_v46 = vmax.f32 %v10868_v12, 0.0  ;;  %v10901_v35 = vmax.f32 %v10869_v63, 0.0  ;;  %v10902_v4 = vmax.f32 %v10870_v62, 0.0  ;;  %v10903_v43 = vmax.f32 %v10871_v33, 0.0 }
 0xd3f   : > { %v10904_v13 = vmax.f32 %v10872_v9, 0.0  ;;  %v10905_v26 = vmax.f32 %v10873_v41, 0.0  ;;  %v10906_v57 = vmax.f32 %v10874_v42, 0.0  ;;  %v10907_v61 = vmax.f32 %v10875_v22, 0.0  ;;  %10970 = vst.msk [vmem:[#allocation5 + $0x8] sm:$0xff] %vm10483_vm4, %v10899_v30 }
 0xd40   : > { %v10908_v51 = vmax.f32 %v10876_v53, 0.0  ;;  %v10909_v0 = vmax.f32 %v10877_v21, 0.0  ;;  %v10910_v16 = vmax.f32 %v10878_v49, 0.0  ;;  %v10911_v20 = vmax.f32 %v10879_v8, 0.0  ;;  %10971 = vst.msk [vmem:[#allocation5 + $0x10] sm:$0xff] %vm10483_vm4, %v10900_v46  ;;  %10972 = vst.msk [vmem:[#allocation5 + $0x28] sm:$0xff] %vm10483_vm4, %v10903_v43 }
 0xd41   : > { %10987 = vst.msk [vmem:[#allocation6 + $0x28] sm:$0xff] %vm10483_vm4, %v10901_v35  ;;  %10988 = vst.msk [vmem:[#allocation6 + $0x30] sm:$0xff] %vm10483_vm4, %v10902_v4  ;;  %v10912_v23 = vmax.f32 %v10880_v50, 0.0  ;;  %v10913_v11 = vmax.f32 %v10881_v40, 0.0  ;;  %v10914_v58 = vmax.f32 %v10882_v36, 0.0  ;;  %v10915_v10 = vmax.f32 %v10883_v60, 0.0 }
 0xd42   : > { %10973 = vst.msk [vmem:[#allocation5 + $0x30] sm:$0xff] %vm10483_vm4, %v10904_v13  ;;  %10974 = vst.msk [vmem:[#allocation5 + $0x48] sm:$0xff] %vm10483_vm4, %v10907_v61  ;;  %v10916_v55 = vmax.f32 %v10884_v52, 0.0  ;;  %v10917_v14 = vmax.f32 %v23769_v18, 0.0  ;;  %v10918_v3 = vmax.f32 %v23771_v31, 0.0  ;;  %v10919_v29 = vmax.f32 %v10887_v45, 0.0 }
 0xd43   : > { %10989 = vst.msk [vmem:[#allocation6 + $0x48] sm:$0xff] %vm10483_vm4, %v10905_v26  ;;  %10990 = vst.msk [vmem:[#allocation6 + $0x50] sm:$0xff] %vm10483_vm4, %v10906_v57  ;;  %v10920_v60 = vmax.f32 %v23773_v39, 0.0  ;;  %v10921_v24 = vmax.f32 %v23775_v5, 0.0  ;;  %v10922_v38 = vmax.f32 %v23777_v48, 0.0  ;;  %v10923_v12 = vmax.f32 %v23779_v37, 0.0 }
 0xd44   : > { %10975 = vst.msk [vmem:[#allocation5 + $0x50] sm:$0xff] %vm10483_vm4, %v10908_v51  ;;  %10976 = vst.msk [vmem:[#allocation5 + $0x68] sm:$0xff] %vm10483_vm4, %v10911_v20  ;;  %v10924_v18 = vmax.f32 %v23781_v47, 0.0  ;;  %v10925_v63 = vmax.f32 %v23783_v15, 0.0  ;;  %v10926_v62 = vmax.f32 %v23785_v25, 0.0  ;;  %v10927_v33 = vmax.f32 %v23787_v32, 0.0 }
 0xd45   : > { %10991 = vst.msk [vmem:[#allocation6 + $0x68] sm:$0xff] %vm10483_vm4, %v10909_v0  ;;  %10992 = vst.msk [vmem:[#allocation6 + $0x70] sm:$0xff] %vm10483_vm4, %v10910_v16  ;;  %v10928_v9 = vmax.f32 %v23789_v19, 0.0  ;;  %v10929_v41 = vmax.f32 %v23791_v44, 0.0  ;;  %v10930_v42 = vmax.f32 %v23793_v34, 0.0  ;;  %v20195_v50 = vld [vmem:[%s24823_s16 + $0x8] sm:$0xff]  }
 0xd46   : > { %10977 = vst.msk [vmem:[#allocation5 + $0x70] sm:$0xff] %vm10483_vm4, %v10912_v23  ;;  %10978 = vst.msk [vmem:[#allocation5 + $0x88] sm:$0xff] %vm10483_vm4, %v10915_v10  ;;  %v20196_v36 = vld [vmem:[%s24823_s16 + $0x20] sm:$0xff]   ;;  %v11003_v19 = vld [vmem:[#allocation6 + $0x7] sm:$0xff] }
 0xd47   : > { %10993 = vst.msk [vmem:[#allocation6 + $0x88] sm:$0xff] %vm10483_vm4, %v10913_v11  ;;  %10994 = vst.msk [vmem:[#allocation6 + $0x90] sm:$0xff] %vm10483_vm4, %v10914_v58  ;;  %v11004_v44 = vld [vmem:[#allocation6 + $0xf] sm:$0xff]  ;;  %v20197_v61 = vld [vmem:[%s24823_s16 + $0x28] sm:$0xff]  }
 0xd48   : > { %10979 = vst.msk [vmem:[#allocation5 + $0x90] sm:$0xff] %vm10483_vm4, %v10916_v55  ;;  %10980 = vst.msk [vmem:[#allocation5 + $0xa8] sm:$0xff] %vm10483_vm4, %v10919_v29  ;;  %v11033_v22 = vld [vmem:[#allocation6 + $0x28] sm:$0xff]  ;;  %v11034_v53 = vld [vmem:[#allocation6 + $0x30] sm:$0xff]  ;;  %v11019_v46 = vpack.c.bf16 %v11004_v44, %v11003_v19 }
 0xd49   : > { %10995 = vst.msk [vmem:[#allocation6 + $0xa8] sm:$0xff] %vm10483_vm4, %v10917_v14  ;;  %10996 = vst.msk [vmem:[#allocation6 + $0xb0] sm:$0xff] %vm10483_vm4, %v10918_v3  ;;  %v23840_v21 = vpack.c.bf16 %v11034_v53, %v11033_v22  ;;  %v11005_v4 = vld [vmem:[#allocation6 + $0x27] sm:$0xff]  ;;  %v11006_v43 = vld [vmem:[#allocation6 + $0x2f] sm:$0xff] }
 0xd4a   : > { %10981 = vst.msk [vmem:[#allocation5 + $0xb0] sm:$0xff] %vm10483_vm4, %v10920_v60  ;;  %10982 = vst.msk [vmem:[#allocation5 + $0xc8] sm:$0xff] %vm10483_vm4, %v10923_v12  ;;  %v11035_v49 = vld [vmem:[#allocation6 + $0x48] sm:$0xff]  ;;  %v11036_v8 = vld [vmem:[#allocation6 + $0x50] sm:$0xff]  ;;  %v23872_v57 = vpack.c.bf16 %v11006_v43, %v11005_v4 }
 0xd4b   : > { %10997 = vst.msk [vmem:[#allocation6 + $0xc8] sm:$0xff] %vm10483_vm4, %v10921_v24  ;;  %10998 = vst.msk [vmem:[#allocation6 + $0xd0] sm:$0xff] %vm10483_vm4, %v10922_v38  ;;  %v23843_v40 = vpack.c.bf16 %v11036_v8, %v11035_v49  ;;  %18490 = vmatmul.mubr.msk.bf16.vlgmr.msra.gmra.mrb[68].mxu0 %vm10483_vm4, %v23840_v21  ;;  %v11007_v13 = vld [vmem:[#allocation6 + $0x47] sm:$0xff]  ;;  %v11008_v26 = vld [vmem:[#allocation6 + $0x4f] sm:$0xff] }
 0xd4c   : > { %10983 = vst.msk [vmem:[#allocation5 + $0xd0] sm:$0xff] %vm10483_vm4, %v10924_v18  ;;  %10984 = vst.msk [vmem:[#allocation5 + $0xe8] sm:$0xff] %vm10483_vm4, %v10927_v33  ;;  %18506 = vmatpush3.bf16.msra.mxu0 %v23619_v54  ;;  %v11037_v52 = vld [vmem:[#allocation6 + $0x68] sm:$0xff]  ;;  %v11038_v31 = vld [vmem:[#allocation6 + $0x70] sm:$0xff]  ;;  %v23875_v51 = vpack.c.bf16 %v11008_v26, %v11007_v13 }
 0xd4d   : > { %10999 = vst.msk [vmem:[#allocation6 + $0xe8] sm:$0xff] %vm10483_vm4, %v10925_v63  ;;  %11000 = vst.msk [vmem:[#allocation6 + $0xf0] sm:$0xff] %vm10483_vm4, %v10926_v62  ;;  %18493 = vmatprep.mubr.msk.bf16.mxu0 %vm10483_vm4, %v23843_v40  ;;  %18507 = vmatprep.subr.bf16.mxu0 %v20195_v50  ;;  %v23851_v5 = vpack.c.bf16 %v11038_v31, %v11037_v52  ;;  %v20198_v0 = vld [vmem:[%s24823_s16 + $0x30] sm:$0xff]   ;;  %v11010_v20 = vld [vmem:[#allocation6 + $0x6f] sm:$0xff] }
 0xd4e   : > { %10985 = vst.msk [vmem:[#allocation5 + $0xf0] sm:$0xff] %vm10483_vm4, %v10928_v9  ;;  %11001 = vst.msk [vmem:[#allocation6 + $0x108] sm:$0xff] %vm10483_vm4, %v10929_v41  ;;  %v11039_v45 = vld [vmem:[#allocation6 + $0x88] sm:$0xff]  ;;  %v11040_v39 = vld [vmem:[#allocation6 + $0x90] sm:$0xff] }
 0xd4f   : > { %11002 = vst.msk [vmem:[#allocation6 + $0x110] sm:$0xff] %vm10483_vm4, %v10930_v42  ;;  %v23853_v48 = vpack.c.bf16 %v11040_v39, %v11039_v45  ;;  %v11009_v16 = vld [vmem:[#allocation6 + $0x67] sm:$0xff]  ;;  %v11012_v11 = vld [vmem:[#allocation6 + $0x8f] sm:$0xff] }
 0xd50   : > { %18508 = vmatpush3.bf16.msra.mxu0 %v20195_v50  ;;  %v11041_v37 = vld [vmem:[#allocation6 + $0xa8] sm:$0xff]  ;;  %v11042_v54 = vld [vmem:[#allocation6 + $0xb0] sm:$0xff]  ;;  %v23882_v58 = vpack.c.bf16 %v11010_v20, %v11009_v16 }
 0xd51   : > { %18525 = vmatprep.subr.bf16.mxu0 %v20196_v36  ;;  %v23859_v25 = vpack.c.bf16 %v11042_v54, %v11041_v37  ;;  %v11011_v23 = vld [vmem:[#allocation6 + $0x87] sm:$0xff]  ;;  %v11014_v14 = vld [vmem:[#allocation6 + $0xaf] sm:$0xff] }
 0xd52   : > { %v11043_v47 = vld [vmem:[#allocation6 + $0xc8] sm:$0xff]  ;;  %v11044_v15 = vld [vmem:[#allocation6 + $0xd0] sm:$0xff]  ;;  %v23884_v10 = vpack.c.bf16 %v11012_v11, %v11011_v23  ;;  %v20201_v11 = vld [vmem:[%s24823_s16 + $0x48] sm:$0xff]  }
 0xd53   : > { %18494 = vmatmul.mubr.msk.bf16.gmra.mrb[72].mxu0 %vm10483_vm4, %v23851_v5  ;;  %v23861_v32 = vpack.c.bf16 %v11044_v15, %v11043_v47  ;;  %v11013_v55 = vld [vmem:[#allocation6 + $0xa7] sm:$0xff]  ;;  %v11016_v29 = vld [vmem:[#allocation6 + $0xcf] sm:$0xff] }
 0xd54   : > { %18497 = vmatprep.mubr.msk.bf16.mxu0 %vm10483_vm4, %v23853_v48  ;;  %v11045_v34 = vld [vmem:[#allocation6 + $0xe8] sm:$0xff]  ;;  %v11046_v30 = vld [vmem:[#allocation6 + $0xf0] sm:$0xff]  ;;  %v23890_v60 = vpack.c.bf16 %v11014_v14, %v11013_v55  ;;  %v20202_v14 = vld [vmem:[%s24823_s16 + $0x50] sm:$0xff]  }
 0xd55   : > { %v23867_v35 = vpack.c.bf16 %v11046_v30, %v11045_v34  ;;  %v11015_v3 = vld [vmem:[#allocation6 + $0xc7] sm:$0xff]  ;;  %v11327_v12 = vld [vmem:[#allocation6 + $0x11] sm:$0xff] }
 0xd56   : > { %v23892_v24 = vpack.c.bf16 %v11016_v29, %v11015_v3  ;;  %v11326_v38 = vld [vmem:[#allocation6 + $0x9] sm:$0xff]  ;;  %v11329_v41 = vld [vmem:[#allocation6 + $0x31] sm:$0xff] }
 0xd57   : > { %v11017_v18 = vld [vmem:[#allocation6 + $0xe7] sm:$0xff]  ;;  %v11018_v63 = vld [vmem:[#allocation6 + $0xef] sm:$0xff]  ;;  %v11342_v62 = vpack.c.bf16 %v11327_v12, %v11326_v38 }
 0xd58   : > { %v23898_v33 = vpack.c.bf16 %v11018_v63, %v11017_v18  ;;  %v11328_v9 = vld [vmem:[#allocation6 + $0x29] sm:$0xff]  ;;  %v11331_v22 = vld [vmem:[#allocation6 + $0x51] sm:$0xff] }
 0xd59   : > { %v11330_v42 = vld [vmem:[#allocation6 + $0x49] sm:$0xff]  ;;  %v23903_v53 = vpack.c.bf16 %v11329_v41, %v11328_v9  ;;  %v11333_v52 = vld [vmem:[#allocation6 + $0x71] sm:$0xff] }
 0xd5a   : > { %v20199_v49 = vld [vmem:[%s24823_s16 + $0x38] sm:$0xff]   ;;  %v23906_v8 = vpack.c.bf16 %v11331_v22, %v11330_v42  ;;  %v20200_v50 = vld [vmem:[%s24823_s16 + $0x40] sm:$0xff]  }
 0xd5b   : > { %18498 = vmatmul.mubr.msk.bf16.gmra.mrb[76].mxu0 %vm10483_vm4, %v23859_v25  ;;  %v11334_v31 = vld [vmem:[#allocation6 + $0x89] sm:$0xff]  ;;  %v11335_v45 = vld [vmem:[#allocation6 + $0x91] sm:$0xff] }
 0xd5c   : > { %18501 = vmatprep.mubr.msk.bf16.mxu0 %vm10483_vm4, %v23861_v32  ;;  %v23915_v37 = vpack.c.bf16 %v11335_v45, %v11334_v31  ;;  %v11336_v54 = vld [vmem:[#allocation6 + $0xa9] sm:$0xff]  ;;  %v11337_v47 = vld [vmem:[#allocation6 + $0xb1] sm:$0xff] }
 0xd5d   : > { %v11338_v15 = vld [vmem:[#allocation6 + $0xc9] sm:$0xff]  ;;  %v11339_v19 = vld [vmem:[#allocation6 + $0xd1] sm:$0xff]  ;;  %v23921_v44 = vpack.c.bf16 %v11337_v47, %v11336_v54 }
 0xd5e   : > { %v23923_v34 = vpack.c.bf16 %v11339_v19, %v11338_v15  ;;  %v11340_v30 = vld [vmem:[#allocation6 + $0xe9] sm:$0xff] }
 0xd5f   : > { %v11504_v4 = vld [vmem:[#allocation5 + $0x7] sm:$0xff]  ;;  %v11505_v43 = vld [vmem:[#allocation5 + $0xf] sm:$0xff] }
 0xd60   : > { %v11520_v26 = vpack.c.bf16 %v11505_v43, %v11504_v4  ;;  %v11508_v16 = vld [vmem:[#allocation5 + $0x47] sm:$0xff]  ;;  %v11509_v20 = vld [vmem:[#allocation5 + $0x4f] sm:$0xff] }
 0xd61   : > { %v11522_v55 = vpack.c.bf16 %v11509_v20, %v11508_v16  ;;  %v11510_v3 = vld [vmem:[#allocation5 + $0x67] sm:$0xff]  ;;  %v11511_v29 = vld [vmem:[#allocation5 + $0x6f] sm:$0xff] }
 0xd62   : > { %v11512_v38 = vld [vmem:[#allocation5 + $0x87] sm:$0xff]  ;;  %v11513_v12 = vld [vmem:[#allocation5 + $0x8f] sm:$0xff]  ;;  %v11523_v18 = vpack.c.bf16 %v11511_v29, %v11510_v3 }
 0xd63   : > { %18502 = vmatmul.mubr.msk.bf16.gmra.mrb[80].mxu0 %vm10483_vm4, %v23867_v35  ;;  %v11524_v63 = vpack.c.bf16 %v11513_v12, %v11512_v38  ;;  %v11515_v9 = vld [vmem:[#allocation5 + $0xaf] sm:$0xff]  ;;  %v11516_v41 = vld [vmem:[#allocation5 + $0xc7] sm:$0xff] }
 0xd64   : > { %18509 = vmatprep.mubr.msk.bf16.mxu0 %vm10483_vm4, %v11019_v46  ;;  %v11341_v46 = vld [vmem:[#allocation6 + $0xf1] sm:$0xff]  ;;  %v11684_v47 = vld [vmem:[#allocation5 + $0x28] sm:$0xff] }
 0xd65   : > { %v23929_v13 = vpack.c.bf16 %v11341_v46, %v11340_v30  ;;  %v11517_v42 = vld [vmem:[#allocation5 + $0xcf] sm:$0xff] }
 0xd66   : > { %v11683_v31 = vld [vmem:[#allocation5 + $0x10] sm:$0xff]  ;;  %v11686_v19 = vld [vmem:[#allocation5 + $0x48] sm:$0xff] }
 0xd67   : > { %v11685_v15 = vld [vmem:[#allocation5 + $0x30] sm:$0xff]  ;;  %v20203_v4 = vld [vmem:[%s24823_s16 + $0x58] sm:$0xff]  }
 0xd68   : > { %v11687_v30 = vld [vmem:[#allocation5 + $0x50] sm:$0xff]  ;;  %v11699_v46 = vpack.c.bf16 %v11685_v15, %v11684_v47  ;;  %v11690_v16 = vld [vmem:[#allocation5 + $0x88] sm:$0xff] }
 0xd69   : > { %v11700_v43 = vpack.c.bf16 %v11687_v30, %v11686_v19  ;;  %v11691_v20 = vld [vmem:[#allocation5 + $0x90] sm:$0xff]  ;;  %v11694_v29 = vld [vmem:[#allocation5 + $0xc8] sm:$0xff] }
 0xd6a   : > { %v11693_v3 = vld [vmem:[#allocation5 + $0xb0] sm:$0xff] }
 0xd6b   : > { %18510 = vmatmul.mubr.msk.bf16.vlgmr.msra.gmra.mrb[68].mxu0 %vm10483_vm4, %v23872_v57  ;;  %v11695_v38 = vld [vmem:[#allocation5 + $0xd0] sm:$0xff] }
 0xd6c   : > { %18513 = vmatprep.mubr.msk.bf16.mxu0 %vm10483_vm4, %v23875_v51  ;;  %18526 = vmatpush3.bf16.msra.mxu0 %v20196_v36  ;;  %v11332_v36 = vld [vmem:[#allocation6 + $0x69] sm:$0xff]  ;;  %v11867_v15 = vld [vmem:[#allocation5 + $0x71] sm:$0xff] }
 0xd6d   : > { %18527 = vmatprep.subr.bf16.mxu0 %v20197_v61  ;;  %v23913_v39 = vpack.c.bf16 %v11333_v52, %v11332_v36  ;;  %v11519_v36 = vld [vmem:[#allocation5 + $0xef] sm:$0xff] }
 0xd6e   : > { %v11682_v52 = vld [vmem:[#allocation5 + $0x8] sm:$0xff]  ;;  %v11869_v30 = vld [vmem:[#allocation5 + $0x91] sm:$0xff] }
 0xd6f   : > { %v11698_v54 = vpack.c.bf16 %v11683_v31, %v11682_v52  ;;  %v20205_v31 = vld [vmem:[%s24823_s16 + $0x68] sm:$0xff]   ;;  %v11866_v47 = vld [vmem:[#allocation5 + $0x69] sm:$0xff] }
 0xd70   : > { %18528 = vmatpush3.bf16.msra.mxu0 %v20197_v61  ;;  %v11506_v61 = vld [vmem:[#allocation5 + $0x27] sm:$0xff] }
 0xd71   : > { %18545 = vmatprep.subr.bf16.mxu0 %v20198_v0  ;;  %v11868_v19 = vld [vmem:[#allocation5 + $0x89] sm:$0xff] }
 0xd73   : > { %18514 = vmatmul.mubr.msk.bf16.gmra.mrb[72].mxu0 %vm10483_vm4, %v23882_v58 }
 0xd74   : > { %18517 = vmatprep.mubr.msk.bf16.mxu0 %vm10483_vm4, %v23884_v10 }
 0xd7b   : > { %18518 = vmatmul.mubr.msk.bf16.gmra.mrb[76].mxu0 %vm10483_vm4, %v23890_v60 }
 0xd7c   : > { %18521 = vmatprep.mubr.msk.bf16.mxu0 %vm10483_vm4, %v23892_v24 }
 0xd83   : > { %18522 = vmatmul.mubr.msk.bf16.gmra.mrb[80].mxu0 %vm10483_vm4, %v23898_v33 }
 0xd84   : > { %18529 = vmatprep.mubr.msk.bf16.mxu0 %vm10483_vm4, %v11342_v62  ;;  %v11514_v62 = vld [vmem:[#allocation5 + $0xa7] sm:$0xff] }
 0xd85   : > { %v11525_v22 = vpack.c.bf16 %v11515_v9, %v11514_v62  ;;  %v11860_v62 = vld [vmem:[#allocation5 + $0x9] sm:$0xff]  ;;  %v11861_v9 = vld [vmem:[#allocation5 + $0x11] sm:$0xff] }
 0xd8b   : > { %18530 = vmatmul.mubr.msk.bf16.vlgmr.msra.gmra.mrb[68].mxu0 %vm10483_vm4, %v23903_v53 }
 0xd8c   : > { %18533 = vmatprep.mubr.msk.bf16.mxu0 %vm10483_vm4, %v23906_v8  ;;  %18546 = vmatpush3.bf16.msra.mxu0 %v20198_v0  ;;  %v11507_v0 = vld [vmem:[#allocation5 + $0x2f] sm:$0xff] }
 0xd8d   : > { %18547 = vmatprep.subr.bf16.mxu0 %v20199_v49  ;;  %v11521_v23 = vpack.c.bf16 %v11507_v0, %v11506_v61  ;;  %v11688_v61 = vld [vmem:[#allocation5 + $0x68] sm:$0xff]  ;;  %v11689_v0 = vld [vmem:[#allocation5 + $0x70] sm:$0xff] }
 0xd90   : > { %18548 = vmatpush3.bf16.msra.mxu0 %v20199_v49  ;;  %v11526_v49 = vpack.c.bf16 %v11517_v42, %v11516_v41  ;;  %v11876_v42 = vpack.c.bf16 %v11861_v9, %v11860_v62 }
 0xd91   : > { %18565 = vmatprep.subr.bf16.mxu0 %v20200_v50 }
 0xd93   : > { %18534 = vmatmul.mubr.msk.bf16.gmra.mrb[72].mxu0 %vm10483_vm4, %v23913_v39 }
 0xd94   : > { %18537 = vmatprep.mubr.msk.bf16.mxu0 %vm10483_vm4, %v23915_v37 }
 0xd9b   : > { %18538 = vmatmul.mubr.msk.bf16.gmra.mrb[76].mxu0 %vm10483_vm4, %v23921_v44 }
 0xd9c   : > { %18541 = vmatprep.mubr.msk.bf16.mxu0 %vm10483_vm4, %v23923_v34 }
 0xda3   : > { %18542 = vmatmul.mubr.msk.bf16.gmra.mrb[80].mxu0 %vm10483_vm4, %v23929_v13 }
 0xda4   : > { %18549 = vmatprep.mubr.msk.bf16.mxu0 %vm10483_vm4, %v11520_v26  ;;  %v20204_v26 = vld [vmem:[%s24823_s16 + $0x60] sm:$0xff]  }
 0xdab   : > { %18550 = vmatmul.mubr.msk.bf16.vlgmr.msra.gmra.mrb[68].mxu0 %vm10483_vm4, %v11521_v23  ;;  %v11701_v23 = vpack.c.bf16 %v11689_v0, %v11688_v61  ;;  %v11871_v61 = vld [vmem:[#allocation5 + $0xb1] sm:$0xff]  ;;  %v11872_v0 = vld [vmem:[#allocation5 + $0xc9] sm:$0xff] }
 0xdac   : > { %18553 = vmatprep.mubr.msk.bf16.mxu0 %vm10483_vm4, %v11522_v55  ;;  %18566 = vmatpush3.bf16.msra.mxu0 %v20200_v50  ;;  %v11518_v50 = vld [vmem:[#allocation5 + $0xe7] sm:$0xff] }
 0xdad   : > { %18567 = vmatprep.subr.bf16.mxu0 %v20201_v11  ;;  %v11527_v45 = vpack.c.bf16 %v11519_v36, %v11518_v50  ;;  %v11692_v55 = vld [vmem:[#allocation5 + $0xa8] sm:$0xff]  ;;  %v11865_v36 = vld [vmem:[#allocation5 + $0x51] sm:$0xff] }
 0xdae   : > { %v11703_v12 = vpack.c.bf16 %v11693_v3, %v11692_v55  ;;  %v11864_v50 = vld [vmem:[#allocation5 + $0x49] sm:$0xff] }
 0xdaf   : > { %v20207_v3 = vld [vmem:[%s24823_s16 + $0x78] sm:$0xff]  }
 0xdb0   : > { %18568 = vmatpush3.bf16.msra.mxu0 %v20201_v11  ;;  %v11702_v11 = vpack.c.bf16 %v11691_v20, %v11690_v16 }
 0xdb1   : > { %18585 = vmatprep.subr.bf16.mxu0 %v20202_v14 }
 0xdb3   : > { %18554 = vmatmul.mubr.msk.bf16.gmra.mrb[72].mxu0 %vm10483_vm4, %v11523_v18  ;;  %v11696_v18 = vld [vmem:[#allocation5 + $0xe8] sm:$0xff] }
 0xdb4   : > { %18557 = vmatprep.mubr.msk.bf16.mxu0 %vm10483_vm4, %v11524_v63  ;;  %v11697_v63 = vld [vmem:[#allocation5 + $0xf0] sm:$0xff] }
 0xdb5   : > { %v11705_v41 = vpack.c.bf16 %v11697_v63, %v11696_v18 }
 0xdbb   : > { %18558 = vmatmul.mubr.msk.bf16.gmra.mrb[76].mxu0 %vm10483_vm4, %v11525_v22  ;;  %v11862_v22 = vld [vmem:[#allocation5 + $0x29] sm:$0xff] }
 0xdbc   : > { %18561 = vmatprep.mubr.msk.bf16.mxu0 %vm10483_vm4, %v11526_v49  ;;  %v11863_v49 = vld [vmem:[#allocation5 + $0x31] sm:$0xff] }
 0xdbd   : > { %v11877_v52 = vpack.c.bf16 %v11863_v49, %v11862_v22 }
 0xdc3   : > { %18562 = vmatmul.mubr.msk.bf16.gmra.mrb[80].mxu0 %vm10483_vm4, %v11527_v45  ;;  %v11878_v45 = vpack.c.bf16 %v11865_v36, %v11864_v50 }
 0xdc4   : > { %18569 = vmatprep.mubr.msk.bf16.mxu0 %vm10483_vm4, %v11698_v54  ;;  %v20206_v54 = vld [vmem:[%s24823_s16 + $0x70] sm:$0xff]  }
 0xdcb   : > { %18570 = vmatmul.mubr.msk.bf16.vlgmr.msra.gmra.mrb[68].mxu0 %vm10483_vm4, %v11699_v46  ;;  %v11879_v46 = vpack.c.bf16 %v11867_v15, %v11866_v47 }
 0xdcc   : > { %18573 = vmatprep.mubr.msk.bf16.mxu0 %vm10483_vm4, %v11700_v43  ;;  %18586 = vmatpush3.bf16.msra.mxu0 %v20202_v14  ;;  %v11704_v14 = vpack.c.bf16 %v11695_v38, %v11694_v29  ;;  %v11870_v43 = vld [vmem:[#allocation5 + $0xa9] sm:$0xff]  ;;  %v20209_v38 = vld [vmem:[%s24823_s16 + $0x88] sm:$0xff]  }
 0xdcd   : > { %18587 = vmatprep.subr.bf16.mxu0 %v20203_v4  ;;  %v11881_v16 = vpack.c.bf16 %v11871_v61, %v11870_v43  ;;  %v20208_v29 = vld [vmem:[%s24823_s16 + $0x80] sm:$0xff]   ;;  %v20212_v43 = vld [vmem:[%s24828_s15 + $0x8] sm:$0xff]   ;;  %v20213_v61 = vld [vmem:[%s24828_s15 + $0x10] sm:$0xff]  }
 0xdd0   : > { %18588 = vmatpush3.bf16.msra.mxu0 %v20203_v4  ;;  %v11880_v4 = vpack.c.bf16 %v11869_v30, %v11868_v19 }
 0xdd1   : > { %18605 = vmatprep.subr.bf16.mxu0 %v20204_v26 }
 0xdd3   : > { %18574 = vmatmul.mubr.msk.bf16.gmra.mrb[72].mxu0 %vm10483_vm4, %v11701_v23  ;;  %v11874_v23 = vld [vmem:[#allocation5 + $0xe9] sm:$0xff] }
 0xdd4   : > { %18577 = vmatprep.mubr.msk.bf16.mxu0 %vm10483_vm4, %v11702_v11  ;;  %v11875_v11 = vld [vmem:[#allocation5 + $0xf1] sm:$0xff] }
 0xdd5   : > { %v11883_v55 = vpack.c.bf16 %v11875_v11, %v11874_v23 }
 0xddb   : > { %18578 = vmatmul.mubr.msk.bf16.gmra.mrb[76].mxu0 %vm10483_vm4, %v11703_v12 }
 0xddc   : > { %18581 = vmatprep.mubr.msk.bf16.mxu0 %vm10483_vm4, %v11704_v14 }
 0xde3   : > { %18582 = vmatmul.mubr.msk.bf16.gmra.mrb[80].mxu0 %vm10483_vm4, %v11705_v41 }
 0xde4   : > { %18589 = vmatprep.mubr.msk.bf16.mxu0 %vm10483_vm4, %v11876_v42 }
 0xdeb   : > { %18590 = vmatmul.mubr.msk.bf16.vlgmr.msra.gmra.mrb[68].mxu0 %vm10483_vm4, %v11877_v52 }
 0xdec   : > { %18593 = vmatprep.mubr.msk.bf16.mxu0 %vm10483_vm4, %v11878_v45  ;;  %18606 = vmatpush3.bf16.msra.mxu0 %v20204_v26  ;;  %v11873_v26 = vld [vmem:[#allocation5 + $0xd1] sm:$0xff] }
 0xded   : > { %18607 = vmatprep.subr.bf16.mxu0 %v20205_v31  ;;  %v11882_v20 = vpack.c.bf16 %v11873_v26, %v11872_v0  ;;  %v24840_v0 = vmov 0.0|0.0   ;;  %v20214_v26 = vld [vmem:[%s24828_s15 + $0x18] sm:$0xff]  }
 0xdf0   : > { %18608 = vmatpush3.bf16.msra.mxu0 %v20205_v31 }
 0xdf1   : > { %18625 = vmatprep.subr.bf16.mxu0 %v20206_v54 }
 0xdf3   : > { %18594 = vmatmul.mubr.msk.bf16.gmra.mrb[72].mxu0 %vm10483_vm4, %v11879_v46 }
 0xdf4   : > { %18597 = vmatprep.mubr.msk.bf16.mxu0 %vm10483_vm4, %v11880_v4 }
 0xdfb   : > { %18598 = vmatmul.mubr.msk.bf16.gmra.mrb[76].mxu0 %vm10483_vm4, %v11881_v16 }
 0xdfc   : > { %18601 = vmatprep.mubr.msk.bf16.mxu0 %vm10483_vm4, %v11882_v20 }
 0xe03   : > { %18602 = vmatmul.mubr.msk.bf16.gmra.mrb[80].mxu0 %vm10483_vm4, %v11883_v55 }
 0xe04   : > { %18609 = vmatprep.mubr.msk.bf16.mxu0 %vm10483_vm4, %v23872_v57  ;;  %v12052_v57 = vld [vmem:[#allocation6 + $0x107] sm:$0xff] }
 0xe0b   : > { %18610 = vmatmul.mubr.msk.bf16.vlgmr.msra.gmra.mrb[68].mxu0 %vm10483_vm4, %v23875_v51  ;;  %v12053_v51 = vld [vmem:[#allocation6 + $0x10f] sm:$0xff] }
 0xe0c   : > { %18613 = vmatprep.mubr.msk.bf16.mxu0 %vm10483_vm4, %v23882_v58  ;;  %18626 = vmatpush3.bf16.msra.mxu0 %v20206_v54  ;;  %v12061_v58 = vpack.c.bf16 %v12053_v51, %v12052_v57 }
 0xe0d   : > { %18627 = vmatprep.subr.bf16.mxu0 %v20207_v3 }
 0xe10   : > { %18628 = vmatpush3.bf16.msra.mxu0 %v20207_v3 }
 0xe11   : > { %18645 = vmatprep.subr.bf16.mxu0 %v20208_v29 }
 0xe13   : > { %18614 = vmatmul.mubr.msk.bf16.gmra.mrb[72].mxu0 %vm10483_vm4, %v23884_v10  ;;  %v20210_v10 = vld [vmem:[%s24827_s10] sm:$0xff]   ;;  %s24839_s10 = sld [smem:[#allocation26_spill]] }
 0xe14   : > { %18617 = vmatprep.mubr.msk.bf16.mxu0 %vm10483_vm4, %v23890_v60  ;;  %v12573_v60 = vpack.c.bf16 %v22570_v1, %v22554_v2  ;;  %v24833_v1 = vld [vmem:[#allocation71_spill] sm:$0xff] }
 0xe19   : > { %v12890_v16 = vld [vmem:[%s24839_s10] sm:$0xff]  ;;  %v12891_v20 = vld [vmem:[%s24839_s10 + $0x8] sm:$0xff]  ;;  %v12892_v23 = vld [vmem:[%s24839_s10 + $0x10] sm:$0xff] }
 0xe1a   : > { %v19031_v11 = vpack.c.bf16 %v12891_v20, %v12890_v16  ;;  %v12893_v55 = vld [vmem:[%s24839_s10 + $0x18] sm:$0xff] }
 0xe1b   : > { %18618 = vmatmul.mubr.msk.bf16.gmra.mrb[76].mxu0 %vm10483_vm4, %v23892_v24  ;;  %v12574_v24 = vpack.c.bf16 %v22607_v28, %v22601_v27  ;;  %v24834_v27 = vld [vmem:[#allocation70_spill] sm:$0xff]  ;;  %v19034_v3 = vpack.c.bf16 %v12893_v55, %v12892_v23 }
 0xe1c   : > { %18621 = vmatprep.mubr.msk.bf16.mxu0 %vm10483_vm4, %v23898_v33  ;;  %v12575_v33 = vpack.c.bf16 %v22652_v59, %v22639_v17  ;;  %v24835_v28 = vpack.c.bf16 %v24833_v1, %v24834_v27  ;;  %v20211_v59 = vld [vmem:[%s24828_s15] sm:$0xff]  }
 0xe23   : > { %18622 = vmatmul.mubr.msk.bf16.gmra.mrb[80].mxu0 %vm10483_vm4, %v12061_v58 }
 0xe24   : > { %18629 = vmatprep.mubr.msk.bf16.mxu0 %vm10483_vm4, %v23840_v21  ;;  %v12230_v21 = vld [vmem:[#allocation6 + $0x108] sm:$0xff] }
 0xe2b   : > { %18630 = vmatmul.mubr.msk.bf16.vlgmr.msra.gmra.mrb[68].mxu0 %vm10483_vm4, %v23843_v40  ;;  %v12231_v40 = vld [vmem:[#allocation6 + $0x110] sm:$0xff] }
 0xe2c   : > { %18633 = vmatprep.mubr.msk.bf16.mxu0 %vm10483_vm4, %v23851_v5  ;;  %18646 = vmatpush3.bf16.msra.mxu0 %v20208_v29  ;;  %v12239_v5 = vpack.c.bf16 %v12231_v40, %v12230_v21  ;;  %v16530_v29 = vld [vmem:[%s24841_s3] ss:$0 sm:$0xff]  ;;  %s24842_s3 = sld [smem:[#allocation27_spill]] }
 0xe2d   : > { %18647 = vmatprep.subr.bf16.mxu0 %v20209_v38 }
 0xe30   : > { %18648 = vmatpush3.bf16.msra.mxu0 %v20209_v38 }
 0xe31   : > { %18665 = vmatprep.subr.bf16.mxu0 %v20210_v10 }
 0xe33   : > { %18634 = vmatmul.mubr.msk.bf16.gmra.mrb[72].mxu0 %vm10483_vm4, %v23853_v48  ;;  %v12408_v48 = vld [vmem:[#allocation6 + $0x109] sm:$0xff] }
 0xe34   : > { %18637 = vmatprep.mubr.msk.bf16.mxu0 %vm10483_vm4, %v23859_v25  ;;  %v12409_v25 = vld [vmem:[#allocation6 + $0x111] sm:$0xff] }
 0xe3b   : > { %18638 = vmatmul.mubr.msk.bf16.gmra.mrb[76].mxu0 %vm10483_vm4, %v23861_v32  ;;  %v12417_v32 = vpack.c.bf16 %v12409_v25, %v12408_v48 }
 0xe3c   : > { %18641 = vmatprep.mubr.msk.bf16.mxu0 %vm10483_vm4, %v23867_v35  ;;  %v12572_v35 = vpack.c.bf16 %v22522_v56, %v22513_v7  ;;  %v24831_v56 = vld [vmem:[#allocation68_spill] sm:$0xff] }
 0xe43   : > { %18642 = vmatmul.mubr.msk.bf16.gmra.mrb[80].mxu0 %vm10483_vm4, %v12239_v5 }
 0xe44   : > { %18649 = vmatprep.mubr.msk.bf16.mxu0 %vm10483_vm4, %v23903_v53  ;;  %v24829_v53 = vld [vmem:[#allocation41_spill] sm:$0xff] }
 0xe4b   : > { %18650 = vmatmul.mubr.msk.bf16.vlgmr.msra.gmra.mrb[68].mxu0 %vm10483_vm4, %v23906_v8  ;;  %v24830_v8 = vld [vmem:[#allocation40_spill] sm:$0xff] }
 0xe4c   : > { %18653 = vmatprep.mubr.msk.bf16.mxu0 %vm10483_vm4, %v23913_v39  ;;  %18666 = vmatpush3.bf16.msra.mxu0 %v20210_v10  ;;  %v12576_v7 = vpack.c.bf16 %v24830_v8, %v24829_v53  ;;  %v24832_v39 = vld [vmem:[#allocation69_spill] sm:$0xff] }
 0xe4d   : > { %v12577_v2 = vpack.c.bf16 %v24832_v39, %v24831_v56 }
 0xe53   : > { %18654 = vmatmul.mubr.msk.bf16.gmra.mrb[72].mxu0 %vm10483_vm4, %v23915_v37  ;;  %v24836_v37 = vld [vmem:[#allocation42_spill] sm:$0xff] }
 0xe54   : > { %18657 = vmatprep.mubr.msk.bf16.mxu0 %vm10483_vm4, %v23921_v44  ;;  %v24837_v44 = vld [vmem:[#allocation43_spill] sm:$0xff] }
 0xe55   : > { %v24838_v17 = vpack.c.bf16 %v24836_v37, %v24837_v44 }
 0xe5b   : > { %18658 = vmatmul.mubr.msk.bf16.gmra.mrb[76].mxu0 %vm10483_vm4, %v23923_v34 }
 0xe5c   : > { %18661 = vmatprep.mubr.msk.bf16.mxu0 %vm10483_vm4, %v23929_v13 }
 0xe63   : > { %18662 = vmatmul.mubr.msk.bf16.gmra.mrb[80].mxu0 %vm10483_vm4, %v12417_v32 }
 0xe64   : > { %18667 = vmatprep.mubr.msk.bf16.mxu0 %vm1388_vm2, %v12572_v35 }
 0xe6b   : > { %18668 = vmatmul.mubr.msk.bf16.vlgmr.msra.gmra.mrb[68].mxu0 %vm1388_vm2, %v12573_v60 }
 0xe6c   : > { %18671 = vmatprep.mubr.msk.bf16.mxu0 %vm1388_vm2, %v12574_v24 }
 0xe73   : > { %18672 = vmatmul.mubr.msk.bf16.gmra.mrb[72].mxu0 %vm1388_vm2, %v12575_v33 }
 0xe74   : > { %18675 = vmatprep.mubr.msk.bf16.mxu0 %vm1388_vm2, %v12576_v7 }
 0xe7b   : > { %18676 = vmatmul.mubr.msk.bf16.gmra.mrb[76].mxu0 %vm1388_vm2, %v12577_v2 }
 0xe7c   : > { %18679 = vmatprep.mubr.msk.bf16.mxu0 %vm1388_vm2, %v24835_v28 }
 0xe83   : > { %18680 = vmatmul.mubr.msk.bf16.gmra.mrb[80].mxu0 %vm1388_vm2, %v24838_v17 }
 0xe84   : > { %18699 = vmatprep.mubr.bf16.mxu0 %v20211_v59 }
 0xf3e   : > { %v18669_v34 = vpop.f32.mrb[68].mxu0 }
 0xf3f   : > { %v12646_v13 = vpop.f32.mrb[69].mxu0 }
 0xf40   : > { %v18670_v12 = vpop.f32.mrb[70].mxu0 }
 0xf41   : > { %v12734_v14 = vpack.c.bf16 %v18670_v12, %v18669_v34  ;;  %v12649_v18 = vpop.f32.mrb[71].mxu0 }
 0xf42   : > { %v12733_v63 = vpack.c.bf16 %v12649_v18, %v12646_v13 }
 0xf44   : > { %18683 = vmatprep.subr.bf16.mxu0 %v12733_v63 }
 0xf45   : > { %18684 = vmatpush3.bf16.msra.mxu0 %v12733_v63 }
 0xf46   : > { %v18673_v62 = vpop.f32.mrb[72].mxu0  ;;  %18685 = vmatprep.subr.bf16.mxu0 %v12734_v14 }
 0xf47   : > { %v12662_v9 = vpop.f32.mrb[73].mxu0 }
 0xf48   : > { %v18674_v41 = vpop.f32.mrb[74].mxu0 }
 0xf49   : > { %v12736_v42 = vpack.c.bf16 %v18674_v41, %v18673_v62  ;;  %v12665_v22 = vpop.f32.mrb[75].mxu0  ;;  %18686 = vmatpush3.bf16.msra.mxu0 %v12734_v14 }
 0xf4a   : > { %v12735_v49 = vpack.c.bf16 %v12665_v22, %v12662_v9 }
 0xf4c   : > { %18687 = vmatprep.subr.bf16.mxu0 %v12735_v49 }
 0xf4d   : > { %18688 = vmatpush3.bf16.msra.mxu0 %v12735_v49 }
 0xf4e   : > { %v18677_v50 = vpop.f32.mrb[76].mxu0  ;;  %18689 = vmatprep.subr.bf16.mxu0 %v12736_v42 }
 0xf4f   : > { %v12678_v36 = vpop.f32.mrb[77].mxu0 }
 0xf50   : > { %v18678_v52 = vpop.f32.mrb[78].mxu0 }
 0xf51   : > { %v12738_v31 = vpack.c.bf16 %v18678_v52, %v18677_v50  ;;  %v12681_v45 = vpop.f32.mrb[79].mxu0  ;;  %18690 = vmatpush3.bf16.msra.mxu0 %v12736_v42 }
 0xf52   : > { %v12737_v54 = vpack.c.bf16 %v12681_v45, %v12678_v36 }
 0xf54   : > { %18691 = vmatprep.subr.bf16.mxu0 %v12737_v54 }
 0xf55   : > { %18692 = vmatpush3.bf16.msra.mxu0 %v12737_v54 }
 0xf56   : > { %v18681_v47 = vpop.f32.mrb[80].mxu0  ;;  %18693 = vmatprep.subr.bf16.mxu0 %v12738_v31 }
 0xf57   : > { %v12694_v15 = vpop.f32.mrb[81].mxu0 }
 0xf58   : > { %v18682_v19 = vpop.f32.mrb[82].mxu0 }
 0xf59   : > { %v12740_v30 = vpack.c.bf16 %v18682_v19, %v18681_v47  ;;  %v12697_v46 = vpop.f32.mrb[83].mxu0  ;;  %18694 = vmatpush3.bf16.msra.mxu0 %v12738_v31 }
 0xf5a   : > { %v12739_v4 = vpack.c.bf16 %v12697_v46, %v12694_v15 }
 0xf5c   : > { %18695 = vmatprep.subr.bf16.mxu0 %v12739_v4 }
 0xf5d   : > { %18696 = vmatpush3.bf16.msra.mxu0 %v12739_v4 }
 0xf5e   : > { %18697 = vmatprep.subr.bf16.mxu0 %v12740_v30 }
 0xf61   : > { %18698 = vmatpush3.bf16.msra.mxu0 %v12740_v30 }
 0xf62   : > { %19030 = vmatprep.subr.bf16.mxu0 %v24840_v0 }
 0xf64   : > { %18700 = vmatmul.mubr.bf16.vlgmr.msra.gmra.mrb[84].mxu0 %v20212_v43 }
 0xf65   : > { %18703 = vmatprep.mubr.bf16.mxu0 %v20213_v61  ;;  %19032 = vmatpush3.bf16.msra.mxu0 %v19031_v11 }
 0xf66   : > { %19033 = vmatprep.subr.bf16.mxu0 %v24840_v0 }
 0xf69   : > { %19035 = vmatpush3.bf16.msra.mxu0 %v19034_v3 }
 0xf6a   : > { %19036 = vmatprep.subr.bf16.mxu0 %v24840_v0 }
 0xf6c   : > { %18704 = vmatmul.mubr.bf16.gmra.mrb[88].mxu0 %v20214_v26 }
 0xf6d   : > { %18715 = vmatprep.mubr.msk.f32.mxu0 %vm20392_vm5, %v24822_v6 }
0x1037   : > { %v18701_v57 = vpop.f32.mrb[84].mxu0 }
0x1038   : > { %v12806_v51 = vpop.f32.mrb[85].mxu0  ;;  %v24052_v58 = vadd.f32 %v18701_v57, %v16530_v29 }
0x1039   : > { %v24054_v38 = vadd.f32 %v16530_v29, %v12806_v51  ;;  %v18702_v10 = vpop.f32.mrb[86].mxu0 }
0x103a   : > { %v12809_v21 = vpop.f32.mrb[87].mxu0  ;;  %v24060_v48 = vadd.f32 %v18702_v10, %v16530_v29  ;;  %v12862_v25 = vmul.f32 %v24052_v58, %v24052_v58  ;;  %v12842_v33 = vsel %vm10483_vm4, %v24052_v58, 0.0 }
0x103b   : > { %v12860_v40 = vmul.f32 %v24054_v38, %v24054_v38  ;;  %v24058_v5 = vadd.f32 %v16530_v29, %v12809_v21  ;;  %v12839_v32 = vsel %vm10483_vm4, %v24054_v38, 0.0 }
0x103c   : > { %v12863_v56 = vmul.f32 %v24060_v48, %v24060_v48  ;;  %v12871_v27 = vsel %vm10483_vm4, %v12862_v25, 0.0  ;;  %v12844_v34 = vsel %vm10483_vm4, %v24060_v48, 0.0  ;;  %v12977_v25 = vld [vmem:[%s24842_s3] sm:$0xff] }
0x103d   : > { %v12840_v35 = vsel %vm10483_vm4, %v24058_v5, 0.0  ;;  %v12861_v60 = vmul.f32 %v24058_v5, %v24058_v5  ;;  %v12868_v53 = vsel %vm10483_vm4, %v12860_v40, 0.0 }
0x103e   : > { %v12841_v24 = vadd.f32 %v12840_v35, %v12839_v32  ;;  %v12873_v18 = vsel %vm10483_vm4, %v12863_v56, 0.0  ;;  %v12978_v32 = vld [vmem:[%s24842_s3 + $0x8] sm:$0xff]  ;;  %s24847_s3 = sld [smem:[#allocation31_spill]] }
0x103f   : > { %v12869_v8 = vsel %vm10483_vm4, %v12861_v60, 0.0  ;;  %v18705_v7 = vpop.f32.mrb[88].mxu0  ;;  %v19037_v35 = vpack.c.bf16 %v12978_v32, %v12977_v25 }
0x1040   : > { %v12843_v39 = vadd.f32 %v12842_v33, %v12841_v24  ;;  %v12870_v2 = vadd.f32 %v12869_v8, %v12868_v53  ;;  %v12822_v1 = vpop.f32.mrb[89].mxu0  ;;  %v24079_v17 = vadd.f32 %v18705_v7, %v16530_v29 }
0x1041   : > { %v24077_v28 = vadd.f32 %v16530_v29, %v12822_v1  ;;  %v18706_v37 = vpop.f32.mrb[90].mxu0  ;;  %v20215_v1 = vld [vmem:[%s24843_s5 + $0x10] sm:$0xff]  }
0x1042   : > { %v12872_v44 = vadd.f32 %v12871_v27, %v12870_v2  ;;  %v12825_v59 = vpop.f32.mrb[91].mxu0  ;;  %v24090_v63 = vadd.f32 %v18706_v37, %v16530_v29  ;;  %v12845_v62 = vadd.f32 %v12844_v34, %v12843_v39  ;;  %v12866_v49 = vmul.f32 %v24079_v17, %v24079_v17  ;;  %v20216_v27 = vld [vmem:[%s24843_s5 + $0x18] sm:$0xff]   ;;  %v20217_v37 = vld [vmem:[%s24843_s5] sm:$0xff]  }
0x1043   : > { %v12846_v13 = vsel %vm10483_vm4, %v24077_v28, 0.0  ;;  %v12864_v12 = vmul.f32 %v24077_v28, %v24077_v28  ;;  %v24087_v14 = vadd.f32 %v16530_v29, %v12825_v59  ;;  %v12850_v54 = vsel %vm10483_vm4, %v24079_v17, 0.0 }
0x1044   : > { %v12874_v22 = vadd.f32 %v12873_v18, %v12872_v44  ;;  %v12847_v50 = vadd.f32 %v12846_v13, %v12845_v62  ;;  %v12867_v31 = vmul.f32 %v24090_v63, %v24090_v63  ;;  %v12879_v15 = vsel %vm10483_vm4, %v12866_v49, 0.0  ;;  %v12837_v44 = vld [vmem:[%s24844_s6] sm:$0x1]  ;;  %v12838_v62 = vld [vmem:[%s24844_s6 + $0x1] sm:$0x1]  ;;  %s24849_s6 = sld [smem:[#allocation29_spill]] }
0x1045   : > { %v12875_v9 = vsel %vm10483_vm4, %v12864_v12, 0.0  ;;  %v12848_v41 = vsel %vm10483_vm4, %v24087_v14, 0.0  ;;  %v12865_v42 = vmul.f32 %v24087_v14, %v24087_v14  ;;  %v12852_v30 = vsel %vm10483_vm4, %v24090_v63, 0.0 }
0x1046   : > { %v12876_v36 = vadd.f32 %v12875_v9, %v12874_v22  ;;  %v12849_v45 = vadd.f32 %v12848_v41, %v12847_v50  ;;  %v12881_v4 = vsel %vm10483_vm4, %v12867_v31, 0.0  ;;  %v13053_v59 = vrot.slane %v12837_v44, 7  ;;  %v24845_v9 = vld [vmem:[#allocation45_spill] sm:$0xff]  ;;  %v24846_v31 = vld [vmem:[#allocation67_spill] sm:$0xff] }
0x1047   : > { %v12877_v52 = vsel %vm10483_vm4, %v12865_v42, 0.0 }
0x1048   : > { %v12878_v47 = vadd.f32 %v12877_v52, %v12876_v36  ;;  %v12851_v19 = vadd.f32 %v12850_v54, %v12849_v45 }
0x104a   : > { %v12880_v46 = vadd.f32 %v12879_v15, %v12878_v47  ;;  %v12853_v43 = vadd.f32 %v12852_v30, %v12851_v19 }
0x104c   : > { %v12882_v61 = vadd.f32 %v12881_v4, %v12880_v46  ;;  %v12854_v26 = vrot.slane %v12853_v43, 4 }
0x104e   : > { %v12883_v16 = vrot.slane %v12882_v61, 4  ;;  %v12855_v20 = vadd.f32 %v12854_v26, %v12853_v43 }
0x1050   : > { %v12884_v23 = vadd.f32 %v12883_v16, %v12882_v61  ;;  %v12856_v11 = vrot.slane %v12855_v20, 2 }
0x1052   : > { %v12885_v55 = vrot.slane %v12884_v23, 2  ;;  %v12857_v3 = vadd.f32 %v12856_v11, %v12855_v20 }
0x1054   : > { %v12886_v29 = vadd.f32 %v12885_v55, %v12884_v23  ;;  %v12858_v57 = vrot.slane %v12857_v3, 1 }
0x1056   : > { %v12887_v51 = vrot.slane %v12886_v29, 1  ;;  %v12859_v10 = vadd.f32 %v12858_v57, %v12857_v3 }
0x1058   : > { %v12888_v21 = vadd.f32 %v12887_v51, %v12886_v29 }
0x105a   : > { %v12889_v40 = vsel %vm10654_vm6, %v12859_v10, %v12888_v21 }
0x105b   : > { %18716 = vmatmul.mubr.msk.f32.vlgmr.msra.gmra.mrb[92].mxu0 %vm10483_vm4, %v12889_v40 }
0x105c   : > { %18722 = vmatprep.mubr.msk.f32.mxu0 %vm20392_vm5, %v24822_v6  ;;  %19038 = vmatpush3.bf16.msra.mxu0 %v19037_v35  ;;  %v20218_v35 = vld [vmem:[%s24843_s5 + $0x8] sm:$0xff]  }
0x105d   : > { %18725 = vmatprep.subr.bf16.mxu0 %v20215_v1 }
0x112e   : > { %v12963_v60 = vpop.f32.mrb[92].mxu0 }
0x112f   : > { %v12968_v24 = vmul.f32 0.0078125, %v12963_v60  ;;  %v18717_v33 = vpop.f32.mrb[93].mxu0 }
0x1131   : > { %v12969_v53 = vmul.f32 %v12968_v24, %v12968_v24 }
0x1133   : > { %v12971_v8 = vrot.slane %v12969_v53, 7 }
0x1135   : > { %v12973_v7 = vsub.f32 %v12968_v24, %v12971_v8  ;;  %v13129_v8 = vld [vmem:[#allocation7 + $0x7] sm:$0xff] }
0x1137   : > { %v12974_v56 = vadd.f32 1e-05, %v12973_v7 }
0x1139   : > { %20284 = vrsqrt.f32 %v12974_v56 }
0x1143   : > { %v20285_v39 = vpop.eup %20284 }
0x1144   : > { %v12976_v2 = vsel %vm10654_vm6, %v12968_v24, %v20285_v39  ;;  %v20219_v24 = vld [vmem:[%s24843_s5 + $0x20] sm:$0xff]  }
0x1145   : > { %18723 = vmatmul.mubr.msk.f32.vlgmr.msra.gmra.mrb[94].mxu0 %vm1388_vm2, %v12976_v2 }
0x1146   : > { %18726 = vmatpush3.bf16.msra.mxu0 %v20215_v1 }
0x1147   : > { %18727 = vmatprep.subr.bf16.mxu0 %v20216_v27 }
0x114a   : > { %18728 = vmatpush3.bf16.msra.mxu0 %v20216_v27 }
0x114b   : > { %18737 = vmatprep.subr.bf16.mxu0 %v20217_v37 }
0x1218   : > { %v13048_v34 = vpop.f32.mrb[94].mxu0 }
0x1219   : > { %v13055_v13 = vmul.f32 %v13053_v59, %v13048_v34  ;;  %v18724_v12 = vpop.f32.mrb[95].mxu0  ;;  %v20220_v59 = vld [vmem:[%s24843_s5 + $0x28] sm:$0xff]  }
0x121b   : > { %v13057_v18 = vrot.slane %v13055_v13, 1  ;;  %v13064_v41 = vrot.slane %v13055_v13, %v24845_v9  ;;  %v20221_v13 = vld [vmem:[%s24843_s5 + $0x30] sm:$0xff]  }
0x121d   : > { %v13059_v42 = vmul.f32 %v13057_v18, %v13048_v34  ;;  %v13065_v49 = vmul.f32 %v13064_v41, %v24054_v38  ;;  %v13066_v50 = vmul.f32 %v13064_v41, %v24058_v5  ;;  %v13067_v36 = vmul.f32 %v13064_v41, %v24052_v58 }
0x121e   : > { %v13068_v52 = vmul.f32 %v13064_v41, %v24060_v48  ;;  %v13069_v54 = vmul.f32 %v13064_v41, %v24077_v28  ;;  %v13070_v47 = vmul.f32 %v13064_v41, %v24087_v14  ;;  %v13071_v15 = vmul.f32 %v13064_v41, %v24079_v17 }
0x121f   : > { %v13060_v22 = vsub.f32 %v12838_v62, %v13059_v42  ;;  %v13072_v19 = vmul.f32 %v13064_v41, %v24090_v63  ;;  %v13145_v63 = vld [vmem:[#allocation7 + $0x8] sm:$0xff] }
0x1220   : > { %v13340_v62 = vld [vmem:[#allocation7 + $0x9] sm:$0xff] }
0x1221   : > { %v13076_v45 = vrot.slane %v13060_v22, %v24846_v31 }
0x1223   : > { %v13077_v30 = vadd.f32 %v13076_v45, %v13065_v49  ;;  %v13078_v46 = vadd.f32 %v13076_v45, %v13066_v50  ;;  %v13079_v4 = vadd.f32 %v13076_v45, %v13067_v36  ;;  %v13080_v43 = vadd.f32 %v13076_v45, %v13068_v52 }
0x1224   : > { %v13081_v61 = vadd.f32 %v13076_v45, %v13069_v54  ;;  %v13082_v5 = vadd.f32 %v13076_v45, %v13070_v47  ;;  %v13083_v26 = vadd.f32 %v13076_v45, %v13071_v15  ;;  %v13084_v16 = vadd.f32 %v13076_v45, %v13072_v19  ;;  %v20222_v54 = vld [vmem:[%s24843_s5 + $0x38] sm:$0xff]   ;;  %v20223_v15 = vld [vmem:[%s24843_s5 + $0x40] sm:$0xff]  }
0x1225   : > { %v13085_v20 = vmax.f32 %v13077_v30, 0.0  ;;  %v13086_v48 = vmax.f32 %v13078_v46, 0.0  ;;  %v13087_v23 = vmax.f32 %v13079_v4, 0.0  ;;  %v13088_v11 = vmax.f32 %v13080_v43, 0.0 }
0x1226   : > { %v13089_v55 = vmax.f32 %v13081_v61, 0.0  ;;  %v13090_v3 = vmax.f32 %v13082_v5, 0.0  ;;  %v13091_v29 = vmax.f32 %v13083_v26, 0.0  ;;  %v13092_v14 = vmax.f32 %v13084_v16, 0.0  ;;  %v20224_v61 = vld [vmem:[%s24843_s5 + $0x48] sm:$0xff]   ;;  %v20225_v26 = vld [vmem:[%s24843_s5 + $0x50] sm:$0xff]  }
0x1227   : > { %13121 = vst.msk [vmem:[#allocation7 + $0x20] sm:$0xff] %vm10483_vm4, %v13085_v20  ;;  %13122 = vst.msk [vmem:[#allocation7 + $0x38] sm:$0xff] %vm10483_vm4, %v13086_v48 }
0x1228   : > { %13123 = vst.msk [vmem:[#allocation7 + $0x50] sm:$0xff] %vm10483_vm4, %v13087_v23  ;;  %13124 = vst.msk [vmem:[#allocation7 + $0x68] sm:$0xff] %vm10483_vm4, %v13088_v11  ;;  %v20226_v11 = vld [vmem:[%s24843_s5 + $0x58] sm:$0xff]  }
0x1229   : > { %13125 = vst.msk [vmem:[#allocation7 + $0x80] sm:$0xff] %vm10483_vm4, %v13089_v55  ;;  %13126 = vst.msk [vmem:[#allocation7 + $0x98] sm:$0xff] %vm10483_vm4, %v13090_v3  ;;  %v20227_v3 = vld [vmem:[%s24843_s5 + $0x60] sm:$0xff]  }
0x122a   : > { %13127 = vst.msk [vmem:[#allocation7 + $0xb0] sm:$0xff] %vm10483_vm4, %v13091_v29  ;;  %13128 = vst.msk [vmem:[#allocation7 + $0xc8] sm:$0xff] %vm10483_vm4, %v13092_v14 }
0x122e   : > { %v24139_v57 = vld [vmem:[#allocation7 + $0x20] sm:$0xff]  ;;  %v24141_v51 = vld [vmem:[#allocation7 + $0x38] sm:$0xff] }
0x122f   : > { %v24143_v10 = vld [vmem:[#allocation7 + $0x50] sm:$0xff]  ;;  %v13153_v21 = vpack.c.bf16 %v24139_v57, %v13145_v63  ;;  %v24150_v25 = vld [vmem:[#allocation7 + $0x68] sm:$0xff]  ;;  %v13130_v7 = vld [vmem:[#allocation7 + $0x1f] sm:$0xff]  ;;  %v13576_v48 = vpack.c.bf16 %v24141_v51, %v24139_v57 }
0x1230   : > { %v24148_v40 = vpack.c.bf16 %v24143_v10, %v24141_v51  ;;  %v24152_v32 = vld [vmem:[#allocation7 + $0x80] sm:$0xff]  ;;  %v24165_v33 = vld [vmem:[#allocation7 + $0x98] sm:$0xff]  ;;  %v13137_v39 = vpack.c.bf16 %v13130_v7, %v13129_v8  ;;  %v13132_v1 = vld [vmem:[#allocation7 + $0x4f] sm:$0xff]  ;;  %v13577_v23 = vpack.c.bf16 %v24150_v25, %v24143_v10 }
0x1231   : > { %18729 = vmatprep.mubr.msk.bf16.mxu0 %vm10483_vm4, %v13153_v21  ;;  %v24158_v60 = vpack.c.bf16 %v24152_v32, %v24150_v25  ;;  %v24167_v53 = vld [vmem:[#allocation7 + $0xb0] sm:$0xff]  ;;  %v13133_v27 = vld [vmem:[#allocation7 + $0x67] sm:$0xff]  ;;  %v13342_v49 = vld [vmem:[#allocation7 + $0x39] sm:$0xff]  ;;  %v13578_v55 = vpack.c.bf16 %v24165_v33, %v24152_v32 }
0x1232   : > { %18730 = vmatmul.mubr.msk.bf16.vlgmr.msra.gmra.mrb[96].mxu0 %vm10483_vm4, %v24148_v40  ;;  %v24171_v56 = vpack.c.bf16 %v24167_v53, %v24165_v33  ;;  %v13131_v2 = vld [vmem:[#allocation7 + $0x37] sm:$0xff]  ;;  %v13136_v18 = vld [vmem:[#allocation7 + $0xaf] sm:$0xff]  ;;  %v13341_v41 = vld [vmem:[#allocation7 + $0x21] sm:$0xff]  ;;  %v13463_v43 = vpack.c.bf16 %v13133_v27, %v13132_v1 }
0x1233   : > { %18733 = vmatprep.mubr.msk.bf16.mxu0 %vm10483_vm4, %v24158_v60  ;;  %18738 = vmatpush3.bf16.msra.mxu0 %v20217_v37  ;;  %v13134_v37 = vld [vmem:[#allocation7 + $0x7f] sm:$0xff]  ;;  %v24176_v44 = vpack.c.bf16 %v13132_v1, %v13131_v2  ;;  %v13135_v12 = vld [vmem:[#allocation7 + $0x97] sm:$0xff]  ;;  %v13348_v22 = vpack.c.bf16 %v13341_v41, %v13340_v62  ;;  %v13344_v36 = vld [vmem:[#allocation7 + $0x69] sm:$0xff]  ;;  %v13462_v4 = vpack.c.bf16 %v13131_v2, %v13130_v7 }
0x1234   : > { %18739 = vmatprep.subr.bf16.mxu0 %v20218_v35  ;;  %v24179_v34 = vpack.c.bf16 %v13134_v37, %v13133_v27  ;;  %v24186_v42 = vpack.c.bf16 %v13136_v18, %v13135_v12  ;;  %v13343_v50 = vld [vmem:[#allocation7 + $0x51] sm:$0xff]  ;;  %v13345_v52 = vld [vmem:[#allocation7 + $0x81] sm:$0xff]  ;;  %v13346_v19 = vld [vmem:[#allocation7 + $0x99] sm:$0xff]  ;;  %v13464_v5 = vpack.c.bf16 %v13135_v12, %v13134_v37  ;;  %v13690_v63 = vpack.c.bf16 %v13342_v49, %v13341_v41 }
0x1235   : > { %v24191_v45 = vpack.c.bf16 %v13343_v50, %v13342_v49  ;;  %v24194_v47 = vpack.c.bf16 %v13345_v52, %v13344_v36  ;;  %v13347_v30 = vld [vmem:[#allocation7 + $0xb1] sm:$0xff]  ;;  %v13461_v16 = vld [vmem:[#allocation7 + $0xc7] sm:$0xff]  ;;  %v13691_v57 = vpack.c.bf16 %v13344_v36, %v13343_v50  ;;  %v13692_v10 = vpack.c.bf16 %v13346_v19, %v13345_v52  ;;  %v13804_v33 = vld [vmem:[#allocation7 + $0xdf] sm:$0xff] }
0x1236   : > { %v24201_v46 = vpack.c.bf16 %v13347_v30, %v13346_v19  ;;  %v13465_v20 = vpack.c.bf16 %v13461_v16, %v13136_v18  ;;  %v13575_v29 = vld [vmem:[#allocation7 + $0xc8] sm:$0xff]  ;;  %v20228_v51 = vld [vmem:[%s24843_s5 + $0x68] sm:$0xff]   ;;  %v20229_v21 = vld [vmem:[%s24843_s5 + $0x70] sm:$0xff]  }
0x1237   : > { %18740 = vmatpush3.bf16.msra.mxu0 %v20218_v35  ;;  %v13579_v14 = vpack.c.bf16 %v13575_v29, %v24167_v53  ;;  %v13689_v25 = vld [vmem:[#allocation7 + $0xc9] sm:$0xff]  ;;  %v13808_v53 = vpack.c.bf16 %v13804_v33, %v13461_v16  ;;  %v20232_v8 = vld [vmem:[%s24843_s5 + $0x88] sm:$0xff]   ;;  %v13918_v7 = vld [vmem:[#allocation7 + $0xe0] sm:$0xff] }
0x1238   : > { %18749 = vmatprep.subr.bf16.mxu0 %v20219_v24  ;;  %v13693_v32 = vpack.c.bf16 %v13689_v25, %v13347_v30  ;;  %v20230_v35 = vld [vmem:[%s24843_s5 + $0x78] sm:$0xff]   ;;  %v14209_v2 = vld [vmem:[%s24847_s3 + $0x8] sm:$0xff]  ;;  %v14210_v1 = vld [vmem:[%s24847_s3 + $0x10] sm:$0xff] }
0x1239   : > { %v14211_v37 = vld [vmem:[%s24847_s3 + $0x18] sm:$0xff]  ;;  %v14214_v12 = vld [vmem:[%s24847_s3 + $0x30] sm:$0xff]  ;;  %v16623_v49 = vld [vmem:[%s24849_s6] ss:$0 sm:$0xff]  ;;  %s24850_s6 = sld [smem:[#allocation33_spill]] }
0x123a   : > { %18734 = vmatmul.mubr.msk.bf16.gmra.mrb[100].mxu0 %vm10483_vm4, %v24171_v56  ;;  %v14215_v18 = vld [vmem:[%s24847_s3 + $0x38] sm:$0xff] }
0x123b   : > { %18741 = vmatprep.mubr.msk.bf16.mxu0 %vm10483_vm4, %v13137_v39  ;;  %v13922_v39 = vpack.c.bf16 %v13918_v7, %v13575_v29 }
0x1242   : > { %18742 = vmatmul.mubr.msk.bf16.vlgmr.msra.gmra.mrb[96].mxu0 %vm10483_vm4, %v24176_v44 }
0x1243   : > { %18745 = vmatprep.mubr.msk.bf16.mxu0 %vm10483_vm4, %v24179_v34  ;;  %18750 = vmatpush3.bf16.msra.mxu0 %v20219_v24  ;;  %v20231_v24 = vld [vmem:[%s24843_s5 + $0x80] sm:$0xff]   ;;  %s24848_s5 = sld [smem:[#allocation32_spill]] }
0x1244   : > { %18751 = vmatprep.subr.bf16.mxu0 %v20220_v59 }
0x1247   : > { %18752 = vmatpush3.bf16.msra.mxu0 %v20220_v59  ;;  %v14212_v59 = vld [vmem:[%s24847_s3 + $0x20] sm:$0xff] }
0x1248   : > { %18761 = vmatprep.subr.bf16.mxu0 %v20221_v13 }
0x1249   : > { %v14298_v62 = vld [vmem:[%s24848_s5] sm:$0xff]  ;;  %v14299_v41 = vld [vmem:[%s24848_s5 + $0x8] sm:$0xff]  ;;  %s24853_s5 = sld [smem:[#allocation36_spill]] }
0x124a   : > { %18746 = vmatmul.mubr.msk.bf16.gmra.mrb[100].mxu0 %vm10483_vm4, %v24186_v42 }
0x124b   : > { %18753 = vmatprep.mubr.msk.bf16.mxu0 %vm10483_vm4, %v13348_v22  ;;  %v19049_v22 = vpack.c.bf16 %v14215_v18, %v14214_v12 }
0x1252   : > { %18754 = vmatmul.mubr.msk.bf16.vlgmr.msra.gmra.mrb[96].mxu0 %vm10483_vm4, %v24191_v45 }
0x1253   : > { %18757 = vmatprep.mubr.msk.bf16.mxu0 %vm10483_vm4, %v24194_v47  ;;  %18762 = vmatpush3.bf16.msra.mxu0 %v20221_v13 }
0x1254   : > { %18763 = vmatprep.subr.bf16.mxu0 %v20222_v54 }
0x1257   : > { %18764 = vmatpush3.bf16.msra.mxu0 %v20222_v54 }
0x1258   : > { %18773 = vmatprep.subr.bf16.mxu0 %v20223_v15 }
0x125a   : > { %18758 = vmatmul.mubr.msk.bf16.gmra.mrb[100].mxu0 %vm10483_vm4, %v24201_v46 }
0x125b   : > { %18765 = vmatprep.mubr.msk.bf16.mxu0 %vm10483_vm4, %v13462_v4 }
0x1262   : > { %18766 = vmatmul.mubr.msk.bf16.vlgmr.msra.gmra.mrb[96].mxu0 %vm10483_vm4, %v13463_v43 }
0x1263   : > { %18769 = vmatprep.mubr.msk.bf16.mxu0 %vm10483_vm4, %v13464_v5  ;;  %18774 = vmatpush3.bf16.msra.mxu0 %v20223_v15 }
0x1264   : > { %18775 = vmatprep.subr.bf16.mxu0 %v20224_v61 }
0x1267   : > { %18776 = vmatpush3.bf16.msra.mxu0 %v20224_v61 }
0x1268   : > { %18785 = vmatprep.subr.bf16.mxu0 %v20225_v26 }
0x126a   : > { %18770 = vmatmul.mubr.msk.bf16.gmra.mrb[100].mxu0 %vm10483_vm4, %v13465_v20 }
0x126b   : > { %18777 = vmatprep.mubr.msk.bf16.mxu0 %vm10483_vm4, %v13576_v48 }
0x1272   : > { %18778 = vmatmul.mubr.msk.bf16.vlgmr.msra.gmra.mrb[96].mxu0 %vm10483_vm4, %v13577_v23 }
0x1273   : > { %18781 = vmatprep.mubr.msk.bf16.mxu0 %vm10483_vm4, %v13578_v55  ;;  %18786 = vmatpush3.bf16.msra.mxu0 %v20225_v26 }
0x1274   : > { %18787 = vmatprep.subr.bf16.mxu0 %v20226_v11 }
0x1277   : > { %18788 = vmatpush3.bf16.msra.mxu0 %v20226_v11 }
0x1278   : > { %18797 = vmatprep.subr.bf16.mxu0 %v20227_v3 }
0x127a   : > { %18782 = vmatmul.mubr.msk.bf16.gmra.mrb[100].mxu0 %vm10483_vm4, %v13579_v14 }
0x127b   : > { %18789 = vmatprep.mubr.msk.bf16.mxu0 %vm10483_vm4, %v13690_v63 }
0x1282   : > { %18790 = vmatmul.mubr.msk.bf16.vlgmr.msra.gmra.mrb[96].mxu0 %vm10483_vm4, %v13691_v57 }
0x1283   : > { %18793 = vmatprep.mubr.msk.bf16.mxu0 %vm10483_vm4, %v13692_v10  ;;  %18798 = vmatpush3.bf16.msra.mxu0 %v20227_v3 }
0x1284   : > { %18799 = vmatprep.subr.bf16.mxu0 %v20228_v51 }
0x1287   : > { %18800 = vmatpush3.bf16.msra.mxu0 %v20228_v51 }
0x1288   : > { %18809 = vmatprep.subr.bf16.mxu0 %v20229_v21 }
0x128a   : > { %18794 = vmatmul.mubr.msk.bf16.gmra.mrb[100].mxu0 %vm10483_vm4, %v13693_v32 }
0x128b   : > { %18801 = vmatprep.mubr.msk.bf16.mxu0 %vm10483_vm4, %v24176_v44  ;;  %v19043_v44 = vpack.c.bf16 %v14211_v37, %v14210_v1 }
0x1292   : > { %18802 = vmatmul.mubr.msk.bf16.vlgmr.msra.gmra.mrb[96].mxu0 %vm10483_vm4, %v24179_v34  ;;  %v14213_v34 = vld [vmem:[%s24847_s3 + $0x28] sm:$0xff] }
0x1293   : > { %18805 = vmatprep.mubr.msk.bf16.mxu0 %vm10483_vm4, %v24186_v42  ;;  %18810 = vmatpush3.bf16.msra.mxu0 %v20229_v21  ;;  %v19046_v13 = vpack.c.bf16 %v14213_v34, %v14212_v59  ;;  %v19052_v42 = vpack.c.bf16 %v14299_v41, %v14298_v62 }
0x1294   : > { %18811 = vmatprep.subr.bf16.mxu0 %v20230_v35 }
0x1295   : > { %19053 = vmatpush3.bf16.msra.mxu1 %v19052_v42 }
0x1296   : > { %18975 = vmatprep.subr.bf16.mxu1 %v24822_v6 }
0x1297   : > { %18812 = vmatpush3.bf16.msra.mxu0 %v20230_v35 }
0x1298   : > { %18821 = vmatprep.subr.bf16.mxu0 %v20231_v24 }
0x129a   : > { %18806 = vmatmul.mubr.msk.bf16.gmra.mrb[100].mxu0 %vm10483_vm4, %v13808_v53 }
0x129b   : > { %18813 = vmatprep.mubr.msk.bf16.mxu0 %vm10483_vm4, %v24148_v40  ;;  %v14032_v40 = vld [vmem:[#allocation7 + $0xe1] sm:$0xff] }
0x12a2   : > { %18814 = vmatmul.mubr.msk.bf16.vlgmr.msra.gmra.mrb[96].mxu0 %vm10483_vm4, %v24158_v60  ;;  %v14036_v60 = vpack.c.bf16 %v14032_v40, %v13689_v25 }
0x12a3   : > { %18817 = vmatprep.mubr.msk.bf16.mxu0 %vm10483_vm4, %v24171_v56  ;;  %18822 = vmatpush3.bf16.msra.mxu0 %v20231_v24  ;;  %v14208_v56 = vld [vmem:[%s24847_s3] sm:$0xff]  ;;  %s24851_s3 = sld [smem:[#allocation30_spill]] }
0x12a4   : > { %18823 = vmatprep.subr.bf16.mxu0 %v20232_v8  ;;  %v19040_v27 = vpack.c.bf16 %v14209_v2, %v14208_v56 }
0x12a7   : > { %18824 = vmatpush3.bf16.msra.mxu0 %v20232_v8 }
0x12a8   : > { %19039 = vmatprep.subr.bf16.mxu0 %v24840_v0 }
0x12aa   : > { %18818 = vmatmul.mubr.msk.bf16.gmra.mrb[100].mxu0 %vm10483_vm4, %v13922_v39 }
0x12ab   : > { %18825 = vmatprep.mubr.msk.bf16.mxu0 %vm10483_vm4, %v24191_v45 }
0x12b2   : > { %18826 = vmatmul.mubr.msk.bf16.vlgmr.msra.gmra.mrb[96].mxu0 %vm10483_vm4, %v24194_v47 }
0x12b3   : > { %18829 = vmatprep.mubr.msk.bf16.mxu0 %vm10483_vm4, %v24201_v46  ;;  %19041 = vmatpush3.bf16.msra.mxu0 %v19040_v27 }
0x12b4   : > { %19042 = vmatprep.subr.bf16.mxu0 %v24840_v0 }
0x12b7   : > { %19044 = vmatpush3.bf16.msra.mxu0 %v19043_v44 }
0x12b8   : > { %19045 = vmatprep.subr.bf16.mxu0 %v24840_v0 }
0x12ba   : > { %18830 = vmatmul.mubr.msk.bf16.gmra.mrb[100].mxu0 %vm10483_vm4, %v14036_v60 }
0x12bb   : > { %18849 = vmatprep.mubr.msk.f32.mxu0 %vm20392_vm5, %v24822_v6  ;;  %19047 = vmatpush3.bf16.msra.mxu0 %v19046_v13 }
0x12bc   : > { %19048 = vmatprep.subr.bf16.mxu0 %v24840_v0 }
0x12bf   : > { %19050 = vmatpush3.bf16.msra.mxu0 %v19049_v22 }
0x1385   : > { %v18827_v50 = vpop.f32.mrb[96].mxu0 }
0x1386   : > { %v14100_v36 = vpop.f32.mrb[97].mxu0  ;;  %v24278_v52 = vadd.f32 %v18827_v50, %v16623_v49 }
0x1387   : > { %v24280_v45 = vadd.f32 %v16623_v49, %v14100_v36  ;;  %v18828_v54 = vpop.f32.mrb[98].mxu0 }
0x1388   : > { %v14103_v47 = vpop.f32.mrb[99].mxu0  ;;  %v24284_v19 = vadd.f32 %v18828_v54, %v16623_v49  ;;  %v14180_v46 = vmul.f32 %v24278_v52, %v24278_v52  ;;  %v14160_v26 = vsel %vm14156_vm8, %v24278_v52, 0.0 }
0x1389   : > { %v14178_v15 = vmul.f32 %v24280_v45, %v24280_v45  ;;  %v24286_v30 = vadd.f32 %v16623_v49, %v14103_v47  ;;  %v14157_v4 = vsel %vm14156_vm8, %v24280_v45, 0.0 }
0x138a   : > { %v14181_v20 = vmul.f32 %v24284_v19, %v24284_v19  ;;  %v14189_v29 = vsel %vm14156_vm8, %v14180_v46, 0.0  ;;  %v14162_v14 = vsel %vm14156_vm8, %v24284_v19, 0.0 }
0x138b   : > { %v14158_v43 = vsel %vm14156_vm8, %v24286_v30, 0.0  ;;  %v14179_v61 = vmul.f32 %v24286_v30, %v24286_v30  ;;  %v14186_v16 = vsel %vm14156_vm8, %v14178_v15, 0.0 }
0x138c   : > { %v14159_v5 = vadd.f32 %v14158_v43, %v14157_v4  ;;  %v14191_v32 = vsel %vm14156_vm8, %v14181_v20, 0.0 }
0x138d   : > { %v14187_v48 = vsel %vm14156_vm8, %v14179_v61, 0.0  ;;  %v18831_v23 = vpop.f32.mrb[100].mxu0 }
0x138e   : > { %v14161_v11 = vadd.f32 %v14160_v26, %v14159_v5  ;;  %v14188_v55 = vadd.f32 %v14187_v48, %v14186_v16  ;;  %v14116_v3 = vpop.f32.mrb[101].mxu0  ;;  %v24307_v10 = vadd.f32 %v18831_v23, %v16623_v49 }
0x138f   : > { %v24305_v63 = vadd.f32 %v16623_v49, %v14116_v3  ;;  %v18832_v57 = vpop.f32.mrb[102].mxu0 }
0x1390   : > { %v14190_v51 = vadd.f32 %v14189_v29, %v14188_v55  ;;  %v14163_v21 = vadd.f32 %v14162_v14, %v14161_v11  ;;  %v14119_v25 = vpop.f32.mrb[103].mxu0  ;;  %v24316_v7 = vadd.f32 %v18832_v57, %v16623_v49  ;;  %v14184_v60 = vmul.f32 %v24307_v10, %v24307_v10  ;;  %v20233_v57 = vld [vmem:[%s24850_s6 + $0x20] sm:$0xff]  }
0x1391   : > { %v14164_v35 = vsel %vm14156_vm8, %v24305_v63, 0.0  ;;  %v14182_v24 = vmul.f32 %v24305_v63, %v24305_v63  ;;  %v24314_v33 = vadd.f32 %v16623_v49, %v14119_v25  ;;  %v14168_v27 = vsel %vm14156_vm8, %v24307_v10, 0.0  ;;  %18859 = vmatprep.subr.bf16.mxu0 %v20233_v57  ;;  %v20236_v25 = vld [vmem:[%s24850_s6 + $0x38] sm:$0xff]  }
0x1392   : > { %v14165_v53 = vadd.f32 %v14164_v35, %v14163_v21  ;;  %v14192_v8 = vadd.f32 %v14191_v32, %v14190_v51  ;;  %v14185_v37 = vmul.f32 %v24316_v7, %v24316_v7  ;;  %v14170_v34 = vsel %vm14156_vm8, %v24316_v7, 0.0  ;;  %v20234_v51 = vld [vmem:[%s24850_s6 + $0x28] sm:$0xff]   ;;  %v20235_v21 = vld [vmem:[%s24850_s6 + $0x30] sm:$0xff]   ;;  %v24345_v32 = vld [vmem:[%s24850_s6] sm:$0xff]  }
0x1393   : > { %v14193_v39 = vsel %vm14156_vm8, %v14182_v24, 0.0  ;;  %v14166_v40 = vsel %vm14156_vm8, %v24314_v33, 0.0  ;;  %v14183_v1 = vmul.f32 %v24314_v33, %v24314_v33  ;;  %v14197_v12 = vsel %vm14156_vm8, %v14184_v60, 0.0  ;;  %v14154_v35 = vld [vmem:[%s24851_s3] sm:$0x1] }
0x1394   : > { %v14194_v56 = vadd.f32 %v14193_v39, %v14192_v8  ;;  %v14167_v2 = vadd.f32 %v14166_v40, %v14165_v53  ;;  %v14199_v41 = vsel %vm14156_vm8, %v14185_v37, 0.0  ;;  %v14374_v24 = vrot.slane %v14154_v35, 7  ;;  %v14155_v60 = vld [vmem:[%s24851_s3 + $0x1] sm:$0x1]  ;;  %v14632_v35 = vld [vmem:[#allocation9 + $0x9] sm:$0xff]  ;;  %s24852_s3 = sld [smem:[#allocation34_spill]] }
0x1395   : > { %v14195_v59 = vsel %vm14156_vm8, %v14183_v1, 0.0 }
0x1396   : > { %v14169_v44 = vadd.f32 %v14168_v27, %v14167_v2  ;;  %v14196_v13 = vadd.f32 %v14195_v59, %v14194_v56 }
0x1398   : > { %v14171_v18 = vadd.f32 %v14170_v34, %v14169_v44  ;;  %v14198_v62 = vadd.f32 %v14197_v12, %v14196_v13 }
0x139a   : > { %v14172_v42 = vrot.slane %v14171_v18, 4  ;;  %v14200_v22 = vadd.f32 %v14199_v41, %v14198_v62 }
0x139c   : > { %v14173_v49 = vadd.f32 %v14172_v42, %v14171_v18  ;;  %v14201_v50 = vrot.slane %v14200_v22, 4 }
0x139e   : > { %v14174_v36 = vrot.slane %v14173_v49, 2  ;;  %v14202_v54 = vadd.f32 %v14201_v50, %v14200_v22 }
0x13a0   : > { %v14175_v47 = vadd.f32 %v14174_v36, %v14173_v49  ;;  %v14203_v15 = vrot.slane %v14202_v54, 2 }
0x13a2   : > { %v14176_v46 = vrot.slane %v14175_v47, 1  ;;  %v14204_v4 = vadd.f32 %v14203_v15, %v14202_v54 }
0x13a4   : > { %v14205_v43 = vrot.slane %v14204_v4, 1  ;;  %v14177_v61 = vadd.f32 %v14176_v46, %v14175_v47 }
0x13a6   : > { %v14206_v5 = vadd.f32 %v14205_v43, %v14204_v4 }
0x13a8   : > { %v14207_v26 = vsel %vm10654_vm6, %v14177_v61, %v14206_v5 }
0x13a9   : > { %18850 = vmatmul.mubr.msk.f32.vlgmr.msra.gmra.mrb[104].mxu0 %vm14156_vm8, %v14207_v26 }
0x13aa   : > { %18860 = vmatpush3.bf16.msra.mxu0 %v20233_v57  ;;  %v20239_v57 = vld [vmem:[%s24850_s6 + $0x10] sm:$0xff]  }
0x13ab   : > { %18861 = vmatprep.subr.bf16.mxu0 %v20234_v51 }
0x13ae   : > { %18862 = vmatpush3.bf16.msra.mxu0 %v20234_v51  ;;  %v20240_v51 = vld [vmem:[%s24850_s6 + $0x18] sm:$0xff]  }
0x13af   : > { %18863 = vmatprep.subr.bf16.mxu0 %v20235_v21 }
0x13b2   : > { %18864 = vmatpush3.bf16.msra.mxu0 %v20235_v21  ;;  %v20241_v21 = vld [vmem:[%s24850_s6 + $0x40] sm:$0xff]  }
0x13b3   : > { %18865 = vmatprep.subr.bf16.mxu0 %v20236_v25 }
0x13b6   : > { %18866 = vmatpush3.bf16.msra.mxu0 %v20236_v25 }
0x13b7   : > { %18871 = vmatprep.subr.bf16.mxu0 %v24345_v32 }
0x147c   : > { %v14285_v16 = vpop.f32.mrb[104].mxu0 }
0x147d   : > { %v14289_v20 = vmul.f32 0.00390625, %v14285_v16  ;;  %v18851_v48 = vpop.f32.mrb[105].mxu0 }
0x147f   : > { %v14290_v23 = vmul.f32 %v14289_v20, %v14289_v20 }
0x1481   : > { %v14292_v11 = vrot.slane %v14290_v23, 7  ;;  %v20238_v23 = vld [vmem:[%s24850_s6 + $0x8] sm:$0xff]  }
0x1483   : > { %v14294_v55 = vsub.f32 %v14289_v20, %v14292_v11 }
0x1485   : > { %v14295_v3 = vadd.f32 1e-05, %v14294_v55 }
0x1487   : > { %20286 = vrsqrt.f32 %v14295_v3 }
0x1491   : > { %v20287_v29 = vpop.eup %20286 }
0x1492   : > { %v14297_v14 = vsel %vm10654_vm6, %v14289_v20, %v20287_v29 }
0x1493   : > { %18857 = vmatmul.mubr.msk.f32.vlgmr.msra.gmra.mrb[92].mxu1 %vm1388_vm2, %v14297_v14 }
0x1494   : > { %18979 = vmatprep.mubr.msk.bf16.mxu1 %vm20392_vm5, %v24822_v6 }
0x1566   : > { %v14369_v53 = vpop.f32.mrb[92].mxu1 }
0x1567   : > { %v14376_v8 = vmul.f32 %v14374_v24, %v14369_v53  ;;  %v18858_v39 = vpop.f32.mrb[93].mxu1  ;;  %v20242_v24 = vld [vmem:[%s24850_s6 + $0x48] sm:$0xff]  }
0x1568   : > { %v20244_v39 = vld [vmem:[%s24850_s6 + $0x58] sm:$0xff]  }
0x1569   : > { %v14378_v40 = vrot.slane %v14376_v8, 1  ;;  %v14385_v56 = vrot.slane %v14376_v8, %v24845_v9  ;;  %v20243_v8 = vld [vmem:[%s24850_s6 + $0x50] sm:$0xff]  }
0x156b   : > { %v14380_v2 = vmul.f32 %v14378_v40, %v14369_v53  ;;  %v14386_v27 = vmul.f32 %v14385_v56, %v24280_v45  ;;  %v14387_v37 = vmul.f32 %v14385_v56, %v24286_v30  ;;  %v14388_v44 = vmul.f32 %v14385_v56, %v24278_v52  ;;  %v20245_v40 = vld [vmem:[%s24850_s6 + $0x60] sm:$0xff]  }
0x156c   : > { %v14389_v59 = vmul.f32 %v14385_v56, %v24284_v19  ;;  %v14390_v13 = vmul.f32 %v14385_v56, %v24305_v63  ;;  %v14391_v12 = vmul.f32 %v14385_v56, %v24314_v33  ;;  %v14392_v18 = vmul.f32 %v14385_v56, %v24307_v10  ;;  %v14459_v10 = vld [vmem:[#allocation9 + $0x8] sm:$0xff] }
0x156d   : > { %v14381_v1 = vsub.f32 %v14155_v60, %v14380_v2  ;;  %v14393_v62 = vmul.f32 %v14385_v56, %v24316_v7  ;;  %v14445_v7 = vld [vmem:[#allocation9 + $0x7] sm:$0xff] }
0x156f   : > { %v14397_v34 = vrot.slane %v14381_v1, %v24846_v31 }
0x1571   : > { %v14398_v41 = vadd.f32 %v14397_v34, %v14386_v27  ;;  %v14399_v42 = vadd.f32 %v14397_v34, %v14387_v37  ;;  %v14400_v22 = vadd.f32 %v14397_v34, %v14388_v44  ;;  %v14401_v45 = vadd.f32 %v14397_v34, %v14389_v59  ;;  %v20246_v27 = vld [vmem:[%s24850_s6 + $0x68] sm:$0xff]   ;;  %v20247_v44 = vld [vmem:[%s24850_s6 + $0x70] sm:$0xff]   ;;  %v20248_v59 = vld [vmem:[%s24850_s6 + $0x78] sm:$0xff]  }
0x1572   : > { %v14402_v49 = vadd.f32 %v14397_v34, %v14390_v13  ;;  %v14403_v30 = vadd.f32 %v14397_v34, %v14391_v12  ;;  %v14404_v50 = vadd.f32 %v14397_v34, %v14392_v18  ;;  %v14405_v52 = vadd.f32 %v14397_v34, %v14393_v62  ;;  %v20249_v34 = vld [vmem:[%s24850_s6 + $0x80] sm:$0xff]  }
0x1573   : > { %v14406_v36 = vmax.f32 %v14398_v41, 0.0  ;;  %v14407_v19 = vmax.f32 %v14399_v42, 0.0  ;;  %v14408_v54 = vmax.f32 %v14400_v22, 0.0  ;;  %v14409_v47 = vmax.f32 %v14401_v45, 0.0  ;;  %v20250_v42 = vld [vmem:[%s24850_s6 + $0x88] sm:$0xff]   ;;  %v20251_v45 = vld [vmem:[%s24850_s6 + $0x90] sm:$0xff]  }
0x1574   : > { %v14410_v15 = vmax.f32 %v14402_v49, 0.0  ;;  %v14411_v63 = vmax.f32 %v14403_v30, 0.0  ;;  %v14412_v46 = vmax.f32 %v14404_v50, 0.0  ;;  %v14413_v33 = vmax.f32 %v14405_v52, 0.0  ;;  %v20252_v49 = vld [vmem:[%s24850_s6 + $0x98] sm:$0xff]   ;;  %v20253_v30 = vld [vmem:[%s24850_s6 + $0xa0] sm:$0xff]  }
0x1575   : > { %14436 = vst.msk [vmem:[#allocation8 + $0x8] sm:$0xff] %vm14156_vm8, %v14406_v36  ;;  %14437 = vst.msk [vmem:[#allocation8 + $0x20] sm:$0xff] %vm14156_vm8, %v14408_v54 }
0x1576   : > { %14441 = vst.msk [vmem:[#allocation9 + $0x20] sm:$0xff] %vm14156_vm8, %v14407_v19  ;;  %14442 = vst.msk [vmem:[#allocation9 + $0x38] sm:$0xff] %vm14156_vm8, %v14409_v47  ;;  %v20254_v47 = vld [vmem:[%s24850_s6 + $0xa8] sm:$0xff]  }
0x1577   : > { %14438 = vst.msk [vmem:[#allocation8 + $0x38] sm:$0xff] %vm14156_vm8, %v14410_v15  ;;  %14439 = vst.msk [vmem:[#allocation8 + $0x50] sm:$0xff] %vm14156_vm8, %v14412_v46  ;;  %v20256_v46 = vld [vmem:[%s24850_s6 + $0xb8] sm:$0xff]  }
0x1578   : > { %14443 = vst.msk [vmem:[#allocation9 + $0x50] sm:$0xff] %vm14156_vm8, %v14411_v63  ;;  %14444 = vst.msk [vmem:[#allocation9 + $0x68] sm:$0xff] %vm14156_vm8, %v14413_v33  ;;  %v20255_v63 = vld [vmem:[%s24850_s6 + $0xb0] sm:$0xff]   ;;  %v20257_v33 = vld [vmem:[%s24850_s6 + $0xc0] sm:$0xff]  }
0x157c   : > { %v14730_v56 = vld [vmem:[#allocation8 + $0x7] sm:$0xff]  ;;  %v14731_v2 = vld [vmem:[#allocation8 + $0x1f] sm:$0xff] }
0x157d   : > { %v24404_v4 = vld [vmem:[#allocation9 + $0x20] sm:$0xff]  ;;  %v24406_v43 = vld [vmem:[#allocation9 + $0x38] sm:$0xff]  ;;  %v14734_v37 = vpack.c.bf16 %v14731_v2, %v14730_v56  ;;  %v14828_v18 = vld [vmem:[#allocation8 + $0x8] sm:$0xff] }
0x157e   : > { %v24408_v61 = vld [vmem:[#allocation9 + $0x1f] sm:$0xff]  ;;  %v14463_v5 = vpack.c.bf16 %v24404_v4, %v14459_v10  ;;  %v24413_v16 = vld [vmem:[#allocation9 + $0x37] sm:$0xff]  ;;  %v15126_v20 = vpack.c.bf16 %v24406_v43, %v24404_v4  ;;  %v14733_v12 = vld [vmem:[#allocation8 + $0x4f] sm:$0xff] }
0x157f   : > { %v24411_v26 = vld [vmem:[#allocation9 + $0x50] sm:$0xff]  ;;  %v24420_v11 = vld [vmem:[#allocation9 + $0x21] sm:$0xff]  ;;  %v24422_v55 = vld [vmem:[#allocation9 + $0x39] sm:$0xff]  ;;  %v15028_v3 = vpack.c.bf16 %v24413_v16, %v24408_v61  ;;  %v14449_v29 = vpack.c.bf16 %v24408_v61, %v14445_v7 }
0x1580   : > { %v14464_v48 = vpack.c.bf16 %v24411_v26, %v24406_v43  ;;  %18867 = vmatprep.mubr.msk.bf16.mxu0 %vm14156_vm8, %v14463_v5  ;;  %v15224_v14 = vpack.c.bf16 %v24422_v55, %v24420_v11  ;;  %v24436_v25 = vld [vmem:[#allocation9 + $0x4f] sm:$0xff]  ;;  %v14636_v53 = vpack.c.bf16 %v24420_v11, %v14632_v35  ;;  %v14732_v13 = vld [vmem:[#allocation8 + $0x37] sm:$0xff]  ;;  %v14829_v62 = vld [vmem:[#allocation8 + $0x20] sm:$0xff]  ;;  %v15319_v11 = vpack.c.bf16 %v24079_v17, %v24077_v28 }
0x1581   : > { %v24447_v60 = vld [vmem:[#allocation9 + $0x51] sm:$0xff]  ;;  %v14735_v41 = vpack.c.bf16 %v14733_v12, %v14732_v13  ;;  %v14832_v22 = vpack.c.bf16 %v14829_v62, %v14828_v18  ;;  %v14926_v36 = vld [vmem:[#allocation8 + $0x9] sm:$0xff]  ;;  %v14927_v19 = vld [vmem:[#allocation8 + $0x21] sm:$0xff] }
0x1582   : > { %18868 = vmatmul.mubr.msk.bf16.vlgmr.msra.gmra.mrb[108].mxu0 %vm14156_vm8, %v14464_v48  ;;  %v14637_v1 = vpack.c.bf16 %v24447_v60, %v24422_v55  ;;  %v14830_v50 = vld [vmem:[#allocation8 + $0x38] sm:$0xff]  ;;  %v14831_v52 = vld [vmem:[#allocation8 + $0x50] sm:$0xff]  ;;  %v14930_v15 = vpack.c.bf16 %v14927_v19, %v14926_v36  ;;  %v20258_v48 = vld [vmem:[%s24850_s6 + $0xc8] sm:$0xff]  }
0x1583   : > { %18872 = vmatpush3.bf16.msra.mxu0 %v24345_v32  ;;  %18879 = vmatprep.mubr.msk.bf16.mxu0 %vm14156_vm8, %v14449_v29  ;;  %v14450_v32 = vpack.c.bf16 %v24436_v25, %v24413_v16  ;;  %v14833_v54 = vpack.c.bf16 %v14831_v52, %v14830_v50  ;;  %v14928_v10 = vld [vmem:[#allocation8 + $0x39] sm:$0xff]  ;;  %v14929_v7 = vld [vmem:[#allocation8 + $0x51] sm:$0xff]  ;;  %v20262_v35 = vld [vmem:[%s24850_s6 + $0xe8] sm:$0xff]  }
0x1584   : > { %18873 = vmatprep.subr.bf16.mxu0 %v20238_v23  ;;  %v14931_v5 = vpack.c.bf16 %v14929_v7, %v14928_v10  ;;  %v20260_v29 = vld [vmem:[%s24850_s6 + $0xd8] sm:$0xff]   ;;  %v20263_v61 = vld [vmem:[%s24850_s6 + $0xf0] sm:$0xff]   ;;  %v20271_v56 = vld [vmem:[%s24853_s5] sm:$0xff]   ;;  %s24856_s5 = sld [smem:[#allocation37_spill]] }
0x1585   : > { %v20264_v16 = vld [vmem:[%s24850_s6 + $0xf8] sm:$0xff]   ;;  %v20267_v4 = vld [vmem:[%s24850_s6 + $0x110] sm:$0xff]  }
0x1586   : > { %v20268_v43 = vld [vmem:[%s24850_s6 + $0x118] sm:$0xff]  }
0x1587   : > { %18874 = vmatpush3.bf16.msra.mxu0 %v20238_v23  ;;  %v20259_v23 = vld [vmem:[%s24850_s6 + $0xd0] sm:$0xff]  }
0x1588   : > { %18875 = vmatprep.subr.bf16.mxu0 %v20239_v57 }
0x158b   : > { %18876 = vmatpush3.bf16.msra.mxu0 %v20239_v57  ;;  %v20261_v57 = vld [vmem:[%s24850_s6 + $0xe0] sm:$0xff]  }
0x158c   : > { %18877 = vmatprep.subr.bf16.mxu0 %v20240_v51 }
0x158f   : > { %18878 = vmatpush3.bf16.msra.mxu0 %v20240_v51  ;;  %v15027_v51 = vld [vmem:[#allocation9 + $0x67] sm:$0xff] }
0x1590   : > { %18883 = vmatprep.subr.bf16.mxu0 %v20241_v21 }
0x1592   : > { %18880 = vmatmul.mubr.msk.bf16.vlgmr.msra.gmra.mrb[108].mxu0 %vm14156_vm8, %v14450_v32 }
0x1593   : > { %18884 = vmatpush3.bf16.msra.mxu0 %v20241_v21  ;;  %18891 = vmatprep.mubr.msk.bf16.mxu0 %vm14156_vm8, %v14636_v53  ;;  %v15029_v21 = vpack.c.bf16 %v15027_v51, %v24436_v25  ;;  %v15125_v25 = vld [vmem:[#allocation9 + $0x68] sm:$0xff] }
0x1594   : > { %18885 = vmatprep.subr.bf16.mxu0 %v20242_v24  ;;  %v15127_v32 = vpack.c.bf16 %v15125_v25, %v24411_v26  ;;  %v15223_v26 = vld [vmem:[#allocation9 + $0x69] sm:$0xff] }
0x1595   : > { %v15225_v53 = vpack.c.bf16 %v15223_v26, %v24447_v60 }
0x1597   : > { %18886 = vmatpush3.bf16.msra.mxu0 %v20242_v24  ;;  %v20266_v24 = vld [vmem:[%s24850_s6 + $0x108] sm:$0xff]  }
0x1598   : > { %18887 = vmatprep.subr.bf16.mxu0 %v20243_v8 }
0x159b   : > { %18888 = vmatpush3.bf16.msra.mxu0 %v20243_v8  ;;  %v20270_v8 = vld [vmem:[%s24852_s3 + $0x8] sm:$0xff]  }
0x159c   : > { %18889 = vmatprep.subr.bf16.mxu0 %v20244_v39 }
0x159f   : > { %18890 = vmatpush3.bf16.msra.mxu0 %v20244_v39  ;;  %v15318_v39 = vpack.c.bf16 %v24052_v58, %v24054_v38 }
0x15a0   : > { %18895 = vmatprep.subr.bf16.mxu0 %v20245_v40 }
0x15a2   : > { %18892 = vmatmul.mubr.msk.bf16.vlgmr.msra.gmra.mrb[108].mxu0 %vm14156_vm8, %v14637_v1 }
0x15a3   : > { %18896 = vmatpush3.bf16.msra.mxu0 %v20245_v40  ;;  %18903 = vmatprep.mubr.msk.bf16.mxu0 %vm14156_vm8, %v14734_v37 }
0x15a4   : > { %18897 = vmatprep.subr.bf16.mxu0 %v20246_v27 }
0x15a7   : > { %18898 = vmatpush3.bf16.msra.mxu0 %v20246_v27 }
0x15a8   : > { %18899 = vmatprep.subr.bf16.mxu0 %v20247_v44 }
0x15ab   : > { %18900 = vmatpush3.bf16.msra.mxu0 %v20247_v44 }
0x15ac   : > { %18901 = vmatprep.subr.bf16.mxu0 %v20248_v59 }
0x15af   : > { %18902 = vmatpush3.bf16.msra.mxu0 %v20248_v59 }
0x15b0   : > { %18907 = vmatprep.subr.bf16.mxu0 %v20249_v34 }
0x15b2   : > { %18904 = vmatmul.mubr.msk.bf16.vlgmr.msra.gmra.mrb[108].mxu0 %vm14156_vm8, %v14735_v41 }
0x15b3   : > { %18908 = vmatpush3.bf16.msra.mxu0 %v20249_v34  ;;  %18915 = vmatprep.mubr.msk.bf16.mxu0 %vm14156_vm8, %v14832_v22 }
0x15b4   : > { %18909 = vmatprep.subr.bf16.mxu0 %v20250_v42 }
0x15b7   : > { %18910 = vmatpush3.bf16.msra.mxu0 %v20250_v42 }
0x15b8   : > { %18911 = vmatprep.subr.bf16.mxu0 %v20251_v45 }
0x15bb   : > { %18912 = vmatpush3.bf16.msra.mxu0 %v20251_v45 }
0x15bc   : > { %18913 = vmatprep.subr.bf16.mxu0 %v20252_v49 }
0x15bf   : > { %18914 = vmatpush3.bf16.msra.mxu0 %v20252_v49 }
0x15c0   : > { %18919 = vmatprep.subr.bf16.mxu0 %v20253_v30 }
0x15c2   : > { %18916 = vmatmul.mubr.msk.bf16.vlgmr.msra.gmra.mrb[108].mxu0 %vm14156_vm8, %v14833_v54 }
0x15c3   : > { %18920 = vmatpush3.bf16.msra.mxu0 %v20253_v30  ;;  %18927 = vmatprep.mubr.msk.bf16.mxu0 %vm14156_vm8, %v14930_v15 }
0x15c4   : > { %18921 = vmatprep.subr.bf16.mxu0 %v20254_v47 }
0x15c7   : > { %18922 = vmatpush3.bf16.msra.mxu0 %v20254_v47 }
0x15c8   : > { %18923 = vmatprep.subr.bf16.mxu0 %v20255_v63 }
0x15cb   : > { %18924 = vmatpush3.bf16.msra.mxu0 %v20255_v63 }
0x15cc   : > { %18925 = vmatprep.subr.bf16.mxu0 %v20256_v46 }
0x15cf   : > { %18926 = vmatpush3.bf16.msra.mxu0 %v20256_v46 }
0x15d0   : > { %18931 = vmatprep.subr.bf16.mxu0 %v20257_v33 }
0x15d2   : > { %18928 = vmatmul.mubr.msk.bf16.vlgmr.msra.gmra.mrb[108].mxu0 %vm14156_vm8, %v14931_v5 }
0x15d3   : > { %18932 = vmatpush3.bf16.msra.mxu0 %v20257_v33  ;;  %18939 = vmatprep.mubr.msk.bf16.mxu0 %vm14156_vm8, %v15028_v3  ;;  %v20265_v3 = vld [vmem:[%s24850_s6 + $0x100] sm:$0xff]   ;;  %s24854_s6 = sld [smem:[#allocation38_spill]] }
0x15d4   : > { %18933 = vmatprep.subr.bf16.mxu0 %v20258_v48 }
0x15d7   : > { %18934 = vmatpush3.bf16.msra.mxu0 %v20258_v48 }
0x15d8   : > { %18935 = vmatprep.subr.bf16.mxu0 %v20259_v23 }
0x15d9   : > { %v15478_v28 = vld [vmem:[%s24854_s6] sm:$0xff]  ;;  %v15479_v17 = vld [vmem:[%s24854_s6 + $0x8] sm:$0xff]  ;;  %v15480_v2 = vld [vmem:[%s24854_s6 + $0x10] sm:$0xff] }
0x15da   : > { %v19055_v1 = vpack.c.bf16 %v15479_v17, %v15478_v28  ;;  %v15481_v27 = vld [vmem:[%s24854_s6 + $0x18] sm:$0xff]  ;;  %v15482_v44 = vld [vmem:[%s24854_s6 + $0x20] sm:$0xff]  ;;  %v15483_v59 = vld [vmem:[%s24854_s6 + $0x28] sm:$0xff] }
0x15db   : > { %18936 = vmatpush3.bf16.msra.mxu0 %v20259_v23  ;;  %v19058_v37 = vpack.c.bf16 %v15481_v27, %v15480_v2  ;;  %v19061_v34 = vpack.c.bf16 %v15483_v59, %v15482_v44  ;;  %v15484_v13 = vld [vmem:[%s24854_s6 + $0x30] sm:$0xff]  ;;  %v15485_v12 = vld [vmem:[%s24854_s6 + $0x38] sm:$0xff]  ;;  %v15456_v17 = vld [vmem:[%s24856_s5 + $0x1] sm:$0x1] }
0x15dc   : > { %18937 = vmatprep.subr.bf16.mxu0 %v20260_v29  ;;  %v19064_v18 = vpack.c.bf16 %v15485_v12, %v15484_v13 }
0x15df   : > { %18938 = vmatpush3.bf16.msra.mxu0 %v20260_v29 }
0x15e0   : > { %18943 = vmatprep.subr.bf16.mxu0 %v20261_v57 }
0x15e2   : > { %18940 = vmatmul.mubr.msk.bf16.vlgmr.msra.gmra.mrb[108].mxu0 %vm14156_vm8, %v15029_v21 }
0x15e3   : > { %18944 = vmatpush3.bf16.msra.mxu0 %v20261_v57  ;;  %18951 = vmatprep.mubr.msk.bf16.mxu0 %vm14156_vm8, %v15126_v20  ;;  %v20269_v20 = vld [vmem:[%s24852_s3] sm:$0xff]   ;;  %s24855_s3 = sld [smem:[#allocation35_spill]] }
0x15e4   : > { %18945 = vmatprep.subr.bf16.mxu0 %v20262_v35 }
0x15e7   : > { %18946 = vmatpush3.bf16.msra.mxu0 %v20262_v35 }
0x15e8   : > { %18947 = vmatprep.subr.bf16.mxu0 %v20263_v61 }
0x15e9   : > { %v16748_v62 = vld [vmem:[%s24855_s3] ss:$0 sm:$0xff]  ;;  %s1089_s3 = sand.u32 1, %s20344_s1  }
0x15ea   : > { %s15758_s9 = scalar_lea.sflag [#allocation11], %s1089_s3 }
0x15eb   : > { %18948 = vmatpush3.bf16.msra.mxu0 %v20263_v61  ;;  %v15569_v61 = vld [vmem:[%s24713_s4] sm:$0xff] }
0x15ec   : > { %18949 = vmatprep.subr.bf16.mxu0 %v20264_v16 }
0x15ef   : > { %18950 = vmatpush3.bf16.msra.mxu0 %v20264_v16  ;;  %v15570_v16 = vld [vmem:[%s24713_s4 + $0x8] sm:$0xff]  ;;  %s16758_s4 = sshll.u32 %s20605_s0, 4  ;;  %s20393_s0 = smov [#allocation10]  }
0x15f0   : > { %18955 = vmatprep.subr.bf16.mxu0 %v20265_v3  ;;  %s24571_s8 = scalar_lea.hbm %s20582_s27, %s16758_s4  ;;  %s20294_s12 = sshll.u32 %s20393_s0, 4  ;;  %s20295_s12 = int_to_ptr.vmem [resolvable:$false] %s20294_s12 }
0x15f1   : > { %s20296_s13 = scalar_lea.vmem %s20295_s12, 32 }
0x15f2   : > { %18952 = vmatmul.mubr.msk.bf16.vlgmr.msra.gmra.mrb[108].mxu0 %vm14156_vm8, %v15127_v32 }
0x15f3   : > { %18956 = vmatpush3.bf16.msra.mxu0 %v20265_v3  ;;  %18963 = vmatprep.mubr.msk.bf16.mxu0 %vm14156_vm8, %v15224_v14  ;;  %v19067_v3 = vpack.c.bf16 %v15570_v16, %v15569_v61 }
0x15f4   : > { %18957 = vmatprep.subr.bf16.mxu0 %v20266_v24 }
0x15f7   : > { %18958 = vmatpush3.bf16.msra.mxu0 %v20266_v24 }
0x15f8   : > { %18959 = vmatprep.subr.bf16.mxu0 %v20267_v4 }
0x15fb   : > { %18960 = vmatpush3.bf16.msra.mxu0 %v20267_v4 }
0x15fc   : > { %18961 = vmatprep.subr.bf16.mxu0 %v20268_v43 }
0x15ff   : > { %18962 = vmatpush3.bf16.msra.mxu0 %v20268_v43 }
0x1600   : > { %18967 = vmatprep.subr.bf16.mxu0 %v20269_v20 }
0x1602   : > { %18964 = vmatmul.mubr.msk.bf16.vlgmr.msra.gmra.mrb[108].mxu0 %vm14156_vm8, %v15225_v53 }
0x1603   : > { %18968 = vmatpush3.bf16.msra.mxu0 %v20269_v20  ;;  %18971 = vmatprep.mubr.msk.bf16.mxu0 %vm10483_vm4, %v15318_v39  ;;  %v20272_v39 = vld [vmem:[%s20572_s30] sm:$0xff]  }
0x1604   : > { %18969 = vmatprep.subr.bf16.mxu0 %v20270_v8 }
0x1607   : > { %18970 = vmatpush3.bf16.msra.mxu0 %v20270_v8 }
0x160e   : > { %18972 = vmatmul.mubr.msk.bf16.vlgmr.msra.gmra.mrb[108].mxu0 %vm10483_vm4, %v15319_v11  ;;  %v20273_v11 = vld [vmem:[%s20572_s30 + $0x8] sm:$0xff]  }
0x16e1   : > { %v18973_v55 = vpop.f32.mrb[108].mxu0 }
0x16e2   : > { %v15376_v14 = vpop.f32.mrb[109].mxu0 }
0x16e3   : > { %v18974_v58 = vpop.f32.mrb[110].mxu0 }
0x16e4   : > { %v15398_v38 = vpack.c.bf16 %v18974_v58, %v18973_v55  ;;  %v15379_v40 = vpop.f32.mrb[111].mxu0  ;;  %v20274_v55 = vld [vmem:[%s20572_s30 + $0x10] sm:$0xff]   ;;  %v15455_v58 = vld [vmem:[%s24856_s5] sm:$0x1]  ;;  %s1090_s5 = scalar_lea.vmem [#allocation10], %s1089_s3 }
0x16e5   : > { %v15397_v60 = vpack.c.bf16 %v15379_v40, %v15376_v14  ;;  %v20275_v14 = vld [vmem:[%s20572_s30 + $0x18] sm:$0xff]   ;;  %s15770_s6 = sshll.u32 %s1090_s5, 4  ;;  %s24573_s6 = int_to_ptr.vmem [resolvable:$true] %s15770_s6 }
0x16e6   : > { %s20290_s10 = scalar_lea.vmem %s24573_s6, 16  ;;  %p20297_p0 = scmp.lt.s32.totalorder %s24573_s6, %s20295_s12 }
0x16e7   : > { %18976 = vmatpush3.bf16.msra.mxu1 %v15397_v60  ;;  %p20291_p11 = scmp.ne.s32.totalorder %s24573_s6, %s20290_s10  ;;  %p20298_p1 = scmp.lt.s32.totalorder %s20296_s13, %s20290_s10 }
0x16e8   : > { %18977 = vmatprep.subr.bf16.mxu1 %v24822_v6 }
0x16e9   : > { %p20292_p12 = pnand %p20291_p11, %p20622_p5  ;;  %p20299_p2 = por %p20298_p1, %p20297_p0 }
0x16eb   : > { %18978 = vmatpush3.bf16.msra.mxu1 %v15398_v38  ;;  %v15645_v38 = vrot.slane %v15455_v58, 7  ;;  %p20293_p13 = pneg %p20292_p12 }
0x16ec   : > { %19054 = vmatprep.subr.bf16.mxu1 %v24840_v0 }
0x16ed   : > { %p20300_p3 = pnand %p20299_p2, %p20293_p13 }
0x16ee   : > { %18980 = vmatmul.mubr.msk.bf16.vlgmr.msra.gmra.mrb[96].mxu1 %vm10483_vm4, %v20271_v56 }
0x16ef   : > { %18999 = vmatprep.mubr.msk.f32.mxu1 %vm20392_vm5, %v24822_v6  ;;  %19056 = vmatpush3.bf16.msra.mxu1 %v19055_v1 }
0x16f0   : > { %19057 = vmatprep.subr.bf16.mxu1 %v24840_v0 }
0x16f3   : > { %19059 = vmatpush3.bf16.msra.mxu1 %v19058_v37 }
0x16f4   : > { %19060 = vmatprep.subr.bf16.mxu1 %v24840_v0 }
0x16f7   : > { %19062 = vmatpush3.bf16.msra.mxu1 %v19061_v34 }
0x16f8   : > { %19063 = vmatprep.subr.bf16.mxu1 %v24840_v0 }
0x16fb   : > { %19065 = vmatpush3.bf16.msra.mxu1 %v19064_v18 }
0x16fc   : > { %19066 = vmatprep.subr.bf16.mxu1 %v24840_v0 }
0x17c1   : > { %v15448_v41 = vpop.f32.mrb[96].mxu1 }
0x17c2   : > { %v24526_v42 = vadd.f32 %v16748_v62, %v15448_v41  ;;  %v18981_v22 = vpop.f32.mrb[97].mxu1 }
0x17c3   : > { %v15451_v45 = vpop.f32.mrb[98].mxu1 }
0x17c4   : > { %v15466_v49 = vmul.f32 %v24526_v42, %v24526_v42  ;;  %v24530_v30 = vadd.f32 %v16748_v62, %v15451_v45  ;;  %v18982_v50 = vpop.f32.mrb[99].mxu1  ;;  %v15457_v52 = vsel %vm14156_vm8, %v24526_v42, 0.0 }
0x17c6   : > { %v15458_v36 = vsel %vm14156_vm8, %v24530_v30, 0.0  ;;  %v15467_v0 = vmul.f32 %v24530_v30, %v24530_v30  ;;  %v15468_v54 = vsel %vm14156_vm8, %v15466_v49, 0.0 }
0x17c7   : > { %v15459_v19 = vadd.f32 %v15458_v36, %v15457_v52  ;;  %v15687_v52 = vld [vmem:[%s20577_s20] sm:$0x1] }
0x17c8   : > { %v15469_v47 = vsel %vm14156_vm8, %v15467_v0, 0.0 }
0x17c9   : > { %v15460_v15 = vrot.slane %v15459_v19, 4  ;;  %v15470_v63 = vadd.f32 %v15469_v47, %v15468_v54 }
0x17cb   : > { %v15461_v46 = vadd.f32 %v15460_v15, %v15459_v19  ;;  %v15471_v33 = vrot.slane %v15470_v63, 4 }
0x17cd   : > { %v15462_v10 = vrot.slane %v15461_v46, 2  ;;  %v15472_v7 = vadd.f32 %v15471_v33, %v15470_v63 }
0x17cf   : > { %v15463_v5 = vadd.f32 %v15462_v10, %v15461_v46  ;;  %v15473_v48 = vrot.slane %v15472_v7, 2 }
0x17d1   : > { %v15464_v23 = vrot.slane %v15463_v5, 1  ;;  %v15474_v29 = vadd.f32 %v15473_v48, %v15472_v7 }
0x17d3   : > { %v15475_v57 = vrot.slane %v15474_v29, 1  ;;  %v15465_v51 = vadd.f32 %v15464_v23, %v15463_v5 }
0x17d5   : > { %v15476_v21 = vadd.f32 %v15475_v57, %v15474_v29 }
0x17d7   : > { %v15477_v35 = vsel %vm10654_vm6, %v15465_v51, %v15476_v21 }
0x17d8   : > { %19000 = vmatmul.mubr.msk.f32.vlgmr.msra.gmra.mrb[94].mxu1 %vm14156_vm8, %v15477_v35 }
0x17d9   : > { %19006 = vmatprep.mubr.msk.f32.mxu1 %vm20392_vm5, %v24822_v6  ;;  %19068 = vmatpush3.bf16.msra.mxu1 %v19067_v3 }
0x17da   : > { %19009 = vmatprep.subr.bf16.mxu1 %v24822_v6 }
0x18ab   : > { %v15555_v25 = vpop.f32.mrb[94].mxu1 }
0x18ac   : > { %v15560_v32 = vmul.f32 0.015625, %v15555_v25  ;;  %v19001_v24 = vpop.f32.mrb[95].mxu1 }
0x18ae   : > { %v15561_v4 = vmul.f32 %v15560_v32, %v15560_v32 }
0x18b0   : > { %v15563_v43 = vrot.slane %v15561_v4, 7 }
0x18b2   : > { %v15565_v20 = vsub.f32 %v15560_v32, %v15563_v43 }
0x18b4   : > { %v15566_v26 = vadd.f32 1e-05, %v15565_v20 }
0x18b6   : > { %20288 = vrsqrt.f32 %v15566_v26 }
0x18c0   : > { %v20289_v53 = vpop.eup %20288 }
0x18c1   : > { %v15568_v8 = vsel %vm10654_vm6, %v15560_v32, %v20289_v53 }
0x18c2   : > { %19007 = vmatmul.mubr.msk.f32.vlgmr.msra.gmra.mrb[100].mxu1 %vm1388_vm2, %v15568_v8 }
0x18c3   : > { %19017 = vmatprep.mubr.msk.bf16.mxu1 %vm20392_vm5, %v24822_v6  ;;  %19010 = vmatpush3.bf16.msra.mxu1 %v20272_v39 }
0x18c4   : > { %19011 = vmatprep.subr.bf16.mxu1 %v24822_v6 }
0x18c7   : > { %19012 = vmatpush3.bf16.msra.mxu1 %v20273_v11 }
0x18c8   : > { %19013 = vmatprep.subr.bf16.mxu1 %v24822_v6 }
0x18cb   : > { %19014 = vmatpush3.bf16.msra.mxu1 %v20274_v55 }
0x18cc   : > { %19015 = vmatprep.subr.bf16.mxu1 %v24822_v6 }
0x18cf   : > { %19016 = vmatpush3.bf16.msra.mxu1 %v20275_v14 }
0x1995   : > { %v15640_v40 = vpop.f32.mrb[100].mxu1 }
0x1996   : > { %v15647_v60 = vmul.f32 %v15645_v38, %v15640_v40  ;;  %v19008_v56 = vpop.f32.mrb[101].mxu1 }
0x1998   : > { %v15649_v28 = vrot.slane %v15647_v60, 1  ;;  %v15656_v1 = vrot.slane %v15647_v60, %v24845_v9 }
0x199a   : > { %v15651_v2 = vmul.f32 %v15649_v28, %v15640_v40  ;;  %v15657_v37 = vmul.f32 %v15656_v1, %v24526_v42  ;;  %v15658_v44 = vmul.f32 %v15656_v1, %v24530_v30 }
0x199c   : > { %v15652_v27 = vsub.f32 %v15456_v17, %v15651_v2 }
0x199e   : > { %v15662_v59 = vrot.slane %v15652_v27, %v24846_v31 }
0x19a0   : > { %v15663_v34 = vadd.f32 %v15662_v59, %v15657_v37  ;;  %v15664_v6 = vadd.f32 %v15662_v59, %v15658_v44 }
0x19a2   : > { %v15665_v13 = vmax.f32 %v15663_v34, 0.0  ;;  %v15666_v12 = vmax.f32 %v15664_v6, 0.0 }
0x19a4   : > { %v15667_v18 = vsel %vm14156_vm8, %v15665_v13, 0.0  ;;  %v15668_v62 = vsel %vm14156_vm8, %v15666_v12, 0.0 }
0x19a5   : > { %v15669_v41 = vadd.f32 %v15668_v62, %v15667_v18 }
0x19a7   : > { %v15670_v9 = vrot.slane %v15669_v41, 4 }
0x19a9   : > { %v15671_v22 = vadd.f32 %v15670_v9, %v15669_v41 }
0x19ab   : > { %v15672_v45 = vrot.slane %v15671_v22, 2 }
0x19ad   : > { %v15673_v42 = vadd.f32 %v15672_v45, %v15671_v22 }
0x19af   : > { %v15674_v49 = vrot.slane %v15673_v42, 1 }
0x19b1   : > { %v15675_v30 = vadd.f32 %v15674_v49, %v15673_v42 }
0x19b3   : > { %v15677_v31 = vmul.f32 0.0625, %v15675_v30 }
0x19b5   : > { %v15678_v50 = vpack.c.bf16 %v15677_v31, %v15677_v31 }
0x19b7   : > { %19018 = vmatmul.mubr.msk.bf16.vlgmr.msra.gmra.mrb[104].mxu1 %vm14156_vm8, %v15678_v50 }
0x1a8a   : > { %v15749_v36 = vpop.f32.mrb[104].mxu1 }
0x1a8b   : > { %v15750_v0 = vadd.f32 %v15749_v36, %v15687_v52  ;;  %v19019_v19 = vpop.f32.mrb[105].mxu1 }
0x1a8c   : > { %v15752_v54 = vpop.f32.mrb[106].mxu1 }
0x1a8d   : > { %v19020_v47 = vpop.f32.mrb[107].mxu1  ;;  %15756 = vst.msk [vmem:[%s1090_s5] sm:$0x1] %vm15755_vm10, %v15750_v0 }
0x1a8e   : > { %20303 = shalt.err (!%p20300_p3)
}
0x1a8f   : > { %s20304_s4 = scalar_lea.hbm %s24571_s8, 16  ;;  %s20308_s5 = scalar_lea.hbm %s20582_s27, 32 }
0x1a90   : > { %p20305_p4 = scmp.ne.s32.totalorder %s24571_s8, %s20304_s4  ;;  %p20309_p9 = scmp.lt.u32.totalorder %s24571_s8, %s20582_s27 }
0x1a91   : > { %p20310_p10 = scmp.lt.u32.totalorder %s20308_s5, %s20304_s4  ;;  %p20312_p12 = scmp.lt.u32.totalorder %s20304_s4, %s24571_s8 }
0x1a92   : > { %p20306_p7 = pnand %p20305_p4, %p20622_p5 }
0x1a93   : > { %p20311_p11 = por %p20310_p10, %p20309_p9 }
0x1a94   : > { %p20307_p8 = pneg %p20306_p7 }
0x1a95   : > { %p20313_p0 = por %p20312_p12, %p20311_p11 }
0x1a97   : > { %p20314_p13 = pnand %p20313_p0, %p20307_p8 }
0x1a99   : > { %20317 = shalt.err (!%p20314_p13)
}
0x1a9a   : > { %20084 = dma.vmem_to_hbm [thread:$0]  (%p20622_p5), %s24573_s6, 16, %s24571_s8, %s15758_s9  }
0x1a9b PF: > { %p20090_p1 = scmp.ge.s32.totalorder %s20352_s7, 2  ;;  %s15782_s13 = sand.u32 1, %s20340_s28  }
0x1a9c   : > { %s15783_s12 = scalar_lea.sflag [#allocation11], %s15782_s13 }
0x1a9d   : > { %p20087_p2 = pnand %p20090_p1, %p20626_p6 }
0x1a9f   : > { %20335 = dma.done.wait (!%p20087_p2), %s15783_s12, 16  }
0x1aa0   : > { %20337 = vsyncadd (!%p20087_p2), %s15783_s12, 4294967280  ;;  %p83_p3 = scmp.ge.s32.totalorder %s20609_s11, 4   ;;  %s24857_s28 = smov %s20344_s1 }
0x1aa1   : > { %s24858_s1 = smov %s20348_s2  ;;  %s24859_s2 = smov %s20620_s18 }
0x1aa2   : > { %s24860_s7 = smov %s20609_s11  ;;  %85 = sbr.rel (!%p83_p3) target bundleno = 72 (0x48), region = 297 }
0x1aa9   :  { %15787 = vsyncpa [#allocation11], 1 }
0x1aaa   :  { %15789 = vsyncpa [#allocation11 + $0x1], 1 }

</bundles_post_ra>
